<compile_context>
chip_gen: v5e
topology: v5e:2x2
jax: 0.10.0
libtpu: 0.0.40
codegen_flags: <defaults>
</compile_context>

<pallas_src>
import functools
import math

import jax
import jax.numpy as jnp
from jax import lax
from jax.experimental import pallas as pl
from jax.experimental.pallas import tpu as pltpu

BN_EPS = 1e-5
LANES = 128


def _round_up(x, m):
    return ((x + m - 1) // m) * m


# ----------------------------------------------------------------------------
# Fused Pallas kernel:  out = act( (A @ B) * scale + shift [+ residual] )
# ----------------------------------------------------------------------------
def _fused_matmul_kernel(*refs, relu, has_residual):
    if has_residual:
        a_ref, b_ref, s_ref, t_ref, r_ref, o_ref = refs
    else:
        a_ref, b_ref, s_ref, t_ref, o_ref = refs
        r_ref = None
    y = jnp.dot(a_ref[...], b_ref[...], preferred_element_type=jnp.float32)
    y = y * s_ref[...] + t_ref[...]          # fused inference BatchNorm
    if has_residual:
        y = y + r_ref[...]                   # fused residual add
    if relu:
        y = jnp.maximum(y, 0.0)              # fused ReLU
    o_ref[...] = y


_TM_CANDIDATES = (1024, 512, 256, 128, 64, 32, 16, 8)


def _pick_tm(M, K, cap_bytes=2 << 20):
    """Largest M-tile that divides M, keeps the A tile <= ~2 MiB and (when
    possible) leaves >= 2 grid steps for megacore sharding."""
    for tm in _TM_CANDIDATES:
        if tm < M and M % tm == 0 and tm * K * 4 <= cap_bytes:
            return tm
    return M  # small M: single full-extent block (always a legal block shape)


def fused_matmul_bn(A, B, scale, shift, *, relu, residual=None):
    """A: (M, K) f32, B: (K, Np) f32 with Np % 128 == 0, scale/shift: (1, Np),
    residual: optional (M, Np).  Returns (M, Np) f32 (lane-dense output)."""
    M, K = A.shape
    K2, Np = B.shape
    assert K == K2 and Np % LANES == 0
    tm = _pick_tm(M, K)
    in_specs = [
        pl.BlockSpec((tm, K), lambda i: (i, 0)),
        pl.BlockSpec((K, Np), lambda i: (0, 0)),     # loop-invariant weight block
        pl.BlockSpec((1, Np), lambda i: (0, 0)),
        pl.BlockSpec((1, Np), lambda i: (0, 0)),
    ]
    args = [A, B, scale, shift]
    if residual is not None:
        in_specs.append(pl.BlockSpec((tm, Np), lambda i: (i, 0)))
        args.append(residual)
    return pl.pallas_call(
        functools.partial(_fused_matmul_kernel, relu=relu,
                          has_residual=residual is not None),
        out_shape=jax.ShapeDtypeStruct((M, Np), jnp.float32),
        grid=(M // tm,),
        in_specs=in_specs,
        out_specs=pl.BlockSpec((tm, Np), lambda i: (i, 0)),
        compiler_params=pltpu.CompilerParams(
            dimension_semantics=("parallel",),
            vmem_limit_bytes=32 * 1024 * 1024),
    )(*args)


# ----------------------------------------------------------------------------
# Conv3d (+BN +residual +ReLU) = channels-last im2col + one fused Pallas call
# ----------------------------------------------------------------------------
def fused_conv_bn(x, w, stride, padding, *, relu, residual=None):
    """x: (N, D, H, W, Cx) channels-last; Cx may be zero-padded beyond the
    conv's true Cin.  w: (Cout, Cin, kd, kh, kw) (PyTorch layout).
    residual: optional (N, Do, Ho, Wo, Np).
    Returns (N, Do, Ho, Wo, Np), Np = round_up(Cout, 128); padded channels are 0.
    """
    N, D, H, W, Cx = x.shape
    Cout, Cin, kd, kh, kw = w.shape
    if Cx != Cin:
        x = x[..., :Cin]                       # drop zero-padded lanes for im2col
    sd, sh, sw = stride
    pd, ph, pw = padding
    Do = (D + 2 * pd - kd) // sd + 1
    Ho = (H + 2 * ph - kh) // sh + 1
    Wo = (W + 2 * pw - kw) // sw + 1
    xp = jnp.pad(x, ((0, 0), (pd, pd), (ph, ph), (pw, pw), (0, 0)))

    # TODO(synk): im2col patches are still materialized in HBM (kd*kh*kw
    # expansion); a streaming tap-reduction grid (element-offset index maps)
    # would avoid it, but the known-correct tap ordering is kept here.
    cols = []
    for i in range(kd):
        for j in range(kh):
            for k in range(kw):
                cols.append(xp[:,
                                i:i + sd * (Do - 1) + 1:sd,
                                j:j + sh * (Ho - 1) + 1:sh,
                                k:k + sw * (Wo - 1) + 1:sw, :])
    A = jnp.stack(cols, axis=4).reshape(N * Do * Ho * Wo, kd * kh * kw * Cin)

    Np = _round_up(Cout, LANES)
    B = jnp.transpose(w, (2, 3, 4, 1, 0)).reshape(kd * kh * kw * Cin, Cout)
    B = jnp.pad(B, ((0, 0), (0, Np - Cout)))   # zero cols -> padded outputs are 0

    # Inference BatchNorm3d with __init__ parameters.
    scale = jnp.full((1, Np), 1.0 / math.sqrt(1.0 + BN_EPS), jnp.float32)
    shift = jnp.zeros((1, Np), jnp.float32)

    res2d = None
    if residual is not None:
        res2d = residual.reshape(N * Do * Ho * Wo, Np)

    out = fused_matmul_bn(A, B, scale, shift, relu=relu, residual=res2d)
    return out.reshape(N, Do, Ho, Wo, Np)


# ----------------------------------------------------------------------------
# CBAM attention (tiny matmuls / Cout=1 conv: plain XLA per perf review)
# ----------------------------------------------------------------------------
def channel_attention(x, fc1_w, fc2_w):
    """Both pool branches are AdaptiveAvgPool2d(1): average over (H, W)."""
    N, D, H, W, Cp = x.shape
    pooled = jnp.mean(x, axis=(2, 3))                      # (N, D, Cp)
    r, cin = fc1_w.shape[0], fc1_w.shape[1]
    w1 = jnp.pad(fc1_w.reshape(r, cin).T, ((0, Cp - cin), (0, 0)))  # (Cp, r)
    w2 = jnp.pad(fc2_w.reshape(cin, r).T, ((0, 0), (0, Cp - cin)))  # (r, Cp)
    v = pooled.reshape(N * D, Cp)
    h = jnp.maximum(v @ w1, 0.0)
    att = jax.nn.sigmoid(2.0 * (h @ w2))                   # avg_out + max_out (identical)
    return att.reshape(N, D, 1, 1, Cp)


def spatial_attention(x, conv_w, c_true):
    # x >= 0 here, so the max over the zero-padded channels equals the max over
    # the real channels; the mean uses the true channel count.
    avg_out = jnp.sum(x, axis=-1, keepdims=True) / float(c_true)
    max_out = jnp.max(x, axis=-1, keepdims=True)
    cat = jnp.concatenate([avg_out, max_out], axis=-1)     # (N, D, H, W, 2)
    w = jnp.transpose(conv_w, (2, 3, 4, 1, 0))             # DHWIO, Cout=1
    out = lax.conv_general_dilated(
        cat, w, window_strides=(1, 1, 1),
        padding=((3, 3), (3, 3), (3, 3)),
        dimension_numbers=("NDHWC", "DHWIO", "NDHWC"))
    return jax.nn.sigmoid(out)                             # (N, D, H, W, 1)


def maxpool3d_k3s2p1(x):
    # TODO(synk): MaxPool3d left as lax.reduce_window (-inf padding, like PyTorch).
    return lax.reduce_window(
        x, -jnp.inf, lax.max,
        window_dimensions=(1, 3, 3, 3, 1),
        window_strides=(1, 2, 2, 2, 1),
        padding=((0, 0), (1, 1), (1, 1), (1, 1), (0, 0)))


# ----------------------------------------------------------------------------
# ResNet3d (BasicBlock, layers=[1,1,1,1], block_inplanes=[16,32,64,128])
# ----------------------------------------------------------------------------
def basic_block(x, p, stride):
    s = (stride, stride, stride)
    h = fused_conv_bn(x, p["conv1_w"], s, (1, 1, 1), relu=True)
    if "ds_w" in p:
        res = fused_conv_bn(x, p["ds_w"], s, (0, 0, 0), relu=False)
    else:
        res = x
    # conv2 + BN + residual add + final ReLU in a single fused Pallas pass.
    return fused_conv_bn(h, p["conv2_w"], (1, 1, 1), (1, 1, 1),
                         relu=True, residual=res)


def forward(params, x_ncdhw):
    # Single layout change at the API boundary: NCDHW -> channels-last NDHWC.
    x = jnp.transpose(x_ncdhw, (0, 2, 3, 4, 1))
    c0 = params["conv1_w"].shape[0]                        # 16

    x = fused_conv_bn(x, params["conv1_w"], (1, 2, 2), (3, 3, 3), relu=True)
    x = channel_attention(x, params["ca_fc1_w"], params["ca_fc2_w"]) * x
    x = spatial_attention(x, params["sa_conv_w"], c0) * x
    x = maxpool3d_k3s2p1(x)

    x = basic_block(x, params["layer1"], 1)
    x = basic_block(x, params["layer2"], 2)
    x = basic_block(x, params["layer3"], 2)
    x = basic_block(x, params["layer4"], 2)

    c4 = params["layer4"]["conv2_w"].shape[0]              # 128 (== lane width)
    feat = jnp.mean(x, axis=(1, 2, 3))[:, :c4]             # AdaptiveAvgPool3d + flatten
    # Tiny head matmuls (M = batch) stay on plain XLA, not the MXU kernel.
    h = feat @ params["fc1_w"] + params["fc1_b"]
    return h @ params["fc2_w"] + params["fc2_b"]


# ----------------------------------------------------------------------------
# Deterministic parameter initialization (matches the module's __init__ shapes)
# ----------------------------------------------------------------------------
def _kaiming_conv(key, cout, cin, kd, kh, kw):
    fan_out = cout * kd * kh * kw
    std = math.sqrt(2.0 / fan_out)
    return std * jax.random.normal(key, (cout, cin, kd, kh, kw), jnp.float32)


def _linear(key, fan_in, fan_out):
    kw_, kb_ = jax.random.split(key)
    bound = 1.0 / math.sqrt(fan_in)
    w = jax.random.uniform(kw_, (fan_in, fan_out), jnp.float32, -bound, bound)
    b = jax.random.uniform(kb_, (fan_out,), jnp.float32, -bound, bound)
    return w, b


def init_params(key):
    C0, C1, C2, C3 = 16, 32, 64, 128   # block_inplanes
    keys = list(jax.random.split(key, 16))
    it = iter(keys)
    p = {}
    p["conv1_w"] = _kaiming_conv(next(it), C0, 1, 7, 7, 7)
    p["ca_fc1_w"] = _kaiming_conv(next(it), C0 // 16, C0, 1, 1, 1)
    p["ca_fc2_w"] = _kaiming_conv(next(it), C0, C0 // 16, 1, 1, 1)
    p["sa_conv_w"] = _kaiming_conv(next(it), 1, 2, 7, 7, 7)

    def make_block(k, cin, cout, stride):
        k1, k2, k3 = jax.random.split(k, 3)
        blk = {"conv1_w": _kaiming_conv(k1, cout, cin, 3, 3, 3),
               "conv2_w": _kaiming_conv(k2, cout, cout, 3, 3, 3)}
        if stride != 1 or cin != cout:
            blk["ds_w"] = _kaiming_conv(k3, cout, cin, 1, 1, 1)
        return blk

    p["layer1"] = make_block(next(it), C0, C0, 1)
    p["layer2"] = make_block(next(it), C0, C1, 2)
    p["layer3"] = make_block(next(it), C1, C2, 2)
    p["layer4"] = make_block(next(it), C2, C3, 2)
    p["fc1_w"], p["fc1_b"] = _linear(next(it), C3, 400)
    p["fc2_w"], p["fc2_b"] = _linear(next(it), 400, 2)
    return p


if __name__ == "__main__":
    key = jax.random.PRNGKey(0)
    kp, kx = jax.random.split(key)
    params = init_params(kp)
    # Small input consistent with the module: (batch=2, channels=1, D=H=W=16)
    x = jax.random.normal(kx, (2, 1, 16, 16, 16), jnp.float32)

    fwd = jax.jit(forward)
    out = jax.block_until_ready(fwd(params, x))
    assert out.shape == (2, 2), out.shape
    assert bool(jnp.all(jnp.isfinite(out)))
    print("KERNEL_OK")
</pallas_src>

<mosaic_0001>
module attributes {stable_mosaic.version = 11 : i64} {
  func.func @_fused_matmul_kernel(%arg0: i32, %arg1: memref<1024x343xf32, #tpu.memory_space<vmem>>, %arg2: memref<343x128xf32, #tpu.memory_space<vmem>>, %arg3: memref<1x128xf32, #tpu.memory_space<vmem>>, %arg4: memref<1x128xf32, #tpu.memory_space<vmem>>, %arg5: memref<1024x128xf32, #tpu.memory_space<vmem>>) attributes {dimension_semantics = [#tpu.dimension_semantics<parallel>], iteration_bounds = array<i64: 2>, scalar_prefetch = 0 : i64, scratch_operands = 0 : i64, tpu.core_type = #tpu.core_type<tc>, window_params = [{transform_indices = @transform_0, window_bounds = array<i64: 1024, 343>}, {pipeline_mode = #tpu.pipeline_mode<synchronous>, transform_indices = @transform_1, window_bounds = array<i64: 343, 128>}, {pipeline_mode = #tpu.pipeline_mode<synchronous>, transform_indices = @transform_2, window_bounds = array<i64: 1, 128>}, {pipeline_mode = #tpu.pipeline_mode<synchronous>, transform_indices = @transform_3, window_bounds = array<i64: 1, 128>}, {transform_indices = @transform_4, window_bounds = array<i64: 1024, 128>}]} {
    %c0 = arith.constant 0 : index
    %c0_0 = arith.constant 0 : index
    %0 = vector.load %arg1[%c0, %c0_0] : memref<1024x343xf32, #tpu.memory_space<vmem>>, vector<1024x343xf32>
    %c0_1 = arith.constant 0 : index
    %c0_2 = arith.constant 0 : index
    %1 = vector.load %arg2[%c0_1, %c0_2] : memref<343x128xf32, #tpu.memory_space<vmem>>, vector<343x128xf32>
    %cst = arith.constant dense<0.000000e+00> : vector<1024x128xf32>
    %2 = tpu.matmul %0, %1, %cst {dimension_numbers = #tpu.dot_dimension_numbers<[1], [0], [0], [1], [0, 0, 1, 1], [], []>} : vector<1024x343xf32>, vector<343x128xf32>, vector<1024x128xf32> -> vector<1024x128xf32>
    %c0_3 = arith.constant 0 : index
    %c0_4 = arith.constant 0 : index
    %3 = vector.load %arg3[%c0_3, %c0_4] : memref<1x128xf32, #tpu.memory_space<vmem>>, vector<1x128xf32>
    %4 = vector.broadcast %3 : vector<1x128xf32> to vector<1024x128xf32>
    %5 = arith.mulf %2, %4 : vector<1024x128xf32>
    %c0_5 = arith.constant 0 : index
    %c0_6 = arith.constant 0 : index
    %6 = vector.load %arg4[%c0_5, %c0_6] : memref<1x128xf32, #tpu.memory_space<vmem>>, vector<1x128xf32>
    %7 = vector.broadcast %6 : vector<1x128xf32> to vector<1024x128xf32>
    %8 = arith.addf %5, %7 : vector<1024x128xf32>
    %cst_7 = arith.constant 0.000000e+00 : f32
    %9 = vector.broadcast %cst_7 : f32 to vector<1024x128xf32>
    %10 = arith.maximumf %8, %9 : vector<1024x128xf32>
    %c0_8 = arith.constant 0 : index
    %c0_9 = arith.constant 0 : index
    %11 = vector.load %arg5[%c0_8, %c0_9] : memref<1024x128xf32, #tpu.memory_space<vmem>>, vector<1024x128xf32>
    tpu.vector_store %arg5[%c0_8, %c0_9], %10 {strides = array<i32>} : memref<1024x128xf32, #tpu.memory_space<vmem>>, vector<1024x128xf32>,
    return
  }
  func.func @transform_0(%arg0: i32) -> (i32, i32) {
    %c0_i32 = arith.constant 0 : i32
    %c0_i32_0 = arith.constant 0 : i32
    return %arg0, %c0_i32 : i32, i32
  }
  func.func @transform_1(%arg0: i32) -> (i32, i32) {
    %c0_i32 = arith.constant 0 : i32
    %c0_i32_0 = arith.constant 0 : i32
    %c0_i32_1 = arith.constant 0 : i32
    return %c0_i32, %c0_i32_0 : i32, i32
  }
  func.func @transform_2(%arg0: i32) -> (i32, i32) {
    %c0_i32 = arith.constant 0 : i32
    %c0_i32_0 = arith.constant 0 : i32
    %c0_i32_1 = arith.constant 0 : i32
    return %c0_i32, %c0_i32_0 : i32, i32
  }
  func.func @transform_3(%arg0: i32) -> (i32, i32) {
    %c0_i32 = arith.constant 0 : i32
    %c0_i32_0 = arith.constant 0 : i32
    %c0_i32_1 = arith.constant 0 : i32
    return %c0_i32, %c0_i32_0 : i32, i32
  }
  func.func @transform_4(%arg0: i32) -> (i32, i32) {
    %c0_i32 = arith.constant 0 : i32
    %c0_i32_0 = arith.constant 0 : i32
    return %arg0, %c0_i32 : i32, i32
  }
}

module attributes {stable_mosaic.version = 11 : i64} {
  func.func @_fused_matmul_kernel(%arg0: i32, %arg1: memref<128x432xf32, #tpu.memory_space<vmem>>, %arg2: memref<432x128xf32, #tpu.memory_space<vmem>>, %arg3: memref<1x128xf32, #tpu.memory_space<vmem>>, %arg4: memref<1x128xf32, #tpu.memory_space<vmem>>, %arg5: memref<128x128xf32, #tpu.memory_space<vmem>>) attributes {dimension_semantics = [#tpu.dimension_semantics<parallel>], iteration_bounds = array<i64: 2>, scalar_prefetch = 0 : i64, scratch_operands = 0 : i64, tpu.core_type = #tpu.core_type<tc>, window_params = [{transform_indices = @transform_0, window_bounds = array<i64: 128, 432>}, {pipeline_mode = #tpu.pipeline_mode<synchronous>, transform_indices = @transform_1, window_bounds = array<i64: 432, 128>}, {pipeline_mode = #tpu.pipeline_mode<synchronous>, transform_indices = @transform_2, window_bounds = array<i64: 1, 128>}, {pipeline_mode = #tpu.pipeline_mode<synchronous>, transform_indices = @transform_3, window_bounds = array<i64: 1, 128>}, {transform_indices = @transform_4, window_bounds = array<i64: 128, 128>}]} {
    %c0 = arith.constant 0 : index
    %c0_0 = arith.constant 0 : index
    %0 = vector.load %arg1[%c0, %c0_0] : memref<128x432xf32, #tpu.memory_space<vmem>>, vector<128x432xf32>
    %c0_1 = arith.constant 0 : index
    %c0_2 = arith.constant 0 : index
    %1 = vector.load %arg2[%c0_1, %c0_2] : memref<432x128xf32, #tpu.memory_space<vmem>>, vector<432x128xf32>
    %cst = arith.constant dense<0.000000e+00> : vector<128x128xf32>
    %2 = tpu.matmul %0, %1, %cst {dimension_numbers = #tpu.dot_dimension_numbers<[1], [0], [0], [1], [0, 0, 1, 1], [], []>} : vector<128x432xf32>, vector<432x128xf32>, vector<128x128xf32> -> vector<128x128xf32>
    %c0_3 = arith.constant 0 : index
    %c0_4 = arith.constant 0 : index
    %3 = vector.load %arg3[%c0_3, %c0_4] : memref<1x128xf32, #tpu.memory_space<vmem>>, vector<1x128xf32>
    %4 = vector.broadcast %3 : vector<1x128xf32> to vector<128x128xf32>
    %5 = arith.mulf %2, %4 : vector<128x128xf32>
    %c0_5 = arith.constant 0 : index
    %c0_6 = arith.constant 0 : index
    %6 = vector.load %arg4[%c0_5, %c0_6] : memref<1x128xf32, #tpu.memory_space<vmem>>, vector<1x128xf32>
    %7 = vector.broadcast %6 : vector<1x128xf32> to vector<128x128xf32>
    %8 = arith.addf %5, %7 : vector<128x128xf32>
    %cst_7 = arith.constant 0.000000e+00 : f32
    %9 = vector.broadcast %cst_7 : f32 to vector<128x128xf32>
    %10 = arith.maximumf %8, %9 : vector<128x128xf32>
    %c0_8 = arith.constant 0 : index
    %c0_9 = arith.constant 0 : index
    %11 = vector.load %arg5[%c0_8, %c0_9] : memref<128x128xf32, #tpu.memory_space<vmem>>, vector<128x128xf32>
    tpu.vector_store %arg5[%c0_8, %c0_9], %10 {strides = array<i32>} : memref<128x128xf32, #tpu.memory_space<vmem>>, vector<128x128xf32>,
    return
  }
  func.func @transform_0(%arg0: i32) -> (i32, i32) {
    %c0_i32 = arith.constant 0 : i32
    %c0_i32_0 = arith.constant 0 : i32
    return %arg0, %c0_i32 : i32, i32
  }
  func.func @transform_1(%arg0: i32) -> (i32, i32) {
    %c0_i32 = arith.constant 0 : i32
    %c0_i32_0 = arith.constant 0 : i32
    %c0_i32_1 = arith.constant 0 : i32
    return %c0_i32, %c0_i32_0 : i32, i32
  }
  func.func @transform_2(%arg0: i32) -> (i32, i32) {
    %c0_i32 = arith.constant 0 : i32
    %c0_i32_0 = arith.constant 0 : i32
    %c0_i32_1 = arith.constant 0 : i32
    return %c0_i32, %c0_i32_0 : i32, i32
  }
  func.func @transform_3(%arg0: i32) -> (i32, i32) {
    %c0_i32 = arith.constant 0 : i32
    %c0_i32_0 = arith.constant 0 : i32
    %c0_i32_1 = arith.constant 0 : i32
    return %c0_i32, %c0_i32_0 : i32, i32
  }
  func.func @transform_4(%arg0: i32) -> (i32, i32) {
    %c0_i32 = arith.constant 0 : i32
    %c0_i32_0 = arith.constant 0 : i32
    return %arg0, %c0_i32 : i32, i32
  }
}

module attributes {stable_mosaic.version = 11 : i64} {
  func.func @_fused_matmul_kernel(%arg0: i32, %arg1: memref<128x432xf32, #tpu.memory_space<vmem>>, %arg2: memref<432x128xf32, #tpu.memory_space<vmem>>, %arg3: memref<1x128xf32, #tpu.memory_space<vmem>>, %arg4: memref<1x128xf32, #tpu.memory_space<vmem>>, %arg5: memref<128x128xf32, #tpu.memory_space<vmem>>, %arg6: memref<128x128xf32, #tpu.memory_space<vmem>>) attributes {dimension_semantics = [#tpu.dimension_semantics<parallel>], iteration_bounds = array<i64: 2>, scalar_prefetch = 0 : i64, scratch_operands = 0 : i64, tpu.core_type = #tpu.core_type<tc>, window_params = [{transform_indices = @transform_0, window_bounds = array<i64: 128, 432>}, {pipeline_mode = #tpu.pipeline_mode<synchronous>, transform_indices = @transform_1, window_bounds = array<i64: 432, 128>}, {pipeline_mode = #tpu.pipeline_mode<synchronous>, transform_indices = @transform_2, window_bounds = array<i64: 1, 128>}, {pipeline_mode = #tpu.pipeline_mode<synchronous>, transform_indices = @transform_3, window_bounds = array<i64: 1, 128>}, {transform_indices = @transform_4, window_bounds = array<i64: 128, 128>}, {transform_indices = @transform_5, window_bounds = array<i64: 128, 128>}]} {
    %c0 = arith.constant 0 : index
    %c0_0 = arith.constant 0 : index
    %0 = vector.load %arg1[%c0, %c0_0] : memref<128x432xf32, #tpu.memory_space<vmem>>, vector<128x432xf32>
    %c0_1 = arith.constant 0 : index
    %c0_2 = arith.constant 0 : index
    %1 = vector.load %arg2[%c0_1, %c0_2] : memref<432x128xf32, #tpu.memory_space<vmem>>, vector<432x128xf32>
    %cst = arith.constant dense<0.000000e+00> : vector<128x128xf32>
    %2 = tpu.matmul %0, %1, %cst {dimension_numbers = #tpu.dot_dimension_numbers<[1], [0], [0], [1], [0, 0, 1, 1], [], []>} : vector<128x432xf32>, vector<432x128xf32>, vector<128x128xf32> -> vector<128x128xf32>
    %c0_3 = arith.constant 0 : index
    %c0_4 = arith.constant 0 : index
    %3 = vector.load %arg3[%c0_3, %c0_4] : memref<1x128xf32, #tpu.memory_space<vmem>>, vector<1x128xf32>
    %4 = vector.broadcast %3 : vector<1x128xf32> to vector<128x128xf32>
    %5 = arith.mulf %2, %4 : vector<128x128xf32>
    %c0_5 = arith.constant 0 : index
    %c0_6 = arith.constant 0 : index
    %6 = vector.load %arg4[%c0_5, %c0_6] : memref<1x128xf32, #tpu.memory_space<vmem>>, vector<1x128xf32>
    %7 = vector.broadcast %6 : vector<1x128xf32> to vector<128x128xf32>
    %8 = arith.addf %5, %7 : vector<128x128xf32>
    %c0_7 = arith.constant 0 : index
    %c0_8 = arith.constant 0 : index
    %9 = vector.load %arg5[%c0_7, %c0_8] : memref<128x128xf32, #tpu.memory_space<vmem>>, vector<128x128xf32>
    %10 = arith.addf %8, %9 : vector<128x128xf32>
    %cst_9 = arith.constant 0.000000e+00 : f32
    %11 = vector.broadcast %cst_9 : f32 to vector<128x128xf32>
    %12 = arith.maximumf %10, %11 : vector<128x128xf32>
    %c0_10 = arith.constant 0 : index
    %c0_11 = arith.constant 0 : index
    %13 = vector.load %arg6[%c0_10, %c0_11] : memref<128x128xf32, #tpu.memory_space<vmem>>, vector<128x128xf32>
    tpu.vector_store %arg6[%c0_10, %c0_11], %12 {strides = array<i32>} : memref<128x128xf32, #tpu.memory_space<vmem>>, vector<128x128xf32>,
    return
  }
  func.func @transform_0(%arg0: i32) -> (i32, i32) {
    %c0_i32 = arith.constant 0 : i32
    %c0_i32_0 = arith.constant 0 : i32
    return %arg0, %c0_i32 : i32, i32
  }
  func.func @transform_1(%arg0: i32) -> (i32, i32) {
    %c0_i32 = arith.constant 0 : i32
    %c0_i32_0 = arith.constant 0 : i32
    %c0_i32_1 = arith.constant 0 : i32
    return %c0_i32, %c0_i32_0 : i32, i32
  }
  func.func @transform_2(%arg0: i32) -> (i32, i32) {
    %c0_i32 = arith.constant 0 : i32
    %c0_i32_0 = arith.constant 0 : i32
    %c0_i32_1 = arith.constant 0 : i32
    return %c0_i32, %c0_i32_0 : i32, i32
  }
  func.func @transform_3(%arg0: i32) -> (i32, i32) {
    %c0_i32 = arith.constant 0 : i32
    %c0_i32_0 = arith.constant 0 : i32
    %c0_i32_1 = arith.constant 0 : i32
    return %c0_i32, %c0_i32_0 : i32, i32
  }
  func.func @transform_4(%arg0: i32) -> (i32, i32) {
    %c0_i32 = arith.constant 0 : i32
    %c0_i32_0 = arith.constant 0 : i32
    return %arg0, %c0_i32 : i32, i32
  }
  func.func @transform_5(%arg0: i32) -> (i32, i32) {
    %c0_i32 = arith.constant 0 : i32
    %c0_i32_0 = arith.constant 0 : i32
    return %arg0, %c0_i32 : i32, i32
  }
}

module attributes {stable_mosaic.version = 11 : i64} {
  func.func @_fused_matmul_kernel(%arg0: i32, %arg1: memref<16x432xf32, #tpu.memory_space<vmem>>, %arg2: memref<432x128xf32, #tpu.memory_space<vmem>>, %arg3: memref<1x128xf32, #tpu.memory_space<vmem>>, %arg4: memref<1x128xf32, #tpu.memory_space<vmem>>, %arg5: memref<16x128xf32, #tpu.memory_space<vmem>>) attributes {dimension_semantics = [#tpu.dimension_semantics<parallel>], iteration_bounds = array<i64: 2>, scalar_prefetch = 0 : i64, scratch_operands = 0 : i64, tpu.core_type = #tpu.core_type<tc>, window_params = [{transform_indices = @transform_0, window_bounds = array<i64: 16, 432>}, {pipeline_mode = #tpu.pipeline_mode<synchronous>, transform_indices = @transform_1, window_bounds = array<i64: 432, 128>}, {pipeline_mode = #tpu.pipeline_mode<synchronous>, transform_indices = @transform_2, window_bounds = array<i64: 1, 128>}, {pipeline_mode = #tpu.pipeline_mode<synchronous>, transform_indices = @transform_3, window_bounds = array<i64: 1, 128>}, {transform_indices = @transform_4, window_bounds = array<i64: 16, 128>}]} {
    %c0 = arith.constant 0 : index
    %c0_0 = arith.constant 0 : index
    %0 = vector.load %arg1[%c0, %c0_0] : memref<16x432xf32, #tpu.memory_space<vmem>>, vector<16x432xf32>
    %c0_1 = arith.constant 0 : index
    %c0_2 = arith.constant 0 : index
    %1 = vector.load %arg2[%c0_1, %c0_2] : memref<432x128xf32, #tpu.memory_space<vmem>>, vector<432x128xf32>
    %cst = arith.constant dense<0.000000e+00> : vector<16x128xf32>
    %2 = tpu.matmul %0, %1, %cst {dimension_numbers = #tpu.dot_dimension_numbers<[1], [0], [0], [1], [0, 0, 1, 1], [], []>} : vector<16x432xf32>, vector<432x128xf32>, vector<16x128xf32> -> vector<16x128xf32>
    %c0_3 = arith.constant 0 : index
    %c0_4 = arith.constant 0 : index
    %3 = vector.load %arg3[%c0_3, %c0_4] : memref<1x128xf32, #tpu.memory_space<vmem>>, vector<1x128xf32>
    %4 = vector.broadcast %3 : vector<1x128xf32> to vector<16x128xf32>
    %5 = arith.mulf %2, %4 : vector<16x128xf32>
    %c0_5 = arith.constant 0 : index
    %c0_6 = arith.constant 0 : index
    %6 = vector.load %arg4[%c0_5, %c0_6] : memref<1x128xf32, #tpu.memory_space<vmem>>, vector<1x128xf32>
    %7 = vector.broadcast %6 : vector<1x128xf32> to vector<16x128xf32>
    %8 = arith.addf %5, %7 : vector<16x128xf32>
    %cst_7 = arith.constant 0.000000e+00 : f32
    %9 = vector.broadcast %cst_7 : f32 to vector<16x128xf32>
    %10 = arith.maximumf %8, %9 : vector<16x128xf32>
    %c0_8 = arith.constant 0 : index
    %c0_9 = arith.constant 0 : index
    %11 = vector.load %arg5[%c0_8, %c0_9] : memref<16x128xf32, #tpu.memory_space<vmem>>, vector<16x128xf32>
    tpu.vector_store %arg5[%c0_8, %c0_9], %10 {strides = array<i32>} : memref<16x128xf32, #tpu.memory_space<vmem>>, vector<16x128xf32>,
    return
  }
  func.func @transform_0(%arg0: i32) -> (i32, i32) {
    %c0_i32 = arith.constant 0 : i32
    %c0_i32_0 = arith.constant 0 : i32
    return %arg0, %c0_i32 : i32, i32
  }
  func.func @transform_1(%arg0: i32) -> (i32, i32) {
    %c0_i32 = arith.constant 0 : i32
    %c0_i32_0 = arith.constant 0 : i32
    %c0_i32_1 = arith.constant 0 : i32
    return %c0_i32, %c0_i32_0 : i32, i32
  }
  func.func @transform_2(%arg0: i32) -> (i32, i32) {
    %c0_i32 = arith.constant 0 : i32
    %c0_i32_0 = arith.constant 0 : i32
    %c0_i32_1 = arith.constant 0 : i32
    return %c0_i32, %c0_i32_0 : i32, i32
  }
  func.func @transform_3(%arg0: i32) -> (i32, i32) {
    %c0_i32 = arith.constant 0 : i32
    %c0_i32_0 = arith.constant 0 : i32
    %c0_i32_1 = arith.constant 0 : i32
    return %c0_i32, %c0_i32_0 : i32, i32
  }
  func.func @transform_4(%arg0: i32) -> (i32, i32) {
    %c0_i32 = arith.constant 0 : i32
    %c0_i32_0 = arith.constant 0 : i32
    return %arg0, %c0_i32 : i32, i32
  }
}

module attributes {stable_mosaic.version = 11 : i64} {
  func.func @_fused_matmul_kernel(%arg0: i32, %arg1: memref<16x16xf32, #tpu.memory_space<vmem>>, %arg2: memref<16x128xf32, #tpu.memory_space<vmem>>, %arg3: memref<1x128xf32, #tpu.memory_space<vmem>>, %arg4: memref<1x128xf32, #tpu.memory_space<vmem>>, %arg5: memref<16x128xf32, #tpu.memory_space<vmem>>) attributes {dimension_semantics = [#tpu.dimension_semantics<parallel>], iteration_bounds = array<i64: 2>, scalar_prefetch = 0 : i64, scratch_operands = 0 : i64, tpu.core_type = #tpu.core_type<tc>, window_params = [{transform_indices = @transform_0, window_bounds = array<i64: 16, 16>}, {pipeline_mode = #tpu.pipeline_mode<synchronous>, transform_indices = @transform_1, window_bounds = array<i64: 16, 128>}, {pipeline_mode = #tpu.pipeline_mode<synchronous>, transform_indices = @transform_2, window_bounds = array<i64: 1, 128>}, {pipeline_mode = #tpu.pipeline_mode<synchronous>, transform_indices = @transform_3, window_bounds = array<i64: 1, 128>}, {transform_indices = @transform_4, window_bounds = array<i64: 16, 128>}]} {
    %c0 = arith.constant 0 : index
    %c0_0 = arith.constant 0 : index
    %0 = vector.load %arg1[%c0, %c0_0] : memref<16x16xf32, #tpu.memory_space<vmem>>, vector<16x16xf32>
    %c0_1 = arith.constant 0 : index
    %c0_2 = arith.constant 0 : index
    %1 = vector.load %arg2[%c0_1, %c0_2] : memref<16x128xf32, #tpu.memory_space<vmem>>, vector<16x128xf32>
    %cst = arith.constant dense<0.000000e+00> : vector<16x128xf32>
    %2 = tpu.matmul %0, %1, %cst {dimension_numbers = #tpu.dot_dimension_numbers<[1], [0], [0], [1], [0, 0, 1, 1], [], []>} : vector<16x16xf32>, vector<16x128xf32>, vector<16x128xf32> -> vector<16x128xf32>
    %c0_3 = arith.constant 0 : index
    %c0_4 = arith.constant 0 : index
    %3 = vector.load %arg3[%c0_3, %c0_4] : memref<1x128xf32, #tpu.memory_space<vmem>>, vector<1x128xf32>
    %4 = vector.broadcast %3 : vector<1x128xf32> to vector<16x128xf32>
    %5 = arith.mulf %2, %4 : vector<16x128xf32>
    %c0_5 = arith.constant 0 : index
    %c0_6 = arith.constant 0 : index
    %6 = vector.load %arg4[%c0_5, %c0_6] : memref<1x128xf32, #tpu.memory_space<vmem>>, vector<1x128xf32>
    %7 = vector.broadcast %6 : vector<1x128xf32> to vector<16x128xf32>
    %8 = arith.addf %5, %7 : vector<16x128xf32>
    %c0_7 = arith.constant 0 : index
    %c0_8 = arith.constant 0 : index
    %9 = vector.load %arg5[%c0_7, %c0_8] : memref<16x128xf32, #tpu.memory_space<vmem>>, vector<16x128xf32>
    tpu.vector_store %arg5[%c0_7, %c0_8], %8 {strides = array<i32>} : memref<16x128xf32, #tpu.memory_space<vmem>>, vector<16x128xf32>,
    return
  }
  func.func @transform_0(%arg0: i32) -> (i32, i32) {
    %c0_i32 = arith.constant 0 : i32
    %c0_i32_0 = arith.constant 0 : i32
    return %arg0, %c0_i32 : i32, i32
  }
  func.func @transform_1(%arg0: i32) -> (i32, i32) {
    %c0_i32 = arith.constant 0 : i32
    %c0_i32_0 = arith.constant 0 : i32
    %c0_i32_1 = arith.constant 0 : i32
    return %c0_i32, %c0_i32_0 : i32, i32
  }
  func.func @transform_2(%arg0: i32) -> (i32, i32) {
    %c0_i32 = arith.constant 0 : i32
    %c0_i32_0 = arith.constant 0 : i32
    %c0_i32_1 = arith.constant 0 : i32
    return %c0_i32, %c0_i32_0 : i32, i32
  }
  func.func @transform_3(%arg0: i32) -> (i32, i32) {
    %c0_i32 = arith.constant 0 : i32
    %c0_i32_0 = arith.constant 0 : i32
    %c0_i32_1 = arith.constant 0 : i32
    return %c0_i32, %c0_i32_0 : i32, i32
  }
  func.func @transform_4(%arg0: i32) -> (i32, i32) {
    %c0_i32 = arith.constant 0 : i32
    %c0_i32_0 = arith.constant 0 : i32
    return %arg0, %c0_i32 : i32, i32
  }
}

module attributes {stable_mosaic.version = 11 : i64} {
  func.func @_fused_matmul_kernel(%arg0: i32, %arg1: memref<16x864xf32, #tpu.memory_space<vmem>>, %arg2: memref<864x128xf32, #tpu.memory_space<vmem>>, %arg3: memref<1x128xf32, #tpu.memory_space<vmem>>, %arg4: memref<1x128xf32, #tpu.memory_space<vmem>>, %arg5: memref<16x128xf32, #tpu.memory_space<vmem>>, %arg6: memref<16x128xf32, #tpu.memory_space<vmem>>) attributes {dimension_semantics = [#tpu.dimension_semantics<parallel>], iteration_bounds = array<i64: 2>, scalar_prefetch = 0 : i64, scratch_operands = 0 : i64, tpu.core_type = #tpu.core_type<tc>, window_params = [{transform_indices = @transform_0, window_bounds = array<i64: 16, 864>}, {pipeline_mode = #tpu.pipeline_mode<synchronous>, transform_indices = @transform_1, window_bounds = array<i64: 864, 128>}, {pipeline_mode = #tpu.pipeline_mode<synchronous>, transform_indices = @transform_2, window_bounds = array<i64: 1, 128>}, {pipeline_mode = #tpu.pipeline_mode<synchronous>, transform_indices = @transform_3, window_bounds = array<i64: 1, 128>}, {transform_indices = @transform_4, window_bounds = array<i64: 16, 128>}, {transform_indices = @transform_5, window_bounds = array<i64: 16, 128>}]} {
    %c0 = arith.constant 0 : index
    %c0_0 = arith.constant 0 : index
    %0 = vector.load %arg1[%c0, %c0_0] : memref<16x864xf32, #tpu.memory_space<vmem>>, vector<16x864xf32>
    %c0_1 = arith.constant 0 : index
    %c0_2 = arith.constant 0 : index
    %1 = vector.load %arg2[%c0_1, %c0_2] : memref<864x128xf32, #tpu.memory_space<vmem>>, vector<864x128xf32>
    %cst = arith.constant dense<0.000000e+00> : vector<16x128xf32>
    %2 = tpu.matmul %0, %1, %cst {dimension_numbers = #tpu.dot_dimension_numbers<[1], [0], [0], [1], [0, 0, 1, 1], [], []>} : vector<16x864xf32>, vector<864x128xf32>, vector<16x128xf32> -> vector<16x128xf32>
    %c0_3 = arith.constant 0 : index
    %c0_4 = arith.constant 0 : index
    %3 = vector.load %arg3[%c0_3, %c0_4] : memref<1x128xf32, #tpu.memory_space<vmem>>, vector<1x128xf32>
    %4 = vector.broadcast %3 : vector<1x128xf32> to vector<16x128xf32>
    %5 = arith.mulf %2, %4 : vector<16x128xf32>
    %c0_5 = arith.constant 0 : index
    %c0_6 = arith.constant 0 : index
    %6 = vector.load %arg4[%c0_5, %c0_6] : memref<1x128xf32, #tpu.memory_space<vmem>>, vector<1x128xf32>
    %7 = vector.broadcast %6 : vector<1x128xf32> to vector<16x128xf32>
    %8 = arith.addf %5, %7 : vector<16x128xf32>
    %c0_7 = arith.constant 0 : index
    %c0_8 = arith.constant 0 : index
    %9 = vector.load %arg5[%c0_7, %c0_8] : memref<16x128xf32, #tpu.memory_space<vmem>>, vector<16x128xf32>
    %10 = arith.addf %8, %9 : vector<16x128xf32>
    %cst_9 = arith.constant 0.000000e+00 : f32
    %11 = vector.broadcast %cst_9 : f32 to vector<16x128xf32>
    %12 = arith.maximumf %10, %11 : vector<16x128xf32>
    %c0_10 = arith.constant 0 : index
    %c0_11 = arith.constant 0 : index
    %13 = vector.load %arg6[%c0_10, %c0_11] : memref<16x128xf32, #tpu.memory_space<vmem>>, vector<16x128xf32>
    tpu.vector_store %arg6[%c0_10, %c0_11], %12 {strides = array<i32>} : memref<16x128xf32, #tpu.memory_space<vmem>>, vector<16x128xf32>,
    return
  }
  func.func @transform_0(%arg0: i32) -> (i32, i32) {
    %c0_i32 = arith.constant 0 : i32
    %c0_i32_0 = arith.constant 0 : i32
    return %arg0, %c0_i32 : i32, i32
  }
  func.func @transform_1(%arg0: i32) -> (i32, i32) {
    %c0_i32 = arith.constant 0 : i32
    %c0_i32_0 = arith.constant 0 : i32
    %c0_i32_1 = arith.constant 0 : i32
    return %c0_i32, %c0_i32_0 : i32, i32
  }
  func.func @transform_2(%arg0: i32) -> (i32, i32) {
    %c0_i32 = arith.constant 0 : i32
    %c0_i32_0 = arith.constant 0 : i32
    %c0_i32_1 = arith.constant 0 : i32
    return %c0_i32, %c0_i32_0 : i32, i32
  }
  func.func @transform_3(%arg0: i32) -> (i32, i32) {
    %c0_i32 = arith.constant 0 : i32
    %c0_i32_0 = arith.constant 0 : i32
    %c0_i32_1 = arith.constant 0 : i32
    return %c0_i32, %c0_i32_0 : i32, i32
  }
  func.func @transform_4(%arg0: i32) -> (i32, i32) {
    %c0_i32 = arith.constant 0 : i32
    %c0_i32_0 = arith.constant 0 : i32
    return %arg0, %c0_i32 : i32, i32
  }
  func.func @transform_5(%arg0: i32) -> (i32, i32) {
    %c0_i32 = arith.constant 0 : i32
    %c0_i32_0 = arith.constant 0 : i32
    return %arg0, %c0_i32 : i32, i32
  }
}

module attributes {stable_mosaic.version = 11 : i64} {
  func.func @_fused_matmul_kernel(%arg0: i32, %arg1: memref<4x864xf32, #tpu.memory_space<vmem>>, %arg2: memref<864x128xf32, #tpu.memory_space<vmem>>, %arg3: memref<1x128xf32, #tpu.memory_space<vmem>>, %arg4: memref<1x128xf32, #tpu.memory_space<vmem>>, %arg5: memref<4x128xf32, #tpu.memory_space<vmem>>) attributes {dimension_semantics = [#tpu.dimension_semantics<parallel>], iteration_bounds = array<i64: 1>, scalar_prefetch = 0 : i64, scratch_operands = 0 : i64, tpu.core_type = #tpu.core_type<tc>, window_params = [{transform_indices = @transform_0, window_bounds = array<i64: 4, 864>}, {pipeline_mode = #tpu.pipeline_mode<synchronous>, transform_indices = @transform_1, window_bounds = array<i64: 864, 128>}, {pipeline_mode = #tpu.pipeline_mode<synchronous>, transform_indices = @transform_2, window_bounds = array<i64: 1, 128>}, {pipeline_mode = #tpu.pipeline_mode<synchronous>, transform_indices = @transform_3, window_bounds = array<i64: 1, 128>}, {transform_indices = @transform_4, window_bounds = array<i64: 4, 128>}]} {
    %c0 = arith.constant 0 : index
    %c0_0 = arith.constant 0 : index
    %0 = vector.load %arg1[%c0, %c0_0] : memref<4x864xf32, #tpu.memory_space<vmem>>, vector<4x864xf32>
    %c0_1 = arith.constant 0 : index
    %c0_2 = arith.constant 0 : index
    %1 = vector.load %arg2[%c0_1, %c0_2] : memref<864x128xf32, #tpu.memory_space<vmem>>, vector<864x128xf32>
    %cst = arith.constant dense<0.000000e+00> : vector<4x128xf32>
    %2 = tpu.matmul %0, %1, %cst {dimension_numbers = #tpu.dot_dimension_numbers<[1], [0], [0], [1], [0, 0, 1, 1], [], []>} : vector<4x864xf32>, vector<864x128xf32>, vector<4x128xf32> -> vector<4x128xf32>
    %c0_3 = arith.constant 0 : index
    %c0_4 = arith.constant 0 : index
    %3 = vector.load %arg3[%c0_3, %c0_4] : memref<1x128xf32, #tpu.memory_space<vmem>>, vector<1x128xf32>
    %4 = vector.broadcast %3 : vector<1x128xf32> to vector<4x128xf32>
    %5 = arith.mulf %2, %4 : vector<4x128xf32>
    %c0_5 = arith.constant 0 : index
    %c0_6 = arith.constant 0 : index
    %6 = vector.load %arg4[%c0_5, %c0_6] : memref<1x128xf32, #tpu.memory_space<vmem>>, vector<1x128xf32>
    %7 = vector.broadcast %6 : vector<1x128xf32> to vector<4x128xf32>
    %8 = arith.addf %5, %7 : vector<4x128xf32>
    %cst_7 = arith.constant 0.000000e+00 : f32
    %9 = vector.broadcast %cst_7 : f32 to vector<4x128xf32>
    %10 = arith.maximumf %8, %9 : vector<4x128xf32>
    %c0_8 = arith.constant 0 : index
    %c0_9 = arith.constant 0 : index
    %11 = vector.load %arg5[%c0_8, %c0_9] : memref<4x128xf32, #tpu.memory_space<vmem>>, vector<4x128xf32>
    tpu.vector_store %arg5[%c0_8, %c0_9], %10 {strides = array<i32>} : memref<4x128xf32, #tpu.memory_space<vmem>>, vector<4x128xf32>,
    return
  }
  func.func @transform_0(%arg0: i32) -> (i32, i32) {
    %c0_i32 = arith.constant 0 : i32
    %c0_i32_0 = arith.constant 0 : i32
    return %arg0, %c0_i32 : i32, i32
  }
  func.func @transform_1(%arg0: i32) -> (i32, i32) {
    %c0_i32 = arith.constant 0 : i32
    %c0_i32_0 = arith.constant 0 : i32
    %c0_i32_1 = arith.constant 0 : i32
    return %c0_i32, %c0_i32_0 : i32, i32
  }
  func.func @transform_2(%arg0: i32) -> (i32, i32) {
    %c0_i32 = arith.constant 0 : i32
    %c0_i32_0 = arith.constant 0 : i32
    %c0_i32_1 = arith.constant 0 : i32
    return %c0_i32, %c0_i32_0 : i32, i32
  }
  func.func @transform_3(%arg0: i32) -> (i32, i32) {
    %c0_i32 = arith.constant 0 : i32
    %c0_i32_0 = arith.constant 0 : i32
    %c0_i32_1 = arith.constant 0 : i32
    return %c0_i32, %c0_i32_0 : i32, i32
  }
  func.func @transform_4(%arg0: i32) -> (i32, i32) {
    %c0_i32 = arith.constant 0 : i32
    %c0_i32_0 = arith.constant 0 : i32
    return %arg0, %c0_i32 : i32, i32
  }
}

module attributes {stable_mosaic.version = 11 : i64} {
  func.func @_fused_matmul_kernel(%arg0: i32, %arg1: memref<4x32xf32, #tpu.memory_space<vmem>>, %arg2: memref<32x128xf32, #tpu.memory_space<vmem>>, %arg3: memref<1x128xf32, #tpu.memory_space<vmem>>, %arg4: memref<1x128xf32, #tpu.memory_space<vmem>>, %arg5: memref<4x128xf32, #tpu.memory_space<vmem>>) attributes {dimension_semantics = [#tpu.dimension_semantics<parallel>], iteration_bounds = array<i64: 1>, scalar_prefetch = 0 : i64, scratch_operands = 0 : i64, tpu.core_type = #tpu.core_type<tc>, window_params = [{transform_indices = @transform_0, window_bounds = array<i64: 4, 32>}, {pipeline_mode = #tpu.pipeline_mode<synchronous>, transform_indices = @transform_1, window_bounds = array<i64: 32, 128>}, {pipeline_mode = #tpu.pipeline_mode<synchronous>, transform_indices = @transform_2, window_bounds = array<i64: 1, 128>}, {pipeline_mode = #tpu.pipeline_mode<synchronous>, transform_indices = @transform_3, window_bounds = array<i64: 1, 128>}, {transform_indices = @transform_4, window_bounds = array<i64: 4, 128>}]} {
    %c0 = arith.constant 0 : index
    %c0_0 = arith.constant 0 : index
    %0 = vector.load %arg1[%c0, %c0_0] : memref<4x32xf32, #tpu.memory_space<vmem>>, vector<4x32xf32>
    %c0_1 = arith.constant 0 : index
    %c0_2 = arith.constant 0 : index
    %1 = vector.load %arg2[%c0_1, %c0_2] : memref<32x128xf32, #tpu.memory_space<vmem>>, vector<32x128xf32>
    %cst = arith.constant dense<0.000000e+00> : vector<4x128xf32>
    %2 = tpu.matmul %0, %1, %cst {dimension_numbers = #tpu.dot_dimension_numbers<[1], [0], [0], [1], [0, 0, 1, 1], [], []>} : vector<4x32xf32>, vector<32x128xf32>, vector<4x128xf32> -> vector<4x128xf32>
    %c0_3 = arith.constant 0 : index
    %c0_4 = arith.constant 0 : index
    %3 = vector.load %arg3[%c0_3, %c0_4] : memref<1x128xf32, #tpu.memory_space<vmem>>, vector<1x128xf32>
    %4 = vector.broadcast %3 : vector<1x128xf32> to vector<4x128xf32>
    %5 = arith.mulf %2, %4 : vector<4x128xf32>
    %c0_5 = arith.constant 0 : index
    %c0_6 = arith.constant 0 : index
    %6 = vector.load %arg4[%c0_5, %c0_6] : memref<1x128xf32, #tpu.memory_space<vmem>>, vector<1x128xf32>
    %7 = vector.broadcast %6 : vector<1x128xf32> to vector<4x128xf32>
    %8 = arith.addf %5, %7 : vector<4x128xf32>
    %c0_7 = arith.constant 0 : index
    %c0_8 = arith.constant 0 : index
    %9 = vector.load %arg5[%c0_7, %c0_8] : memref<4x128xf32, #tpu.memory_space<vmem>>, vector<4x128xf32>
    tpu.vector_store %arg5[%c0_7, %c0_8], %8 {strides = array<i32>} : memref<4x128xf32, #tpu.memory_space<vmem>>, vector<4x128xf32>,
    return
  }
  func.func @transform_0(%arg0: i32) -> (i32, i32) {
    %c0_i32 = arith.constant 0 : i32
    %c0_i32_0 = arith.constant 0 : i32
    return %arg0, %c0_i32 : i32, i32
  }
  func.func @transform_1(%arg0: i32) -> (i32, i32) {
    %c0_i32 = arith.constant 0 : i32
    %c0_i32_0 = arith.constant 0 : i32
    %c0_i32_1 = arith.constant 0 : i32
    return %c0_i32, %c0_i32_0 : i32, i32
  }
  func.func @transform_2(%arg0: i32) -> (i32, i32) {
    %c0_i32 = arith.constant 0 : i32
    %c0_i32_0 = arith.constant 0 : i32
    %c0_i32_1 = arith.constant 0 : i32
    return %c0_i32, %c0_i32_0 : i32, i32
  }
  func.func @transform_3(%arg0: i32) -> (i32, i32) {
    %c0_i32 = arith.constant 0 : i32
    %c0_i32_0 = arith.constant 0 : i32
    %c0_i32_1 = arith.constant 0 : i32
    return %c0_i32, %c0_i32_0 : i32, i32
  }
  func.func @transform_4(%arg0: i32) -> (i32, i32) {
    %c0_i32 = arith.constant 0 : i32
    %c0_i32_0 = arith.constant 0 : i32
    return %arg0, %c0_i32 : i32, i32
  }
}

module attributes {stable_mosaic.version = 11 : i64} {
  func.func @_fused_matmul_kernel(%arg0: i32, %arg1: memref<4x1728xf32, #tpu.memory_space<vmem>>, %arg2: memref<1728x128xf32, #tpu.memory_space<vmem>>, %arg3: memref<1x128xf32, #tpu.memory_space<vmem>>, %arg4: memref<1x128xf32, #tpu.memory_space<vmem>>, %arg5: memref<4x128xf32, #tpu.memory_space<vmem>>, %arg6: memref<4x128xf32, #tpu.memory_space<vmem>>) attributes {dimension_semantics = [#tpu.dimension_semantics<parallel>], iteration_bounds = array<i64: 1>, scalar_prefetch = 0 : i64, scratch_operands = 0 : i64, tpu.core_type = #tpu.core_type<tc>, window_params = [{transform_indices = @transform_0, window_bounds = array<i64: 4, 1728>}, {pipeline_mode = #tpu.pipeline_mode<synchronous>, transform_indices = @transform_1, window_bounds = array<i64: 1728, 128>}, {pipeline_mode = #tpu.pipeline_mode<synchronous>, transform_indices = @transform_2, window_bounds = array<i64: 1, 128>}, {pipeline_mode = #tpu.pipeline_mode<synchronous>, transform_indices = @transform_3, window_bounds = array<i64: 1, 128>}, {transform_indices = @transform_4, window_bounds = array<i64: 4, 128>}, {transform_indices = @transform_5, window_bounds = array<i64: 4, 128>}]} {
    %c0 = arith.constant 0 : index
    %c0_0 = arith.constant 0 : index
    %0 = vector.load %arg1[%c0, %c0_0] : memref<4x1728xf32, #tpu.memory_space<vmem>>, vector<4x1728xf32>
    %c0_1 = arith.constant 0 : index
    %c0_2 = arith.constant 0 : index
    %1 = vector.load %arg2[%c0_1, %c0_2] : memref<1728x128xf32, #tpu.memory_space<vmem>>, vector<1728x128xf32>
    %cst = arith.constant dense<0.000000e+00> : vector<4x128xf32>
    %2 = tpu.matmul %0, %1, %cst {dimension_numbers = #tpu.dot_dimension_numbers<[1], [0], [0], [1], [0, 0, 1, 1], [], []>} : vector<4x1728xf32>, vector<1728x128xf32>, vector<4x128xf32> -> vector<4x128xf32>
    %c0_3 = arith.constant 0 : index
    %c0_4 = arith.constant 0 : index
    %3 = vector.load %arg3[%c0_3, %c0_4] : memref<1x128xf32, #tpu.memory_space<vmem>>, vector<1x128xf32>
    %4 = vector.broadcast %3 : vector<1x128xf32> to vector<4x128xf32>
    %5 = arith.mulf %2, %4 : vector<4x128xf32>
    %c0_5 = arith.constant 0 : index
    %c0_6 = arith.constant 0 : index
    %6 = vector.load %arg4[%c0_5, %c0_6] : memref<1x128xf32, #tpu.memory_space<vmem>>, vector<1x128xf32>
    %7 = vector.broadcast %6 : vector<1x128xf32> to vector<4x128xf32>
    %8 = arith.addf %5, %7 : vector<4x128xf32>
    %c0_7 = arith.constant 0 : index
    %c0_8 = arith.constant 0 : index
    %9 = vector.load %arg5[%c0_7, %c0_8] : memref<4x128xf32, #tpu.memory_space<vmem>>, vector<4x128xf32>
    %10 = arith.addf %8, %9 : vector<4x128xf32>
    %cst_9 = arith.constant 0.000000e+00 : f32
    %11 = vector.broadcast %cst_9 : f32 to vector<4x128xf32>
    %12 = arith.maximumf %10, %11 : vector<4x128xf32>
    %c0_10 = arith.constant 0 : index
    %c0_11 = arith.constant 0 : index
    %13 = vector.load %arg6[%c0_10, %c0_11] : memref<4x128xf32, #tpu.memory_space<vmem>>, vector<4x128xf32>
    tpu.vector_store %arg6[%c0_10, %c0_11], %12 {strides = array<i32>} : memref<4x128xf32, #tpu.memory_space<vmem>>, vector<4x128xf32>,
    return
  }
  func.func @transform_0(%arg0: i32) -> (i32, i32) {
    %c0_i32 = arith.constant 0 : i32
    %c0_i32_0 = arith.constant 0 : i32
    return %arg0, %c0_i32 : i32, i32
  }
  func.func @transform_1(%arg0: i32) -> (i32, i32) {
    %c0_i32 = arith.constant 0 : i32
    %c0_i32_0 = arith.constant 0 : i32
    %c0_i32_1 = arith.constant 0 : i32
    return %c0_i32, %c0_i32_0 : i32, i32
  }
  func.func @transform_2(%arg0: i32) -> (i32, i32) {
    %c0_i32 = arith.constant 0 : i32
    %c0_i32_0 = arith.constant 0 : i32
    %c0_i32_1 = arith.constant 0 : i32
    return %c0_i32, %c0_i32_0 : i32, i32
  }
  func.func @transform_3(%arg0: i32) -> (i32, i32) {
    %c0_i32 = arith.constant 0 : i32
    %c0_i32_0 = arith.constant 0 : i32
    %c0_i32_1 = arith.constant 0 : i32
    return %c0_i32, %c0_i32_0 : i32, i32
  }
  func.func @transform_4(%arg0: i32) -> (i32, i32) {
    %c0_i32 = arith.constant 0 : i32
    %c0_i32_0 = arith.constant 0 : i32
    return %arg0, %c0_i32 : i32, i32
  }
  func.func @transform_5(%arg0: i32) -> (i32, i32) {
    %c0_i32 = arith.constant 0 : i32
    %c0_i32_0 = arith.constant 0 : i32
    return %arg0, %c0_i32 : i32, i32
  }
}

module attributes {stable_mosaic.version = 11 : i64} {
  func.func @_fused_matmul_kernel(%arg0: i32, %arg1: memref<2x1728xf32, #tpu.memory_space<vmem>>, %arg2: memref<1728x128xf32, #tpu.memory_space<vmem>>, %arg3: memref<1x128xf32, #tpu.memory_space<vmem>>, %arg4: memref<1x128xf32, #tpu.memory_space<vmem>>, %arg5: memref<2x128xf32, #tpu.memory_space<vmem>>) attributes {dimension_semantics = [#tpu.dimension_semantics<parallel>], iteration_bounds = array<i64: 1>, scalar_prefetch = 0 : i64, scratch_operands = 0 : i64, tpu.core_type = #tpu.core_type<tc>, window_params = [{transform_indices = @transform_0, window_bounds = array<i64: 2, 1728>}, {pipeline_mode = #tpu.pipeline_mode<synchronous>, transform_indices = @transform_1, window_bounds = array<i64: 1728, 128>}, {pipeline_mode = #tpu.pipeline_mode<synchronous>, transform_indices = @transform_2, window_bounds = array<i64: 1, 128>}, {pipeline_mode = #tpu.pipeline_mode<synchronous>, transform_indices = @transform_3, window_bounds = array<i64: 1, 128>}, {transform_indices = @transform_4, window_bounds = array<i64: 2, 128>}]} {
    %c0 = arith.constant 0 : index
    %c0_0 = arith.constant 0 : index
    %0 = vector.load %arg1[%c0, %c0_0] : memref<2x1728xf32, #tpu.memory_space<vmem>>, vector<2x1728xf32>
    %c0_1 = arith.constant 0 : index
    %c0_2 = arith.constant 0 : index
    %1 = vector.load %arg2[%c0_1, %c0_2] : memref<1728x128xf32, #tpu.memory_space<vmem>>, vector<1728x128xf32>
    %cst = arith.constant dense<0.000000e+00> : vector<2x128xf32>
    %2 = tpu.matmul %0, %1, %cst {dimension_numbers = #tpu.dot_dimension_numbers<[1], [0], [0], [1], [0, 0, 1, 1], [], []>} : vector<2x1728xf32>, vector<1728x128xf32>, vector<2x128xf32> -> vector<2x128xf32>
    %c0_3 = arith.constant 0 : index
    %c0_4 = arith.constant 0 : index
    %3 = vector.load %arg3[%c0_3, %c0_4] : memref<1x128xf32, #tpu.memory_space<vmem>>, vector<1x128xf32>
    %4 = vector.broadcast %3 : vector<1x128xf32> to vector<2x128xf32>
    %5 = arith.mulf %2, %4 : vector<2x128xf32>
    %c0_5 = arith.constant 0 : index
    %c0_6 = arith.constant 0 : index
    %6 = vector.load %arg4[%c0_5, %c0_6] : memref<1x128xf32, #tpu.memory_space<vmem>>, vector<1x128xf32>
    %7 = vector.broadcast %6 : vector<1x128xf32> to vector<2x128xf32>
    %8 = arith.addf %5, %7 : vector<2x128xf32>
    %cst_7 = arith.constant 0.000000e+00 : f32
    %9 = vector.broadcast %cst_7 : f32 to vector<2x128xf32>
    %10 = arith.maximumf %8, %9 : vector<2x128xf32>
    %c0_8 = arith.constant 0 : index
    %c0_9 = arith.constant 0 : index
    %11 = vector.load %arg5[%c0_8, %c0_9] : memref<2x128xf32, #tpu.memory_space<vmem>>, vector<2x128xf32>
    tpu.vector_store %arg5[%c0_8, %c0_9], %10 {strides = array<i32>} : memref<2x128xf32, #tpu.memory_space<vmem>>, vector<2x128xf32>,
    return
  }
  func.func @transform_0(%arg0: i32) -> (i32, i32) {
    %c0_i32 = arith.constant 0 : i32
    %c0_i32_0 = arith.constant 0 : i32
    return %arg0, %c0_i32 : i32, i32
  }
  func.func @transform_1(%arg0: i32) -> (i32, i32) {
    %c0_i32 = arith.constant 0 : i32
    %c0_i32_0 = arith.constant 0 : i32
    %c0_i32_1 = arith.constant 0 : i32
    return %c0_i32, %c0_i32_0 : i32, i32
  }
  func.func @transform_2(%arg0: i32) -> (i32, i32) {
    %c0_i32 = arith.constant 0 : i32
    %c0_i32_0 = arith.constant 0 : i32
    %c0_i32_1 = arith.constant 0 : i32
    return %c0_i32, %c0_i32_0 : i32, i32
  }
  func.func @transform_3(%arg0: i32) -> (i32, i32) {
    %c0_i32 = arith.constant 0 : i32
    %c0_i32_0 = arith.constant 0 : i32
    %c0_i32_1 = arith.constant 0 : i32
    return %c0_i32, %c0_i32_0 : i32, i32
  }
  func.func @transform_4(%arg0: i32) -> (i32, i32) {
    %c0_i32 = arith.constant 0 : i32
    %c0_i32_0 = arith.constant 0 : i32
    return %arg0, %c0_i32 : i32, i32
  }
}

module attributes {stable_mosaic.version = 11 : i64} {
  func.func @_fused_matmul_kernel(%arg0: i32, %arg1: memref<2x64xf32, #tpu.memory_space<vmem>>, %arg2: memref<64x128xf32, #tpu.memory_space<vmem>>, %arg3: memref<1x128xf32, #tpu.memory_space<vmem>>, %arg4: memref<1x128xf32, #tpu.memory_space<vmem>>, %arg5: memref<2x128xf32, #tpu.memory_space<vmem>>) attributes {dimension_semantics = [#tpu.dimension_semantics<parallel>], iteration_bounds = array<i64: 1>, scalar_prefetch = 0 : i64, scratch_operands = 0 : i64, tpu.core_type = #tpu.core_type<tc>, window_params = [{transform_indices = @transform_0, window_bounds = array<i64: 2, 64>}, {pipeline_mode = #tpu.pipeline_mode<synchronous>, transform_indices = @transform_1, window_bounds = array<i64: 64, 128>}, {pipeline_mode = #tpu.pipeline_mode<synchronous>, transform_indices = @transform_2, window_bounds = array<i64: 1, 128>}, {pipeline_mode = #tpu.pipeline_mode<synchronous>, transform_indices = @transform_3, window_bounds = array<i64: 1, 128>}, {transform_indices = @transform_4, window_bounds = array<i64: 2, 128>}]} {
    %c0 = arith.constant 0 : index
    %c0_0 = arith.constant 0 : index
    %0 = vector.load %arg1[%c0, %c0_0] : memref<2x64xf32, #tpu.memory_space<vmem>>, vector<2x64xf32>
    %c0_1 = arith.constant 0 : index
    %c0_2 = arith.constant 0 : index
    %1 = vector.load %arg2[%c0_1, %c0_2] : memref<64x128xf32, #tpu.memory_space<vmem>>, vector<64x128xf32>
    %cst = arith.constant dense<0.000000e+00> : vector<2x128xf32>
    %2 = tpu.matmul %0, %1, %cst {dimension_numbers = #tpu.dot_dimension_numbers<[1], [0], [0], [1], [0, 0, 1, 1], [], []>} : vector<2x64xf32>, vector<64x128xf32>, vector<2x128xf32> -> vector<2x128xf32>
    %c0_3 = arith.constant 0 : index
    %c0_4 = arith.constant 0 : index
    %3 = vector.load %arg3[%c0_3, %c0_4] : memref<1x128xf32, #tpu.memory_space<vmem>>, vector<1x128xf32>
    %4 = vector.broadcast %3 : vector<1x128xf32> to vector<2x128xf32>
    %5 = arith.mulf %2, %4 : vector<2x128xf32>
    %c0_5 = arith.constant 0 : index
    %c0_6 = arith.constant 0 : index
    %6 = vector.load %arg4[%c0_5, %c0_6] : memref<1x128xf32, #tpu.memory_space<vmem>>, vector<1x128xf32>
    %7 = vector.broadcast %6 : vector<1x128xf32> to vector<2x128xf32>
    %8 = arith.addf %5, %7 : vector<2x128xf32>
    %c0_7 = arith.constant 0 : index
    %c0_8 = arith.constant 0 : index
    %9 = vector.load %arg5[%c0_7, %c0_8] : memref<2x128xf32, #tpu.memory_space<vmem>>, vector<2x128xf32>
    tpu.vector_store %arg5[%c0_7, %c0_8], %8 {strides = array<i32>} : memref<2x128xf32, #tpu.memory_space<vmem>>, vector<2x128xf32>,
    return
  }
  func.func @transform_0(%arg0: i32) -> (i32, i32) {
    %c0_i32 = arith.constant 0 : i32
    %c0_i32_0 = arith.constant 0 : i32
    return %arg0, %c0_i32 : i32, i32
  }
  func.func @transform_1(%arg0: i32) -> (i32, i32) {
    %c0_i32 = arith.constant 0 : i32
    %c0_i32_0 = arith.constant 0 : i32
    %c0_i32_1 = arith.constant 0 : i32
    return %c0_i32, %c0_i32_0 : i32, i32
  }
  func.func @transform_2(%arg0: i32) -> (i32, i32) {
    %c0_i32 = arith.constant 0 : i32
    %c0_i32_0 = arith.constant 0 : i32
    %c0_i32_1 = arith.constant 0 : i32
    return %c0_i32, %c0_i32_0 : i32, i32
  }
  func.func @transform_3(%arg0: i32) -> (i32, i32) {
    %c0_i32 = arith.constant 0 : i32
    %c0_i32_0 = arith.constant 0 : i32
    %c0_i32_1 = arith.constant 0 : i32
    return %c0_i32, %c0_i32_0 : i32, i32
  }
  func.func @transform_4(%arg0: i32) -> (i32, i32) {
    %c0_i32 = arith.constant 0 : i32
    %c0_i32_0 = arith.constant 0 : i32
    return %arg0, %c0_i32 : i32, i32
  }
}

module attributes {stable_mosaic.version = 11 : i64} {
  func.func @_fused_matmul_kernel(%arg0: i32, %arg1: memref<2x3456xf32, #tpu.memory_space<vmem>>, %arg2: memref<3456x128xf32, #tpu.memory_space<vmem>>, %arg3: memref<1x128xf32, #tpu.memory_space<vmem>>, %arg4: memref<1x128xf32, #tpu.memory_space<vmem>>, %arg5: memref<2x128xf32, #tpu.memory_space<vmem>>, %arg6: memref<2x128xf32, #tpu.memory_space<vmem>>) attributes {dimension_semantics = [#tpu.dimension_semantics<parallel>], iteration_bounds = array<i64: 1>, scalar_prefetch = 0 : i64, scratch_operands = 0 : i64, tpu.core_type = #tpu.core_type<tc>, window_params = [{transform_indices = @transform_0, window_bounds = array<i64: 2, 3456>}, {pipeline_mode = #tpu.pipeline_mode<synchronous>, transform_indices = @transform_1, window_bounds = array<i64: 3456, 128>}, {pipeline_mode = #tpu.pipeline_mode<synchronous>, transform_indices = @transform_2, window_bounds = array<i64: 1, 128>}, {pipeline_mode = #tpu.pipeline_mode<synchronous>, transform_indices = @transform_3, window_bounds = array<i64: 1, 128>}, {transform_indices = @transform_4, window_bounds = array<i64: 2, 128>}, {transform_indices = @transform_5, window_bounds = array<i64: 2, 128>}]} {
    %c0 = arith.constant 0 : index
    %c0_0 = arith.constant 0 : index
    %0 = vector.load %arg1[%c0, %c0_0] : memref<2x3456xf32, #tpu.memory_space<vmem>>, vector<2x3456xf32>
    %c0_1 = arith.constant 0 : index
    %c0_2 = arith.constant 0 : index
    %1 = vector.load %arg2[%c0_1, %c0_2] : memref<3456x128xf32, #tpu.memory_space<vmem>>, vector<3456x128xf32>
    %cst = arith.constant dense<0.000000e+00> : vector<2x128xf32>
    %2 = tpu.matmul %0, %1, %cst {dimension_numbers = #tpu.dot_dimension_numbers<[1], [0], [0], [1], [0, 0, 1, 1], [], []>} : vector<2x3456xf32>, vector<3456x128xf32>, vector<2x128xf32> -> vector<2x128xf32>
    %c0_3 = arith.constant 0 : index
    %c0_4 = arith.constant 0 : index
    %3 = vector.load %arg3[%c0_3, %c0_4] : memref<1x128xf32, #tpu.memory_space<vmem>>, vector<1x128xf32>
    %4 = vector.broadcast %3 : vector<1x128xf32> to vector<2x128xf32>
    %5 = arith.mulf %2, %4 : vector<2x128xf32>
    %c0_5 = arith.constant 0 : index
    %c0_6 = arith.constant 0 : index
    %6 = vector.load %arg4[%c0_5, %c0_6] : memref<1x128xf32, #tpu.memory_space<vmem>>, vector<1x128xf32>
    %7 = vector.broadcast %6 : vector<1x128xf32> to vector<2x128xf32>
    %8 = arith.addf %5, %7 : vector<2x128xf32>
    %c0_7 = arith.constant 0 : index
    %c0_8 = arith.constant 0 : index
    %9 = vector.load %arg5[%c0_7, %c0_8] : memref<2x128xf32, #tpu.memory_space<vmem>>, vector<2x128xf32>
    %10 = arith.addf %8, %9 : vector<2x128xf32>
    %cst_9 = arith.constant 0.000000e+00 : f32
    %11 = vector.broadcast %cst_9 : f32 to vector<2x128xf32>
    %12 = arith.maximumf %10, %11 : vector<2x128xf32>
    %c0_10 = arith.constant 0 : index
    %c0_11 = arith.constant 0 : index
    %13 = vector.load %arg6[%c0_10, %c0_11] : memref<2x128xf32, #tpu.memory_space<vmem>>, vector<2x128xf32>
    tpu.vector_store %arg6[%c0_10, %c0_11], %12 {strides = array<i32>} : memref<2x128xf32, #tpu.memory_space<vmem>>, vector<2x128xf32>,
    return
  }
  func.func @transform_0(%arg0: i32) -> (i32, i32) {
    %c0_i32 = arith.constant 0 : i32
    %c0_i32_0 = arith.constant 0 : i32
    return %arg0, %c0_i32 : i32, i32
  }
  func.func @transform_1(%arg0: i32) -> (i32, i32) {
    %c0_i32 = arith.constant 0 : i32
    %c0_i32_0 = arith.constant 0 : i32
    %c0_i32_1 = arith.constant 0 : i32
    return %c0_i32, %c0_i32_0 : i32, i32
  }
  func.func @transform_2(%arg0: i32) -> (i32, i32) {
    %c0_i32 = arith.constant 0 : i32
    %c0_i32_0 = arith.constant 0 : i32
    %c0_i32_1 = arith.constant 0 : i32
    return %c0_i32, %c0_i32_0 : i32, i32
  }
  func.func @transform_3(%arg0: i32) -> (i32, i32) {
    %c0_i32 = arith.constant 0 : i32
    %c0_i32_0 = arith.constant 0 : i32
    %c0_i32_1 = arith.constant 0 : i32
    return %c0_i32, %c0_i32_0 : i32, i32
  }
  func.func @transform_4(%arg0: i32) -> (i32, i32) {
    %c0_i32 = arith.constant 0 : i32
    %c0_i32_0 = arith.constant 0 : i32
    return %arg0, %c0_i32 : i32, i32
  }
  func.func @transform_5(%arg0: i32) -> (i32, i32) {
    %c0_i32 = arith.constant 0 : i32
    %c0_i32_0 = arith.constant 0 : i32
    return %arg0, %c0_i32 : i32, i32
  }
}

</mosaic_0001>

<bundles_post_ra>
// kernel: forward.13
= control target key start
LH: loop header
LB: loop body
LE: loop exit
PB: predicated region body
PF: predicated region fallthrough
CT: control target
= control target key end

     0   :  { %s3032_s15 = smov 0   ;;  %s4413_s0 = inlined_call_operand.vmem [shape: f32[2048,343], index: 0, kind: input, shape index: {}]   ;;  %s4414_s1 = inlined_call_operand.vmem [shape: f32[343,128], index: 1, kind: input, shape index: {}]   ;;  %s4415_s2 = inlined_call_operand.vmem [shape: f32[1,128], index: 2, kind: input, shape index: {}]   ;;  %s4416_s3 = inlined_call_operand.vmem [shape: f32[1,128], index: 3, kind: input, shape index: {}]   ;;  %s4417_s4 = inlined_call_operand.vmem [shape: f32[2048,128], index: 4, kind: output, shape index: {}]  }
   0x1 LB: > { %s2799_s16 = sadd.s32 4294967295, %s3005_s15   ;;  %p2803_p0 = scmp.ge.s32.totalorder %s3005_s15, 1  ;;  %s3005_s15 = sphi %s3032_s15, %s14_s15  }
   0x2   : > { %p164_p1 = scmp.lt.s32.totalorder %s3005_s15, 3 }
   0x4   : > { %p165_p2 = pnand %p2803_p0, %p164_p1 }
   0x6   : > { %168 = sbr.rel (%p165_p2) target bundleno = 943 (0x3af), region = 36 }
   0xb   : > { %v603_v0 = vld [vmem:[%s4414_s1 + $0x78] sm:$0xff]  ;;  %v3051_v2 = vld [vmem:[%s4414_s1 + $0x150] sm:$0x7f]  ;;  %vm1016_vm0 = vcmask 1046528   ;;  %v3064_v5 = vld [vmem:[%s4414_s1 + $0x148] sm:$0xff]  ;;  %s2804_s5 = sshll.u32 %s2799_s16, 7 }
   0xc   : > { %v3046_v1 = vld [vmem:[%s4414_s1 + $0xf8] sm:$0xff]  ;;  %1020 = vmatpush.msra.mxu0 %v603_v0  ;;  %2939 = vmatpush.msra.mxu3 %v603_v0  ;;  %v602_v3 = vld [vmem:[%s4414_s1 + $0x70] sm:$0xff]  ;;  %v601_v6 = vld [vmem:[%s4414_s1 + $0x68] sm:$0xff]  ;;  %p192_p3 = scmp.lt.s32.totalorder %s2804_s5, 255  ;;  %vm631_vm1 = vcmask 711680  }
   0xd   : > { %v3059_v4 = vld [vmem:[%s4414_s1 + $0xf0] sm:$0xff]  ;;  %1421 = vmatpush.msra.mxu1 %v3046_v1  ;;  %2808 = vmatpush.msk.msra.mxu2 %vm1016_vm0, %v3051_v2  ;;  %v3075_v7 = vld [vmem:[%s4414_s1 + $0xe8] sm:$0xff]  ;;  %v3080_v8 = vld [vmem:[%s4414_s1 + $0x140] sm:$0xff] }
   0xe   : > { %1021 = vmatpush.msra.mxu0 %v602_v3  ;;  %2940 = vmatpush.msra.mxu3 %v602_v3  ;;  %v600_v9 = vld [vmem:[%s4414_s1 + $0x60] sm:$0xff]  ;;  %v3095_v11 = vld [vmem:[%s4414_s1 + $0x138] sm:$0xff]  ;;  %v3110_v14 = vld [vmem:[%s4414_s1 + $0x130] sm:$0xff]  ;;  %s4455_s5 = smov (!%p192_p3, %s2804_s5), 255 }
   0xf   : > { %1422 = vmatpush.msra.mxu1 %v3059_v4  ;;  %1828 = vmatpush.msra.mxu2 %v3064_v5  ;;  %v3090_v10 = vld [vmem:[%s4414_s1 + $0xe0] sm:$0xff]  ;;  %v599_v12 = vld [vmem:[%s4414_s1 + $0x58] sm:$0xff]  ;;  %v598_v15 = vld [vmem:[%s4414_s1 + $0x50] sm:$0xff]  ;;  %s2982_s17 = smul.u32 24, %s4455_s5  ;;  %s2807_s16 = sshll.u32 %s4455_s5, 3 }
  0x10   : > { %1022 = vmatpush.msra.mxu0 %v601_v6  ;;  %2941 = vmatpush.msra.mxu3 %v601_v6  ;;  %v3105_v13 = vld [vmem:[%s4414_s1 + $0xd8] sm:$0xff]  ;;  %v3120_v16 = vld [vmem:[%s4414_s1 + $0xd0] sm:$0xff]  ;;  %v3125_v17 = vld [vmem:[%s4414_s1 + $0x128] sm:$0xff]  ;;  %s3384_s19 = scalar_lea.vmem %s4417_s4, %s2807_s16 }
  0x11   : > { %1423 = vmatpush.msra.mxu1 %v3075_v7  ;;  %1829 = vmatpush.msra.mxu2 %v3080_v8  ;;  %v597_v18 = vld [vmem:[%s4414_s1 + $0x48] sm:$0xff]  ;;  %v3143_v20 = vld [vmem:[%s4414_s1 + $0x120] sm:$0xff]  ;;  %v3158_v23 = vld [vmem:[%s4414_s1 + $0x118] sm:$0xff]  ;;  %s3194_s7 = scalar_lea.vmem %s4413_s0, %s2982_s17 }
  0x12   : > { %1023 = vmatpush.msra.mxu0 %v600_v9  ;;  %2942 = vmatpush.msra.mxu3 %v600_v9  ;;  %v3138_v19 = vld [vmem:[%s4414_s1 + $0xc8] sm:$0xff]  ;;  %v596_v21 = vld [vmem:[%s4414_s1 + $0x40] sm:$0xff]  ;;  %v595_v24 = vld [vmem:[%s4414_s1 + $0x38] sm:$0xff] }
  0x13   : > { %1424 = vmatpush.msra.mxu1 %v3090_v10  ;;  %1830 = vmatpush.msra.mxu2 %v3095_v11  ;;  %v3153_v22 = vld [vmem:[%s4414_s1 + $0xc0] sm:$0xff]  ;;  %v3169_v25 = vld [vmem:[%s4414_s1 + $0xb8] sm:$0xff]  ;;  %v3174_v26 = vld [vmem:[%s4414_s1 + $0x110] sm:$0xff] }
  0x14   : > { %1024 = vmatpush.msra.mxu0 %v599_v12  ;;  %2943 = vmatpush.msra.mxu3 %v599_v12  ;;  %v594_v27 = vld [vmem:[%s4414_s1 + $0x30] sm:$0xff]  ;;  %v3189_v29 = vld [vmem:[%s4414_s1 + $0x108] sm:$0xff]  ;;  %v3209_v32 = vld [vmem:[%s4414_s1 + $0x100] sm:$0xff] }
  0x15   : > { %1425 = vmatpush.msra.mxu1 %v3105_v13  ;;  %1831 = vmatpush.msra.mxu2 %v3110_v14  ;;  %v3184_v28 = vld [vmem:[%s4414_s1 + $0xb0] sm:$0xff]  ;;  %v593_v30 = vld [vmem:[%s4414_s1 + $0x28] sm:$0xff]  ;;  %v592_v34 = vld [vmem:[%s4414_s1 + $0x20] sm:$0xff] }
  0x16   : > { %1025 = vmatpush.msra.mxu0 %v598_v15  ;;  %2944 = vmatpush.msra.mxu3 %v598_v15  ;;  %v3204_v31 = vld [vmem:[%s4414_s1 + $0xa8] sm:$0xff]  ;;  %v206_v33 = vld [vmem:[%s3194_s7 + $0x10] sm:$0xff]  ;;  %v3220_v35 = vld [vmem:[%s4414_s1 + $0xa0] sm:$0xff] }
  0x17   : > { %1426 = vmatpush.msra.mxu1 %v3120_v16  ;;  %1832 = vmatpush.msra.mxu2 %v3125_v17  ;;  %v591_v36 = vld [vmem:[%s4414_s1 + $0x18] sm:$0xff]  ;;  %v590_v38 = vld [vmem:[%s4414_s1 + $0x10] sm:$0xff]  ;;  %v589_v40 = vld [vmem:[%s4414_s1 + $0x8] sm:$0xff] }
  0x18   : > { %1026 = vmatpush.msra.mxu0 %v597_v18  ;;  %2945 = vmatpush.msra.mxu3 %v597_v18  ;;  %v3231_v37 = vld [vmem:[%s4414_s1 + $0x98] sm:$0xff]  ;;  %v606_v39 = vld [vmem:[%s4414_s1 + $0x90] sm:$0xff]  ;;  %v605_v41 = vld [vmem:[%s4414_s1 + $0x88] sm:$0xff] }
  0x19   : > { %1427 = vmatpush.msra.mxu1 %v3138_v19  ;;  %1833 = vmatpush.msra.mxu2 %v3143_v20  ;;  %v209_v42 = vld [vmem:[%s3194_s7 + $0x28] sm:$0xff]  ;;  %v588_v43 = vld [vmem:[%s4414_s1] sm:$0xff]  ;;  %v207_v49 = vld [vmem:[%s3194_s7 + $0x18] sm:$0xff] }
  0x1a   : > { %1027 = vmatpush.msra.mxu0 %v596_v21  ;;  %2946 = vmatpush.msra.mxu3 %v596_v21  ;;  %v604_v44 = vld [vmem:[%s4414_s1 + $0x80] sm:$0xff]  ;;  %v205_v47 = vld [vmem:[%s3194_s7 + $0x8] sm:$0xff]  ;;  %v495_v50 = vld [vmem:[%s3194_s7 + $0x918] sm:$0xff] }
  0x1b   : > { %1428 = vmatpush.msra.mxu1 %v3153_v22  ;;  %1834 = vmatpush.msra.mxu2 %v3158_v23  ;;  %v204_v45 = vld [vmem:[%s3194_s7] sm:$0xff]  ;;  %v215_v52 = vld [vmem:[%s3194_s7 + $0x58] sm:$0xff]  ;;  %v210_v53 = vld [vmem:[%s3194_s7 + $0x30] sm:$0xff] }
  0x1c   : > { %1028 = vmatpush.msra.mxu0 %v595_v24  ;;  %2947 = vmatpush.msra.mxu3 %v595_v24  ;;  %v492_v46 = vld [vmem:[%s3194_s7 + $0x900] sm:$0xff]  ;;  %v498_v54 = vld [vmem:[%s3194_s7 + $0x930] sm:$0xff]  ;;  %v211_v55 = vld [vmem:[%s3194_s7 + $0x38] sm:$0xff] }
  0x1d   : > { %1429 = vmatpush.msra.mxu1 %v3169_v25  ;;  %1835 = vmatpush.msra.mxu2 %v3174_v26  ;;  %v212_v48 = vld [vmem:[%s3194_s7 + $0x40] sm:$0xff]  ;;  %v218_v56 = vld [vmem:[%s3194_s7 + $0x70] sm:$0xff]  ;;  %v213_v57 = vld [vmem:[%s3194_s7 + $0x48] sm:$0xff] }
  0x1e   : > { %1029 = vmatpush.msra.mxu0 %v594_v27  ;;  %2948 = vmatpush.msra.mxu3 %v594_v27  ;;  %v208_v51 = vld [vmem:[%s3194_s7 + $0x20] sm:$0xff]  ;;  %v501_v58 = vld [vmem:[%s3194_s7 + $0x948] sm:$0xff]  ;;  %v214_v59 = vld [vmem:[%s3194_s7 + $0x50] sm:$0xff] }
  0x1f   : > { %1430 = vmatpush.msra.mxu1 %v3184_v28  ;;  %1836 = vmatpush.msra.mxu2 %v3189_v29  ;;  %v221_v60 = vld [vmem:[%s3194_s7 + $0x88] sm:$0xff]  ;;  %v216_v61 = vld [vmem:[%s3194_s7 + $0x60] sm:$0xff]  ;;  %v507_v3 = vld [vmem:[%s3194_s7 + $0x978] sm:$0xff] }
  0x20   : > { %1030 = vmatpush.msra.mxu0 %v593_v30  ;;  %2949 = vmatpush.msra.mxu3 %v593_v30  ;;  %v504_v62 = vld [vmem:[%s3194_s7 + $0x960] sm:$0xff]  ;;  %v217_v63 = vld [vmem:[%s3194_s7 + $0x68] sm:$0xff]  ;;  %v510_v6 = vld [vmem:[%s3194_s7 + $0x990] sm:$0xff] }
  0x21   : > { %1431 = vmatpush.msra.mxu1 %v3204_v31  ;;  %1837 = vmatpush.msra.mxu2 %v3209_v32  ;;  %v224_v0 = vld [vmem:[%s3194_s7 + $0xa0] sm:$0xff]  ;;  %v225_v9 = vld [vmem:[%s3194_s7 + $0xa8] sm:$0xff]  ;;  %v519_v18 = vld [vmem:[%s3194_s7 + $0x9d8] sm:$0xff] }
  0x22   : > { %2809 = vmatmul.msk.f32.vlgmr.msra.gmra.mxu2 %vm631_vm1, %v206_v33  ;;  %1031 = vmatpush.msra.mxu0 %v592_v34  ;;  %v233_v12 = vld [vmem:[%s3194_s7 + $0xe8] sm:$0xff]  ;;  %v234_v21 = vld [vmem:[%s3194_s7 + $0xf0] sm:$0xff]  ;;  %v528_v30 = vld [vmem:[%s3194_s7 + $0xa20] sm:$0xff] }
  0x23   : > { %2950 = vmatpush.msra.mxu3 %v592_v34  ;;  %1432 = vmatpush.msra.mxu1 %v3220_v35  ;;  %v229_v15 = vld [vmem:[%s3194_s7 + $0xc8] sm:$0xff]  ;;  %v242_v24 = vld [vmem:[%s3194_s7 + $0x130] sm:$0xff]  ;;  %v243_v33 = vld [vmem:[%s3194_s7 + $0x138] sm:$0xff] }
  0x24   : > { %1032 = vmatpush.msra.mxu0 %v591_v36  ;;  %v238_v27 = vld [vmem:[%s3194_s7 + $0x110] sm:$0xff]  ;;  %v531_v34 = vld [vmem:[%s3194_s7 + $0xa38] sm:$0xff] }
  0x25   : > { %2951 = vmatpush.msra.mxu3 %v591_v36  ;;  %1433 = vmatpush.msra.mxu1 %v3231_v37  ;;  %v251_v36 = vld [vmem:[%s3194_s7 + $0x178] sm:$0xff] }
  0x26   : > { %1033 = vmatpush.msra.mxu0 %v590_v38 }
  0x27   : > { %2952 = vmatpush.msra.mxu3 %v590_v38  ;;  %1434 = vmatpush.msra.mxu1 %v606_v39  ;;  %v534_v38 = vld [vmem:[%s3194_s7 + $0xa50] sm:$0xff] }
  0x28   : > { %1034 = vmatpush.msra.mxu0 %v589_v40 }
  0x29   : > { %2953 = vmatpush.msra.mxu3 %v589_v40  ;;  %1435 = vmatpush.msra.mxu1 %v605_v41  ;;  %v254_v40 = vld [vmem:[%s3194_s7 + $0x190] sm:$0xff] }
  0x2a   : > { %2810 = vmatmul.msk.f32.gmra.mxu2 %vm631_vm1, %v209_v42  ;;  %1035 = vmatpush.msra.mxu0 %v588_v43  ;;  %v537_v42 = vld [vmem:[%s3194_s7 + $0xa68] sm:$0xff] }
  0x2b   : > { %2954 = vmatpush.msra.mxu3 %v588_v43  ;;  %1436 = vmatpush.msra.mxu1 %v604_v44  ;;  %v250_v43 = vld [vmem:[%s3194_s7 + $0x170] sm:$0xff] }
  0x2c   : > { %1036 = vmatmul.f32.vlgmr.msra.gmra.mxu0 %v204_v45  ;;  %1324 = vmatmul.f32.vlgmr.msra.gmra.mxu3 %v492_v46  ;;  %v257_v45 = vld [vmem:[%s3194_s7 + $0x1a8] sm:$0xff] }
  0x2d   : > { %1437 = vmatmul.f32.vlgmr.msra.gmra.mxu1 %v205_v47  ;;  %2955 = vmatpush.msrb.mxu3 %v3046_v1  ;;  %v219_v1 = vld [vmem:[%s3194_s7 + $0x78] sm:$0xff]  ;;  %v252_v47 = vld [vmem:[%s3194_s7 + $0x180] sm:$0xff] }
  0x2f   : > { %2956 = vmatpush.msrb.mxu3 %v3059_v4  ;;  %v220_v4 = vld [vmem:[%s3194_s7 + $0x80] sm:$0xff] }
  0x31   : > { %2957 = vmatpush.msrb.mxu3 %v3075_v7  ;;  %v223_v7 = vld [vmem:[%s3194_s7 + $0x98] sm:$0xff] }
  0x32   : > { %2811 = vmatmul.msk.f32.gmra.mxu2 %vm631_vm1, %v212_v48  ;;  %v540_v48 = vld [vmem:[%s3194_s7 + $0xa80] sm:$0xff] }
  0x33   : > { %2958 = vmatpush.msrb.mxu3 %v3090_v10  ;;  %v513_v10 = vld [vmem:[%s3194_s7 + $0x9a8] sm:$0xff] }
  0x34   : > { %1039 = vmatmul.f32.gmra.mxu0 %v207_v49  ;;  %1327 = vmatmul.f32.gmra.mxu3 %v495_v50  ;;  %v253_v50 = vld [vmem:[%s3194_s7 + $0x188] sm:$0xff] }
  0x35   : > { %1440 = vmatmul.f32.gmra.mxu1 %v208_v51  ;;  %2959 = vmatpush.msrb.mxu3 %v3105_v13  ;;  %v228_v13 = vld [vmem:[%s3194_s7 + $0xc0] sm:$0xff] }
  0x37   : > { %2960 = vmatpush.msrb.mxu3 %v3120_v16  ;;  %v236_v16 = vld [vmem:[%s3194_s7 + $0x100] sm:$0xff] }
  0x39   : > { %2961 = vmatpush.msrb.mxu3 %v3138_v19  ;;  %v232_v19 = vld [vmem:[%s3194_s7 + $0xe0] sm:$0xff] }
  0x3a   : > { %2812 = vmatmul.msk.f32.gmra.mxu2 %vm631_vm1, %v215_v52  ;;  %v3366_v52 = vld [vmem:[%s4415_s2] ss:$0 sm:$0xff] }
  0x3b   : > { %2962 = vmatpush.msrb.mxu3 %v3153_v22  ;;  %v522_v22 = vld [vmem:[%s3194_s7 + $0x9f0] sm:$0xff] }
  0x3c   : > { %1042 = vmatmul.f32.gmra.mxu0 %v210_v53  ;;  %1330 = vmatmul.f32.gmra.mxu3 %v498_v54  ;;  %v3371_v54 = vld [vmem:[%s4416_s3] ss:$0 sm:$0xff] }
  0x3d   : > { %1443 = vmatmul.f32.gmra.mxu1 %v211_v55  ;;  %2963 = vmatpush.msrb.mxu3 %v3169_v25  ;;  %v237_v25 = vld [vmem:[%s3194_s7 + $0x108] sm:$0xff] }
  0x3f   : > { %2964 = vmatpush.msrb.mxu3 %v3184_v28  ;;  %v245_v28 = vld [vmem:[%s3194_s7 + $0x148] sm:$0xff] }
  0x41   : > { %2965 = vmatpush.msrb.mxu3 %v3204_v31  ;;  %v241_v31 = vld [vmem:[%s3194_s7 + $0x128] sm:$0xff] }
  0x42   : > { %2813 = vmatmul.msk.f32.gmra.mxu2 %vm631_vm1, %v218_v56 }
  0x43   : > { %2966 = vmatpush.msrb.mxu3 %v3220_v35  ;;  %v244_v35 = vld [vmem:[%s3194_s7 + $0x140] sm:$0xff] }
  0x44   : > { %1045 = vmatmul.f32.gmra.mxu0 %v213_v57  ;;  %1333 = vmatmul.f32.gmra.mxu3 %v501_v58  ;;  %v260_v58 = vld [vmem:[%s3194_s7 + $0x1c0] sm:$0xff] }
  0x45   : > { %1446 = vmatmul.f32.gmra.mxu1 %v214_v59  ;;  %2967 = vmatpush.msrb.mxu3 %v3231_v37  ;;  %v246_v37 = vld [vmem:[%s3194_s7 + $0x150] sm:$0xff] }
  0x47   : > { %2968 = vmatpush.msrb.mxu3 %v606_v39  ;;  %v247_v39 = vld [vmem:[%s3194_s7 + $0x158] sm:$0xff] }
  0x49   : > { %2969 = vmatpush.msrb.mxu3 %v605_v41  ;;  %v249_v41 = vld [vmem:[%s3194_s7 + $0x168] sm:$0xff] }
  0x4a   : > { %2814 = vmatmul.msk.f32.gmra.mxu2 %vm631_vm1, %v221_v60 }
  0x4b   : > { %2970 = vmatpush.msrb.mxu3 %v604_v44 }
  0x4c   : > { %1048 = vmatmul.f32.gmra.mxu0 %v216_v61  ;;  %1336 = vmatmul.f32.gmra.mxu3 %v504_v62  ;;  %v255_v61 = vld [vmem:[%s3194_s7 + $0x198] sm:$0xff] }
  0x4d   : > { %1449 = vmatmul.f32.gmra.mxu1 %v217_v63  ;;  %2971 = vmatpush.msk.msra.mxu3 %vm1016_vm0, %v3051_v2  ;;  %v227_v2 = vld [vmem:[%s3194_s7 + $0xb8] sm:$0xff] }
  0x4e   : > { %v543_v62 = vld [vmem:[%s3194_s7 + $0xa98] sm:$0xff] }
  0x4f   : > { %2972 = vmatpush.msra.mxu3 %v3064_v5  ;;  %v222_v5 = vld [vmem:[%s3194_s7 + $0x90] sm:$0xff] }
  0x51   : > { %2973 = vmatpush.msra.mxu3 %v3080_v8  ;;  %v230_v8 = vld [vmem:[%s3194_s7 + $0xd0] sm:$0xff] }
  0x52   : > { %2815 = vmatmul.msk.f32.gmra.mxu2 %vm631_vm1, %v224_v0  ;;  %v256_v0 = vld [vmem:[%s3194_s7 + $0x1a0] sm:$0xff] }
  0x53   : > { %2974 = vmatpush.msra.mxu3 %v3095_v11  ;;  %v226_v11 = vld [vmem:[%s3194_s7 + $0xb0] sm:$0xff] }
  0x54   : > { %1051 = vmatmul.f32.gmra.mxu0 %v219_v1  ;;  %1339 = vmatmul.f32.gmra.mxu3 %v507_v3 }
  0x55   : > { %1452 = vmatmul.f32.gmra.mxu1 %v220_v4  ;;  %2975 = vmatpush.msra.mxu3 %v3110_v14  ;;  %v516_v14 = vld [vmem:[%s3194_s7 + $0x9c0] sm:$0xff] }
  0x57   : > { %2976 = vmatpush.msra.mxu3 %v3125_v17  ;;  %v231_v17 = vld [vmem:[%s3194_s7 + $0xd8] sm:$0xff] }
  0x59   : > { %2977 = vmatpush.msra.mxu3 %v3143_v20  ;;  %v239_v20 = vld [vmem:[%s3194_s7 + $0x118] sm:$0xff] }
  0x5a   : > { %2816 = vmatmul.msk.f32.gmra.mxu2 %vm631_vm1, %v227_v2 }
  0x5b   : > { %2978 = vmatpush.msra.mxu3 %v3158_v23  ;;  %v235_v23 = vld [vmem:[%s3194_s7 + $0xf8] sm:$0xff] }
  0x5c   : > { %1054 = vmatmul.f32.gmra.mxu0 %v222_v5  ;;  %1342 = vmatmul.f32.gmra.mxu3 %v510_v6 }
  0x5d   : > { %1455 = vmatmul.f32.gmra.mxu1 %v223_v7  ;;  %2979 = vmatpush.msra.mxu3 %v3174_v26  ;;  %v525_v26 = vld [vmem:[%s3194_s7 + $0xa08] sm:$0xff]  ;;  %v263_v7 = vld [vmem:[%s3194_s7 + $0x1d8] sm:$0xff] }
  0x5f   : > { %2980 = vmatpush.msra.mxu3 %v3189_v29  ;;  %v240_v29 = vld [vmem:[%s3194_s7 + $0x120] sm:$0xff] }
  0x61   : > { %2981 = vmatpush.msra.mxu3 %v3209_v32  ;;  %v248_v32 = vld [vmem:[%s3194_s7 + $0x160] sm:$0xff] }
  0x62   : > { %2817 = vmatmul.msk.f32.gmra.mxu2 %vm631_vm1, %v230_v8 }
  0x64   : > { %1057 = vmatmul.f32.gmra.mxu0 %v225_v9  ;;  %1345 = vmatmul.f32.gmra.mxu3 %v513_v10  ;;  %v258_v10 = vld [vmem:[%s3194_s7 + $0x1b0] sm:$0xff] }
  0x65   : > { %1458 = vmatmul.f32.gmra.mxu1 %v226_v11  ;;  %v546_v11 = vld [vmem:[%s3194_s7 + $0xab0] sm:$0xff] }
  0x6a   : > { %2818 = vmatmul.msk.f32.gmra.mxu2 %vm631_vm1, %v233_v12 }
  0x6c   : > { %1060 = vmatmul.f32.gmra.mxu0 %v228_v13  ;;  %1348 = vmatmul.f32.gmra.mxu3 %v516_v14  ;;  %v259_v13 = vld [vmem:[%s3194_s7 + $0x1b8] sm:$0xff] }
  0x6d   : > { %1461 = vmatmul.f32.gmra.mxu1 %v229_v15 }
  0x72   : > { %2819 = vmatmul.msk.f32.gmra.mxu2 %vm631_vm1, %v236_v16 }
  0x74   : > { %1063 = vmatmul.f32.gmra.mxu0 %v231_v17  ;;  %1351 = vmatmul.f32.gmra.mxu3 %v519_v18 }
  0x75   : > { %1464 = vmatmul.f32.gmra.mxu1 %v232_v19 }
  0x7a   : > { %2820 = vmatmul.msk.f32.gmra.mxu2 %vm631_vm1, %v239_v20  ;;  %v266_v20 = vld [vmem:[%s3194_s7 + $0x1f0] sm:$0xff] }
  0x7c   : > { %1066 = vmatmul.f32.gmra.mxu0 %v234_v21  ;;  %1354 = vmatmul.f32.gmra.mxu3 %v522_v22 }
  0x7d   : > { %1467 = vmatmul.f32.gmra.mxu1 %v235_v23  ;;  %v261_v23 = vld [vmem:[%s3194_s7 + $0x1c8] sm:$0xff] }
  0x82   : > { %2821 = vmatmul.msk.f32.gmra.mxu2 %vm631_vm1, %v242_v24  ;;  %v549_v24 = vld [vmem:[%s3194_s7 + $0xac8] sm:$0xff] }
  0x84   : > { %1069 = vmatmul.f32.gmra.mxu0 %v237_v25  ;;  %1357 = vmatmul.f32.gmra.mxu3 %v525_v26  ;;  %v262_v26 = vld [vmem:[%s3194_s7 + $0x1d0] sm:$0xff] }
  0x85   : > { %1470 = vmatmul.f32.gmra.mxu1 %v238_v27 }
  0x8a   : > { %2822 = vmatmul.msk.f32.gmra.mxu2 %vm631_vm1, %v245_v28 }
  0x8c   : > { %1072 = vmatmul.f32.gmra.mxu0 %v240_v29  ;;  %1360 = vmatmul.f32.gmra.mxu3 %v528_v30 }
  0x8d   : > { %1473 = vmatmul.f32.gmra.mxu1 %v241_v31 }
  0x92   : > { %2823 = vmatmul.msk.f32.gmra.mxu2 %vm631_vm1, %v248_v32 }
  0x94   : > { %1075 = vmatmul.f32.gmra.mxu0 %v243_v33  ;;  %1363 = vmatmul.f32.gmra.mxu3 %v531_v34  ;;  %v269_v33 = vld [vmem:[%s3194_s7 + $0x208] sm:$0xff] }
  0x95   : > { %1476 = vmatmul.f32.gmra.mxu1 %v244_v35 }
  0x9a   : > { %2824 = vmatmul.msk.f32.gmra.mxu2 %vm631_vm1, %v251_v36  ;;  %v264_v36 = vld [vmem:[%s3194_s7 + $0x1e0] sm:$0xff] }
  0x9c   : > { %1078 = vmatmul.f32.gmra.mxu0 %v246_v37  ;;  %1366 = vmatmul.f32.gmra.mxu3 %v534_v38  ;;  %v552_v37 = vld [vmem:[%s3194_s7 + $0xae0] sm:$0xff] }
  0x9d   : > { %1479 = vmatmul.f32.gmra.mxu1 %v247_v39  ;;  %v265_v39 = vld [vmem:[%s3194_s7 + $0x1e8] sm:$0xff] }
  0xa2   : > { %2825 = vmatmul.msk.f32.gmra.mxu2 %vm631_vm1, %v254_v40 }
  0xa4   : > { %1081 = vmatmul.f32.gmra.mxu0 %v249_v41  ;;  %1369 = vmatmul.f32.gmra.mxu3 %v537_v42 }
  0xa5   : > { %1482 = vmatmul.f32.gmra.mxu1 %v250_v43  ;;  %v1839_v44 = vpop.f32.mrf.mxu2 }
  0xa9   : > { %v1037_v46 = vpop.f32.mrf.mxu0 }
  0xaa   : > { %v1438_v49 = vpop.f32.mrf.mxu1  ;;  %2826 = vmatmul.msk.f32.gmra.mxu2 %vm631_vm1, %v257_v45 }
  0xab   : > { %v1439_v51 = vadd.f32 %v1438_v49, %v1037_v46  ;;  %v272_v46 = vld [vmem:[%s3194_s7 + $0x220] sm:$0xff]  ;;  %v267_v49 = vld [vmem:[%s3194_s7 + $0x1f8] sm:$0xff] }
  0xac   : > { %1084 = vmatmul.f32.gmra.mxu0 %v252_v47  ;;  %1372 = vmatmul.f32.gmra.mxu3 %v540_v48 }
  0xad   : > { %v1840_v53 = vadd.f32 %v1839_v44, %v1439_v51  ;;  %1485 = vmatmul.f32.gmra.mxu1 %v253_v50  ;;  %v1842_v55 = vpop.f32.mrf.mxu2  ;;  %v555_v50 = vld [vmem:[%s3194_s7 + $0xaf8] sm:$0xff] }
  0xaf   : > { %v2227_v56 = vmul.f32 %v3366_v52, %v1840_v53  ;;  %v3375_v57 = vpop.f32.mrf.mxu3  ;;  %v268_v53 = vld [vmem:[%s3194_s7 + $0x200] sm:$0xff] }
  0xb0   : > { %4418 = vst [vmem:[#allocation2_spill] sm:$0xff] %v3375_v57  ;;  %v396_v57 = vld [vmem:[%s3194_s7 + $0x600] sm:$0xff] }
  0xb1   : > { %v2359_v59 = vadd.f32 %v3371_v54, %v2227_v56  ;;  %v1040_v60 = vpop.f32.mrf.mxu0 }
  0xb2   : > { %v1441_v63 = vpop.f32.mrf.mxu1  ;;  %2827 = vmatmul.msk.f32.gmra.mxu2 %vm631_vm1, %v260_v58 }
  0xb3   : > { %v2487_v1 = vmax.f32 %v2359_v59, 0.0  ;;  %v1442_v3 = vadd.f32 %v1441_v63, %v1040_v60 }
  0xb4   : > { %1087 = vmatmul.f32.gmra.mxu0 %v255_v61  ;;  %1375 = vmatmul.f32.gmra.mxu3 %v543_v62  ;;  %v275_v62 = vld [vmem:[%s3194_s7 + $0x238] sm:$0xff] }
  0xb5   : > { %2615 = vst [vmem:[%s3384_s19] sm:$0xff] %v2487_v1  ;;  %v1843_v4 = vadd.f32 %v1842_v55, %v1442_v3  ;;  %1488 = vmatmul.f32.gmra.mxu1 %v256_v0  ;;  %v1845_v2 = vpop.f32.mrf.mxu2  ;;  %v270_v1 = vld [vmem:[%s3194_s7 + $0x210] sm:$0xff] }
  0xb6   : > { %v558_v3 = vld [vmem:[%s3194_s7 + $0xb10] sm:$0xff] }
  0xb7   : > { %v2228_v5 = vmul.f32 %v3366_v52, %v1843_v4  ;;  %v3390_v6 = vpop.f32.mrf.mxu3 }
  0xb9   : > { %v2360_v8 = vadd.f32 %v3371_v54, %v2228_v5  ;;  %v1043_v9 = vpop.f32.mrf.mxu0 }
  0xba   : > { %v1444_v12 = vpop.f32.mrf.mxu1  ;;  %2828 = vmatmul.msk.f32.gmra.mxu2 %vm631_vm1, %v263_v7 }
  0xbb   : > { %v2488_v14 = vmax.f32 %v2360_v8, 0.0  ;;  %v1445_v15 = vadd.f32 %v1444_v12, %v1043_v9  ;;  %v278_v12 = vld [vmem:[%s3194_s7 + $0x250] sm:$0xff] }
  0xbc   : > { %1090 = vmatmul.f32.gmra.mxu0 %v258_v10  ;;  %1378 = vmatmul.f32.gmra.mxu3 %v546_v11 }
  0xbd   : > { %2616 = vst [vmem:[%s3384_s19 + $0x8] sm:$0xff] %v2488_v14  ;;  %v1846_v16 = vadd.f32 %v1845_v2, %v1445_v15  ;;  %1491 = vmatmul.f32.gmra.mxu1 %v259_v13  ;;  %v1848_v17 = vpop.f32.mrf.mxu2  ;;  %v271_v2 = vld [vmem:[%s3194_s7 + $0x218] sm:$0xff]  ;;  %v273_v15 = vld [vmem:[%s3194_s7 + $0x228] sm:$0xff] }
  0xbf   : > { %v2229_v18 = vmul.f32 %v3366_v52, %v1846_v16  ;;  %v3400_v19 = vpop.f32.mrf.mxu3  ;;  %v561_v16 = vld [vmem:[%s3194_s7 + $0xb28] sm:$0xff] }
  0xc1   : > { %v2361_v21 = vadd.f32 %v3371_v54, %v2229_v18  ;;  %v1046_v22 = vpop.f32.mrf.mxu0  ;;  %v274_v18 = vld [vmem:[%s3194_s7 + $0x230] sm:$0xff] }
  0xc2   : > { %v1447_v25 = vpop.f32.mrf.mxu1  ;;  %2829 = vmatmul.msk.f32.gmra.mxu2 %vm631_vm1, %v266_v20 }
  0xc3   : > { %v2489_v27 = vmax.f32 %v2361_v21, 0.0  ;;  %v1448_v28 = vadd.f32 %v1447_v25, %v1046_v22 }
  0xc4   : > { %1093 = vmatmul.f32.gmra.mxu0 %v261_v23  ;;  %1381 = vmatmul.f32.gmra.mxu3 %v549_v24 }
  0xc5   : > { %2617 = vst [vmem:[%s3384_s19 + $0x10] sm:$0xff] %v2489_v27  ;;  %v1849_v29 = vadd.f32 %v1848_v17, %v1448_v28  ;;  %1494 = vmatmul.f32.gmra.mxu1 %v262_v26  ;;  %v1851_v30 = vpop.f32.mrf.mxu2  ;;  %v281_v26 = vld [vmem:[%s3194_s7 + $0x268] sm:$0xff] }
  0xc7   : > { %v2230_v31 = vmul.f32 %v3366_v52, %v1849_v29  ;;  %v3410_v32 = vpop.f32.mrf.mxu3  ;;  %v276_v29 = vld [vmem:[%s3194_s7 + $0x240] sm:$0xff] }
  0xc9   : > { %v2362_v34 = vadd.f32 %v3371_v54, %v2230_v31  ;;  %v1049_v35 = vpop.f32.mrf.mxu0 }
  0xca   : > { %v1450_v38 = vpop.f32.mrf.mxu1  ;;  %2830 = vmatmul.msk.f32.gmra.mxu2 %vm631_vm1, %v269_v33  ;;  %v277_v33 = vld [vmem:[%s3194_s7 + $0x248] sm:$0xff] }
  0xcb   : > { %v2490_v40 = vmax.f32 %v2362_v34, 0.0  ;;  %v1451_v41 = vadd.f32 %v1450_v38, %v1049_v35 }
  0xcc   : > { %1096 = vmatmul.f32.gmra.mxu0 %v264_v36  ;;  %1384 = vmatmul.f32.gmra.mxu3 %v552_v37 }
  0xcd   : > { %2618 = vst [vmem:[%s3384_s19 + $0x18] sm:$0xff] %v2490_v40  ;;  %v1852_v42 = vadd.f32 %v1851_v30, %v1451_v41  ;;  %1497 = vmatmul.f32.gmra.mxu1 %v265_v39  ;;  %v1854_v43 = vpop.f32.mrf.mxu2  ;;  %v564_v30 = vld [vmem:[%s3194_s7 + $0xb40] sm:$0xff] }
  0xce   : > { %v284_v40 = vld [vmem:[%s3194_s7 + $0x280] sm:$0xff] }
  0xcf   : > { %v2231_v44 = vmul.f32 %v3366_v52, %v1852_v42  ;;  %v3420_v45 = vpop.f32.mrf.mxu3 }
  0xd1   : > { %v2363_v47 = vadd.f32 %v3371_v54, %v2231_v44  ;;  %v1052_v48 = vpop.f32.mrf.mxu0  ;;  %v567_v44 = vld [vmem:[%s3194_s7 + $0xb58] sm:$0xff] }
  0xd2   : > { %v1453_v51 = vpop.f32.mrf.mxu1  ;;  %2831 = vmatmul.msk.f32.gmra.mxu2 %vm631_vm1, %v272_v46 }
  0xd3   : > { %v2491_v55 = vmax.f32 %v2363_v47, 0.0  ;;  %v1454_v56 = vadd.f32 %v1453_v51, %v1052_v48  ;;  %v280_v47 = vld [vmem:[%s3194_s7 + $0x260] sm:$0xff] }
  0xd4   : > { %1099 = vmatmul.f32.gmra.mxu0 %v267_v49  ;;  %1387 = vmatmul.f32.gmra.mxu3 %v555_v50 }
  0xd5   : > { %2619 = vst [vmem:[%s3384_s19 + $0x20] sm:$0xff] %v2491_v55  ;;  %v1855_v58 = vadd.f32 %v1854_v43, %v1454_v56  ;;  %1500 = vmatmul.f32.gmra.mxu1 %v268_v53  ;;  %v1857_v59 = vpop.f32.mrf.mxu2  ;;  %v279_v43 = vld [vmem:[%s3194_s7 + $0x258] sm:$0xff] }
  0xd6   : > { %v287_v56 = vld [vmem:[%s3194_s7 + $0x298] sm:$0xff] }
  0xd7   : > { %v2232_v60 = vmul.f32 %v3366_v52, %v1855_v58  ;;  %v3430_v61 = vpop.f32.mrf.mxu3 }
  0xd9   : > { %v2364_v63 = vadd.f32 %v3371_v54, %v2232_v60  ;;  %v1055_v0 = vpop.f32.mrf.mxu0  ;;  %v282_v60 = vld [vmem:[%s3194_s7 + $0x270] sm:$0xff] }
  0xda   : > { %v1456_v4 = vpop.f32.mrf.mxu1  ;;  %2832 = vmatmul.msk.f32.gmra.mxu2 %vm631_vm1, %v275_v62  ;;  %v570_v62 = vld [vmem:[%s3194_s7 + $0xb70] sm:$0xff] }
  0xdb   : > { %v2492_v5 = vmax.f32 %v2364_v63, 0.0  ;;  %v1457_v7 = vadd.f32 %v1456_v4, %v1055_v0  ;;  %v283_v0 = vld [vmem:[%s3194_s7 + $0x278] sm:$0xff] }
  0xdc   : > { %1102 = vmatmul.f32.gmra.mxu0 %v270_v1  ;;  %1390 = vmatmul.f32.gmra.mxu3 %v558_v3 }
  0xdd   : > { %2620 = vst [vmem:[%s3384_s19 + $0x28] sm:$0xff] %v2492_v5  ;;  %v1858_v8 = vadd.f32 %v1857_v59, %v1457_v7  ;;  %1503 = vmatmul.f32.gmra.mxu1 %v271_v2  ;;  %v1860_v9 = vpop.f32.mrf.mxu2 }
  0xdf   : > { %v2233_v10 = vmul.f32 %v3366_v52, %v1858_v8  ;;  %v3440_v11 = vpop.f32.mrf.mxu3  ;;  %v290_v8 = vld [vmem:[%s3194_s7 + $0x2b0] sm:$0xff] }
  0xe1   : > { %v2365_v13 = vadd.f32 %v3371_v54, %v2233_v10  ;;  %v1058_v14 = vpop.f32.mrf.mxu0 }
  0xe2   : > { %v1459_v17 = vpop.f32.mrf.mxu1  ;;  %2833 = vmatmul.msk.f32.gmra.mxu2 %vm631_vm1, %v278_v12  ;;  %v285_v12 = vld [vmem:[%s3194_s7 + $0x288] sm:$0xff] }
  0xe3   : > { %v2493_v20 = vmax.f32 %v2365_v13, 0.0  ;;  %v1460_v21 = vadd.f32 %v1459_v17, %v1058_v14  ;;  %v573_v13 = vld [vmem:[%s3194_s7 + $0xb88] sm:$0xff] }
  0xe4   : > { %1105 = vmatmul.f32.gmra.mxu0 %v273_v15  ;;  %1393 = vmatmul.f32.gmra.mxu3 %v561_v16  ;;  %v286_v15 = vld [vmem:[%s3194_s7 + $0x290] sm:$0xff] }
  0xe5   : > { %2621 = vst [vmem:[%s3384_s19 + $0x30] sm:$0xff] %v2493_v20  ;;  %v1861_v22 = vadd.f32 %v1860_v9, %v1460_v21  ;;  %1506 = vmatmul.f32.gmra.mxu1 %v274_v18  ;;  %v1863_v23 = vpop.f32.mrf.mxu2 }
  0xe7   : > { %v2234_v24 = vmul.f32 %v3366_v52, %v1861_v22  ;;  %v3450_v25 = vpop.f32.mrf.mxu3 }
  0xe9   : > { %v2366_v27 = vadd.f32 %v3371_v54, %v2234_v24  ;;  %v1061_v28 = vpop.f32.mrf.mxu0 }
  0xea   : > { %v1462_v31 = vpop.f32.mrf.mxu1  ;;  %2834 = vmatmul.msk.f32.gmra.mxu2 %vm631_vm1, %v281_v26 }
  0xeb   : > { %v2494_v34 = vmax.f32 %v2366_v27, 0.0  ;;  %v1463_v35 = vadd.f32 %v1462_v31, %v1061_v28  ;;  %v288_v27 = vld [vmem:[%s3194_s7 + $0x2a0] sm:$0xff] }
  0xec   : > { %1108 = vmatmul.f32.gmra.mxu0 %v276_v29  ;;  %1396 = vmatmul.f32.gmra.mxu3 %v564_v30  ;;  %v576_v28 = vld [vmem:[%s3194_s7 + $0xba0] sm:$0xff]  ;;  %v289_v30 = vld [vmem:[%s3194_s7 + $0x2a8] sm:$0xff] }
  0xed   : > { %2622 = vst [vmem:[%s3384_s19 + $0x38] sm:$0xff] %v2494_v34  ;;  %v1864_v36 = vadd.f32 %v1863_v23, %v1463_v35  ;;  %1509 = vmatmul.f32.gmra.mxu1 %v277_v33  ;;  %v1866_v37 = vpop.f32.mrf.mxu2  ;;  %v293_v23 = vld [vmem:[%s3194_s7 + $0x2c8] sm:$0xff] }
  0xef   : > { %v2235_v38 = vmul.f32 %v3366_v52, %v1864_v36  ;;  %v3460_v39 = vpop.f32.mrf.mxu3 }
  0xf1   : > { %v2367_v41 = vadd.f32 %v3371_v54, %v2235_v38  ;;  %v1064_v42 = vpop.f32.mrf.mxu0  ;;  %v296_v38 = vld [vmem:[%s3194_s7 + $0x2e0] sm:$0xff] }
  0xf2   : > { %v1465_v46 = vpop.f32.mrf.mxu1  ;;  %2835 = vmatmul.msk.f32.gmra.mxu2 %vm631_vm1, %v284_v40 }
  0xf3   : > { %v2495_v48 = vmax.f32 %v2367_v41, 0.0  ;;  %v1466_v49 = vadd.f32 %v1465_v46, %v1064_v42  ;;  %v291_v42 = vld [vmem:[%s3194_s7 + $0x2b8] sm:$0xff]  ;;  %v292_v46 = vld [vmem:[%s3194_s7 + $0x2c0] sm:$0xff] }
  0xf4   : > { %1111 = vmatmul.f32.gmra.mxu0 %v279_v43  ;;  %1399 = vmatmul.f32.gmra.mxu3 %v567_v44  ;;  %v579_v43 = vld [vmem:[%s3194_s7 + $0xbb8] sm:$0xff] }
  0xf5   : > { %2623 = vst [vmem:[%s3384_s19 + $0x40] sm:$0xff] %v2495_v48  ;;  %v1867_v50 = vadd.f32 %v1866_v37, %v1466_v49  ;;  %1512 = vmatmul.f32.gmra.mxu1 %v280_v47  ;;  %v1869_v51 = vpop.f32.mrf.mxu2 }
  0xf7   : > { %v2236_v53 = vmul.f32 %v3366_v52, %v1867_v50  ;;  %v3470_v55 = vpop.f32.mrf.mxu3 }
  0xf9   : > { %v2368_v58 = vadd.f32 %v3371_v54, %v2236_v53  ;;  %v1067_v59 = vpop.f32.mrf.mxu0 }
  0xfa   : > { %v1468_v63 = vpop.f32.mrf.mxu1  ;;  %2836 = vmatmul.msk.f32.gmra.mxu2 %vm631_vm1, %v287_v56  ;;  %v299_v56 = vld [vmem:[%s3194_s7 + $0x2f8] sm:$0xff] }
  0xfb   : > { %v2496_v1 = vmax.f32 %v2368_v58, 0.0  ;;  %v1469_v3 = vadd.f32 %v1468_v63, %v1067_v59 }
  0xfc   : > { %1114 = vmatmul.f32.gmra.mxu0 %v282_v60  ;;  %1402 = vmatmul.f32.gmra.mxu3 %v570_v62  ;;  %v294_v60 = vld [vmem:[%s3194_s7 + $0x2d0] sm:$0xff] }
  0xfd   : > { %2624 = vst [vmem:[%s3384_s19 + $0x48] sm:$0xff] %v2496_v1  ;;  %v1870_v4 = vadd.f32 %v1869_v51, %v1469_v3  ;;  %1515 = vmatmul.f32.gmra.mxu1 %v283_v0  ;;  %v1872_v2 = vpop.f32.mrf.mxu2  ;;  %v582_v62 = vld [vmem:[%s3194_s7 + $0xbd0] sm:$0xff]  ;;  %v295_v0 = vld [vmem:[%s3194_s7 + $0x2d8] sm:$0xff] }
  0xff   : > { %v2237_v5 = vmul.f32 %v3366_v52, %v1870_v4  ;;  %v3480_v7 = vpop.f32.mrf.mxu3 }
 0x101   : > { %v2369_v9 = vadd.f32 %v3371_v54, %v2237_v5  ;;  %v1070_v10 = vpop.f32.mrf.mxu0 }
 0x102   : > { %v1471_v14 = vpop.f32.mrf.mxu1  ;;  %2837 = vmatmul.msk.f32.gmra.mxu2 %vm631_vm1, %v290_v8 }
 0x103   : > { %v2497_v16 = vmax.f32 %v2369_v9, 0.0  ;;  %v1472_v17 = vadd.f32 %v1471_v14, %v1070_v10  ;;  %v302_v9 = vld [vmem:[%s3194_s7 + $0x310] sm:$0xff]  ;;  %v585_v14 = vld [vmem:[%s3194_s7 + $0xbe8] sm:$0xff] }
 0x104   : > { %1117 = vmatmul.f32.gmra.mxu0 %v285_v12  ;;  %1405 = vmatmul.f32.gmra.mxu3 %v573_v13  ;;  %v297_v13 = vld [vmem:[%s3194_s7 + $0x2e8] sm:$0xff] }
 0x105   : > { %2625 = vst [vmem:[%s3384_s19 + $0x50] sm:$0xff] %v2497_v16  ;;  %v1873_v18 = vadd.f32 %v1872_v2, %v1472_v17  ;;  %1518 = vmatmul.f32.gmra.mxu1 %v286_v15  ;;  %v1875_v20 = vpop.f32.mrf.mxu2  ;;  %v298_v16 = vld [vmem:[%s3194_s7 + $0x2f0] sm:$0xff] }
 0x107   : > { %v2238_v21 = vmul.f32 %v3366_v52, %v1873_v18  ;;  %v3490_v22 = vpop.f32.mrf.mxu3 }
 0x109   : > { %v2370_v24 = vadd.f32 %v3371_v54, %v2238_v21  ;;  %v1073_v26 = vpop.f32.mrf.mxu0 }
 0x10a   : > { %v1474_v29 = vpop.f32.mrf.mxu1  ;;  %2838 = vmatmul.msk.f32.gmra.mxu2 %vm631_vm1, %v293_v23 }
 0x10b   : > { %v2498_v31 = vmax.f32 %v2370_v24, 0.0  ;;  %v1475_v33 = vadd.f32 %v1474_v29, %v1073_v26  ;;  %v305_v26 = vld [vmem:[%s3194_s7 + $0x328] sm:$0xff]  ;;  %v300_v29 = vld [vmem:[%s3194_s7 + $0x300] sm:$0xff] }
 0x10c   : > { %1120 = vmatmul.f32.gmra.mxu0 %v288_v27  ;;  %1408 = vmatmul.f32.gmra.mxu3 %v576_v28 }
 0x10d   : > { %2626 = vst [vmem:[%s3384_s19 + $0x58] sm:$0xff] %v2498_v31  ;;  %v1876_v34 = vadd.f32 %v1875_v20, %v1475_v33  ;;  %1521 = vmatmul.f32.gmra.mxu1 %v289_v30  ;;  %v1878_v35 = vpop.f32.mrf.mxu2  ;;  %v493_v30 = vld [vmem:[%s3194_s7 + $0x908] sm:$0xff] }
 0x10e   : > { %v301_v33 = vld [vmem:[%s3194_s7 + $0x308] sm:$0xff] }
 0x10f   : > { %v2239_v36 = vmul.f32 %v3366_v52, %v1876_v34  ;;  %v3500_v37 = vpop.f32.mrf.mxu3 }
 0x111   : > { %v2371_v40 = vadd.f32 %v3371_v54, %v2239_v36  ;;  %v1076_v41 = vpop.f32.mrf.mxu0 }
 0x112   : > { %v1477_v44 = vpop.f32.mrf.mxu1  ;;  %2839 = vmatmul.msk.f32.gmra.mxu2 %vm631_vm1, %v296_v38 }
 0x113   : > { %v2499_v47 = vmax.f32 %v2371_v40, 0.0  ;;  %v1478_v48 = vadd.f32 %v1477_v44, %v1076_v41 }
 0x114   : > { %1123 = vmatmul.f32.gmra.mxu0 %v291_v42  ;;  %1411 = vmatmul.f32.gmra.mxu3 %v579_v43  ;;  %v308_v42 = vld [vmem:[%s3194_s7 + $0x340] sm:$0xff] }
 0x115   : > { %2627 = vst [vmem:[%s3384_s19 + $0x60] sm:$0xff] %v2499_v47  ;;  %v1879_v49 = vadd.f32 %v1878_v35, %v1478_v48  ;;  %1524 = vmatmul.f32.gmra.mxu1 %v292_v46  ;;  %v1881_v50 = vpop.f32.mrf.mxu2  ;;  %v303_v46 = vld [vmem:[%s3194_s7 + $0x318] sm:$0xff]  ;;  %v496_v47 = vld [vmem:[%s3194_s7 + $0x920] sm:$0xff] }
 0x117   : > { %v2240_v51 = vmul.f32 %v3366_v52, %v1879_v49  ;;  %v3510_v53 = vpop.f32.mrf.mxu3  ;;  %v304_v49 = vld [vmem:[%s3194_s7 + $0x320] sm:$0xff] }
 0x119   : > { %v2372_v58 = vadd.f32 %v3371_v54, %v2240_v51  ;;  %v1079_v59 = vpop.f32.mrf.mxu0 }
 0x11a   : > { %v1480_v63 = vpop.f32.mrf.mxu1  ;;  %2840 = vmatmul.msk.f32.gmra.mxu2 %vm631_vm1, %v299_v56 }
 0x11b   : > { %v2500_v1 = vmax.f32 %v2372_v58, 0.0  ;;  %v1481_v3 = vadd.f32 %v1480_v63, %v1079_v59 }
 0x11c   : > { %1126 = vmatmul.f32.gmra.mxu0 %v294_v60  ;;  %1414 = vmatmul.f32.gmra.mxu3 %v582_v62  ;;  %v311_v62 = vld [vmem:[%s3194_s7 + $0x358] sm:$0xff] }
 0x11d   : > { %2628 = vst [vmem:[%s3384_s19 + $0x68] sm:$0xff] %v2500_v1  ;;  %v1882_v4 = vadd.f32 %v1881_v50, %v1481_v3  ;;  %1527 = vmatmul.f32.gmra.mxu1 %v295_v0  ;;  %v1884_v2 = vpop.f32.mrf.mxu2  ;;  %v306_v1 = vld [vmem:[%s3194_s7 + $0x330] sm:$0xff]  ;;  %v499_v3 = vld [vmem:[%s3194_s7 + $0x938] sm:$0xff] }
 0x11f   : > { %v2241_v5 = vmul.f32 %v3366_v52, %v1882_v4  ;;  %v3520_v8 = vpop.f32.mrf.mxu3 }
 0x121   : > { %v2373_v10 = vadd.f32 %v3371_v54, %v2241_v5  ;;  %v1082_v12 = vpop.f32.mrf.mxu0 }
 0x122   : > { %v1483_v15 = vpop.f32.mrf.mxu1  ;;  %2841 = vmatmul.msk.f32.gmra.mxu2 %vm631_vm1, %v302_v9 }
 0x123   : > { %v2501_v17 = vmax.f32 %v2373_v10, 0.0  ;;  %v1484_v18 = vadd.f32 %v1483_v15, %v1082_v12  ;;  %v314_v15 = vld [vmem:[%s3194_s7 + $0x370] sm:$0xff] }
 0x124   : > { %1129 = vmatmul.f32.gmra.mxu0 %v297_v13  ;;  %1417 = vmatmul.f32.gmra.mxu3 %v585_v14 }
 0x125   : > { %2629 = vst [vmem:[%s3384_s19 + $0x70] sm:$0xff] %v2501_v17  ;;  %v1885_v20 = vadd.f32 %v1884_v2, %v1484_v18  ;;  %1530 = vmatmul.f32.gmra.mxu1 %v298_v16  ;;  %v1887_v21 = vpop.f32.mrf.mxu2  ;;  %v307_v2 = vld [vmem:[%s3194_s7 + $0x338] sm:$0xff]  ;;  %v309_v18 = vld [vmem:[%s3194_s7 + $0x348] sm:$0xff] }
 0x127   : > { %v2242_v23 = vmul.f32 %v3366_v52, %v1885_v20  ;;  %v3530_v24 = vpop.f32.mrf.mxu3  ;;  %v502_v20 = vld [vmem:[%s3194_s7 + $0x950] sm:$0xff] }
 0x129   : > { %v2374_v27 = vadd.f32 %v3371_v54, %v2242_v23  ;;  %v1085_v28 = vpop.f32.mrf.mxu0  ;;  %v310_v23 = vld [vmem:[%s3194_s7 + $0x350] sm:$0xff] }
 0x12a   : > { %v1486_v31 = vpop.f32.mrf.mxu1  ;;  %2842 = vmatmul.msk.f32.gmra.mxu2 %vm631_vm1, %v305_v26 }
 0x12b   : > { %v2502_v34 = vmax.f32 %v2374_v27, 0.0  ;;  %v1487_v35 = vadd.f32 %v1486_v31, %v1085_v28 }
 0x12c   : > { %1132 = vmatmul.f32.gmra.mxu0 %v300_v29  ;;  %1725 = vmatmul.f32.vlgmr.msrb.gmra.mxu3 %v493_v30 }
 0x12d   : > { %2630 = vst [vmem:[%s3384_s19 + $0x78] sm:$0xff] %v2502_v34  ;;  %v1888_v36 = vadd.f32 %v1887_v21, %v1487_v35  ;;  %1533 = vmatmul.f32.gmra.mxu1 %v301_v33  ;;  %v1890_v38 = vpop.f32.mrf.mxu2  ;;  %v317_v33 = vld [vmem:[%s3194_s7 + $0x388] sm:$0xff] }
 0x12f   : > { %v2243_v40 = vmul.f32 %v3366_v52, %v1888_v36  ;;  %v3540_v41 = vpop.f32.mrf.mxu3  ;;  %v312_v36 = vld [vmem:[%s3194_s7 + $0x360] sm:$0xff] }
 0x131   : > { %v2375_v43 = vadd.f32 %v3371_v54, %v2243_v40  ;;  %v1088_v44 = vpop.f32.mrf.mxu0 }
 0x132   : > { %v1489_v48 = vpop.f32.mrf.mxu1  ;;  %2843 = vmatmul.msk.f32.gmra.mxu2 %vm631_vm1, %v308_v42  ;;  %v313_v42 = vld [vmem:[%s3194_s7 + $0x368] sm:$0xff] }
 0x133   : > { %v2503_v50 = vmax.f32 %v2375_v43, 0.0  ;;  %v1490_v51 = vadd.f32 %v1489_v48, %v1088_v44 }
 0x134   : > { %1135 = vmatmul.f32.gmra.mxu0 %v303_v46  ;;  %1728 = vmatmul.f32.gmra.mxu3 %v496_v47 }
 0x135   : > { %2631 = vst [vmem:[%s3384_s19 + $0x80] sm:$0xff] %v2503_v50  ;;  %v1891_v56 = vadd.f32 %v1890_v38, %v1490_v51  ;;  %1536 = vmatmul.f32.gmra.mxu1 %v304_v49  ;;  %v1893_v58 = vpop.f32.mrf.mxu2  ;;  %v505_v38 = vld [vmem:[%s3194_s7 + $0x968] sm:$0xff]  ;;  %v320_v50 = vld [vmem:[%s3194_s7 + $0x3a0] sm:$0xff] }
 0x137   : > { %v2244_v59 = vmul.f32 %v3366_v52, %v1891_v56  ;;  %v3550_v60 = vpop.f32.mrf.mxu3 }
 0x139   : > { %v2376_v63 = vadd.f32 %v3371_v54, %v2244_v59  ;;  %v1091_v0 = vpop.f32.mrf.mxu0  ;;  %v508_v59 = vld [vmem:[%s3194_s7 + $0x980] sm:$0xff] }
 0x13a   : > { %v1492_v4 = vpop.f32.mrf.mxu1  ;;  %2844 = vmatmul.msk.f32.gmra.mxu2 %vm631_vm1, %v311_v62 }
 0x13b   : > { %v2504_v5 = vmax.f32 %v2376_v63, 0.0  ;;  %v1493_v9 = vadd.f32 %v1492_v4, %v1091_v0  ;;  %v316_v63 = vld [vmem:[%s3194_s7 + $0x380] sm:$0xff] }
 0x13c   : > { %1138 = vmatmul.f32.gmra.mxu0 %v306_v1  ;;  %1731 = vmatmul.f32.gmra.mxu3 %v499_v3 }
 0x13d   : > { %2632 = vst [vmem:[%s3384_s19 + $0x88] sm:$0xff] %v2504_v5  ;;  %v1894_v10 = vadd.f32 %v1893_v58, %v1493_v9  ;;  %1539 = vmatmul.f32.gmra.mxu1 %v307_v2  ;;  %v1896_v12 = vpop.f32.mrf.mxu2  ;;  %v315_v58 = vld [vmem:[%s3194_s7 + $0x378] sm:$0xff] }
 0x13e   : > { %v323_v9 = vld [vmem:[%s3194_s7 + $0x3b8] sm:$0xff] }
 0x13f   : > { %v2245_v13 = vmul.f32 %v3366_v52, %v1894_v10  ;;  %v3560_v14 = vpop.f32.mrf.mxu3 }
 0x141   : > { %v2377_v16 = vadd.f32 %v3371_v54, %v2245_v13  ;;  %v1094_v17 = vpop.f32.mrf.mxu0  ;;  %v318_v13 = vld [vmem:[%s3194_s7 + $0x390] sm:$0xff] }
 0x142   : > { %v1495_v21 = vpop.f32.mrf.mxu1  ;;  %2845 = vmatmul.msk.f32.gmra.mxu2 %vm631_vm1, %v314_v15  ;;  %v511_v15 = vld [vmem:[%s3194_s7 + $0x998] sm:$0xff] }
 0x143   : > { %v2505_v26 = vmax.f32 %v2377_v16, 0.0  ;;  %v1496_v27 = vadd.f32 %v1495_v21, %v1094_v17  ;;  %v319_v17 = vld [vmem:[%s3194_s7 + $0x398] sm:$0xff] }
 0x144   : > { %1141 = vmatmul.f32.gmra.mxu0 %v309_v18  ;;  %1734 = vmatmul.f32.gmra.mxu3 %v502_v20 }
 0x145   : > { %2633 = vst [vmem:[%s3384_s19 + $0x90] sm:$0xff] %v2505_v26  ;;  %v1897_v28 = vadd.f32 %v1896_v12, %v1496_v27  ;;  %1542 = vmatmul.f32.gmra.mxu1 %v310_v23  ;;  %v1899_v29 = vpop.f32.mrf.mxu2 }
 0x147   : > { %v2246_v30 = vmul.f32 %v3366_v52, %v1897_v28  ;;  %v3570_v31 = vpop.f32.mrf.mxu3  ;;  %v326_v28 = vld [vmem:[%s3194_s7 + $0x3d0] sm:$0xff] }
 0x149   : > { %v2378_v34 = vadd.f32 %v3371_v54, %v2246_v30  ;;  %v1097_v35 = vpop.f32.mrf.mxu0 }
 0x14a   : > { %v1498_v40 = vpop.f32.mrf.mxu1  ;;  %2846 = vmatmul.msk.f32.gmra.mxu2 %vm631_vm1, %v317_v33  ;;  %v321_v33 = vld [vmem:[%s3194_s7 + $0x3a8] sm:$0xff] }
 0x14b   : > { %v2506_v43 = vmax.f32 %v2378_v34, 0.0  ;;  %v1499_v44 = vadd.f32 %v1498_v40, %v1097_v35  ;;  %v514_v34 = vld [vmem:[%s3194_s7 + $0x9b0] sm:$0xff] }
 0x14c   : > { %1144 = vmatmul.f32.gmra.mxu0 %v312_v36  ;;  %1737 = vmatmul.f32.gmra.mxu3 %v505_v38  ;;  %v322_v36 = vld [vmem:[%s3194_s7 + $0x3b0] sm:$0xff] }
 0x14d   : > { %2634 = vst [vmem:[%s3384_s19 + $0x98] sm:$0xff] %v2506_v43  ;;  %v1900_v46 = vadd.f32 %v1899_v29, %v1499_v44  ;;  %1545 = vmatmul.f32.gmra.mxu1 %v313_v42  ;;  %v1902_v47 = vpop.f32.mrf.mxu2 }
 0x14f   : > { %v2247_v48 = vmul.f32 %v3366_v52, %v1900_v46  ;;  %v3580_v49 = vpop.f32.mrf.mxu3 }
 0x151   : > { %v2379_v51 = vadd.f32 %v3371_v54, %v2247_v48  ;;  %v1100_v56 = vpop.f32.mrf.mxu0 }
 0x152   : > { %v1501_v62 = vpop.f32.mrf.mxu1  ;;  %2847 = vmatmul.msk.f32.gmra.mxu2 %vm631_vm1, %v320_v50 }
 0x153   : > { %v2507_v0 = vmax.f32 %v2379_v51, 0.0  ;;  %v1502_v1 = vadd.f32 %v1501_v62, %v1100_v56  ;;  %v324_v51 = vld [vmem:[%s3194_s7 + $0x3c0] sm:$0xff]  ;;  %v517_v56 = vld [vmem:[%s3194_s7 + $0x9c8] sm:$0xff] }
 0x154   : > { %1147 = vmatmul.f32.gmra.mxu0 %v315_v58  ;;  %1740 = vmatmul.f32.gmra.mxu3 %v508_v59  ;;  %v325_v59 = vld [vmem:[%s3194_s7 + $0x3c8] sm:$0xff] }
 0x155   : > { %2635 = vst [vmem:[%s3384_s19 + $0xa0] sm:$0xff] %v2507_v0  ;;  %v1903_v3 = vadd.f32 %v1902_v47, %v1502_v1  ;;  %1548 = vmatmul.f32.gmra.mxu1 %v316_v63  ;;  %v1905_v4 = vpop.f32.mrf.mxu2  ;;  %v329_v47 = vld [vmem:[%s3194_s7 + $0x3e8] sm:$0xff] }
 0x157   : > { %v2248_v2 = vmul.f32 %v3366_v52, %v1903_v3  ;;  %v3590_v5 = vpop.f32.mrf.mxu3 }
 0x159   : > { %v2380_v10 = vadd.f32 %v3371_v54, %v2248_v2  ;;  %v1103_v12 = vpop.f32.mrf.mxu0  ;;  %v332_v2 = vld [vmem:[%s3194_s7 + $0x400] sm:$0xff] }
 0x15a   : > { %v1504_v16 = vpop.f32.mrf.mxu1  ;;  %2848 = vmatmul.msk.f32.gmra.mxu2 %vm631_vm1, %v323_v9 }
 0x15b   : > { %v2508_v18 = vmax.f32 %v2380_v10, 0.0  ;;  %v1505_v20 = vadd.f32 %v1504_v16, %v1103_v12  ;;  %v327_v12 = vld [vmem:[%s3194_s7 + $0x3d8] sm:$0xff]  ;;  %v328_v16 = vld [vmem:[%s3194_s7 + $0x3e0] sm:$0xff] }
 0x15c   : > { %1150 = vmatmul.f32.gmra.mxu0 %v318_v13  ;;  %1743 = vmatmul.f32.gmra.mxu3 %v511_v15  ;;  %v520_v13 = vld [vmem:[%s3194_s7 + $0x9e0] sm:$0xff] }
 0x15d   : > { %2636 = vst [vmem:[%s3384_s19 + $0xa8] sm:$0xff] %v2508_v18  ;;  %v1906_v21 = vadd.f32 %v1905_v4, %v1505_v20  ;;  %1551 = vmatmul.f32.gmra.mxu1 %v319_v17  ;;  %v1908_v23 = vpop.f32.mrf.mxu2 }
 0x15f   : > { %v2249_v26 = vmul.f32 %v3366_v52, %v1906_v21  ;;  %v3600_v27 = vpop.f32.mrf.mxu3 }
 0x161   : > { %v2381_v29 = vadd.f32 %v3371_v54, %v2249_v26  ;;  %v1106_v30 = vpop.f32.mrf.mxu0 }
 0x162   : > { %v1507_v35 = vpop.f32.mrf.mxu1  ;;  %2849 = vmatmul.msk.f32.gmra.mxu2 %vm631_vm1, %v326_v28  ;;  %v335_v28 = vld [vmem:[%s3194_s7 + $0x418] sm:$0xff] }
 0x163   : > { %v2509_v38 = vmax.f32 %v2381_v29, 0.0  ;;  %v1508_v40 = vadd.f32 %v1507_v35, %v1106_v30 }
 0x164   : > { %1153 = vmatmul.f32.gmra.mxu0 %v321_v33  ;;  %1746 = vmatmul.f32.gmra.mxu3 %v514_v34  ;;  %v330_v33 = vld [vmem:[%s3194_s7 + $0x3f0] sm:$0xff]  ;;  %v523_v34 = vld [vmem:[%s3194_s7 + $0x9f8] sm:$0xff] }
 0x165   : > { %2637 = vst [vmem:[%s3384_s19 + $0xb0] sm:$0xff] %v2509_v38  ;;  %v1909_v42 = vadd.f32 %v1908_v23, %v1508_v40  ;;  %1554 = vmatmul.f32.gmra.mxu1 %v322_v36  ;;  %v1911_v43 = vpop.f32.mrf.mxu2  ;;  %v331_v36 = vld [vmem:[%s3194_s7 + $0x3f8] sm:$0xff] }
 0x167   : > { %v2250_v44 = vmul.f32 %v3366_v52, %v1909_v42  ;;  %v3610_v46 = vpop.f32.mrf.mxu3 }
 0x169   : > { %v2382_v48 = vadd.f32 %v3371_v54, %v2250_v44  ;;  %v1109_v50 = vpop.f32.mrf.mxu0 }
 0x16a   : > { %v1510_v58 = vpop.f32.mrf.mxu1  ;;  %2850 = vmatmul.msk.f32.gmra.mxu2 %vm631_vm1, %v329_v47 }
 0x16b   : > { %v2510_v62 = vmax.f32 %v2382_v48, 0.0  ;;  %v1511_v63 = vadd.f32 %v1510_v58, %v1109_v50  ;;  %v338_v48 = vld [vmem:[%s3194_s7 + $0x430] sm:$0xff] }
 0x16c   : > { %1156 = vmatmul.f32.gmra.mxu0 %v324_v51  ;;  %1749 = vmatmul.f32.gmra.mxu3 %v517_v56  ;;  %v333_v56 = vld [vmem:[%s3194_s7 + $0x408] sm:$0xff]  ;;  %v526_v58 = vld [vmem:[%s3194_s7 + $0xa10] sm:$0xff] }
 0x16d   : > { %2638 = vst [vmem:[%s3384_s19 + $0xb8] sm:$0xff] %v2510_v62  ;;  %v1912_v0 = vadd.f32 %v1911_v43, %v1511_v63  ;;  %1557 = vmatmul.f32.gmra.mxu1 %v325_v59  ;;  %v1914_v1 = vpop.f32.mrf.mxu2  ;;  %v334_v62 = vld [vmem:[%s3194_s7 + $0x410] sm:$0xff] }
 0x16f   : > { %v2251_v3 = vmul.f32 %v3366_v52, %v1912_v0  ;;  %v3620_v4 = vpop.f32.mrf.mxu3 }
 0x170   : > { %4419 = vst [vmem:[#allocation3_spill] sm:$0xff] %v3620_v4 }
 0x171   : > { %v2383_v9 = vadd.f32 %v3371_v54, %v2251_v3  ;;  %v1112_v10 = vpop.f32.mrf.mxu0 }
 0x172   : > { %v1513_v15 = vpop.f32.mrf.mxu1  ;;  %2851 = vmatmul.msk.f32.gmra.mxu2 %vm631_vm1, %v332_v2 }
 0x173   : > { %v2511_v17 = vmax.f32 %v2383_v9, 0.0  ;;  %v1514_v18 = vadd.f32 %v1513_v15, %v1112_v10  ;;  %v341_v10 = vld [vmem:[%s3194_s7 + $0x448] sm:$0xff]  ;;  %v336_v15 = vld [vmem:[%s3194_s7 + $0x420] sm:$0xff] }
 0x174   : > { %1159 = vmatmul.f32.gmra.mxu0 %v327_v12  ;;  %1752 = vmatmul.f32.gmra.mxu3 %v520_v13 }
 0x175   : > { %2639 = vst [vmem:[%s3384_s19 + $0xc0] sm:$0xff] %v2511_v17  ;;  %v1915_v20 = vadd.f32 %v1914_v1, %v1514_v18  ;;  %1560 = vmatmul.f32.gmra.mxu1 %v328_v16  ;;  %v1917_v21 = vpop.f32.mrf.mxu2  ;;  %v529_v16 = vld [vmem:[%s3194_s7 + $0xa28] sm:$0xff] }
 0x176   : > { %v337_v18 = vld [vmem:[%s3194_s7 + $0x428] sm:$0xff] }
 0x177   : > { %v2252_v23 = vmul.f32 %v3366_v52, %v1915_v20  ;;  %v3630_v26 = vpop.f32.mrf.mxu3 }
 0x178   : > { %4420 = vst [vmem:[#allocation4_spill] sm:$0xff] %v3630_v26 }
 0x179   : > { %v2384_v29 = vadd.f32 %v3371_v54, %v2252_v23  ;;  %v1115_v30 = vpop.f32.mrf.mxu0 }
 0x17a   : > { %v1516_v35 = vpop.f32.mrf.mxu1  ;;  %2852 = vmatmul.msk.f32.gmra.mxu2 %vm631_vm1, %v335_v28 }
 0x17b   : > { %v2512_v38 = vmax.f32 %v2384_v29, 0.0  ;;  %v1517_v40 = vadd.f32 %v1516_v35, %v1115_v30  ;;  %v344_v30 = vld [vmem:[%s3194_s7 + $0x460] sm:$0xff] }
 0x17c   : > { %1162 = vmatmul.f32.gmra.mxu0 %v330_v33  ;;  %1755 = vmatmul.f32.gmra.mxu3 %v523_v34  ;;  %v3671_v33 = vld [vmem:[%s4416_s3] ss:$0 sm:$0xff] }
 0x17d   : > { %2640 = vst [vmem:[%s3384_s19 + $0xc8] sm:$0xff] %v2512_v38  ;;  %v1918_v42 = vadd.f32 %v1917_v21, %v1517_v40  ;;  %1563 = vmatmul.f32.gmra.mxu1 %v331_v36  ;;  %v1920_v43 = vpop.f32.mrf.mxu2  ;;  %v339_v36 = vld [vmem:[%s3194_s7 + $0x438] sm:$0xff]  ;;  %v532_v38 = vld [vmem:[%s3194_s7 + $0xa40] sm:$0xff] }
 0x17f   : > { %v2253_v44 = vmul.f32 %v3366_v52, %v1918_v42  ;;  %v3640_v47 = vpop.f32.mrf.mxu3  ;;  %v340_v42 = vld [vmem:[%s3194_s7 + $0x440] sm:$0xff] }
 0x180   : > { %4421 = vst [vmem:[#allocation5_spill] sm:$0xff] %v3640_v47 }
 0x181   : > { %v2385_v50 = vadd.f32 %v3371_v54, %v2253_v44  ;;  %v1118_v51 = vpop.f32.mrf.mxu0 }
 0x182   : > { %v1519_v59 = vpop.f32.mrf.mxu1  ;;  %2853 = vmatmul.msk.f32.gmra.mxu2 %vm631_vm1, %v338_v48 }
 0x183   : > { %v2513_v63 = vmax.f32 %v2385_v50, 0.0  ;;  %v1520_v0 = vadd.f32 %v1519_v59, %v1118_v51 }
 0x184   : > { %1165 = vmatmul.f32.gmra.mxu0 %v333_v56  ;;  %1758 = vmatmul.f32.gmra.mxu3 %v526_v58  ;;  %v347_v58 = vld [vmem:[%s3194_s7 + $0x478] sm:$0xff] }
 0x185   : > { %2641 = vst [vmem:[%s3384_s19 + $0xd0] sm:$0xff] %v2513_v63  ;;  %v1921_v1 = vadd.f32 %v1920_v43, %v1520_v0  ;;  %1566 = vmatmul.f32.gmra.mxu1 %v334_v62  ;;  %v1923_v3 = vpop.f32.mrf.mxu2  ;;  %v342_v63 = vld [vmem:[%s3194_s7 + $0x450] sm:$0xff]  ;;  %v535_v0 = vld [vmem:[%s3194_s7 + $0xa58] sm:$0xff] }
 0x187   : > { %v2254_v2 = vmul.f32 %v3366_v52, %v1921_v1  ;;  %v3650_v9 = vpop.f32.mrf.mxu3 }
 0x188   : > { %4422 = vst [vmem:[#allocation6_spill] sm:$0xff] %v3650_v9 }
 0x189   : > { %v2386_v12 = vadd.f32 %v3371_v54, %v2254_v2  ;;  %v1121_v13 = vpop.f32.mrf.mxu0  ;;  %v3662_v54 = vld [vmem:[%s4415_s2] ss:$0 sm:$0xff] }
 0x18a   : > { %v1522_v17 = vpop.f32.mrf.mxu1  ;;  %2854 = vmatmul.msk.f32.gmra.mxu2 %vm631_vm1, %v341_v10 }
 0x18b   : > { %v2514_v20 = vmax.f32 %v2386_v12, 0.0  ;;  %v1523_v21 = vadd.f32 %v1522_v17, %v1121_v13  ;;  %v350_v17 = vld [vmem:[%s3194_s7 + $0x490] sm:$0xff] }
 0x18c   : > { %1168 = vmatmul.f32.gmra.mxu0 %v336_v15  ;;  %1761 = vmatmul.f32.gmra.mxu3 %v529_v16 }
 0x18d   : > { %2642 = vst [vmem:[%s3384_s19 + $0xd8] sm:$0xff] %v2514_v20  ;;  %v1924_v52 = vadd.f32 %v1923_v3, %v1523_v21  ;;  %1569 = vmatmul.f32.gmra.mxu1 %v337_v18  ;;  %v1926_v23 = vpop.f32.mrf.mxu2  ;;  %v343_v3 = vld [vmem:[%s3194_s7 + $0x458] sm:$0xff]  ;;  %v345_v21 = vld [vmem:[%s3194_s7 + $0x468] sm:$0xff] }
 0x18f   : > { %v2255_v28 = vmul.f32 %v3662_v54, %v1924_v52  ;;  %v3665_v29 = vpop.f32.mrf.mxu3  ;;  %v538_v52 = vld [vmem:[%s3194_s7 + $0xa70] sm:$0xff] }
 0x190   : > { %4423 = vst [vmem:[#allocation7_spill] sm:$0xff] %v3665_v29 }
 0x191   : > { %v2387_v34 = vadd.f32 %v3671_v33, %v2255_v28  ;;  %v1124_v35 = vpop.f32.mrf.mxu0  ;;  %v346_v28 = vld [vmem:[%s3194_s7 + $0x470] sm:$0xff] }
 0x192   : > { %v1525_v40 = vpop.f32.mrf.mxu1  ;;  %2855 = vmatmul.msk.f32.gmra.mxu2 %vm631_vm1, %v344_v30 }
 0x193   : > { %v2515_v43 = vmax.f32 %v2387_v34, 0.0  ;;  %v1526_v44 = vadd.f32 %v1525_v40, %v1124_v35 }
 0x194   : > { %1171 = vmatmul.f32.gmra.mxu0 %v339_v36  ;;  %1764 = vmatmul.f32.gmra.mxu3 %v532_v38 }
 0x195   : > { %2643 = vst [vmem:[%s3384_s19 + $0xe0] sm:$0xff] %v2515_v43  ;;  %v1927_v48 = vadd.f32 %v1926_v23, %v1526_v44  ;;  %1572 = vmatmul.f32.gmra.mxu1 %v340_v42  ;;  %v1929_v50 = vpop.f32.mrf.mxu2  ;;  %v353_v42 = vld [vmem:[%s3194_s7 + $0x4a8] sm:$0xff] }
 0x197   : > { %v2256_v51 = vmul.f32 %v3662_v54, %v1927_v48  ;;  %v3680_v56 = vpop.f32.mrf.mxu3  ;;  %v348_v48 = vld [vmem:[%s3194_s7 + $0x480] sm:$0xff] }
 0x198   : > { %4424 = vst [vmem:[#allocation8_spill] sm:$0xff] %v3680_v56 }
 0x199   : > { %v2388_v59 = vadd.f32 %v3671_v33, %v2256_v51  ;;  %v1127_v62 = vpop.f32.mrf.mxu0 }
 0x19a   : > { %v1528_v1 = vpop.f32.mrf.mxu1  ;;  %2856 = vmatmul.msk.f32.gmra.mxu2 %vm631_vm1, %v347_v58  ;;  %v349_v58 = vld [vmem:[%s3194_s7 + $0x488] sm:$0xff] }
 0x19b   : > { %v2516_v2 = vmax.f32 %v2388_v59, 0.0  ;;  %v1529_v10 = vadd.f32 %v1528_v1, %v1127_v62 }
 0x19c   : > { %1174 = vmatmul.f32.gmra.mxu0 %v342_v63  ;;  %1767 = vmatmul.f32.gmra.mxu3 %v535_v0 }
 0x19d   : > { %2644 = vst [vmem:[%s3384_s19 + $0xe8] sm:$0xff] %v2516_v2  ;;  %v1930_v12 = vadd.f32 %v1929_v50, %v1529_v10  ;;  %1575 = vmatmul.f32.gmra.mxu1 %v343_v3  ;;  %v1932_v13 = vpop.f32.mrf.mxu2  ;;  %v541_v50 = vld [vmem:[%s3194_s7 + $0xa88] sm:$0xff]  ;;  %v356_v2 = vld [vmem:[%s3194_s7 + $0x4c0] sm:$0xff] }
 0x19f   : > { %v2257_v15 = vmul.f32 %v3662_v54, %v1930_v12  ;;  %v3690_v16 = vpop.f32.mrf.mxu3 }
 0x1a0   : > { %4425 = vst [vmem:[#allocation9_spill] sm:$0xff] %v3690_v16 }
 0x1a1   : > { %v2389_v18 = vadd.f32 %v3671_v33, %v2257_v15  ;;  %v1130_v20 = vpop.f32.mrf.mxu0  ;;  %v544_v15 = vld [vmem:[%s3194_s7 + $0xaa0] sm:$0xff] }
 0x1a2   : > { %v1531_v23 = vpop.f32.mrf.mxu1  ;;  %2857 = vmatmul.msk.f32.gmra.mxu2 %vm631_vm1, %v350_v17 }
 0x1a3   : > { %v2517_v30 = vmax.f32 %v2389_v18, 0.0  ;;  %v1532_v34 = vadd.f32 %v1531_v23, %v1130_v20  ;;  %v352_v18 = vld [vmem:[%s3194_s7 + $0x4a0] sm:$0xff] }
 0x1a4   : > { %1177 = vmatmul.f32.gmra.mxu0 %v345_v21  ;;  %1770 = vmatmul.f32.gmra.mxu3 %v538_v52 }
 0x1a5   : > { %2645 = vst [vmem:[%s3384_s19 + $0xf0] sm:$0xff] %v2517_v30  ;;  %v1933_v35 = vadd.f32 %v1932_v13, %v1532_v34  ;;  %1578 = vmatmul.f32.gmra.mxu1 %v346_v28  ;;  %v1935_v36 = vpop.f32.mrf.mxu2  ;;  %v351_v13 = vld [vmem:[%s3194_s7 + $0x498] sm:$0xff] }
 0x1a6   : > { %v359_v34 = vld [vmem:[%s3194_s7 + $0x4d8] sm:$0xff] }
 0x1a7   : > { %v2258_v38 = vmul.f32 %v3662_v54, %v1933_v35  ;;  %v3700_v40 = vpop.f32.mrf.mxu3 }
 0x1a8   : > { %4426 = vst [vmem:[#allocation10_spill] sm:$0xff] %v3700_v40 }
 0x1a9   : > { %v2390_v43 = vadd.f32 %v3671_v33, %v2258_v38  ;;  %v1133_v44 = vpop.f32.mrf.mxu0  ;;  %v354_v38 = vld [vmem:[%s3194_s7 + $0x4b0] sm:$0xff] }
 0x1aa   : > { %v1534_v51 = vpop.f32.mrf.mxu1  ;;  %2858 = vmatmul.msk.f32.gmra.mxu2 %vm631_vm1, %v353_v42  ;;  %v547_v42 = vld [vmem:[%s3194_s7 + $0xab8] sm:$0xff] }
 0x1ab   : > { %v2518_v59 = vmax.f32 %v2390_v43, 0.0  ;;  %v1535_v62 = vadd.f32 %v1534_v51, %v1133_v44  ;;  %v355_v44 = vld [vmem:[%s3194_s7 + $0x4b8] sm:$0xff] }
 0x1ac   : > { %1180 = vmatmul.f32.gmra.mxu0 %v348_v48  ;;  %1773 = vmatmul.f32.gmra.mxu3 %v541_v50 }
 0x1ad   : > { %2646 = vst [vmem:[%s3384_s19 + $0xf8] sm:$0xff] %v2518_v59  ;;  %v1936_v63 = vadd.f32 %v1935_v36, %v1535_v62  ;;  %1581 = vmatmul.f32.gmra.mxu1 %v349_v58  ;;  %v1938_v0 = vpop.f32.mrf.mxu2 }
 0x1af   : > { %v2259_v1 = vmul.f32 %v3662_v54, %v1936_v63  ;;  %v3710_v3 = vpop.f32.mrf.mxu3  ;;  %v362_v63 = vld [vmem:[%s3194_s7 + $0x4f0] sm:$0xff] }
 0x1b0   : > { %4427 = vst [vmem:[#allocation11_spill] sm:$0xff] %v3710_v3  ;;  %v393_v3 = vld [vmem:[%s3194_s7 + $0x5e8] sm:$0xff] }
 0x1b1   : > { %v2391_v10 = vadd.f32 %v3671_v33, %v2259_v1  ;;  %v1136_v12 = vpop.f32.mrf.mxu0 }
 0x1b2   : > { %v1537_v17 = vpop.f32.mrf.mxu1  ;;  %2859 = vmatmul.msk.f32.gmra.mxu2 %vm631_vm1, %v356_v2  ;;  %v357_v2 = vld [vmem:[%s3194_s7 + $0x4c8] sm:$0xff] }
 0x1b3   : > { %v2519_v20 = vmax.f32 %v2391_v10, 0.0  ;;  %v1538_v21 = vadd.f32 %v1537_v17, %v1136_v12  ;;  %v550_v10 = vld [vmem:[%s3194_s7 + $0xad0] sm:$0xff] }
 0x1b4   : > { %1183 = vmatmul.f32.gmra.mxu0 %v351_v13  ;;  %1776 = vmatmul.f32.gmra.mxu3 %v544_v15  ;;  %v358_v13 = vld [vmem:[%s3194_s7 + $0x4d0] sm:$0xff] }
 0x1b5   : > { %2647 = vst [vmem:[%s3384_s19 + $0x100] sm:$0xff] %v2519_v20  ;;  %v1939_v52 = vadd.f32 %v1938_v0, %v1538_v21  ;;  %1584 = vmatmul.f32.gmra.mxu1 %v352_v18  ;;  %v1941_v23 = vpop.f32.mrf.mxu2 }
 0x1b7   : > { %v2260_v28 = vmul.f32 %v3662_v54, %v1939_v52  ;;  %v3720_v30 = vpop.f32.mrf.mxu3 }
 0x1b9   : > { %v2392_v35 = vadd.f32 %v3671_v33, %v2260_v28  ;;  %v1139_v36 = vpop.f32.mrf.mxu0 }
 0x1ba   : > { %v1540_v43 = vpop.f32.mrf.mxu1  ;;  %2860 = vmatmul.msk.f32.gmra.mxu2 %vm631_vm1, %v359_v34 }
 0x1bb   : > { %v2520_v48 = vmax.f32 %v2392_v35, 0.0  ;;  %v1541_v50 = vadd.f32 %v1540_v43, %v1139_v36  ;;  %v360_v35 = vld [vmem:[%s3194_s7 + $0x4e0] sm:$0xff]  ;;  %v553_v36 = vld [vmem:[%s3194_s7 + $0xae8] sm:$0xff] }
 0x1bc   : > { %1186 = vmatmul.f32.gmra.mxu0 %v354_v38  ;;  %1779 = vmatmul.f32.gmra.mxu3 %v547_v42  ;;  %v361_v42 = vld [vmem:[%s3194_s7 + $0x4e8] sm:$0xff] }
 0x1bd   : > { %2648 = vst [vmem:[%s3384_s19 + $0x108] sm:$0xff] %v2520_v48  ;;  %v1942_v51 = vadd.f32 %v1941_v23, %v1541_v50  ;;  %1587 = vmatmul.f32.gmra.mxu1 %v355_v44  ;;  %v1944_v58 = vpop.f32.mrf.mxu2  ;;  %v365_v23 = vld [vmem:[%s3194_s7 + $0x508] sm:$0xff] }
 0x1bf   : > { %v2261_v59 = vmul.f32 %v3662_v54, %v1942_v51  ;;  %v3730_v62 = vpop.f32.mrf.mxu3 }
 0x1c1   : > { %v2393_v0 = vadd.f32 %v3671_v33, %v2261_v59  ;;  %v1142_v1 = vpop.f32.mrf.mxu0  ;;  %v368_v59 = vld [vmem:[%s3194_s7 + $0x520] sm:$0xff] }
 0x1c2   : > { %v1543_v12 = vpop.f32.mrf.mxu1  ;;  %2861 = vmatmul.msk.f32.gmra.mxu2 %vm631_vm1, %v362_v63 }
 0x1c3   : > { %v2521_v15 = vmax.f32 %v2393_v0, 0.0  ;;  %v1544_v17 = vadd.f32 %v1543_v12, %v1142_v1  ;;  %v363_v1 = vld [vmem:[%s3194_s7 + $0x4f8] sm:$0xff]  ;;  %v364_v12 = vld [vmem:[%s3194_s7 + $0x500] sm:$0xff] }
 0x1c4   : > { %1189 = vmatmul.f32.gmra.mxu0 %v357_v2  ;;  %1782 = vmatmul.f32.gmra.mxu3 %v550_v10  ;;  %v556_v2 = vld [vmem:[%s3194_s7 + $0xb00] sm:$0xff] }
 0x1c5   : > { %2649 = vst [vmem:[%s3384_s19 + $0x110] sm:$0xff] %v2521_v15  ;;  %v1945_v18 = vadd.f32 %v1944_v58, %v1544_v17  ;;  %1590 = vmatmul.f32.gmra.mxu1 %v358_v13  ;;  %v1947_v20 = vpop.f32.mrf.mxu2 }
 0x1c7   : > { %v2262_v21 = vmul.f32 %v3662_v54, %v1945_v18  ;;  %v3740_v52 = vpop.f32.mrf.mxu3 }
 0x1c9   : > { %v2394_v28 = vadd.f32 %v3671_v33, %v2262_v21  ;;  %v1145_v34 = vpop.f32.mrf.mxu0 }
 0x1ca   : > { %v1546_v38 = vpop.f32.mrf.mxu1  ;;  %2862 = vmatmul.msk.f32.gmra.mxu2 %vm631_vm1, %v365_v23  ;;  %v371_v23 = vld [vmem:[%s3194_s7 + $0x538] sm:$0xff] }
 0x1cb   : > { %v2522_v43 = vmax.f32 %v2394_v28, 0.0  ;;  %v1547_v44 = vadd.f32 %v1546_v38, %v1145_v34 }
 0x1cc   : > { %1192 = vmatmul.f32.gmra.mxu0 %v360_v35  ;;  %1785 = vmatmul.f32.gmra.mxu3 %v553_v36  ;;  %v366_v35 = vld [vmem:[%s3194_s7 + $0x510] sm:$0xff]  ;;  %v559_v36 = vld [vmem:[%s3194_s7 + $0xb18] sm:$0xff] }
 0x1cd   : > { %2650 = vst [vmem:[%s3384_s19 + $0x118] sm:$0xff] %v2522_v43  ;;  %v1948_v48 = vadd.f32 %v1947_v20, %v1547_v44  ;;  %1593 = vmatmul.f32.gmra.mxu1 %v361_v42  ;;  %v1950_v50 = vpop.f32.mrf.mxu2  ;;  %v367_v42 = vld [vmem:[%s3194_s7 + $0x518] sm:$0xff] }
 0x1cf   : > { %v2263_v51 = vmul.f32 %v3662_v54, %v1948_v48  ;;  %v3750_v58 = vpop.f32.mrf.mxu3 }
 0x1d1   : > { %v2395_v63 = vadd.f32 %v3671_v33, %v2263_v51  ;;  %v1148_v0 = vpop.f32.mrf.mxu0 }
 0x1d2   : > { %v1549_v10 = vpop.f32.mrf.mxu1  ;;  %2863 = vmatmul.msk.f32.gmra.mxu2 %vm631_vm1, %v368_v59 }
 0x1d3   : > { %v2523_v13 = vmax.f32 %v2395_v63, 0.0  ;;  %v1550_v15 = vadd.f32 %v1549_v10, %v1148_v0  ;;  %v374_v63 = vld [vmem:[%s3194_s7 + $0x550] sm:$0xff] }
 0x1d4   : > { %1195 = vmatmul.f32.gmra.mxu0 %v363_v1  ;;  %1788 = vmatmul.f32.gmra.mxu3 %v556_v2  ;;  %v369_v2 = vld [vmem:[%s3194_s7 + $0x528] sm:$0xff]  ;;  %v562_v10 = vld [vmem:[%s3194_s7 + $0xb30] sm:$0xff] }
 0x1d5   : > { %2651 = vst [vmem:[%s3384_s19 + $0x120] sm:$0xff] %v2523_v13  ;;  %v1951_v17 = vadd.f32 %v1950_v50, %v1550_v15  ;;  %1596 = vmatmul.f32.gmra.mxu1 %v364_v12  ;;  %v1953_v18 = vpop.f32.mrf.mxu2  ;;  %v370_v13 = vld [vmem:[%s3194_s7 + $0x530] sm:$0xff] }
 0x1d7   : > { %v2264_v20 = vmul.f32 %v3662_v54, %v1951_v17  ;;  %v3760_v21 = vpop.f32.mrf.mxu3 }
 0x1d9   : > { %v2396_v28 = vadd.f32 %v3671_v33, %v2264_v20  ;;  %v1151_v34 = vpop.f32.mrf.mxu0 }
 0x1da   : > { %v1552_v38 = vpop.f32.mrf.mxu1  ;;  %2864 = vmatmul.msk.f32.gmra.mxu2 %vm631_vm1, %v371_v23 }
 0x1db   : > { %v2524_v43 = vmax.f32 %v2396_v28, 0.0  ;;  %v1553_v44 = vadd.f32 %v1552_v38, %v1151_v34  ;;  %v377_v34 = vld [vmem:[%s3194_s7 + $0x568] sm:$0xff]  ;;  %v372_v38 = vld [vmem:[%s3194_s7 + $0x540] sm:$0xff] }
 0x1dc   : > { %1198 = vmatmul.f32.gmra.mxu0 %v366_v35  ;;  %1791 = vmatmul.f32.gmra.mxu3 %v559_v36 }
 0x1dd   : > { %2652 = vst [vmem:[%s3384_s19 + $0x128] sm:$0xff] %v2524_v43  ;;  %v1954_v48 = vadd.f32 %v1953_v18, %v1553_v44  ;;  %1599 = vmatmul.f32.gmra.mxu1 %v367_v42  ;;  %v1956_v50 = vpop.f32.mrf.mxu2  ;;  %v565_v42 = vld [vmem:[%s3194_s7 + $0xb48] sm:$0xff] }
 0x1de   : > { %v373_v44 = vld [vmem:[%s3194_s7 + $0x548] sm:$0xff] }
 0x1df   : > { %v2265_v51 = vmul.f32 %v3662_v54, %v1954_v48  ;;  %v3770_v59 = vpop.f32.mrf.mxu3 }
 0x1e1   : > { %v2397_v0 = vadd.f32 %v3671_v33, %v2265_v51  ;;  %v1154_v1 = vpop.f32.mrf.mxu0 }
 0x1e2   : > { %v1555_v12 = vpop.f32.mrf.mxu1  ;;  %2865 = vmatmul.msk.f32.gmra.mxu2 %vm631_vm1, %v374_v63 }
 0x1e3   : > { %v2525_v15 = vmax.f32 %v2397_v0, 0.0  ;;  %v1556_v17 = vadd.f32 %v1555_v12, %v1154_v1 }
 0x1e4   : > { %1201 = vmatmul.f32.gmra.mxu0 %v369_v2  ;;  %1794 = vmatmul.f32.gmra.mxu3 %v562_v10  ;;  %v380_v2 = vld [vmem:[%s3194_s7 + $0x580] sm:$0xff] }
 0x1e5   : > { %2653 = vst [vmem:[%s3384_s19 + $0x130] sm:$0xff] %v2525_v15  ;;  %v1957_v18 = vadd.f32 %v1956_v50, %v1556_v17  ;;  %1602 = vmatmul.f32.gmra.mxu1 %v370_v13  ;;  %v1959_v20 = vpop.f32.mrf.mxu2  ;;  %v375_v13 = vld [vmem:[%s3194_s7 + $0x558] sm:$0xff]  ;;  %v568_v15 = vld [vmem:[%s3194_s7 + $0xb60] sm:$0xff] }
 0x1e7   : > { %v2266_v23 = vmul.f32 %v3662_v54, %v1957_v18  ;;  %v3780_v28 = vpop.f32.mrf.mxu3  ;;  %v376_v18 = vld [vmem:[%s3194_s7 + $0x560] sm:$0xff] }
 0x1e9   : > { %v2398_v35 = vadd.f32 %v3671_v33, %v2266_v23  ;;  %v1157_v36 = vpop.f32.mrf.mxu0 }
 0x1ea   : > { %v1558_v43 = vpop.f32.mrf.mxu1  ;;  %2866 = vmatmul.msk.f32.gmra.mxu2 %vm631_vm1, %v377_v34 }
 0x1eb   : > { %v2526_v48 = vmax.f32 %v2398_v35, 0.0  ;;  %v1559_v50 = vadd.f32 %v1558_v43, %v1157_v36 }
 0x1ec   : > { %1204 = vmatmul.f32.gmra.mxu0 %v372_v38  ;;  %1797 = vmatmul.f32.gmra.mxu3 %v565_v42  ;;  %v383_v42 = vld [vmem:[%s3194_s7 + $0x598] sm:$0xff] }
 0x1ed   : > { %2654 = vst [vmem:[%s3384_s19 + $0x138] sm:$0xff] %v2526_v48  ;;  %v1960_v51 = vadd.f32 %v1959_v20, %v1559_v50  ;;  %1605 = vmatmul.f32.gmra.mxu1 %v373_v44  ;;  %v1962_v63 = vpop.f32.mrf.mxu2  ;;  %v378_v48 = vld [vmem:[%s3194_s7 + $0x570] sm:$0xff]  ;;  %v571_v50 = vld [vmem:[%s3194_s7 + $0xb78] sm:$0xff] }
 0x1ef   : > { %v2267_v0 = vmul.f32 %v3662_v54, %v1960_v51  ;;  %v3790_v1 = vpop.f32.mrf.mxu3 }
 0x1f1   : > { %v2399_v10 = vadd.f32 %v3671_v33, %v2267_v0  ;;  %v1160_v12 = vpop.f32.mrf.mxu0 }
 0x1f2   : > { %v1561_v17 = vpop.f32.mrf.mxu1  ;;  %2867 = vmatmul.msk.f32.gmra.mxu2 %vm631_vm1, %v380_v2 }
 0x1f3   : > { %v2527_v20 = vmax.f32 %v2399_v10, 0.0  ;;  %v1562_v23 = vadd.f32 %v1561_v17, %v1160_v12  ;;  %v386_v17 = vld [vmem:[%s3194_s7 + $0x5b0] sm:$0xff] }
 0x1f4   : > { %1207 = vmatmul.f32.gmra.mxu0 %v375_v13  ;;  %1800 = vmatmul.f32.gmra.mxu3 %v568_v15 }
 0x1f5   : > { %2655 = vst [vmem:[%s3384_s19 + $0x140] sm:$0xff] %v2527_v20  ;;  %v1963_v34 = vadd.f32 %v1962_v63, %v1562_v23  ;;  %1608 = vmatmul.f32.gmra.mxu1 %v376_v18  ;;  %v1965_v35 = vpop.f32.mrf.mxu2  ;;  %v379_v63 = vld [vmem:[%s3194_s7 + $0x578] sm:$0xff]  ;;  %v381_v23 = vld [vmem:[%s3194_s7 + $0x588] sm:$0xff] }
 0x1f7   : > { %v2268_v36 = vmul.f32 %v3662_v54, %v1963_v34  ;;  %v3800_v38 = vpop.f32.mrf.mxu3  ;;  %v574_v34 = vld [vmem:[%s3194_s7 + $0xb90] sm:$0xff] }
 0x1f9   : > { %v2400_v43 = vadd.f32 %v3671_v33, %v2268_v36  ;;  %v1163_v44 = vpop.f32.mrf.mxu0 }
 0x1fa   : > { %v1564_v51 = vpop.f32.mrf.mxu1  ;;  %2868 = vmatmul.msk.f32.gmra.mxu2 %vm631_vm1, %v383_v42 }
 0x1fb   : > { %v2528_v0 = vmax.f32 %v2400_v43, 0.0  ;;  %v1565_v2 = vadd.f32 %v1564_v51, %v1163_v44 }
 0x1fc   : > { %1210 = vmatmul.f32.gmra.mxu0 %v378_v48  ;;  %1803 = vmatmul.f32.gmra.mxu3 %v571_v50 }
 0x1fd   : > { %2656 = vst [vmem:[%s3384_s19 + $0x148] sm:$0xff] %v2528_v0  ;;  %v1966_v10 = vadd.f32 %v1965_v35, %v1565_v2  ;;  %1611 = vmatmul.f32.gmra.mxu1 %v379_v63  ;;  %v1968_v12 = vpop.f32.mrf.mxu2  ;;  %v382_v35 = vld [vmem:[%s3194_s7 + $0x590] sm:$0xff]  ;;  %v389_v63 = vld [vmem:[%s3194_s7 + $0x5c8] sm:$0xff] }
 0x1ff   : > { %v2269_v13 = vmul.f32 %v3662_v54, %v1966_v10  ;;  %v3810_v15 = vpop.f32.mrf.mxu3  ;;  %v384_v10 = vld [vmem:[%s3194_s7 + $0x5a0] sm:$0xff] }
 0x201   : > { %v2401_v18 = vadd.f32 %v3671_v33, %v2269_v13  ;;  %v1166_v20 = vpop.f32.mrf.mxu0  ;;  %v577_v13 = vld [vmem:[%s3194_s7 + $0xba8] sm:$0xff] }
 0x202   : > { %v1567_v36 = vpop.f32.mrf.mxu1  ;;  %2869 = vmatmul.msk.f32.gmra.mxu2 %vm631_vm1, %v386_v17 }
 0x203   : > { %v2529_v42 = vmax.f32 %v2401_v18, 0.0  ;;  %v1568_v43 = vadd.f32 %v1567_v36, %v1166_v20 }
 0x204   : > { %1213 = vmatmul.f32.gmra.mxu0 %v381_v23  ;;  %1806 = vmatmul.f32.gmra.mxu3 %v574_v34 }
 0x205   : > { %2657 = vst [vmem:[%s3384_s19 + $0x150] sm:$0xff] %v2529_v42  ;;  %v1969_v44 = vadd.f32 %v1968_v12, %v1568_v43  ;;  %1614 = vmatmul.f32.gmra.mxu1 %v382_v35  ;;  %v1971_v48 = vpop.f32.mrf.mxu2  ;;  %v385_v12 = vld [vmem:[%s3194_s7 + $0x5a8] sm:$0xff]  ;;  %v392_v42 = vld [vmem:[%s3194_s7 + $0x5e0] sm:$0xff] }
 0x207   : > { %v2270_v50 = vmul.f32 %v3662_v54, %v1969_v44  ;;  %v3820_v51 = vpop.f32.mrf.mxu3 }
 0x209   : > { %v2402_v0 = vadd.f32 %v3671_v33, %v2270_v50  ;;  %v1169_v2 = vpop.f32.mrf.mxu0  ;;  %v387_v50 = vld [vmem:[%s3194_s7 + $0x5b8] sm:$0xff] }
 0x20a   : > { %v1570_v17 = vpop.f32.mrf.mxu1  ;;  %2870 = vmatmul.msk.f32.gmra.mxu2 %vm631_vm1, %v389_v63  ;;  %v580_v63 = vld [vmem:[%s3194_s7 + $0xbc0] sm:$0xff] }
 0x20b   : > { %v2530_v18 = vmax.f32 %v2402_v0, 0.0  ;;  %v1571_v20 = vadd.f32 %v1570_v17, %v1169_v2 }
 0x20c   : > { %1216 = vmatmul.f32.gmra.mxu0 %v384_v10  ;;  %1809 = vmatmul.f32.gmra.mxu3 %v577_v13 }
 0x20d   : > { %2658 = vst [vmem:[%s3384_s19 + $0x158] sm:$0xff] %v2530_v18  ;;  %v1972_v23 = vadd.f32 %v1971_v48, %v1571_v20  ;;  %1617 = vmatmul.f32.gmra.mxu1 %v385_v12  ;;  %v1974_v34 = vpop.f32.mrf.mxu2  ;;  %v388_v48 = vld [vmem:[%s3194_s7 + $0x5c0] sm:$0xff]  ;;  %v395_v20 = vld [vmem:[%s3194_s7 + $0x5f8] sm:$0xff] }
 0x20f   : > { %v2271_v36 = vmul.f32 %v3662_v54, %v1972_v23  ;;  %v3830_v35 = vpop.f32.mrf.mxu3 }
 0x211   : > { %v2403_v43 = vadd.f32 %v3671_v33, %v2271_v36  ;;  %v1172_v44 = vpop.f32.mrf.mxu0 }
 0x212   : > { %v1573_v0 = vpop.f32.mrf.mxu1  ;;  %2871 = vmatmul.msk.f32.gmra.mxu2 %vm631_vm1, %v392_v42  ;;  %v390_v42 = vld [vmem:[%s3194_s7 + $0x5d0] sm:$0xff] }
 0x213   : > { %v2531_v2 = vmax.f32 %v2403_v43, 0.0  ;;  %v1574_v10 = vadd.f32 %v1573_v0, %v1172_v44  ;;  %v583_v43 = vld [vmem:[%s3194_s7 + $0xbd8] sm:$0xff] }
 0x214   : > { %1219 = vmatmul.f32.gmra.mxu0 %v387_v50  ;;  %1812 = vmatmul.f32.gmra.mxu3 %v580_v63 }
 0x215   : > { %2659 = vst [vmem:[%s3384_s19 + $0x160] sm:$0xff] %v2531_v2  ;;  %v1975_v13 = vadd.f32 %v1974_v34, %v1574_v10  ;;  %1620 = vmatmul.f32.gmra.mxu1 %v388_v48  ;;  %v1977_v17 = vpop.f32.mrf.mxu2  ;;  %v391_v34 = vld [vmem:[%s3194_s7 + $0x5d8] sm:$0xff] }
 0x217   : > { %v2272_v12 = vmul.f32 %v3662_v54, %v1975_v13  ;;  %v3840_v18 = vpop.f32.mrf.mxu3  ;;  %v398_v13 = vld [vmem:[%s3194_s7 + $0x610] sm:$0xff] }
 0x219   : > { %v2404_v23 = vadd.f32 %v3671_v33, %v2272_v12  ;;  %v1175_v36 = vpop.f32.mrf.mxu0 }
 0x21a   : > { %v1576_v44 = vpop.f32.mrf.mxu1  ;;  %2872 = vmatmul.msk.f32.gmra.mxu2 %vm631_vm1, %v395_v20 }
 0x21b   : > { %v2532_v50 = vmax.f32 %v2404_v23, 0.0  ;;  %v1577_v63 = vadd.f32 %v1576_v44, %v1175_v36  ;;  %v586_v23 = vld [vmem:[%s3194_s7 + $0xbf0] sm:$0xff] }
 0x21c   : > { %1222 = vmatmul.f32.gmra.mxu0 %v390_v42  ;;  %1815 = vmatmul.f32.gmra.mxu3 %v583_v43 }
 0x21d   : > { %2660 = vst [vmem:[%s3384_s19 + $0x168] sm:$0xff] %v2532_v50  ;;  %v1978_v0 = vadd.f32 %v1977_v17, %v1577_v63  ;;  %1623 = vmatmul.f32.gmra.mxu1 %v391_v34  ;;  %v1980_v48 = vpop.f32.mrf.mxu2  ;;  %v394_v17 = vld [vmem:[%s3194_s7 + $0x5f0] sm:$0xff] }
 0x21f   : > { %v2273_v2 = vmul.f32 %v3662_v54, %v1978_v0  ;;  %v3850_v10 = vpop.f32.mrf.mxu3  ;;  %v401_v0 = vld [vmem:[%s3194_s7 + $0x628] sm:$0xff] }
 0x221   : > { %v2405_v12 = vadd.f32 %v3671_v33, %v2273_v2  ;;  %v1178_v20 = vpop.f32.mrf.mxu0 }
 0x222   : > { %v1579_v36 = vpop.f32.mrf.mxu1  ;;  %2873 = vmatmul.msk.f32.gmra.mxu2 %vm631_vm1, %v398_v13 }
 0x223   : > { %v2533_v42 = vmax.f32 %v2405_v12, 0.0  ;;  %v1580_v43 = vadd.f32 %v1579_v36, %v1178_v20  ;;  %v497_v12 = vld [vmem:[%s3194_s7 + $0x928] sm:$0xff] }
 0x224   : > { %1225 = vmatmul.f32.gmra.mxu0 %v393_v3  ;;  %1818 = vmatmul.f32.gmra.mxu3 %v586_v23  ;;  %v397_v3 = vld [vmem:[%s3194_s7 + $0x608] sm:$0xff] }
 0x225   : > { %2661 = vst [vmem:[%s3384_s19 + $0x170] sm:$0xff] %v2533_v42  ;;  %v1981_v44 = vadd.f32 %v1980_v48, %v1580_v43  ;;  %1626 = vmatmul.f32.gmra.mxu1 %v394_v17  ;;  %v1983_v34 = vpop.f32.mrf.mxu2 }
 0x227   : > { %v2274_v50 = vmul.f32 %v3662_v54, %v1981_v44  ;;  %v3860_v63 = vpop.f32.mrf.mxu3  ;;  %v404_v44 = vld [vmem:[%s3194_s7 + $0x640] sm:$0xff] }
 0x229   : > { %v2406_v2 = vadd.f32 %v3671_v33, %v2274_v50  ;;  %v1181_v13 = vpop.f32.mrf.mxu0 }
 0x22a   : > { %v1582_v20 = vpop.f32.mrf.mxu1  ;;  %2874 = vmatmul.msk.f32.gmra.mxu2 %vm631_vm1, %v401_v0 }
 0x22b   : > { %v2534_v48 = vmax.f32 %v2406_v2, 0.0  ;;  %v1583_v23 = vadd.f32 %v1582_v20, %v1181_v13  ;;  %v399_v2 = vld [vmem:[%s3194_s7 + $0x618] sm:$0xff]  ;;  %v500_v13 = vld [vmem:[%s3194_s7 + $0x940] sm:$0xff] }
 0x22c   : > { %1228 = vmatmul.f32.gmra.mxu0 %v396_v57  ;;  %2906 = vmatmul.msk.f32.vlgmr.msra.gmra.mxu3 %vm631_vm1, %v497_v12  ;;  %v400_v57 = vld [vmem:[%s3194_s7 + $0x620] sm:$0xff] }
 0x22d   : > { %2662 = vst [vmem:[%s3384_s19 + $0x178] sm:$0xff] %v2534_v48  ;;  %v1984_v36 = vadd.f32 %v1983_v34, %v1583_v23  ;;  %1629 = vmatmul.f32.gmra.mxu1 %v397_v3  ;;  %v1986_v17 = vpop.f32.mrf.mxu2 }
 0x22f   : > { %v2275_v42 = vmul.f32 %v3662_v54, %v1984_v36  ;;  %v3871_v43 = vpop.f32.mrf.mxu3 }
 0x231   : > { %v2407_v50 = vadd.f32 %v3671_v33, %v2275_v42  ;;  %v1184_v0 = vpop.f32.mrf.mxu0  ;;  %v407_v42 = vld [vmem:[%s3194_s7 + $0x658] sm:$0xff] }
 0x232   : > { %v1585_v20 = vpop.f32.mrf.mxu1  ;;  %2875 = vmatmul.msk.f32.gmra.mxu2 %vm631_vm1, %v404_v44 }
 0x233   : > { %v2535_v34 = vmax.f32 %v2407_v50, 0.0  ;;  %v1586_v12 = vadd.f32 %v1585_v20, %v1184_v0  ;;  %v402_v50 = vld [vmem:[%s3194_s7 + $0x630] sm:$0xff]  ;;  %v503_v0 = vld [vmem:[%s3194_s7 + $0x958] sm:$0xff] }
 0x234   : > { %1231 = vmatmul.f32.gmra.mxu0 %v399_v2  ;;  %2907 = vmatmul.msk.f32.gmra.mxu3 %vm631_vm1, %v500_v13 }
 0x235   : > { %2663 = vst [vmem:[%s3384_s19 + $0x180] sm:$0xff] %v2535_v34  ;;  %v1987_v3 = vadd.f32 %v1986_v17, %v1586_v12  ;;  %1632 = vmatmul.f32.gmra.mxu1 %v400_v57  ;;  %v1989_v48 = vpop.f32.mrf.mxu2  ;;  %v403_v17 = vld [vmem:[%s3194_s7 + $0x638] sm:$0xff] }
 0x237   : > { %v2276_v23 = vmul.f32 %v3662_v54, %v1987_v3  ;;  %v3882_v36 = vpop.f32.mrf.mxu3 }
 0x239   : > { %v2408_v44 = vadd.f32 %v3671_v33, %v2276_v23  ;;  %v1187_v40 = vpop.f32.mrf.mxu0  ;;  %v410_v23 = vld [vmem:[%s3194_s7 + $0x670] sm:$0xff] }
 0x23a   : > { %v1588_v20 = vpop.f32.mrf.mxu1  ;;  %2876 = vmatmul.msk.f32.gmra.mxu2 %vm631_vm1, %v407_v42 }
 0x23b   : > { %v2536_v2 = vmax.f32 %v2408_v44, 0.0  ;;  %v1589_v13 = vadd.f32 %v1588_v20, %v1187_v40  ;;  %v405_v44 = vld [vmem:[%s3194_s7 + $0x648] sm:$0xff]  ;;  %v506_v40 = vld [vmem:[%s3194_s7 + $0x970] sm:$0xff] }
 0x23c   : > { %1234 = vmatmul.f32.gmra.mxu0 %v402_v50  ;;  %2908 = vmatmul.msk.f32.gmra.mxu3 %vm631_vm1, %v503_v0 }
 0x23d   : > { %2664 = vst [vmem:[%s3384_s19 + $0x188] sm:$0xff] %v2536_v2  ;;  %v1990_v57 = vadd.f32 %v1989_v48, %v1589_v13  ;;  %1635 = vmatmul.f32.gmra.mxu1 %v403_v17  ;;  %v1992_v34 = vpop.f32.mrf.mxu2  ;;  %v406_v48 = vld [vmem:[%s3194_s7 + $0x650] sm:$0xff] }
 0x23f   : > { %v2277_v12 = vmul.f32 %v3662_v54, %v1990_v57  ;;  %v3893_v3 = vpop.f32.mrf.mxu3 }
 0x241   : > { %v2409_v42 = vadd.f32 %v3671_v33, %v2277_v12  ;;  %v1190_v16 = vpop.f32.mrf.mxu0  ;;  %v413_v12 = vld [vmem:[%s3194_s7 + $0x688] sm:$0xff] }
 0x242   : > { %v1591_v20 = vpop.f32.mrf.mxu1  ;;  %2877 = vmatmul.msk.f32.gmra.mxu2 %vm631_vm1, %v410_v23 }
 0x243   : > { %v2537_v50 = vmax.f32 %v2409_v42, 0.0  ;;  %v1592_v0 = vadd.f32 %v1591_v20, %v1190_v16  ;;  %v408_v42 = vld [vmem:[%s3194_s7 + $0x660] sm:$0xff]  ;;  %v509_v16 = vld [vmem:[%s3194_s7 + $0x988] sm:$0xff] }
 0x244   : > { %1237 = vmatmul.f32.gmra.mxu0 %v405_v44  ;;  %2909 = vmatmul.msk.f32.gmra.mxu3 %vm631_vm1, %v506_v40 }
 0x245   : > { %2665 = vst [vmem:[%s3384_s19 + $0x190] sm:$0xff] %v2537_v50  ;;  %v1993_v17 = vadd.f32 %v1992_v34, %v1592_v0  ;;  %1638 = vmatmul.f32.gmra.mxu1 %v406_v48  ;;  %v1995_v2 = vpop.f32.mrf.mxu2  ;;  %v409_v34 = vld [vmem:[%s3194_s7 + $0x668] sm:$0xff] }
 0x247   : > { %v2278_v13 = vmul.f32 %v3662_v54, %v1993_v17  ;;  %v3904_v57 = vpop.f32.mrf.mxu3 }
 0x249   : > { %v2410_v23 = vadd.f32 %v3671_v33, %v2278_v13  ;;  %v1193_v56 = vpop.f32.mrf.mxu0  ;;  %v416_v13 = vld [vmem:[%s3194_s7 + $0x6a0] sm:$0xff] }
 0x24a   : > { %v1594_v20 = vpop.f32.mrf.mxu1  ;;  %2878 = vmatmul.msk.f32.gmra.mxu2 %vm631_vm1, %v413_v12 }
 0x24b   : > { %v2538_v44 = vmax.f32 %v2410_v23, 0.0  ;;  %v1595_v40 = vadd.f32 %v1594_v20, %v1193_v56  ;;  %v411_v23 = vld [vmem:[%s3194_s7 + $0x678] sm:$0xff]  ;;  %v512_v56 = vld [vmem:[%s3194_s7 + $0x9a0] sm:$0xff] }
 0x24c   : > { %1240 = vmatmul.f32.gmra.mxu0 %v408_v42  ;;  %2910 = vmatmul.msk.f32.gmra.mxu3 %vm631_vm1, %v509_v16 }
 0x24d   : > { %2666 = vst [vmem:[%s3384_s19 + $0x198] sm:$0xff] %v2538_v44  ;;  %v1996_v48 = vadd.f32 %v1995_v2, %v1595_v40  ;;  %1641 = vmatmul.f32.gmra.mxu1 %v409_v34  ;;  %v1998_v50 = vpop.f32.mrf.mxu2  ;;  %v412_v2 = vld [vmem:[%s3194_s7 + $0x680] sm:$0xff] }
 0x24f   : > { %v2279_v0 = vmul.f32 %v3662_v54, %v1996_v48  ;;  %v3915_v17 = vpop.f32.mrf.mxu3 }
 0x251   : > { %v2411_v12 = vadd.f32 %v3671_v33, %v2279_v0  ;;  %v1196_v29 = vpop.f32.mrf.mxu0  ;;  %v419_v0 = vld [vmem:[%s3194_s7 + $0x6b8] sm:$0xff] }
 0x252   : > { %v1597_v20 = vpop.f32.mrf.mxu1  ;;  %2879 = vmatmul.msk.f32.gmra.mxu2 %vm631_vm1, %v416_v13 }
 0x253   : > { %v2539_v42 = vmax.f32 %v2411_v12, 0.0  ;;  %v1598_v16 = vadd.f32 %v1597_v20, %v1196_v29  ;;  %v414_v12 = vld [vmem:[%s3194_s7 + $0x690] sm:$0xff]  ;;  %v515_v29 = vld [vmem:[%s3194_s7 + $0x9b8] sm:$0xff] }
 0x254   : > { %1243 = vmatmul.f32.gmra.mxu0 %v411_v23  ;;  %2911 = vmatmul.msk.f32.gmra.mxu3 %vm631_vm1, %v512_v56 }
 0x255   : > { %2667 = vst [vmem:[%s3384_s19 + $0x1a0] sm:$0xff] %v2539_v42  ;;  %v1999_v34 = vadd.f32 %v1998_v50, %v1598_v16  ;;  %1644 = vmatmul.f32.gmra.mxu1 %v412_v2  ;;  %v2001_v44 = vpop.f32.mrf.mxu2  ;;  %v415_v50 = vld [vmem:[%s3194_s7 + $0x698] sm:$0xff] }
 0x257   : > { %v2280_v40 = vmul.f32 %v3662_v54, %v1999_v34  ;;  %v3926_v48 = vpop.f32.mrf.mxu3 }
 0x259   : > { %v2412_v13 = vadd.f32 %v3671_v33, %v2280_v40  ;;  %v1199_v9 = vpop.f32.mrf.mxu0  ;;  %v422_v40 = vld [vmem:[%s3194_s7 + $0x6d0] sm:$0xff] }
 0x25a   : > { %v1600_v20 = vpop.f32.mrf.mxu1  ;;  %2880 = vmatmul.msk.f32.gmra.mxu2 %vm631_vm1, %v419_v0 }
 0x25b   : > { %v2540_v23 = vmax.f32 %v2412_v13, 0.0  ;;  %v1601_v56 = vadd.f32 %v1600_v20, %v1199_v9  ;;  %v417_v13 = vld [vmem:[%s3194_s7 + $0x6a8] sm:$0xff]  ;;  %v518_v9 = vld [vmem:[%s3194_s7 + $0x9d0] sm:$0xff] }
 0x25c   : > { %1246 = vmatmul.f32.gmra.mxu0 %v414_v12  ;;  %2912 = vmatmul.msk.f32.gmra.mxu3 %vm631_vm1, %v515_v29 }
 0x25d   : > { %2668 = vst [vmem:[%s3384_s19 + $0x1a8] sm:$0xff] %v2540_v23  ;;  %v2002_v2 = vadd.f32 %v2001_v44, %v1601_v56  ;;  %1647 = vmatmul.f32.gmra.mxu1 %v415_v50  ;;  %v2004_v42 = vpop.f32.mrf.mxu2  ;;  %v418_v44 = vld [vmem:[%s3194_s7 + $0x6b0] sm:$0xff] }
 0x25f   : > { %v2281_v16 = vmul.f32 %v3662_v54, %v2002_v2  ;;  %v3937_v34 = vpop.f32.mrf.mxu3 }
 0x261   : > { %v2413_v0 = vadd.f32 %v3671_v33, %v2281_v16  ;;  %v1202_v47 = vpop.f32.mrf.mxu0  ;;  %v425_v16 = vld [vmem:[%s3194_s7 + $0x6e8] sm:$0xff] }
 0x262   : > { %v1603_v20 = vpop.f32.mrf.mxu1  ;;  %2881 = vmatmul.msk.f32.gmra.mxu2 %vm631_vm1, %v422_v40 }
 0x263   : > { %v2541_v12 = vmax.f32 %v2413_v0, 0.0  ;;  %v1604_v29 = vadd.f32 %v1603_v20, %v1202_v47  ;;  %v420_v0 = vld [vmem:[%s3194_s7 + $0x6c0] sm:$0xff]  ;;  %v521_v47 = vld [vmem:[%s3194_s7 + $0x9e8] sm:$0xff] }
 0x264   : > { %1249 = vmatmul.f32.gmra.mxu0 %v417_v13  ;;  %2913 = vmatmul.msk.f32.gmra.mxu3 %vm631_vm1, %v518_v9 }
 0x265   : > { %2669 = vst [vmem:[%s3384_s19 + $0x1b0] sm:$0xff] %v2541_v12  ;;  %v2005_v50 = vadd.f32 %v2004_v42, %v1604_v29  ;;  %1650 = vmatmul.f32.gmra.mxu1 %v418_v44  ;;  %v2007_v23 = vpop.f32.mrf.mxu2  ;;  %v421_v42 = vld [vmem:[%s3194_s7 + $0x6c8] sm:$0xff] }
 0x267   : > { %v2282_v56 = vmul.f32 %v3662_v54, %v2005_v50  ;;  %v3948_v2 = vpop.f32.mrf.mxu3 }
 0x268   : > { %4428 = vst [vmem:[#allocation12_spill] sm:$0xff] %v3948_v2  ;;  %v423_v2 = vld [vmem:[%s3194_s7 + $0x6d8] sm:$0xff] }
 0x269   : > { %v2414_v40 = vadd.f32 %v3671_v33, %v2282_v56  ;;  %v1205_v26 = vpop.f32.mrf.mxu0  ;;  %v428_v56 = vld [vmem:[%s3194_s7 + $0x700] sm:$0xff] }
 0x26a   : > { %v1606_v20 = vpop.f32.mrf.mxu1  ;;  %2882 = vmatmul.msk.f32.gmra.mxu2 %vm631_vm1, %v425_v16 }
 0x26b   : > { %v2542_v13 = vmax.f32 %v2414_v40, 0.0  ;;  %v1607_v9 = vadd.f32 %v1606_v20, %v1205_v26  ;;  %v524_v26 = vld [vmem:[%s3194_s7 + $0xa00] sm:$0xff] }
 0x26c   : > { %1252 = vmatmul.f32.gmra.mxu0 %v420_v0  ;;  %2914 = vmatmul.msk.f32.gmra.mxu3 %vm631_vm1, %v521_v47  ;;  %v424_v0 = vld [vmem:[%s3194_s7 + $0x6e0] sm:$0xff] }
 0x26d   : > { %2670 = vst [vmem:[%s3384_s19 + $0x1b8] sm:$0xff] %v2542_v13  ;;  %v2008_v44 = vadd.f32 %v2007_v23, %v1607_v9  ;;  %1653 = vmatmul.f32.gmra.mxu1 %v421_v42  ;;  %v2010_v12 = vpop.f32.mrf.mxu2  ;;  %v3972_v20 = vld [vmem:[%s4415_s2] ss:$0 sm:$0xff]  ;;  %v431_v9 = vld [vmem:[%s3194_s7 + $0x718] sm:$0xff] }
 0x26f   : > { %v2283_v29 = vmul.f32 %v3662_v54, %v2008_v44  ;;  %v3959_v50 = vpop.f32.mrf.mxu3 }
 0x270   : > { %4429 = vst [vmem:[#allocation13_spill] sm:$0xff] %v3959_v50  ;;  %v444_v50 = vld [vmem:[%s3194_s7 + $0x780] sm:$0xff] }
 0x271   : > { %v2415_v16 = vadd.f32 %v3671_v33, %v2283_v29  ;;  %v1208_v4 = vpop.f32.mrf.mxu0  ;;  %v527_v29 = vld [vmem:[%s3194_s7 + $0xa18] sm:$0xff] }
 0x272   : > { %v1609_v40 = vpop.f32.mrf.mxu1  ;;  %2883 = vmatmul.msk.f32.gmra.mxu2 %vm631_vm1, %v428_v56 }
 0x273   : > { %v2543_v23 = vmax.f32 %v2415_v16, 0.0  ;;  %v1610_v47 = vadd.f32 %v1609_v40, %v1208_v4  ;;  %v3981_v4 = vld [vmem:[%s4416_s3] ss:$0 sm:$0xff]  ;;  %v427_v16 = vld [vmem:[%s3194_s7 + $0x6f8] sm:$0xff] }
 0x274   : > { %1255 = vmatmul.f32.gmra.mxu0 %v423_v2  ;;  %2915 = vmatmul.msk.f32.gmra.mxu3 %vm631_vm1, %v524_v26 }
 0x275   : > { %2671 = vst [vmem:[%s3384_s19 + $0x1c0] sm:$0xff] %v2543_v23  ;;  %v2011_v54 = vadd.f32 %v2010_v12, %v1610_v47  ;;  %1656 = vmatmul.f32.gmra.mxu1 %v424_v0  ;;  %v2013_v33 = vpop.f32.mrf.mxu2  ;;  %v426_v12 = vld [vmem:[%s3194_s7 + $0x6f0] sm:$0xff] }
 0x277   : > { %v2284_v42 = vmul.f32 %v3972_v20, %v2011_v54  ;;  %v3975_v13 = vpop.f32.mrf.mxu3 }
 0x278   : > { %4430 = vst [vmem:[#allocation14_spill] sm:$0xff] %v3975_v13 }
 0x279   : > { %v2416_v2 = vadd.f32 %v3981_v4, %v2284_v42  ;;  %v1211_v44 = vpop.f32.mrf.mxu0  ;;  %v434_v42 = vld [vmem:[%s3194_s7 + $0x730] sm:$0xff] }
 0x27a   : > { %v1612_v56 = vpop.f32.mrf.mxu1  ;;  %2884 = vmatmul.msk.f32.gmra.mxu2 %vm631_vm1, %v431_v9 }
 0x27b   : > { %v2544_v26 = vmax.f32 %v2416_v2, 0.0  ;;  %v1613_v40 = vadd.f32 %v1612_v56, %v1211_v44  ;;  %v429_v2 = vld [vmem:[%s3194_s7 + $0x708] sm:$0xff]  ;;  %v530_v44 = vld [vmem:[%s3194_s7 + $0xa30] sm:$0xff] }
 0x27c   : > { %1258 = vmatmul.f32.gmra.mxu0 %v426_v12  ;;  %2916 = vmatmul.msk.f32.gmra.mxu3 %vm631_vm1, %v527_v29 }
 0x27d   : > { %2672 = vst [vmem:[%s3384_s19 + $0x1c8] sm:$0xff] %v2544_v26  ;;  %v2014_v0 = vadd.f32 %v2013_v33, %v1613_v40  ;;  %1659 = vmatmul.f32.gmra.mxu1 %v427_v16  ;;  %v2016_v23 = vpop.f32.mrf.mxu2  ;;  %v430_v33 = vld [vmem:[%s3194_s7 + $0x710] sm:$0xff] }
 0x27f   : > { %v2285_v47 = vmul.f32 %v3972_v20, %v2014_v0  ;;  %v3991_v54 = vpop.f32.mrf.mxu3 }
 0x280   : > { %4431 = vst [vmem:[#allocation15_spill] sm:$0xff] %v3991_v54 }
 0x281   : > { %v2417_v9 = vadd.f32 %v3981_v4, %v2285_v47  ;;  %v1214_v13 = vpop.f32.mrf.mxu0  ;;  %v437_v47 = vld [vmem:[%s3194_s7 + $0x748] sm:$0xff] }
 0x282   : > { %v1615_v56 = vpop.f32.mrf.mxu1  ;;  %2885 = vmatmul.msk.f32.gmra.mxu2 %vm631_vm1, %v434_v42 }
 0x283   : > { %v2545_v12 = vmax.f32 %v2417_v9, 0.0  ;;  %v1616_v29 = vadd.f32 %v1615_v56, %v1214_v13  ;;  %v432_v9 = vld [vmem:[%s3194_s7 + $0x720] sm:$0xff]  ;;  %v533_v13 = vld [vmem:[%s3194_s7 + $0xa48] sm:$0xff] }
 0x284   : > { %1261 = vmatmul.f32.gmra.mxu0 %v429_v2  ;;  %2917 = vmatmul.msk.f32.gmra.mxu3 %vm631_vm1, %v530_v44 }
 0x285   : > { %2673 = vst [vmem:[%s3384_s19 + $0x1d0] sm:$0xff] %v2545_v12  ;;  %v2017_v16 = vadd.f32 %v2016_v23, %v1616_v29  ;;  %1662 = vmatmul.f32.gmra.mxu1 %v430_v33  ;;  %v2019_v26 = vpop.f32.mrf.mxu2  ;;  %v433_v23 = vld [vmem:[%s3194_s7 + $0x728] sm:$0xff] }
 0x287   : > { %v2286_v40 = vmul.f32 %v3972_v20, %v2017_v16  ;;  %v4002_v0 = vpop.f32.mrf.mxu3 }
 0x288   : > { %4432 = vst [vmem:[#allocation16_spill] sm:$0xff] %v4002_v0 }
 0x289   : > { %v2418_v42 = vadd.f32 %v3981_v4, %v2286_v40  ;;  %v1217_v54 = vpop.f32.mrf.mxu0  ;;  %v440_v40 = vld [vmem:[%s3194_s7 + $0x760] sm:$0xff] }
 0x28a   : > { %v1618_v56 = vpop.f32.mrf.mxu1  ;;  %2886 = vmatmul.msk.f32.gmra.mxu2 %vm631_vm1, %v437_v47 }
 0x28b   : > { %v2546_v2 = vmax.f32 %v2418_v42, 0.0  ;;  %v1619_v44 = vadd.f32 %v1618_v56, %v1217_v54  ;;  %v435_v42 = vld [vmem:[%s3194_s7 + $0x738] sm:$0xff]  ;;  %v536_v54 = vld [vmem:[%s3194_s7 + $0xa60] sm:$0xff] }
 0x28c   : > { %1264 = vmatmul.f32.gmra.mxu0 %v432_v9  ;;  %2918 = vmatmul.msk.f32.gmra.mxu3 %vm631_vm1, %v533_v13 }
 0x28d   : > { %2674 = vst [vmem:[%s3384_s19 + $0x1d8] sm:$0xff] %v2546_v2  ;;  %v2020_v33 = vadd.f32 %v2019_v26, %v1619_v44  ;;  %1665 = vmatmul.f32.gmra.mxu1 %v433_v23  ;;  %v2022_v12 = vpop.f32.mrf.mxu2  ;;  %v436_v26 = vld [vmem:[%s3194_s7 + $0x740] sm:$0xff] }
 0x28f   : > { %v2287_v29 = vmul.f32 %v3972_v20, %v2020_v33  ;;  %v4013_v16 = vpop.f32.mrf.mxu3 }
 0x290   : > { %4433 = vst [vmem:[#allocation17_spill] sm:$0xff] %v4013_v16 }
 0x291   : > { %v2419_v47 = vadd.f32 %v3981_v4, %v2287_v29  ;;  %v1220_v0 = vpop.f32.mrf.mxu0  ;;  %v443_v29 = vld [vmem:[%s3194_s7 + $0x778] sm:$0xff] }
 0x292   : > { %v1621_v56 = vpop.f32.mrf.mxu1  ;;  %2887 = vmatmul.msk.f32.gmra.mxu2 %vm631_vm1, %v440_v40 }
 0x293   : > { %v2547_v9 = vmax.f32 %v2419_v47, 0.0  ;;  %v1622_v13 = vadd.f32 %v1621_v56, %v1220_v0  ;;  %v438_v47 = vld [vmem:[%s3194_s7 + $0x750] sm:$0xff]  ;;  %v539_v0 = vld [vmem:[%s3194_s7 + $0xa78] sm:$0xff] }
 0x294   : > { %1267 = vmatmul.f32.gmra.mxu0 %v435_v42  ;;  %2919 = vmatmul.msk.f32.gmra.mxu3 %vm631_vm1, %v536_v54 }
 0x295   : > { %2675 = vst [vmem:[%s3384_s19 + $0x1e0] sm:$0xff] %v2547_v9  ;;  %v2023_v23 = vadd.f32 %v2022_v12, %v1622_v13  ;;  %1668 = vmatmul.f32.gmra.mxu1 %v436_v26  ;;  %v2025_v2 = vpop.f32.mrf.mxu2  ;;  %v439_v12 = vld [vmem:[%s3194_s7 + $0x758] sm:$0xff] }
 0x297   : > { %v2288_v44 = vmul.f32 %v3972_v20, %v2023_v23  ;;  %v4024_v33 = vpop.f32.mrf.mxu3 }
 0x298   : > { %4434 = vst [vmem:[#allocation18_spill] sm:$0xff] %v4024_v33 }
 0x299   : > { %v2420_v40 = vadd.f32 %v3981_v4, %v2288_v44  ;;  %v1223_v16 = vpop.f32.mrf.mxu0  ;;  %v446_v44 = vld [vmem:[%s3194_s7 + $0x790] sm:$0xff] }
 0x29a   : > { %v1624_v56 = vpop.f32.mrf.mxu1  ;;  %2888 = vmatmul.msk.f32.gmra.mxu2 %vm631_vm1, %v443_v29 }
 0x29b   : > { %v2548_v42 = vmax.f32 %v2420_v40, 0.0  ;;  %v1625_v54 = vadd.f32 %v1624_v56, %v1223_v16  ;;  %v441_v40 = vld [vmem:[%s3194_s7 + $0x768] sm:$0xff]  ;;  %v542_v16 = vld [vmem:[%s3194_s7 + $0xa90] sm:$0xff] }
 0x29c   : > { %1270 = vmatmul.f32.gmra.mxu0 %v438_v47  ;;  %2920 = vmatmul.msk.f32.gmra.mxu3 %vm631_vm1, %v539_v0 }
 0x29d   : > { %2676 = vst [vmem:[%s3384_s19 + $0x1e8] sm:$0xff] %v2548_v42  ;;  %v2026_v26 = vadd.f32 %v2025_v2, %v1625_v54  ;;  %1671 = vmatmul.f32.gmra.mxu1 %v439_v12  ;;  %v2028_v9 = vpop.f32.mrf.mxu2  ;;  %v442_v2 = vld [vmem:[%s3194_s7 + $0x770] sm:$0xff] }
 0x29f   : > { %v2289_v13 = vmul.f32 %v3972_v20, %v2026_v26  ;;  %v4035_v23 = vpop.f32.mrf.mxu3 }
 0x2a0   : > { %4435 = vst [vmem:[#allocation19_spill] sm:$0xff] %v4035_v23 }
 0x2a1   : > { %v2421_v29 = vadd.f32 %v3981_v4, %v2289_v13  ;;  %v1226_v33 = vpop.f32.mrf.mxu0  ;;  %v449_v13 = vld [vmem:[%s3194_s7 + $0x7a8] sm:$0xff] }
 0x2a2   : > { %v1627_v56 = vpop.f32.mrf.mxu1  ;;  %2889 = vmatmul.msk.f32.gmra.mxu2 %vm631_vm1, %v446_v44 }
 0x2a3   : > { %v2549_v47 = vmax.f32 %v2421_v29, 0.0  ;;  %v1628_v0 = vadd.f32 %v1627_v56, %v1226_v33  ;;  %v545_v33 = vld [vmem:[%s3194_s7 + $0xaa8] sm:$0xff] }
 0x2a4   : > { %1273 = vmatmul.f32.gmra.mxu0 %v441_v40  ;;  %2921 = vmatmul.msk.f32.gmra.mxu3 %vm631_vm1, %v542_v16  ;;  %v445_v40 = vld [vmem:[%s3194_s7 + $0x788] sm:$0xff] }
 0x2a5   : > { %2677 = vst [vmem:[%s3384_s19 + $0x1f0] sm:$0xff] %v2549_v47  ;;  %v2029_v12 = vadd.f32 %v2028_v9, %v1628_v0  ;;  %1674 = vmatmul.f32.gmra.mxu1 %v442_v2  ;;  %v2031_v42 = vpop.f32.mrf.mxu2  ;;  %v1730_v47 = vadd.f32 %v3720_v30, %v3390_v6 }
 0x2a7   : > { %v2290_v54 = vmul.f32 %v3972_v20, %v2029_v12  ;;  %v4046_v26 = vpop.f32.mrf.mxu3 }
 0x2a9   : > { %v2422_v44 = vadd.f32 %v3981_v4, %v2290_v54  ;;  %v1229_v23 = vpop.f32.mrf.mxu0  ;;  %v452_v54 = vld [vmem:[%s3194_s7 + $0x7c0] sm:$0xff] }
 0x2aa   : > { %v1630_v29 = vpop.f32.mrf.mxu1  ;;  %2890 = vmatmul.msk.f32.gmra.mxu2 %vm631_vm1, %v449_v13 }
 0x2ab   : > { %v2550_v9 = vmax.f32 %v2422_v44, 0.0  ;;  %v1631_v16 = vadd.f32 %v1630_v29, %v1229_v23  ;;  %v548_v29 = vld [vmem:[%s3194_s7 + $0xac0] sm:$0xff] }
 0x2ac   : > { %1276 = vmatmul.f32.gmra.mxu0 %v444_v50  ;;  %2922 = vmatmul.msk.f32.gmra.mxu3 %vm631_vm1, %v545_v33  ;;  %v447_v50 = vld [vmem:[%s3194_s7 + $0x798] sm:$0xff] }
 0x2ad   : > { %2678 = vst [vmem:[%s3384_s19 + $0x1f8] sm:$0xff] %v2550_v9  ;;  %v2032_v56 = vadd.f32 %v2031_v42, %v1631_v16  ;;  %1677 = vmatmul.f32.gmra.mxu1 %v445_v40  ;;  %v2034_v2 = vpop.f32.mrf.mxu2  ;;  %v448_v42 = vld [vmem:[%s3194_s7 + $0x7a0] sm:$0xff] }
 0x2af   : > { %v2291_v0 = vmul.f32 %v3972_v20, %v2032_v56  ;;  %v2130_v12 = vpop.f32.mrf.mxu3 }
 0x2b0   : > { %v2131_v13 = vadd.f32 %v2130_v12, %v1730_v47  ;;  %v1733_v47 = vadd.f32 %v3730_v62, %v3400_v19  ;;  %v451_v19 = vld [vmem:[%s3194_s7 + $0x7b8] sm:$0xff] }
 0x2b1   : > { %v2423_v44 = vadd.f32 %v3981_v4, %v2291_v0  ;;  %v1232_v23 = vpop.f32.mrf.mxu0 }
 0x2b2   : > { %v2324_v33 = vmul.f32 %v3972_v20, %v2131_v13  ;;  %v1633_v9 = vpop.f32.mrf.mxu1  ;;  %2891 = vmatmul.msk.f32.gmra.mxu2 %vm631_vm1, %v452_v54  ;;  %v455_v13 = vld [vmem:[%s3194_s7 + $0x7d8] sm:$0xff] }
 0x2b3   : > { %v2551_v6 = vmax.f32 %v2423_v44, 0.0  ;;  %v1634_v30 = vadd.f32 %v1633_v9, %v1232_v23 }
 0x2b4   : > { %v2456_v40 = vadd.f32 %v3981_v4, %v2324_v33  ;;  %1279 = vmatmul.f32.gmra.mxu0 %v447_v50  ;;  %2923 = vmatmul.msk.f32.gmra.mxu3 %vm631_vm1, %v548_v29  ;;  %v450_v29 = vld [vmem:[%s3194_s7 + $0x7b0] sm:$0xff]  ;;  %v551_v33 = vld [vmem:[%s3194_s7 + $0xad8] sm:$0xff] }
 0x2b5   : > { %2679 = vst [vmem:[%s3384_s19 + $0x200] sm:$0xff] %v2551_v6  ;;  %v2035_v16 = vadd.f32 %v2034_v2, %v1634_v30  ;;  %1680 = vmatmul.f32.gmra.mxu1 %v448_v42  ;;  %v2037_v56 = vpop.f32.mrf.mxu2 }
 0x2b6   : > { %v2584_v0 = vmax.f32 %v2456_v40, 0.0 }
 0x2b7   : > { %v2292_v12 = vmul.f32 %v3972_v20, %v2035_v16  ;;  %v2133_v54 = vpop.f32.mrf.mxu3  ;;  %v1736_v16 = vadd.f32 %v3740_v52, %v3410_v32  ;;  %v454_v32 = vld [vmem:[%s3194_s7 + $0x7d0] sm:$0xff] }
 0x2b8   : > { %2712 = vst [vmem:[%s3384_s19 + $0x308] sm:$0xff] %v2584_v0  ;;  %v2134_v44 = vadd.f32 %v2133_v54, %v1733_v47  ;;  %v458_v54 = vld [vmem:[%s3194_s7 + $0x7f0] sm:$0xff] }
 0x2b9   : > { %v2424_v23 = vadd.f32 %v3981_v4, %v2292_v12  ;;  %v1235_v50 = vpop.f32.mrf.mxu0 }
 0x2ba   : > { %v2325_v2 = vmul.f32 %v3972_v20, %v2134_v44  ;;  %v1636_v9 = vpop.f32.mrf.mxu1  ;;  %2892 = vmatmul.msk.f32.gmra.mxu2 %vm631_vm1, %v455_v13 }
 0x2bb   : > { %v2552_v62 = vmax.f32 %v2424_v23, 0.0  ;;  %v1637_v42 = vadd.f32 %v1636_v9, %v1235_v50  ;;  %v453_v50 = vld [vmem:[%s3194_s7 + $0x7c8] sm:$0xff] }
 0x2bc   : > { %v2457_v6 = vadd.f32 %v3981_v4, %v2325_v2  ;;  %1282 = vmatmul.f32.gmra.mxu0 %v450_v29  ;;  %2924 = vmatmul.msk.f32.gmra.mxu3 %vm631_vm1, %v551_v33  ;;  %v554_v29 = vld [vmem:[%s3194_s7 + $0xaf0] sm:$0xff] }
 0x2bd   : > { %2680 = vst [vmem:[%s3384_s19 + $0x208] sm:$0xff] %v2552_v62  ;;  %v2038_v30 = vadd.f32 %v2037_v56, %v1637_v42  ;;  %1683 = vmatmul.f32.gmra.mxu1 %v451_v19  ;;  %v2040_v40 = vpop.f32.mrf.mxu2  ;;  %v1739_v42 = vadd.f32 %v3750_v58, %v3420_v45  ;;  %v457_v45 = vld [vmem:[%s3194_s7 + $0x7e8] sm:$0xff] }
 0x2be   : > { %v2585_v47 = vmax.f32 %v2457_v6, 0.0 }
 0x2bf   : > { %v2293_v0 = vmul.f32 %v3972_v20, %v2038_v30  ;;  %v2136_v12 = vpop.f32.mrf.mxu3 }
 0x2c0   : > { %2713 = vst [vmem:[%s3384_s19 + $0x310] sm:$0xff] %v2585_v47  ;;  %v2137_v13 = vadd.f32 %v2136_v12, %v1736_v16  ;;  %v461_v47 = vld [vmem:[%s3194_s7 + $0x808] sm:$0xff] }
 0x2c1   : > { %v2425_v44 = vadd.f32 %v3981_v4, %v2293_v0  ;;  %v1238_v23 = vpop.f32.mrf.mxu0 }
 0x2c2   : > { %v2326_v56 = vmul.f32 %v3972_v20, %v2137_v13  ;;  %v1639_v33 = vpop.f32.mrf.mxu1  ;;  %2893 = vmatmul.msk.f32.gmra.mxu2 %vm631_vm1, %v458_v54  ;;  %v456_v13 = vld [vmem:[%s3194_s7 + $0x7e0] sm:$0xff] }
 0x2c3   : > { %v2553_v52 = vmax.f32 %v2425_v44, 0.0  ;;  %v1640_v2 = vadd.f32 %v1639_v33, %v1238_v23  ;;  %v557_v44 = vld [vmem:[%s3194_s7 + $0xb08] sm:$0xff] }
 0x2c4   : > { %v2458_v9 = vadd.f32 %v3981_v4, %v2326_v56  ;;  %1285 = vmatmul.f32.gmra.mxu0 %v453_v50  ;;  %2925 = vmatmul.msk.f32.gmra.mxu3 %vm631_vm1, %v554_v29 }
 0x2c5   : > { %2681 = vst [vmem:[%s3384_s19 + $0x210] sm:$0xff] %v2553_v52  ;;  %v2041_v19 = vadd.f32 %v2040_v40, %v1640_v2  ;;  %1686 = vmatmul.f32.gmra.mxu1 %v454_v32  ;;  %v2043_v62 = vpop.f32.mrf.mxu2  ;;  %v1742_v32 = vadd.f32 %v3760_v21, %v3430_v61  ;;  %v460_v61 = vld [vmem:[%s3194_s7 + $0x800] sm:$0xff] }
 0x2c6   : > { %v2586_v6 = vmax.f32 %v2458_v9, 0.0 }
 0x2c7   : > { %v2294_v30 = vmul.f32 %v3972_v20, %v2041_v19  ;;  %v2139_v16 = vpop.f32.mrf.mxu3  ;;  %v464_v19 = vld [vmem:[%s3194_s7 + $0x820] sm:$0xff] }
 0x2c8   : > { %2714 = vst [vmem:[%s3384_s19 + $0x318] sm:$0xff] %v2586_v6  ;;  %v2140_v0 = vadd.f32 %v2139_v16, %v1739_v42  ;;  %v459_v16 = vld [vmem:[%s3194_s7 + $0x7f8] sm:$0xff] }
 0x2c9   : > { %v2426_v12 = vadd.f32 %v3981_v4, %v2294_v30  ;;  %v1241_v54 = vpop.f32.mrf.mxu0 }
 0x2ca   : > { %v2327_v40 = vmul.f32 %v3972_v20, %v2140_v0  ;;  %v1642_v23 = vpop.f32.mrf.mxu1  ;;  %2894 = vmatmul.msk.f32.gmra.mxu2 %vm631_vm1, %v461_v47  ;;  %v560_v47 = vld [vmem:[%s3194_s7 + $0xb20] sm:$0xff] }
 0x2cb   : > { %v2554_v58 = vmax.f32 %v2426_v12, 0.0  ;;  %v1643_v50 = vadd.f32 %v1642_v23, %v1241_v54 }
 0x2cc   : > { %v2459_v29 = vadd.f32 %v3981_v4, %v2327_v40  ;;  %1288 = vmatmul.f32.gmra.mxu0 %v456_v13  ;;  %2926 = vmatmul.msk.f32.gmra.mxu3 %vm631_vm1, %v557_v44  ;;  %v1745_v40 = vadd.f32 %v3770_v59, %v3440_v11  ;;  %v463_v11 = vld [vmem:[%s3194_s7 + $0x818] sm:$0xff] }
 0x2cd   : > { %2682 = vst [vmem:[%s3384_s19 + $0x218] sm:$0xff] %v2554_v58  ;;  %v2044_v56 = vadd.f32 %v2043_v62, %v1643_v50  ;;  %1689 = vmatmul.f32.gmra.mxu1 %v457_v45  ;;  %v2046_v33 = vpop.f32.mrf.mxu2  ;;  %v467_v50 = vld [vmem:[%s3194_s7 + $0x838] sm:$0xff] }
 0x2ce   : > { %v2587_v52 = vmax.f32 %v2459_v29, 0.0 }
 0x2cf   : > { %v2295_v2 = vmul.f32 %v3972_v20, %v2044_v56  ;;  %v2142_v9 = vpop.f32.mrf.mxu3 }
 0x2d0   : > { %2715 = vst [vmem:[%s3384_s19 + $0x320] sm:$0xff] %v2587_v52  ;;  %v2143_v42 = vadd.f32 %v2142_v9, %v1742_v32  ;;  %v462_v52 = vld [vmem:[%s3194_s7 + $0x810] sm:$0xff] }
 0x2d1   : > { %v2427_v6 = vadd.f32 %v3981_v4, %v2295_v2  ;;  %v1244_v30 = vpop.f32.mrf.mxu0  ;;  %v563_v2 = vld [vmem:[%s3194_s7 + $0xb38] sm:$0xff] }
 0x2d2   : > { %v2328_v62 = vmul.f32 %v3972_v20, %v2143_v42  ;;  %v1645_v0 = vpop.f32.mrf.mxu1  ;;  %2895 = vmatmul.msk.f32.gmra.mxu2 %vm631_vm1, %v464_v19 }
 0x2d3   : > { %v2555_v21 = vmax.f32 %v2427_v6, 0.0  ;;  %v1646_v12 = vadd.f32 %v1645_v0, %v1244_v30 }
 0x2d4   : > { %v2460_v54 = vadd.f32 %v3981_v4, %v2328_v62  ;;  %1291 = vmatmul.f32.gmra.mxu0 %v459_v16  ;;  %2927 = vmatmul.msk.f32.gmra.mxu3 %vm631_vm1, %v560_v47  ;;  %v1748_v16 = vadd.f32 %v3780_v28, %v3450_v25  ;;  %v466_v25 = vld [vmem:[%s3194_s7 + $0x830] sm:$0xff] }
 0x2d5   : > { %2683 = vst [vmem:[%s3384_s19 + $0x220] sm:$0xff] %v2555_v21  ;;  %v2047_v13 = vadd.f32 %v2046_v33, %v1646_v12  ;;  %1692 = vmatmul.f32.gmra.mxu1 %v460_v61  ;;  %v2049_v44 = vpop.f32.mrf.mxu2  ;;  %v470_v61 = vld [vmem:[%s3194_s7 + $0x850] sm:$0xff] }
 0x2d6   : > { %v2588_v23 = vmax.f32 %v2460_v54, 0.0 }
 0x2d7   : > { %v2296_v45 = vmul.f32 %v3972_v20, %v2047_v13  ;;  %v2145_v58 = vpop.f32.mrf.mxu3  ;;  %v465_v13 = vld [vmem:[%s3194_s7 + $0x828] sm:$0xff] }
 0x2d8   : > { %2716 = vst [vmem:[%s3384_s19 + $0x328] sm:$0xff] %v2588_v23  ;;  %v2146_v29 = vadd.f32 %v2145_v58, %v1745_v40  ;;  %v566_v40 = vld [vmem:[%s3194_s7 + $0xb50] sm:$0xff] }
 0x2d9   : > { %v2428_v56 = vadd.f32 %v3981_v4, %v2296_v45  ;;  %v1247_v32 = vpop.f32.mrf.mxu0 }
 0x2da   : > { %v2329_v33 = vmul.f32 %v3972_v20, %v2146_v29  ;;  %v1648_v9 = vpop.f32.mrf.mxu1  ;;  %2896 = vmatmul.msk.f32.gmra.mxu2 %vm631_vm1, %v467_v50 }
 0x2db   : > { %v2556_v59 = vmax.f32 %v2428_v56, 0.0  ;;  %v1649_v19 = vadd.f32 %v1648_v9, %v1247_v32  ;;  %v1751_v56 = vadd.f32 %v3790_v1, %v3460_v39  ;;  %v469_v39 = vld [vmem:[%s3194_s7 + $0x848] sm:$0xff] }
 0x2dc   : > { %v2461_v42 = vadd.f32 %v3981_v4, %v2329_v33  ;;  %1294 = vmatmul.f32.gmra.mxu0 %v462_v52  ;;  %2928 = vmatmul.msk.f32.gmra.mxu3 %vm631_vm1, %v563_v2  ;;  %v473_v33 = vld [vmem:[%s3194_s7 + $0x868] sm:$0xff] }
 0x2dd   : > { %2684 = vst [vmem:[%s3384_s19 + $0x228] sm:$0xff] %v2556_v59  ;;  %v2050_v6 = vadd.f32 %v2049_v44, %v1649_v19  ;;  %1695 = vmatmul.f32.gmra.mxu1 %v463_v11  ;;  %v2052_v30 = vpop.f32.mrf.mxu2  ;;  %v468_v19 = vld [vmem:[%s3194_s7 + $0x840] sm:$0xff] }
 0x2de   : > { %v2589_v47 = vmax.f32 %v2461_v42, 0.0  ;;  %v569_v42 = vld [vmem:[%s3194_s7 + $0xb68] sm:$0xff] }
 0x2df   : > { %v2297_v62 = vmul.f32 %v3972_v20, %v2050_v6  ;;  %v2148_v0 = vpop.f32.mrf.mxu3 }
 0x2e0   : > { %2717 = vst [vmem:[%s3384_s19 + $0x330] sm:$0xff] %v2589_v47  ;;  %v2149_v21 = vadd.f32 %v2148_v0, %v1748_v16 }
 0x2e1   : > { %v2429_v12 = vadd.f32 %v3981_v4, %v2297_v62  ;;  %v1250_v54 = vpop.f32.mrf.mxu0 }
 0x2e2   : > { %v2330_v44 = vmul.f32 %v3972_v20, %v2149_v21  ;;  %v1651_v23 = vpop.f32.mrf.mxu1  ;;  %2897 = vmatmul.msk.f32.gmra.mxu2 %vm631_vm1, %v470_v61  ;;  %v1754_v61 = vadd.f32 %v3800_v38, %v3470_v55  ;;  %v472_v55 = vld [vmem:[%s3194_s7 + $0x860] sm:$0xff] }
 0x2e3   : > { %v2557_v28 = vmax.f32 %v2429_v12, 0.0  ;;  %v1652_v45 = vadd.f32 %v1651_v23, %v1250_v54 }
 0x2e4   : > { %v2462_v58 = vadd.f32 %v3981_v4, %v2330_v44  ;;  %1297 = vmatmul.f32.gmra.mxu0 %v465_v13  ;;  %2929 = vmatmul.msk.f32.gmra.mxu3 %vm631_vm1, %v566_v40  ;;  %v476_v13 = vld [vmem:[%s3194_s7 + $0x880] sm:$0xff] }
 0x2e5   : > { %2685 = vst [vmem:[%s3384_s19 + $0x230] sm:$0xff] %v2557_v28  ;;  %v2053_v50 = vadd.f32 %v2052_v30, %v1652_v45  ;;  %1698 = vmatmul.f32.gmra.mxu1 %v466_v25  ;;  %v2055_v29 = vpop.f32.mrf.mxu2  ;;  %v471_v25 = vld [vmem:[%s3194_s7 + $0x858] sm:$0xff]  ;;  %v572_v28 = vld [vmem:[%s3194_s7 + $0xb80] sm:$0xff] }
 0x2e6   : > { %v2590_v32 = vmax.f32 %v2462_v58, 0.0 }
 0x2e7   : > { %v2298_v52 = vmul.f32 %v3972_v20, %v2053_v50  ;;  %v2151_v2 = vpop.f32.mrf.mxu3 }
 0x2e8   : > { %2718 = vst [vmem:[%s3384_s19 + $0x338] sm:$0xff] %v2590_v32  ;;  %v2152_v9 = vadd.f32 %v2151_v2, %v1751_v56 }
 0x2e9   : > { %v2430_v11 = vadd.f32 %v3981_v4, %v2298_v52  ;;  %v1253_v59 = vpop.f32.mrf.mxu0  ;;  %v1757_v52 = vadd.f32 %v3810_v15, %v3480_v7  ;;  %v475_v7 = vld [vmem:[%s3194_s7 + $0x878] sm:$0xff] }
 0x2ea   : > { %v2331_v6 = vmul.f32 %v3972_v20, %v2152_v9  ;;  %v1654_v30 = vpop.f32.mrf.mxu1  ;;  %2898 = vmatmul.msk.f32.gmra.mxu2 %vm631_vm1, %v473_v33 }
 0x2eb   : > { %v2558_v1 = vmax.f32 %v2430_v11, 0.0  ;;  %v1655_v16 = vadd.f32 %v1654_v30, %v1253_v59  ;;  %v479_v11 = vld [vmem:[%s3194_s7 + $0x898] sm:$0xff] }
 0x2ec   : > { %v2463_v47 = vadd.f32 %v3981_v4, %v2331_v6  ;;  %1300 = vmatmul.f32.gmra.mxu0 %v468_v19  ;;  %2930 = vmatmul.msk.f32.gmra.mxu3 %vm631_vm1, %v569_v42  ;;  %v474_v6 = vld [vmem:[%s3194_s7 + $0x870] sm:$0xff]  ;;  %v575_v30 = vld [vmem:[%s3194_s7 + $0xb98] sm:$0xff] }
 0x2ed   : > { %2686 = vst [vmem:[%s3384_s19 + $0x238] sm:$0xff] %v2558_v1  ;;  %v2056_v62 = vadd.f32 %v2055_v29, %v1655_v16  ;;  %1701 = vmatmul.f32.gmra.mxu1 %v469_v39  ;;  %v2058_v0 = vpop.f32.mrf.mxu2 }
 0x2ee   : > { %v2591_v21 = vmax.f32 %v2463_v47, 0.0 }
 0x2ef   : > { %v2299_v12 = vmul.f32 %v3972_v20, %v2056_v62  ;;  %v2154_v54 = vpop.f32.mrf.mxu3 }
 0x2f0   : > { %2719 = vst [vmem:[%s3384_s19 + $0x340] sm:$0xff] %v2591_v21  ;;  %v2155_v40 = vadd.f32 %v2154_v54, %v1754_v61  ;;  %v1760_v61 = vadd.f32 %v3820_v51, %v3490_v22  ;;  %v478_v22 = vld [vmem:[%s3194_s7 + $0x890] sm:$0xff] }
 0x2f1   : > { %v2431_v44 = vadd.f32 %v3981_v4, %v2299_v12  ;;  %v1256_v23 = vpop.f32.mrf.mxu0 }
 0x2f2   : > { %v2332_v45 = vmul.f32 %v3972_v20, %v2155_v40  ;;  %v1657_v58 = vpop.f32.mrf.mxu1  ;;  %2899 = vmatmul.msk.f32.gmra.mxu2 %vm631_vm1, %v476_v13  ;;  %v482_v13 = vld [vmem:[%s3194_s7 + $0x8b0] sm:$0xff] }
 0x2f3   : > { %v2559_v38 = vmax.f32 %v2431_v44, 0.0  ;;  %v1658_v50 = vadd.f32 %v1657_v58, %v1256_v23 }
 0x2f4   : > { %v2464_v29 = vadd.f32 %v3981_v4, %v2332_v45  ;;  %1303 = vmatmul.f32.gmra.mxu0 %v471_v25  ;;  %2931 = vmatmul.msk.f32.gmra.mxu3 %vm631_vm1, %v572_v28  ;;  %v477_v25 = vld [vmem:[%s3194_s7 + $0x888] sm:$0xff]  ;;  %v578_v28 = vld [vmem:[%s3194_s7 + $0xbb0] sm:$0xff] }
 0x2f5   : > { %2687 = vst [vmem:[%s3384_s19 + $0x240] sm:$0xff] %v2559_v38  ;;  %v2059_v56 = vadd.f32 %v2058_v0, %v1658_v50  ;;  %1704 = vmatmul.f32.gmra.mxu1 %v472_v55  ;;  %v2061_v32 = vpop.f32.mrf.mxu2 }
 0x2f6   : > { %v2592_v2 = vmax.f32 %v2464_v29, 0.0 }
 0x2f7   : > { %v2300_v33 = vmul.f32 %v3972_v20, %v2059_v56  ;;  %v2157_v9 = vpop.f32.mrf.mxu3  ;;  %v1763_v56 = vadd.f32 %v3830_v35, %v3500_v37  ;;  %v481_v37 = vld [vmem:[%s3194_s7 + $0x8a8] sm:$0xff] }
 0x2f8   : > { %2720 = vst [vmem:[%s3384_s19 + $0x348] sm:$0xff] %v2592_v2  ;;  %v2158_v59 = vadd.f32 %v2157_v9, %v1757_v52 }
 0x2f9   : > { %v2432_v19 = vadd.f32 %v3981_v4, %v2300_v33  ;;  %v1259_v42 = vpop.f32.mrf.mxu0  ;;  %v485_v33 = vld [vmem:[%s3194_s7 + $0x8c8] sm:$0xff] }
 0x2fa   : > { %v2333_v39 = vmul.f32 %v3972_v20, %v2158_v59  ;;  %v1660_v1 = vpop.f32.mrf.mxu1  ;;  %2900 = vmatmul.msk.f32.gmra.mxu2 %vm631_vm1, %v479_v11 }
 0x2fb   : > { %v2560_v15 = vmax.f32 %v2432_v19, 0.0  ;;  %v1661_v16 = vadd.f32 %v1660_v1, %v1259_v42  ;;  %v480_v19 = vld [vmem:[%s3194_s7 + $0x8a0] sm:$0xff]  ;;  %v581_v42 = vld [vmem:[%s3194_s7 + $0xbc8] sm:$0xff] }
 0x2fc   : > { %v2465_v47 = vadd.f32 %v3981_v4, %v2333_v39  ;;  %1306 = vmatmul.f32.gmra.mxu0 %v474_v6  ;;  %2932 = vmatmul.msk.f32.gmra.mxu3 %vm631_vm1, %v575_v30 }
 0x2fd   : > { %2688 = vst [vmem:[%s3384_s19 + $0x248] sm:$0xff] %v2560_v15  ;;  %v2062_v62 = vadd.f32 %v2061_v32, %v1661_v16  ;;  %1707 = vmatmul.f32.gmra.mxu1 %v475_v7  ;;  %v2064_v0 = vpop.f32.mrf.mxu2  ;;  %v1766_v16 = vadd.f32 %v3840_v18, %v3510_v53  ;;  %v484_v53 = vld [vmem:[%s3194_s7 + $0x8c0] sm:$0xff] }
 0x2fe   : > { %v2593_v21 = vmax.f32 %v2465_v47, 0.0 }
 0x2ff   : > { %v2301_v12 = vmul.f32 %v3972_v20, %v2062_v62  ;;  %v2160_v54 = vpop.f32.mrf.mxu3 }
 0x300   : > { %2721 = vst [vmem:[%s3384_s19 + $0x350] sm:$0xff] %v2593_v21  ;;  %v2161_v40 = vadd.f32 %v2160_v54, %v1760_v61  ;;  %v488_v61 = vld [vmem:[%s3194_s7 + $0x8e0] sm:$0xff] }
 0x301   : > { %v2433_v44 = vadd.f32 %v3981_v4, %v2301_v12  ;;  %v1262_v23 = vpop.f32.mrf.mxu0 }
 0x302   : > { %v2334_v45 = vmul.f32 %v3972_v20, %v2161_v40  ;;  %v1663_v58 = vpop.f32.mrf.mxu1  ;;  %2901 = vmatmul.msk.f32.gmra.mxu2 %vm631_vm1, %v482_v13  ;;  %v483_v13 = vld [vmem:[%s3194_s7 + $0x8b8] sm:$0xff]  ;;  %v584_v40 = vld [vmem:[%s3194_s7 + $0xbe0] sm:$0xff] }
 0x303   : > { %v2561_v51 = vmax.f32 %v2433_v44, 0.0  ;;  %v1664_v55 = vadd.f32 %v1663_v58, %v1262_v23 }
 0x304   : > { %v2466_v38 = vadd.f32 %v3981_v4, %v2334_v45  ;;  %1309 = vmatmul.f32.gmra.mxu0 %v477_v25  ;;  %2933 = vmatmul.msk.f32.gmra.mxu3 %vm631_vm1, %v578_v28 }
 0x305   : > { %2689 = vst [vmem:[%s3384_s19 + $0x250] sm:$0xff] %v2561_v51  ;;  %v2065_v50 = vadd.f32 %v2064_v0, %v1664_v55  ;;  %1710 = vmatmul.f32.gmra.mxu1 %v478_v22  ;;  %v2067_v29 = vpop.f32.mrf.mxu2  ;;  %v1769_v22 = vadd.f32 %v3850_v10, %v3520_v8  ;;  %v487_v8 = vld [vmem:[%s3194_s7 + $0x8d8] sm:$0xff] }
 0x306   : > { %v2594_v32 = vmax.f32 %v2466_v38, 0.0 }
 0x307   : > { %v2302_v52 = vmul.f32 %v3972_v20, %v2065_v50  ;;  %v2163_v2 = vpop.f32.mrf.mxu3  ;;  %v491_v50 = vld [vmem:[%s3194_s7 + $0x8f8] sm:$0xff] }
 0x308   : > { %2722 = vst [vmem:[%s3384_s19 + $0x358] sm:$0xff] %v2594_v32  ;;  %v2164_v9 = vadd.f32 %v2163_v2, %v1763_v56  ;;  %v587_v2 = vld [vmem:[%s3194_s7 + $0xbf8] sm:$0xff] }
 0x309   : > { %v2434_v11 = vadd.f32 %v3981_v4, %v2302_v52  ;;  %v1265_v59 = vpop.f32.mrf.mxu0  ;;  %v486_v52 = vld [vmem:[%s3194_s7 + $0x8d0] sm:$0xff] }
 0x30a   : > { %v2335_v6 = vmul.f32 %v3972_v20, %v2164_v9  ;;  %v1666_v30 = vpop.f32.mrf.mxu1  ;;  %2902 = vmatmul.msk.f32.gmra.mxu2 %vm631_vm1, %v485_v33 }
 0x30b   : > { %v2562_v35 = vmax.f32 %v2434_v11, 0.0  ;;  %v1667_v39 = vadd.f32 %v1666_v30, %v1265_v59 }
 0x30c   : > { %v2467_v1 = vadd.f32 %v3981_v4, %v2335_v6  ;;  %1312 = vmatmul.f32.gmra.mxu0 %v480_v19  ;;  %2934 = vmatmul.msk.f32.gmra.mxu3 %vm631_vm1, %v581_v42  ;;  %v1772_v6 = vadd.f32 %v3860_v63, %v3530_v24 }
 0x30d   : > { %2690 = vst [vmem:[%s3384_s19 + $0x258] sm:$0xff] %v2562_v35  ;;  %v2068_v7 = vadd.f32 %v2067_v29, %v1667_v39  ;;  %1713 = vmatmul.f32.gmra.mxu1 %v481_v37  ;;  %v2070_v15 = vpop.f32.mrf.mxu2  ;;  %v494_v39 = vld [vmem:[%s3194_s7 + $0x910] sm:$0xff] }
 0x30e   : > { %v2595_v47 = vmax.f32 %v2467_v1, 0.0 }
 0x30f   : > { %v2303_v62 = vmul.f32 %v3972_v20, %v2068_v7  ;;  %v2166_v0 = vpop.f32.mrf.mxu3 }
 0x310   : > { %2723 = vst [vmem:[%s3384_s19 + $0x360] sm:$0xff] %v2595_v47  ;;  %v2167_v21 = vadd.f32 %v2166_v0, %v1766_v16  ;;  %v489_v16 = vld [vmem:[%s3194_s7 + $0x8e8] sm:$0xff]  ;;  %v490_v0 = vld [vmem:[%s3194_s7 + $0x8f0] sm:$0xff] }
 0x311   : > { %v2435_v12 = vadd.f32 %v3981_v4, %v2303_v62  ;;  %v1268_v54 = vpop.f32.mrf.mxu0 }
 0x312   : > { %v2336_v44 = vmul.f32 %v3972_v20, %v2167_v21  ;;  %v1669_v23 = vpop.f32.mrf.mxu1  ;;  %2903 = vmatmul.msk.f32.gmra.mxu2 %vm631_vm1, %v488_v61 }
 0x313   : > { %v2563_v18 = vmax.f32 %v2435_v12, 0.0  ;;  %v1670_v25 = vadd.f32 %v1669_v23, %v1268_v54  ;;  %v1775_v54 = vadd.f32 %v3871_v43, %v3540_v41 }
 0x314   : > { %v2468_v28 = vadd.f32 %v3981_v4, %v2336_v44  ;;  %1315 = vmatmul.f32.gmra.mxu0 %v483_v13  ;;  %2935 = vmatmul.msk.f32.gmra.mxu3 %vm631_vm1, %v584_v40 }
 0x315   : > { %2691 = vst [vmem:[%s3384_s19 + $0x260] sm:$0xff] %v2563_v18  ;;  %v2071_v45 = vadd.f32 %v2070_v15, %v1670_v25  ;;  %1716 = vmatmul.f32.gmra.mxu1 %v484_v53  ;;  %v2073_v58 = vpop.f32.mrf.mxu2 }
 0x316   : > { %v2596_v51 = vmax.f32 %v2468_v28, 0.0 }
 0x317   : > { %v2304_v55 = vmul.f32 %v3972_v20, %v2071_v45  ;;  %v2169_v38 = vpop.f32.mrf.mxu3 }
 0x318   : > { %2724 = vst [vmem:[%s3384_s19 + $0x368] sm:$0xff] %v2596_v51  ;;  %v2170_v29 = vadd.f32 %v2169_v38, %v1769_v22  ;;  %v1778_v51 = vadd.f32 %v3882_v36, %v3550_v60  ;;  %v1781_v36 = vadd.f32 %v3893_v3, %v3560_v14 }
 0x319   : > { %v2436_v56 = vadd.f32 %v3981_v4, %v2304_v55  ;;  %v1271_v32 = vpop.f32.mrf.mxu0 }
 0x31a   : > { %v2337_v33 = vmul.f32 %v3972_v20, %v2170_v29  ;;  %v1672_v9 = vpop.f32.mrf.mxu1  ;;  %2904 = vmatmul.msk.f32.gmra.mxu2 %vm631_vm1, %v491_v50 }
 0x31b   : > { %v2564_v10 = vmax.f32 %v2436_v56, 0.0  ;;  %v1673_v11 = vadd.f32 %v1672_v9, %v1271_v32 }
 0x31c   : > { %v2469_v59 = vadd.f32 %v3981_v4, %v2337_v33  ;;  %1318 = vmatmul.f32.gmra.mxu0 %v486_v52  ;;  %2936 = vmatmul.msk.f32.gmra.mxu3 %vm631_vm1, %v587_v2 }
 0x31d   : > { %2692 = vst [vmem:[%s3384_s19 + $0x268] sm:$0xff] %v2564_v10  ;;  %v2074_v19 = vadd.f32 %v2073_v58, %v1673_v11  ;;  %1719 = vmatmul.f32.gmra.mxu1 %v487_v8  ;;  %v2076_v42 = vpop.f32.mrf.mxu2 }
 0x31e   : > { %v2597_v30 = vmax.f32 %v2469_v59, 0.0  ;;  %v4284_v59 = vld [vmem:[%s4415_s2] ss:$0 sm:$0xff] }
 0x31f   : > { %v2305_v37 = vmul.f32 %v3972_v20, %v2074_v19  ;;  %v2172_v35 = vpop.f32.mrf.mxu3 }
 0x320   : > { %2725 = vst [vmem:[%s3384_s19 + $0x370] sm:$0xff] %v2597_v30  ;;  %v2173_v1 = vadd.f32 %v2172_v35, %v1772_v6 }
 0x321   : > { %v2437_v7 = vadd.f32 %v3981_v4, %v2305_v37  ;;  %v1274_v15 = vpop.f32.mrf.mxu0 }
 0x322   : > { %v2338_v47 = vmul.f32 %v3972_v20, %v2173_v1  ;;  %v1675_v62 = vpop.f32.mrf.mxu1  ;;  %2905 = vmatmul.msk.f32.gmra.mxu2 %vm631_vm1, %v494_v39 }
 0x323   : > { %v2565_v24 = vmax.f32 %v2437_v7, 0.0  ;;  %v1676_v63 = vadd.f32 %v1675_v62, %v1274_v15  ;;  %v1784_v15 = vadd.f32 %v3904_v57, %v3570_v31 }
 0x324   : > { %v2470_v61 = vadd.f32 %v3981_v4, %v2338_v47  ;;  %1321 = vmatmul.f32.gmra.mxu0 %v489_v16 }
 0x325   : > { %2693 = vst [vmem:[%s3384_s19 + $0x270] sm:$0xff] %v2565_v24  ;;  %v2077_v21 = vadd.f32 %v2076_v42, %v1676_v63  ;;  %1722 = vmatmul.f32.gmra.mxu1 %v490_v0  ;;  %v2079_v12 = vpop.f32.mrf.mxu2 }
 0x326   : > { %v2598_v13 = vmax.f32 %v2470_v61, 0.0 }
 0x327   : > { %v2306_v40 = vmul.f32 %v3972_v20, %v2077_v21  ;;  %v2175_v44 = vpop.f32.mrf.mxu3 }
 0x328   : > { %2726 = vst [vmem:[%s3384_s19 + $0x378] sm:$0xff] %v2598_v13  ;;  %v2176_v23 = vadd.f32 %v2175_v44, %v1775_v54 }
 0x329   : > { %v2438_v53 = vadd.f32 %v3981_v4, %v2306_v40  ;;  %v1277_v18 = vpop.f32.mrf.mxu0  ;;  %v1787_v40 = vadd.f32 %v3915_v17, %v3580_v49 }
 0x32a   : > { %v2339_v25 = vmul.f32 %v3972_v20, %v2176_v23  ;;  %v1678_v28 = vpop.f32.mrf.mxu1 }
 0x32b   : > { %v2566_v45 = vmax.f32 %v2438_v53, 0.0  ;;  %v1679_v58 = vadd.f32 %v1678_v28, %v1277_v18 }
 0x32c   : > { %v2471_v22 = vadd.f32 %v3981_v4, %v2339_v25 }
 0x32d   : > { %2694 = vst [vmem:[%s3384_s19 + $0x278] sm:$0xff] %v2566_v45  ;;  %v2080_v41 = vadd.f32 %v2079_v12, %v1679_v58  ;;  %v2082_v43 = vpop.f32.mrf.mxu2 }
 0x32e   : > { %v2599_v55 = vmax.f32 %v2471_v22, 0.0 }
 0x32f   : > { %v2307_v38 = vmul.f32 %v3972_v20, %v2080_v41  ;;  %v2178_v50 = vpop.f32.mrf.mxu3 }
 0x330   : > { %2727 = vst [vmem:[%s3384_s19 + $0x380] sm:$0xff] %v2599_v55  ;;  %v2179_v29 = vadd.f32 %v2178_v50, %v1778_v51  ;;  %v1790_v51 = vadd.f32 %v3926_v48, %v3590_v5 }
 0x331   : > { %v2439_v56 = vadd.f32 %v3981_v4, %v2307_v38  ;;  %v1280_v32 = vpop.f32.mrf.mxu0 }
 0x332   : > { %v2340_v52 = vmul.f32 %v3972_v20, %v2179_v29  ;;  %v1681_v2 = vpop.f32.mrf.mxu1 }
 0x333   : > { %v2567_v33 = vmax.f32 %v2439_v56, 0.0  ;;  %v1682_v9 = vadd.f32 %v1681_v2, %v1280_v32 }
 0x334   : > { %v2472_v8 = vadd.f32 %v3981_v4, %v2340_v52  ;;  %v4291_v4 = vld [vmem:[%s4416_s3] ss:$0 sm:$0xff] }
 0x335   : > { %2695 = vst [vmem:[%s3384_s19 + $0x280] sm:$0xff] %v2567_v33  ;;  %v2083_v10 = vadd.f32 %v2082_v43, %v1682_v9  ;;  %v2085_v60 = vpop.f32.mrf.mxu2 }
 0x336   : > { %v2600_v11 = vmax.f32 %v2472_v8, 0.0 }
 0x337   : > { %v2308_v20 = vmul.f32 %v4284_v59, %v2083_v10  ;;  %v2181_v19 = vpop.f32.mrf.mxu3  ;;  %v1793_v10 = vadd.f32 %v3937_v34, %v3600_v27 }
 0x338   : > { %2728 = vst [vmem:[%s3384_s19 + $0x388] sm:$0xff] %v2600_v11  ;;  %v2182_v42 = vadd.f32 %v2181_v19, %v1781_v36 }
 0x339   : > { %v2440_v6 = vadd.f32 %v4291_v4, %v2308_v20  ;;  %v1283_v14 = vpop.f32.mrf.mxu0 }
 0x33a   : > { %v2341_v3 = vmul.f32 %v4284_v59, %v2182_v42  ;;  %v1684_v30 = vpop.f32.mrf.mxu1 }
 0x33b   : > { %v2568_v37 = vmax.f32 %v2440_v6, 0.0  ;;  %v1685_v35 = vadd.f32 %v1684_v30, %v1283_v14 }
 0x33c   : > { %v2473_v39 = vadd.f32 %v4291_v4, %v2341_v3 }
 0x33d   : > { %2696 = vst [vmem:[%s3384_s19 + $0x288] sm:$0xff] %v2568_v37  ;;  %v2086_v1 = vadd.f32 %v2085_v60, %v1685_v35  ;;  %v2088_v7 = vpop.f32.mrf.mxu2  ;;  %v4436_v35 = vld [vmem:[#allocation12_spill] sm:$0xff] }
 0x33e   : > { %v2601_v16 = vmax.f32 %v2473_v39, 0.0  ;;  %v1796_v39 = vadd.f32 %v4436_v35, %v3610_v46 }
 0x33f   : > { %v2309_v47 = vmul.f32 %v4284_v59, %v2086_v1  ;;  %v2184_v62 = vpop.f32.mrf.mxu3 }
 0x340   : > { %2729 = vst [vmem:[%s3384_s19 + $0x390] sm:$0xff] %v2601_v16  ;;  %v2185_v0 = vadd.f32 %v2184_v62, %v1784_v15 }
 0x341   : > { %v2441_v24 = vadd.f32 %v4291_v4, %v2309_v47  ;;  %v1286_v63 = vpop.f32.mrf.mxu0 }
 0x342   : > { %v2342_v61 = vmul.f32 %v4284_v59, %v2185_v0  ;;  %v1687_v21 = vpop.f32.mrf.mxu1 }
 0x343   : > { %v2569_v12 = vmax.f32 %v2441_v24, 0.0  ;;  %v1688_v54 = vadd.f32 %v1687_v21, %v1286_v63 }
 0x344   : > { %v2474_v13 = vadd.f32 %v4291_v4, %v2342_v61 }
 0x345   : > { %2697 = vst [vmem:[%s3384_s19 + $0x290] sm:$0xff] %v2569_v12  ;;  %v2089_v31 = vadd.f32 %v2088_v7, %v1688_v54  ;;  %v2091_v57 = vpop.f32.mrf.mxu2  ;;  %v4437_v54 = vld [vmem:[#allocation3_spill] sm:$0xff] }
 0x346   : > { %v2602_v44 = vmax.f32 %v2474_v13, 0.0  ;;  %v4438_v13 = vld [vmem:[#allocation13_spill] sm:$0xff] }
 0x347   : > { %v2310_v23 = vmul.f32 %v4284_v59, %v2089_v31  ;;  %v2187_v53 = vpop.f32.mrf.mxu3  ;;  %v1799_v31 = vadd.f32 %v4438_v13, %v4437_v54 }
 0x348   : > { %2730 = vst [vmem:[%s3384_s19 + $0x398] sm:$0xff] %v2602_v44  ;;  %v2188_v18 = vadd.f32 %v2187_v53, %v1787_v40 }
 0x349   : > { %v2442_v25 = vadd.f32 %v4291_v4, %v2310_v23  ;;  %v1289_v28 = vpop.f32.mrf.mxu0 }
 0x34a   : > { %v2343_v45 = vmul.f32 %v4284_v59, %v2188_v18  ;;  %v1690_v58 = vpop.f32.mrf.mxu1 }
 0x34b   : > { %v2570_v22 = vmax.f32 %v2442_v25, 0.0  ;;  %v1691_v41 = vadd.f32 %v1690_v58, %v1289_v28 }
 0x34c   : > { %v2475_v43 = vadd.f32 %v4291_v4, %v2343_v45 }
 0x34d   : > { %2698 = vst [vmem:[%s3384_s19 + $0x298] sm:$0xff] %v2570_v22  ;;  %v2092_v49 = vadd.f32 %v2091_v57, %v1691_v41  ;;  %v2094_v17 = vpop.f32.mrf.mxu2 }
 0x34e   : > { %v2603_v55 = vmax.f32 %v2475_v43, 0.0 }
 0x34f   : > { %v2311_v38 = vmul.f32 %v4284_v59, %v2092_v49  ;;  %v2190_v50 = vpop.f32.mrf.mxu3  ;;  %v4439_v49 = vld [vmem:[#allocation4_spill] sm:$0xff] }
 0x350   : > { %2731 = vst [vmem:[%s3384_s19 + $0x3a0] sm:$0xff] %v2603_v55  ;;  %v2191_v29 = vadd.f32 %v2190_v50, %v1790_v51 }
 0x351   : > { %v2443_v56 = vadd.f32 %v4291_v4, %v2311_v38  ;;  %v1292_v32 = vpop.f32.mrf.mxu0 }
 0x352   : > { %v2344_v52 = vmul.f32 %v4284_v59, %v2191_v29  ;;  %v1693_v2 = vpop.f32.mrf.mxu1 }
 0x353   : > { %v2571_v33 = vmax.f32 %v2443_v56, 0.0  ;;  %v1694_v9 = vadd.f32 %v1693_v2, %v1292_v32 }
 0x354   : > { %v2476_v8 = vadd.f32 %v4291_v4, %v2344_v52 }
 0x355   : > { %2699 = vst [vmem:[%s3384_s19 + $0x2a0] sm:$0xff] %v2571_v33  ;;  %v2095_v5 = vadd.f32 %v2094_v17, %v1694_v9  ;;  %v2097_v48 = vpop.f32.mrf.mxu2  ;;  %v4440_v17 = vld [vmem:[#allocation14_spill] sm:$0xff] }
 0x356   : > { %v2604_v60 = vmax.f32 %v2476_v8, 0.0  ;;  %v1802_v51 = vadd.f32 %v4440_v17, %v4439_v49 }
 0x357   : > { %v2312_v36 = vmul.f32 %v4284_v59, %v2095_v5  ;;  %v2193_v11 = vpop.f32.mrf.mxu3 }
 0x358   : > { %2732 = vst [vmem:[%s3384_s19 + $0x3a8] sm:$0xff] %v2604_v60  ;;  %v2194_v20 = vadd.f32 %v2193_v11, %v1793_v10  ;;  %v4441_v10 = vld [vmem:[#allocation5_spill] sm:$0xff]  ;;  %v4442_v60 = vld [vmem:[#allocation15_spill] sm:$0xff] }
 0x359   : > { %v2444_v19 = vadd.f32 %v4291_v4, %v2312_v36  ;;  %v1295_v42 = vpop.f32.mrf.mxu0  ;;  %v1805_v36 = vadd.f32 %v4442_v60, %v4441_v10 }
 0x35a   : > { %v2345_v6 = vmul.f32 %v4284_v59, %v2194_v20  ;;  %v1696_v14 = vpop.f32.mrf.mxu1 }
 0x35b   : > { %v2572_v3 = vmax.f32 %v2444_v19, 0.0  ;;  %v1697_v30 = vadd.f32 %v1696_v14, %v1295_v42 }
 0x35c   : > { %v2477_v37 = vadd.f32 %v4291_v4, %v2345_v6 }
 0x35d   : > { %2700 = vst [vmem:[%s3384_s19 + $0x2a8] sm:$0xff] %v2572_v3  ;;  %v2098_v27 = vadd.f32 %v2097_v48, %v1697_v30  ;;  %v2100_v34 = vpop.f32.mrf.mxu2 }
 0x35e   : > { %v2605_v1 = vmax.f32 %v2477_v37, 0.0 }
 0x35f   : > { %v2313_v7 = vmul.f32 %v4284_v59, %v2098_v27  ;;  %v2196_v15 = vpop.f32.mrf.mxu3 }
 0x360   : > { %2733 = vst [vmem:[%s3384_s19 + $0x3b0] sm:$0xff] %v2605_v1  ;;  %v2197_v16 = vadd.f32 %v2196_v15, %v1796_v39  ;;  %v4443_v1 = vld [vmem:[#allocation6_spill] sm:$0xff] }
 0x361   : > { %v2445_v47 = vadd.f32 %v4291_v4, %v2313_v7  ;;  %v1298_v62 = vpop.f32.mrf.mxu0  ;;  %v4444_v7 = vld [vmem:[#allocation16_spill] sm:$0xff] }
 0x362   : > { %v2346_v0 = vmul.f32 %v4284_v59, %v2197_v16  ;;  %v1699_v24 = vpop.f32.mrf.mxu1  ;;  %v1808_v15 = vadd.f32 %v4444_v7, %v4443_v1 }
 0x363   : > { %v2573_v63 = vmax.f32 %v2445_v47, 0.0  ;;  %v1700_v61 = vadd.f32 %v1699_v24, %v1298_v62 }
 0x364   : > { %v2478_v21 = vadd.f32 %v4291_v4, %v2346_v0 }
 0x365   : > { %2701 = vst [vmem:[%s3384_s19 + $0x2b0] sm:$0xff] %v2573_v63  ;;  %v2101_v46 = vadd.f32 %v2100_v34, %v1700_v61  ;;  %v2103_v12 = vpop.f32.mrf.mxu2 }
 0x366   : > { %v2606_v57 = vmax.f32 %v2478_v21, 0.0 }
 0x367   : > { %v2314_v40 = vmul.f32 %v4284_v59, %v2101_v46  ;;  %v2199_v44 = vpop.f32.mrf.mxu3 }
 0x368   : > { %2734 = vst [vmem:[%s3384_s19 + $0x3b8] sm:$0xff] %v2606_v57  ;;  %v2200_v23 = vadd.f32 %v2199_v44, %v1799_v31  ;;  %v4445_v57 = vld [vmem:[#allocation7_spill] sm:$0xff] }
 0x369   : > { %v2446_v53 = vadd.f32 %v4291_v4, %v2314_v40  ;;  %v1301_v18 = vpop.f32.mrf.mxu0  ;;  %v4446_v40 = vld [vmem:[#allocation17_spill] sm:$0xff] }
 0x36a   : > { %v2347_v25 = vmul.f32 %v4284_v59, %v2200_v23  ;;  %v1702_v28 = vpop.f32.mrf.mxu1  ;;  %v1811_v44 = vadd.f32 %v4446_v40, %v4445_v57  ;;  %v4453_v57 = vld [vmem:[#allocation11_spill] sm:$0xff] }
 0x36b   : > { %v2574_v45 = vmax.f32 %v2446_v53, 0.0  ;;  %v1703_v58 = vadd.f32 %v1702_v28, %v1301_v18 }
 0x36c   : > { %v2479_v22 = vadd.f32 %v4291_v4, %v2347_v25 }
 0x36d   : > { %2702 = vst [vmem:[%s3384_s19 + $0x2b8] sm:$0xff] %v2574_v45  ;;  %v2104_v41 = vadd.f32 %v2103_v12, %v1703_v58  ;;  %v2106_v43 = vpop.f32.mrf.mxu2 }
 0x36e   : > { %v2607_v55 = vmax.f32 %v2479_v22, 0.0 }
 0x36f   : > { %v2315_v38 = vmul.f32 %v4284_v59, %v2104_v41  ;;  %v2202_v50 = vpop.f32.mrf.mxu3 }
 0x370   : > { %2735 = vst [vmem:[%s3384_s19 + $0x3c0] sm:$0xff] %v2607_v55  ;;  %v2203_v29 = vadd.f32 %v2202_v50, %v1802_v51  ;;  %v4447_v55 = vld [vmem:[#allocation8_spill] sm:$0xff] }
 0x371   : > { %v2447_v56 = vadd.f32 %v4291_v4, %v2315_v38  ;;  %v1304_v32 = vpop.f32.mrf.mxu0  ;;  %v4448_v38 = vld [vmem:[#allocation18_spill] sm:$0xff] }
 0x372   : > { %v2348_v52 = vmul.f32 %v4284_v59, %v2203_v29  ;;  %v1705_v2 = vpop.f32.mrf.mxu1  ;;  %v1814_v50 = vadd.f32 %v4448_v38, %v4447_v55 }
 0x373   : > { %v2575_v33 = vmax.f32 %v2447_v56, 0.0  ;;  %v1706_v9 = vadd.f32 %v1705_v2, %v1304_v32 }
 0x374   : > { %v2480_v8 = vadd.f32 %v4291_v4, %v2348_v52 }
 0x375   : > { %2703 = vst [vmem:[%s3384_s19 + $0x2c0] sm:$0xff] %v2575_v33  ;;  %v2107_v5 = vadd.f32 %v2106_v43, %v1706_v9  ;;  %v2109_v48 = vpop.f32.mrf.mxu2 }
 0x376   : > { %v2608_v11 = vmax.f32 %v2480_v8, 0.0 }
 0x377   : > { %v2316_v20 = vmul.f32 %v4284_v59, %v2107_v5  ;;  %v2205_v19 = vpop.f32.mrf.mxu3 }
 0x378   : > { %2736 = vst [vmem:[%s3384_s19 + $0x3c8] sm:$0xff] %v2608_v11  ;;  %v2206_v42 = vadd.f32 %v2205_v19, %v1805_v36  ;;  %v4449_v11 = vld [vmem:[#allocation9_spill] sm:$0xff] }
 0x379   : > { %v2448_v6 = vadd.f32 %v4291_v4, %v2316_v20  ;;  %v1307_v14 = vpop.f32.mrf.mxu0  ;;  %v4450_v20 = vld [vmem:[#allocation19_spill] sm:$0xff] }
 0x37a   : > { %v2349_v3 = vmul.f32 %v4284_v59, %v2206_v42  ;;  %v1708_v30 = vpop.f32.mrf.mxu1  ;;  %v1817_v19 = vadd.f32 %v4450_v20, %v4449_v11 }
 0x37b   : > { %v2576_v37 = vmax.f32 %v2448_v6, 0.0  ;;  %v1709_v27 = vadd.f32 %v1708_v30, %v1307_v14 }
 0x37c   : > { %v2481_v34 = vadd.f32 %v4291_v4, %v2349_v3 }
 0x37d   : > { %2704 = vst [vmem:[%s3384_s19 + $0x2c8] sm:$0xff] %v2576_v37  ;;  %v2110_v35 = vadd.f32 %v2109_v48, %v1709_v27  ;;  %v2112_v39 = vpop.f32.mrf.mxu2 }
 0x37e   : > { %v2609_v16 = vmax.f32 %v2481_v34, 0.0 }
 0x37f   : > { %v2317_v47 = vmul.f32 %v4284_v59, %v2110_v35  ;;  %v2208_v62 = vpop.f32.mrf.mxu3 }
 0x380   : > { %2737 = vst [vmem:[%s3384_s19 + $0x3d0] sm:$0xff] %v2609_v16  ;;  %v2209_v0 = vadd.f32 %v2208_v62, %v1808_v15  ;;  %v4451_v16 = vld [vmem:[#allocation10_spill] sm:$0xff] }
 0x381   : > { %v2449_v24 = vadd.f32 %v4291_v4, %v2317_v47  ;;  %v1310_v63 = vpop.f32.mrf.mxu0  ;;  %v1820_v47 = vadd.f32 %v4046_v26, %v4451_v16 }
 0x382   : > { %v2350_v61 = vmul.f32 %v4284_v59, %v2209_v0  ;;  %v1711_v21 = vpop.f32.mrf.mxu1 }
 0x383   : > { %v2577_v46 = vmax.f32 %v2449_v24, 0.0  ;;  %v1712_v12 = vadd.f32 %v1711_v21, %v1310_v63 }
 0x384   : > { %v2482_v54 = vadd.f32 %v4291_v4, %v2350_v61 }
 0x385   : > { %2705 = vst [vmem:[%s3384_s19 + $0x2d0] sm:$0xff] %v2577_v46  ;;  %v2113_v13 = vadd.f32 %v2112_v39, %v1712_v12  ;;  %v2115_v31 = vpop.f32.mrf.mxu2 }
 0x386   : > { %v2610_v23 = vmax.f32 %v2482_v54, 0.0 }
 0x387   : > { %v2318_v53 = vmul.f32 %v4284_v59, %v2113_v13  ;;  %v2211_v18 = vpop.f32.mrf.mxu3 }
 0x388   : > { %2738 = vst [vmem:[%s3384_s19 + $0x3d8] sm:$0xff] %v2610_v23  ;;  %v2212_v25 = vadd.f32 %v2211_v18, %v1811_v44 }
 0x389   : > { %v2450_v28 = vadd.f32 %v4291_v4, %v2318_v53  ;;  %v1313_v45 = vpop.f32.mrf.mxu0 }
 0x38a   : > { %v2351_v58 = vmul.f32 %v4284_v59, %v2212_v25  ;;  %v1714_v22 = vpop.f32.mrf.mxu1 }
 0x38b   : > { %v2578_v41 = vmax.f32 %v2450_v28, 0.0  ;;  %v1715_v43 = vadd.f32 %v1714_v22, %v1313_v45 }
 0x38c   : > { %v2483_v49 = vadd.f32 %v4291_v4, %v2351_v58 }
 0x38d   : > { %2706 = vst [vmem:[%s3384_s19 + $0x2d8] sm:$0xff] %v2578_v41  ;;  %v2116_v17 = vadd.f32 %v2115_v31, %v1715_v43  ;;  %v2118_v51 = vpop.f32.mrf.mxu2  ;;  %v4452_v31 = vld [vmem:[#allocation2_spill] sm:$0xff] }
 0x38e   : > { %v2611_v29 = vmax.f32 %v2483_v49, 0.0  ;;  %v1727_v26 = vadd.f32 %v4453_v57, %v4452_v31 }
 0x38f   : > { %v2319_v56 = vmul.f32 %v4284_v59, %v2116_v17  ;;  %v2214_v32 = vpop.f32.mrf.mxu3 }
 0x390   : > { %2739 = vst [vmem:[%s3384_s19 + $0x3e0] sm:$0xff] %v2611_v29  ;;  %v2215_v52 = vadd.f32 %v2214_v32, %v1814_v50 }
 0x391   : > { %v2451_v2 = vadd.f32 %v4291_v4, %v2319_v56  ;;  %v1316_v33 = vpop.f32.mrf.mxu0 }
 0x392   : > { %v2352_v9 = vmul.f32 %v4284_v59, %v2215_v52  ;;  %v1717_v8 = vpop.f32.mrf.mxu1 }
 0x393   : > { %v2579_v5 = vmax.f32 %v2451_v2, 0.0  ;;  %v1718_v48 = vadd.f32 %v1717_v8, %v1316_v33 }
 0x394   : > { %v2484_v10 = vadd.f32 %v4291_v4, %v2352_v9 }
 0x395   : > { %2707 = vst [vmem:[%s3384_s19 + $0x2e0] sm:$0xff] %v2579_v5  ;;  %v2119_v60 = vadd.f32 %v2118_v51, %v1718_v48  ;;  %v2121_v36 = vpop.f32.mrf.mxu2 }
 0x396   : > { %v2612_v42 = vmax.f32 %v2484_v10, 0.0 }
 0x397   : > { %v2320_v6 = vmul.f32 %v4284_v59, %v2119_v60  ;;  %v2217_v14 = vpop.f32.mrf.mxu3 }
 0x398   : > { %2740 = vst [vmem:[%s3384_s19 + $0x3e8] sm:$0xff] %v2612_v42  ;;  %v2218_v3 = vadd.f32 %v2217_v14, %v1817_v19 }
 0x399   : > { %v2452_v30 = vadd.f32 %v4291_v4, %v2320_v6  ;;  %v1319_v37 = vpop.f32.mrf.mxu0 }
 0x39a   : > { %v2353_v27 = vmul.f32 %v4284_v59, %v2218_v3  ;;  %v1720_v34 = vpop.f32.mrf.mxu1 }
 0x39b   : > { %v2580_v35 = vmax.f32 %v2452_v30, 0.0  ;;  %v1721_v39 = vadd.f32 %v1720_v34, %v1319_v37 }
 0x39c   : > { %v2485_v1 = vadd.f32 %v4291_v4, %v2353_v27 }
 0x39d   : > { %2708 = vst [vmem:[%s3384_s19 + $0x2e8] sm:$0xff] %v2580_v35  ;;  %v2122_v7 = vadd.f32 %v2121_v36, %v1721_v39  ;;  %v2124_v15 = vpop.f32.mrf.mxu2 }
 0x39e   : > { %v2613_v62 = vmax.f32 %v2485_v1, 0.0 }
 0x39f   : > { %v2321_v0 = vmul.f32 %v4284_v59, %v2122_v7  ;;  %v2220_v24 = vpop.f32.mrf.mxu3 }
 0x3a0   : > { %2741 = vst [vmem:[%s3384_s19 + $0x3f0] sm:$0xff] %v2613_v62  ;;  %v2221_v63 = vadd.f32 %v2220_v24, %v1820_v47 }
 0x3a1   : > { %v2453_v61 = vadd.f32 %v4291_v4, %v2321_v0  ;;  %v1322_v21 = vpop.f32.mrf.mxu0 }
 0x3a2   : > { %v2354_v46 = vmul.f32 %v4284_v59, %v2221_v63  ;;  %v1723_v12 = vpop.f32.mrf.mxu1 }
 0x3a3   : > { %v2581_v54 = vmax.f32 %v2453_v61, 0.0  ;;  %v1724_v13 = vadd.f32 %v1723_v12, %v1322_v21 }
 0x3a4   : > { %v2486_v40 = vadd.f32 %v4291_v4, %v2354_v46 }
 0x3a5   : > { %2709 = vst [vmem:[%s3384_s19 + $0x2f0] sm:$0xff] %v2581_v54  ;;  %v2125_v44 = vadd.f32 %v2124_v15, %v1724_v13  ;;  %v2127_v23 = vpop.f32.mrf.mxu2 }
 0x3a6   : > { %v2614_v53 = vmax.f32 %v2486_v40, 0.0  ;;  %v2128_v18 = vadd.f32 %v2127_v23, %v1727_v26 }
 0x3a7   : > { %v2322_v25 = vmul.f32 %v4284_v59, %v2125_v44 }
 0x3a8   : > { %2742 = vst [vmem:[%s3384_s19 + $0x3f8] sm:$0xff] %v2614_v53  ;;  %v2323_v28 = vmul.f32 %v4284_v59, %v2128_v18 }
 0x3a9   : > { %v2454_v45 = vadd.f32 %v4291_v4, %v2322_v25 }
 0x3aa   : > { %v2455_v58 = vadd.f32 %v4291_v4, %v2323_v28 }
 0x3ab   : > { %v2582_v22 = vmax.f32 %v2454_v45, 0.0 }
 0x3ac   : > { %v2583_v41 = vmax.f32 %v2455_v58, 0.0 }
 0x3ad   : > { %2710 = vst [vmem:[%s3384_s19 + $0x2f8] sm:$0xff] %v2582_v22 }
 0x3ae   : > { %2711 = vst [vmem:[%s3384_s19 + $0x300] sm:$0xff] %v2583_v41 }
 0x3af PF: > { %s14_s15 = sadd.s32 1, %s3005_s15  }
 0x3b0   : > { %p11_p4 = scmp.ge.s32.totalorder %s14_s15, 4  }
 0x3b2   :  { %13 = sbr.rel (!%p11_p4) target bundleno = 1 (0x1), region = 66 }

// kernel: forward.14
= control target key start
LH: loop header
LB: loop body
LE: loop exit
PB: predicated region body
PF: predicated region fallthrough
CT: control target
= control target key end

     0   :  { %s831_s15 = smov 0   ;;  %s1157_s0 = inlined_call_operand.vmem [shape: f32[256,432], index: 0, kind: input, shape index: {}]   ;;  %s1158_s1 = inlined_call_operand.vmem [shape: f32[432,128], index: 1, kind: input, shape index: {}]   ;;  %s1159_s2 = inlined_call_operand.vmem [shape: f32[1,128], index: 2, kind: input, shape index: {}]   ;;  %s1160_s3 = inlined_call_operand.vmem [shape: f32[1,128], index: 3, kind: input, shape index: {}]   ;;  %s1161_s4 = inlined_call_operand.vmem [shape: f32[256,128], index: 4, kind: output, shape index: {}]  }
   0x1 LB: > { %s759_s16 = sadd.s32 4294967295, %s804_s15   ;;  %p763_p0 = scmp.ge.s32.totalorder %s804_s15, 1  ;;  %s804_s15 = sphi %s831_s15, %s14_s15  }
   0x2   : > { %p164_p1 = scmp.lt.s32.totalorder %s804_s15, 3 }
   0x4   : > { %p165_p2 = pnand %p763_p0, %p164_p1 }
   0x5   : > { %s764_s21 = sshll.u32 (!%p165_p2), %s759_s16, 4 }
   0x6   : > { %168 = sbr.rel (%p165_p2) target bundleno = 306 (0x132), region = 36  ;;  %p192_p3 = scmp.lt.s32.totalorder (!%p165_p2), %s764_s21, 31 }
   0xb   : > { %v315_v0 = vld [vmem:[%s1158_s1 + $0x178] sm:$0xff]  ;;  %v314_v1 = vld [vmem:[%s1158_s1 + $0x170] sm:$0xff]  ;;  %v313_v5 = vld [vmem:[%s1158_s1 + $0x168] sm:$0xff]  ;;  %s1163_s21 = smov (!%p192_p3, %s764_s21), 31  ;;  %vm322_vm0 = vcmask 392192  }
   0xc   : > { %v283_v2 = vld [vmem:[%s1158_s1 + $0x78] sm:$0xff]  ;;  %501 = vmatpush.msra.mxu2 %v315_v0  ;;  %v282_v4 = vld [vmem:[%s1158_s1 + $0x70] sm:$0xff]  ;;  %v281_v7 = vld [vmem:[%s1158_s1 + $0x68] sm:$0xff]  ;;  %s787_s13 = sshll.u32 %s1163_s21, 5 }
   0xd   : > { %371 = vmatpush.msra.mxu0 %v283_v2  ;;  %v299_v3 = vld [vmem:[%s1158_s1 + $0xf8] sm:$0xff]  ;;  %v298_v6 = vld [vmem:[%s1158_s1 + $0xf0] sm:$0xff]  ;;  %v297_v8 = vld [vmem:[%s1158_s1 + $0xe8] sm:$0xff]  ;;  %s969_s30 = scalar_lea.vmem %s1157_s0, %s787_s13 }
   0xe   : > { %436 = vmatpush.msra.mxu1 %v299_v3  ;;  %502 = vmatpush.msra.mxu2 %v314_v1  ;;  %v312_v9 = vld [vmem:[%s1158_s1 + $0x160] sm:$0xff]  ;;  %v311_v12 = vld [vmem:[%s1158_s1 + $0x158] sm:$0xff]  ;;  %v310_v15 = vld [vmem:[%s1158_s1 + $0x150] sm:$0xff] }
   0xf   : > { %372 = vmatpush.msra.mxu0 %v282_v4  ;;  %v280_v10 = vld [vmem:[%s1158_s1 + $0x60] sm:$0xff]  ;;  %v279_v13 = vld [vmem:[%s1158_s1 + $0x58] sm:$0xff]  ;;  %v278_v16 = vld [vmem:[%s1158_s1 + $0x50] sm:$0xff] }
  0x10   : > { %437 = vmatpush.msra.mxu1 %v298_v6  ;;  %503 = vmatpush.msra.mxu2 %v313_v5  ;;  %v296_v11 = vld [vmem:[%s1158_s1 + $0xe0] sm:$0xff]  ;;  %v295_v14 = vld [vmem:[%s1158_s1 + $0xd8] sm:$0xff]  ;;  %v294_v17 = vld [vmem:[%s1158_s1 + $0xd0] sm:$0xff] }
  0x11   : > { %373 = vmatpush.msra.mxu0 %v281_v7  ;;  %v309_v18 = vld [vmem:[%s1158_s1 + $0x148] sm:$0xff]  ;;  %v308_v22 = vld [vmem:[%s1158_s1 + $0x140] sm:$0xff]  ;;  %v319_v26 = vld [vmem:[%s1158_s1 + $0x198] sm:$0xff] }
  0x12   : > { %438 = vmatpush.msra.mxu1 %v297_v8  ;;  %504 = vmatpush.msra.mxu2 %v312_v9  ;;  %v277_v19 = vld [vmem:[%s1158_s1 + $0x48] sm:$0xff]  ;;  %v276_v23 = vld [vmem:[%s1158_s1 + $0x40] sm:$0xff]  ;;  %v307_v27 = vld [vmem:[%s1158_s1 + $0x138] sm:$0xff] }
  0x13   : > { %374 = vmatpush.msra.mxu0 %v280_v10  ;;  %v321_v20 = vld [vmem:[%s1158_s1 + $0x1a8] sm:$0xff]  ;;  %v320_v24 = vld [vmem:[%s1158_s1 + $0x1a0] sm:$0xff]  ;;  %v275_v28 = vld [vmem:[%s1158_s1 + $0x38] sm:$0xff] }
  0x14   : > { %439 = vmatpush.msra.mxu1 %v296_v11  ;;  %505 = vmatpush.msra.mxu2 %v311_v12  ;;  %v293_v21 = vld [vmem:[%s1158_s1 + $0xc8] sm:$0xff]  ;;  %v292_v25 = vld [vmem:[%s1158_s1 + $0xc0] sm:$0xff]  ;;  %v291_v29 = vld [vmem:[%s1158_s1 + $0xb8] sm:$0xff] }
  0x15   : > { %375 = vmatpush.msra.mxu0 %v279_v13  ;;  %576 = vmatpush.msra.mxu3 %v321_v20  ;;  %v318_v30 = vld [vmem:[%s1158_s1 + $0x190] sm:$0xff]  ;;  %v317_v34 = vld [vmem:[%s1158_s1 + $0x188] sm:$0xff]  ;;  %v316_v38 = vld [vmem:[%s1158_s1 + $0x180] sm:$0xff] }
  0x16   : > { %440 = vmatpush.msra.mxu1 %v295_v14  ;;  %506 = vmatpush.msra.mxu2 %v310_v15  ;;  %v306_v31 = vld [vmem:[%s1158_s1 + $0x130] sm:$0xff]  ;;  %v305_v35 = vld [vmem:[%s1158_s1 + $0x128] sm:$0xff]  ;;  %v304_v39 = vld [vmem:[%s1158_s1 + $0x120] sm:$0xff] }
  0x17   : > { %376 = vmatpush.msra.mxu0 %v278_v16  ;;  %577 = vmatpush.msra.mxu3 %v320_v24  ;;  %v274_v32 = vld [vmem:[%s1158_s1 + $0x30] sm:$0xff]  ;;  %v273_v36 = vld [vmem:[%s1158_s1 + $0x28] sm:$0xff]  ;;  %v272_v40 = vld [vmem:[%s1158_s1 + $0x20] sm:$0xff] }
  0x18   : > { %441 = vmatpush.msra.mxu1 %v294_v17  ;;  %507 = vmatpush.msra.mxu2 %v309_v18  ;;  %v290_v33 = vld [vmem:[%s1158_s1 + $0xb0] sm:$0xff]  ;;  %v289_v37 = vld [vmem:[%s1158_s1 + $0xa8] sm:$0xff]  ;;  %v303_v41 = vld [vmem:[%s1158_s1 + $0x118] sm:$0xff] }
  0x19   : > { %377 = vmatpush.msra.mxu0 %v277_v19  ;;  %578 = vmatpush.msra.mxu3 %v319_v26  ;;  %v288_v42 = vld [vmem:[%s1158_s1 + $0xa0] sm:$0xff]  ;;  %v207_v43 = vld [vmem:[%s969_s30 + $0x18] sm:$0xff]  ;;  %v302_v46 = vld [vmem:[%s1158_s1 + $0x110] sm:$0xff] }
  0x1a   : > { %442 = vmatpush.msra.mxu1 %v293_v21  ;;  %508 = vmatpush.msra.mxu2 %v308_v22  ;;  %v271_v44 = vld [vmem:[%s1158_s1 + $0x18] sm:$0xff]  ;;  %v270_v47 = vld [vmem:[%s1158_s1 + $0x10] sm:$0xff]  ;;  %v301_v49 = vld [vmem:[%s1158_s1 + $0x108] sm:$0xff] }
  0x1b   : > { %378 = vmatpush.msra.mxu0 %v276_v23  ;;  %579 = vmatpush.msra.mxu3 %v318_v30  ;;  %v287_v45 = vld [vmem:[%s1158_s1 + $0x98] sm:$0xff]  ;;  %v286_v48 = vld [vmem:[%s1158_s1 + $0x90] sm:$0xff]  ;;  %v269_v50 = vld [vmem:[%s1158_s1 + $0x8] sm:$0xff] }
  0x1c   : > { %443 = vmatpush.msra.mxu1 %v292_v25  ;;  %509 = vmatpush.msra.mxu2 %v307_v27  ;;  %v285_v51 = vld [vmem:[%s1158_s1 + $0x88] sm:$0xff]  ;;  %v300_v52 = vld [vmem:[%s1158_s1 + $0x100] sm:$0xff]  ;;  %v206_v54 = vld [vmem:[%s969_s30 + $0x10] sm:$0xff] }
  0x1d   : > { %379 = vmatpush.msra.mxu0 %v275_v28  ;;  %580 = vmatpush.msra.mxu3 %v317_v34  ;;  %v268_v53 = vld [vmem:[%s1158_s1] sm:$0xff]  ;;  %v205_v57 = vld [vmem:[%s969_s30 + $0x8] sm:$0xff]  ;;  %v211_v58 = vld [vmem:[%s969_s30 + $0x38] sm:$0xff] }
  0x1e   : > { %444 = vmatpush.msra.mxu1 %v291_v29  ;;  %510 = vmatpush.msra.mxu2 %v306_v31  ;;  %v284_v55 = vld [vmem:[%s1158_s1 + $0x80] sm:$0xff]  ;;  %v210_v59 = vld [vmem:[%s969_s30 + $0x30] sm:$0xff]  ;;  %v209_v61 = vld [vmem:[%s969_s30 + $0x28] sm:$0xff] }
  0x1f   : > { %380 = vmatpush.msra.mxu0 %v274_v32  ;;  %581 = vmatpush.msra.mxu3 %v316_v38  ;;  %v204_v56 = vld [vmem:[%s969_s30] sm:$0xff]  ;;  %v215_v62 = vld [vmem:[%s969_s30 + $0x58] sm:$0xff]  ;;  %v214_v63 = vld [vmem:[%s969_s30 + $0x50] sm:$0xff] }
  0x20   : > { %445 = vmatpush.msra.mxu1 %v290_v33  ;;  %511 = vmatpush.msra.mxu2 %v305_v35  ;;  %v208_v60 = vld [vmem:[%s969_s30 + $0x20] sm:$0xff]  ;;  %v213_v1 = vld [vmem:[%s969_s30 + $0x48] sm:$0xff]  ;;  %v219_v2 = vld [vmem:[%s969_s30 + $0x78] sm:$0xff] }
  0x21   : > { %381 = vmatpush.msra.mxu0 %v273_v36  ;;  %769 = vmatmul.msk.f32.vlgmr.msra.gmra.mxu3 %vm322_vm0, %v207_v43  ;;  %v212_v0 = vld [vmem:[%s969_s30 + $0x40] sm:$0xff]  ;;  %v218_v3 = vld [vmem:[%s969_s30 + $0x70] sm:$0xff]  ;;  %v217_v5 = vld [vmem:[%s969_s30 + $0x68] sm:$0xff] }
  0x22   : > { %446 = vmatpush.msra.mxu1 %v289_v37  ;;  %512 = vmatpush.msra.mxu2 %v304_v39  ;;  %v216_v4 = vld [vmem:[%s969_s30 + $0x60] sm:$0xff]  ;;  %v223_v6 = vld [vmem:[%s969_s30 + $0x98] sm:$0xff]  ;;  %v222_v7 = vld [vmem:[%s969_s30 + $0x90] sm:$0xff] }
  0x23   : > { %382 = vmatpush.msra.mxu0 %v272_v40  ;;  %v220_v8 = vld [vmem:[%s969_s30 + $0x80] sm:$0xff]  ;;  %v221_v9 = vld [vmem:[%s969_s30 + $0x88] sm:$0xff]  ;;  %v227_v10 = vld [vmem:[%s969_s30 + $0xb8] sm:$0xff] }
  0x24   : > { %447 = vmatpush.msra.mxu1 %v288_v42  ;;  %513 = vmatpush.msra.mxu2 %v303_v41  ;;  %v226_v11 = vld [vmem:[%s969_s30 + $0xb0] sm:$0xff]  ;;  %v224_v12 = vld [vmem:[%s969_s30 + $0xa0] sm:$0xff]  ;;  %v225_v13 = vld [vmem:[%s969_s30 + $0xa8] sm:$0xff] }
  0x25   : > { %383 = vmatpush.msra.mxu0 %v271_v44  ;;  %v231_v14 = vld [vmem:[%s969_s30 + $0xd8] sm:$0xff]  ;;  %v230_v15 = vld [vmem:[%s969_s30 + $0xd0] sm:$0xff]  ;;  %v228_v16 = vld [vmem:[%s969_s30 + $0xc0] sm:$0xff] }
  0x26   : > { %448 = vmatpush.msra.mxu1 %v287_v45  ;;  %514 = vmatpush.msra.mxu2 %v302_v46  ;;  %v229_v17 = vld [vmem:[%s969_s30 + $0xc8] sm:$0xff]  ;;  %v235_v18 = vld [vmem:[%s969_s30 + $0xf8] sm:$0xff]  ;;  %v234_v19 = vld [vmem:[%s969_s30 + $0xf0] sm:$0xff] }
  0x27   : > { %384 = vmatpush.msra.mxu0 %v270_v47  ;;  %v232_v20 = vld [vmem:[%s969_s30 + $0xe0] sm:$0xff]  ;;  %v233_v21 = vld [vmem:[%s969_s30 + $0xe8] sm:$0xff]  ;;  %v239_v22 = vld [vmem:[%s969_s30 + $0x118] sm:$0xff] }
  0x28   : > { %449 = vmatpush.msra.mxu1 %v286_v48  ;;  %515 = vmatpush.msra.mxu2 %v301_v49  ;;  %v238_v23 = vld [vmem:[%s969_s30 + $0x110] sm:$0xff]  ;;  %v236_v24 = vld [vmem:[%s969_s30 + $0x100] sm:$0xff]  ;;  %v237_v25 = vld [vmem:[%s969_s30 + $0x108] sm:$0xff] }
  0x29   : > { %385 = vmatpush.msra.mxu0 %v269_v50  ;;  %770 = vmatmul.msk.f32.gmra.mxu3 %vm322_vm0, %v211_v58  ;;  %v243_v26 = vld [vmem:[%s969_s30 + $0x138] sm:$0xff]  ;;  %v242_v27 = vld [vmem:[%s969_s30 + $0x130] sm:$0xff]  ;;  %v240_v28 = vld [vmem:[%s969_s30 + $0x120] sm:$0xff] }
  0x2a   : > { %450 = vmatpush.msra.mxu1 %v285_v51  ;;  %516 = vmatpush.msra.mxu2 %v300_v52  ;;  %v241_v29 = vld [vmem:[%s969_s30 + $0x128] sm:$0xff]  ;;  %v247_v30 = vld [vmem:[%s969_s30 + $0x158] sm:$0xff]  ;;  %v246_v31 = vld [vmem:[%s969_s30 + $0x150] sm:$0xff] }
  0x2b   : > { %386 = vmatpush.msra.mxu0 %v268_v53  ;;  %517 = vmatmul.f32.vlgmr.msra.gmra.mxu2 %v206_v54  ;;  %v244_v32 = vld [vmem:[%s969_s30 + $0x140] sm:$0xff]  ;;  %v245_v33 = vld [vmem:[%s969_s30 + $0x148] sm:$0xff]  ;;  %v251_v34 = vld [vmem:[%s969_s30 + $0x178] sm:$0xff] }
  0x2c   : > { %451 = vmatpush.msra.mxu1 %v284_v55  ;;  %387 = vmatmul.f32.vlgmr.msra.gmra.mxu0 %v204_v56  ;;  %v250_v35 = vld [vmem:[%s969_s30 + $0x170] sm:$0xff]  ;;  %v248_v36 = vld [vmem:[%s969_s30 + $0x160] sm:$0xff]  ;;  %v249_v37 = vld [vmem:[%s969_s30 + $0x168] sm:$0xff] }
  0x2d   : > { %452 = vmatmul.f32.vlgmr.msra.gmra.mxu1 %v205_v57  ;;  %v255_v38 = vld [vmem:[%s969_s30 + $0x198] sm:$0xff]  ;;  %v254_v39 = vld [vmem:[%s969_s30 + $0x190] sm:$0xff]  ;;  %v252_v40 = vld [vmem:[%s969_s30 + $0x180] sm:$0xff] }
  0x2e   : > { %v253_v41 = vld [vmem:[%s969_s30 + $0x188] sm:$0xff]  ;;  %v259_v42 = vld [vmem:[%s969_s30 + $0x1b8] sm:$0xff]  ;;  %v258_v43 = vld [vmem:[%s969_s30 + $0x1b0] sm:$0xff] }
  0x2f   : > { %v256_v44 = vld [vmem:[%s969_s30 + $0x1a0] sm:$0xff]  ;;  %v257_v45 = vld [vmem:[%s969_s30 + $0x1a8] sm:$0xff]  ;;  %v263_v46 = vld [vmem:[%s969_s30 + $0x1d8] sm:$0xff] }
  0x30   : > { %v262_v47 = vld [vmem:[%s969_s30 + $0x1d0] sm:$0xff]  ;;  %v260_v48 = vld [vmem:[%s969_s30 + $0x1c0] sm:$0xff]  ;;  %v261_v49 = vld [vmem:[%s969_s30 + $0x1c8] sm:$0xff] }
  0x31   : > { %771 = vmatmul.msk.f32.gmra.mxu3 %vm322_vm0, %v215_v62  ;;  %v267_v50 = vld [vmem:[%s969_s30 + $0x1f8] sm:$0xff]  ;;  %v266_v51 = vld [vmem:[%s969_s30 + $0x1f0] sm:$0xff]  ;;  %v264_v52 = vld [vmem:[%s969_s30 + $0x1e0] sm:$0xff] }
  0x32   : > { %v265_v53 = vld [vmem:[%s969_s30 + $0x1e8] sm:$0xff]  ;;  %s768_s30 = sshll.u32 %s1163_s21, 3 }
  0x33   : > { %520 = vmatmul.f32.gmra.mxu2 %v210_v59  ;;  %s1106_s14 = scalar_lea.vmem %s1161_s4, %s768_s30 }
  0x34   : > { %390 = vmatmul.f32.gmra.mxu0 %v208_v60  ;;  %v1093_v60 = vld [vmem:[%s1159_s2] ss:$0 sm:$0xff] }
  0x35   : > { %455 = vmatmul.f32.gmra.mxu1 %v209_v61 }
  0x39   : > { %772 = vmatmul.msk.f32.gmra.mxu3 %vm322_vm0, %v219_v2 }
  0x3b   : > { %523 = vmatmul.f32.gmra.mxu2 %v214_v63  ;;  %v1098_v63 = vld [vmem:[%s1160_s3] ss:$0 sm:$0xff] }
  0x3c   : > { %393 = vmatmul.f32.gmra.mxu0 %v212_v0 }
  0x3d   : > { %458 = vmatmul.f32.gmra.mxu1 %v213_v1 }
  0x41   : > { %773 = vmatmul.msk.f32.gmra.mxu3 %vm322_vm0, %v223_v6 }
  0x43   : > { %526 = vmatmul.f32.gmra.mxu2 %v218_v3 }
  0x44   : > { %396 = vmatmul.f32.gmra.mxu0 %v216_v4 }
  0x45   : > { %461 = vmatmul.f32.gmra.mxu1 %v217_v5 }
  0x49   : > { %774 = vmatmul.msk.f32.gmra.mxu3 %vm322_vm0, %v227_v10 }
  0x4b   : > { %529 = vmatmul.f32.gmra.mxu2 %v222_v7 }
  0x4c   : > { %399 = vmatmul.f32.gmra.mxu0 %v220_v8 }
  0x4d   : > { %464 = vmatmul.f32.gmra.mxu1 %v221_v9 }
  0x51   : > { %775 = vmatmul.msk.f32.gmra.mxu3 %vm322_vm0, %v231_v14 }
  0x53   : > { %532 = vmatmul.f32.gmra.mxu2 %v226_v11 }
  0x54   : > { %402 = vmatmul.f32.gmra.mxu0 %v224_v12 }
  0x55   : > { %467 = vmatmul.f32.gmra.mxu1 %v225_v13 }
  0x59   : > { %776 = vmatmul.msk.f32.gmra.mxu3 %vm322_vm0, %v235_v18 }
  0x5b   : > { %535 = vmatmul.f32.gmra.mxu2 %v230_v15 }
  0x5c   : > { %405 = vmatmul.f32.gmra.mxu0 %v228_v16 }
  0x5d   : > { %470 = vmatmul.f32.gmra.mxu1 %v229_v17 }
  0x61   : > { %777 = vmatmul.msk.f32.gmra.mxu3 %vm322_vm0, %v239_v22 }
  0x63   : > { %538 = vmatmul.f32.gmra.mxu2 %v234_v19 }
  0x64   : > { %408 = vmatmul.f32.gmra.mxu0 %v232_v20 }
  0x65   : > { %473 = vmatmul.f32.gmra.mxu1 %v233_v21 }
  0x69   : > { %778 = vmatmul.msk.f32.gmra.mxu3 %vm322_vm0, %v243_v26 }
  0x6b   : > { %541 = vmatmul.f32.gmra.mxu2 %v238_v23 }
  0x6c   : > { %411 = vmatmul.f32.gmra.mxu0 %v236_v24 }
  0x6d   : > { %476 = vmatmul.f32.gmra.mxu1 %v237_v25 }
  0x71   : > { %779 = vmatmul.msk.f32.gmra.mxu3 %vm322_vm0, %v247_v30 }
  0x73   : > { %544 = vmatmul.f32.gmra.mxu2 %v242_v27 }
  0x74   : > { %414 = vmatmul.f32.gmra.mxu0 %v240_v28 }
  0x75   : > { %479 = vmatmul.f32.gmra.mxu1 %v241_v29 }
  0x79   : > { %780 = vmatmul.msk.f32.gmra.mxu3 %vm322_vm0, %v251_v34 }
  0x7b   : > { %547 = vmatmul.f32.gmra.mxu2 %v246_v31 }
  0x7c   : > { %417 = vmatmul.f32.gmra.mxu0 %v244_v32 }
  0x7d   : > { %482 = vmatmul.f32.gmra.mxu1 %v245_v33 }
  0x81   : > { %781 = vmatmul.msk.f32.gmra.mxu3 %vm322_vm0, %v255_v38 }
  0x83   : > { %550 = vmatmul.f32.gmra.mxu2 %v250_v35 }
  0x84   : > { %420 = vmatmul.f32.gmra.mxu0 %v248_v36 }
  0x85   : > { %485 = vmatmul.f32.gmra.mxu1 %v249_v37 }
  0x89   : > { %782 = vmatmul.msk.f32.gmra.mxu3 %vm322_vm0, %v259_v42 }
  0x8b   : > { %553 = vmatmul.f32.gmra.mxu2 %v254_v39 }
  0x8c   : > { %423 = vmatmul.f32.gmra.mxu0 %v252_v40 }
  0x8d   : > { %488 = vmatmul.f32.gmra.mxu1 %v253_v41 }
  0x91   : > { %783 = vmatmul.msk.f32.gmra.mxu3 %vm322_vm0, %v263_v46 }
  0x93   : > { %556 = vmatmul.f32.gmra.mxu2 %v258_v43 }
  0x94   : > { %426 = vmatmul.f32.gmra.mxu0 %v256_v44 }
  0x95   : > { %491 = vmatmul.f32.gmra.mxu1 %v257_v45 }
  0x99   : > { %784 = vmatmul.msk.f32.gmra.mxu3 %vm322_vm0, %v267_v50 }
  0x9b   : > { %559 = vmatmul.f32.gmra.mxu2 %v262_v47 }
  0x9c   : > { %429 = vmatmul.f32.gmra.mxu0 %v260_v48 }
  0x9d   : > { %494 = vmatmul.f32.gmra.mxu1 %v261_v49 }
  0xa3   : > { %562 = vmatmul.f32.gmra.mxu2 %v266_v51 }
  0xa4   : > { %432 = vmatmul.f32.gmra.mxu0 %v264_v52  ;;  %v583_v54 = vpop.f32.mrf.mxu3 }
  0xa5   : > { %497 = vmatmul.f32.gmra.mxu1 %v265_v53 }
  0xa9   : > { %v388_v55 = vpop.f32.mrf.mxu0 }
  0xaa   : > { %v453_v56 = vpop.f32.mrf.mxu1 }
  0xab   : > { %v454_v57 = vadd.f32 %v453_v56, %v388_v55 }
  0xac   : > { %v586_v61 = vpop.f32.mrf.mxu3 }
  0xae   : > { %v518_v58 = vpop.f32.mrf.mxu2 }
  0xaf   : > { %v519_v59 = vadd.f32 %v518_v58, %v454_v57 }
  0xb1   : > { %v584_v62 = vadd.f32 %v583_v54, %v519_v59  ;;  %v391_v0 = vpop.f32.mrf.mxu0 }
  0xb2   : > { %v456_v1 = vpop.f32.mrf.mxu1 }
  0xb3   : > { %v635_v2 = vmul.f32 %v1093_v60, %v584_v62  ;;  %v457_v3 = vadd.f32 %v456_v1, %v391_v0 }
  0xb4   : > { %v589_v8 = vpop.f32.mrf.mxu3 }
  0xb5   : > { %v655_v4 = vadd.f32 %v1098_v63, %v635_v2 }
  0xb6   : > { %v521_v5 = vpop.f32.mrf.mxu2 }
  0xb7   : > { %v671_v6 = vmax.f32 %v655_v4, 0.0  ;;  %v522_v7 = vadd.f32 %v521_v5, %v457_v3 }
  0xb9   : > { %687 = vst [vmem:[%s1106_s14] sm:$0xff] %v671_v6  ;;  %v587_v9 = vadd.f32 %v586_v61, %v522_v7  ;;  %v394_v10 = vpop.f32.mrf.mxu0 }
  0xba   : > { %v459_v11 = vpop.f32.mrf.mxu1 }
  0xbb   : > { %v636_v12 = vmul.f32 %v1093_v60, %v587_v9  ;;  %v460_v13 = vadd.f32 %v459_v11, %v394_v10 }
  0xbc   : > { %v592_v18 = vpop.f32.mrf.mxu3 }
  0xbd   : > { %v656_v14 = vadd.f32 %v1098_v63, %v636_v12 }
  0xbe   : > { %v524_v15 = vpop.f32.mrf.mxu2 }
  0xbf   : > { %v672_v16 = vmax.f32 %v656_v14, 0.0  ;;  %v525_v17 = vadd.f32 %v524_v15, %v460_v13 }
  0xc1   : > { %688 = vst [vmem:[%s1106_s14 + $0x8] sm:$0xff] %v672_v16  ;;  %v590_v19 = vadd.f32 %v589_v8, %v525_v17  ;;  %v397_v20 = vpop.f32.mrf.mxu0 }
  0xc2   : > { %v462_v21 = vpop.f32.mrf.mxu1 }
  0xc3   : > { %v637_v22 = vmul.f32 %v1093_v60, %v590_v19  ;;  %v463_v23 = vadd.f32 %v462_v21, %v397_v20 }
  0xc4   : > { %v595_v28 = vpop.f32.mrf.mxu3 }
  0xc5   : > { %v657_v24 = vadd.f32 %v1098_v63, %v637_v22 }
  0xc6   : > { %v527_v25 = vpop.f32.mrf.mxu2 }
  0xc7   : > { %v673_v26 = vmax.f32 %v657_v24, 0.0  ;;  %v528_v27 = vadd.f32 %v527_v25, %v463_v23 }
  0xc9   : > { %689 = vst [vmem:[%s1106_s14 + $0x10] sm:$0xff] %v673_v26  ;;  %v593_v29 = vadd.f32 %v592_v18, %v528_v27  ;;  %v400_v30 = vpop.f32.mrf.mxu0 }
  0xca   : > { %v465_v31 = vpop.f32.mrf.mxu1 }
  0xcb   : > { %v638_v32 = vmul.f32 %v1093_v60, %v593_v29  ;;  %v466_v33 = vadd.f32 %v465_v31, %v400_v30 }
  0xcc   : > { %v598_v38 = vpop.f32.mrf.mxu3 }
  0xcd   : > { %v658_v34 = vadd.f32 %v1098_v63, %v638_v32 }
  0xce   : > { %v530_v35 = vpop.f32.mrf.mxu2 }
  0xcf   : > { %v674_v36 = vmax.f32 %v658_v34, 0.0  ;;  %v531_v37 = vadd.f32 %v530_v35, %v466_v33 }
  0xd1   : > { %690 = vst [vmem:[%s1106_s14 + $0x18] sm:$0xff] %v674_v36  ;;  %v596_v39 = vadd.f32 %v595_v28, %v531_v37  ;;  %v403_v40 = vpop.f32.mrf.mxu0 }
  0xd2   : > { %v468_v41 = vpop.f32.mrf.mxu1 }
  0xd3   : > { %v639_v42 = vmul.f32 %v1093_v60, %v596_v39  ;;  %v469_v43 = vadd.f32 %v468_v41, %v403_v40 }
  0xd4   : > { %v601_v48 = vpop.f32.mrf.mxu3 }
  0xd5   : > { %v659_v44 = vadd.f32 %v1098_v63, %v639_v42 }
  0xd6   : > { %v533_v45 = vpop.f32.mrf.mxu2 }
  0xd7   : > { %v675_v46 = vmax.f32 %v659_v44, 0.0  ;;  %v534_v47 = vadd.f32 %v533_v45, %v469_v43 }
  0xd9   : > { %691 = vst [vmem:[%s1106_s14 + $0x20] sm:$0xff] %v675_v46  ;;  %v599_v49 = vadd.f32 %v598_v38, %v534_v47  ;;  %v406_v50 = vpop.f32.mrf.mxu0 }
  0xda   : > { %v471_v51 = vpop.f32.mrf.mxu1 }
  0xdb   : > { %v640_v52 = vmul.f32 %v1093_v60, %v599_v49  ;;  %v472_v53 = vadd.f32 %v471_v51, %v406_v50 }
  0xdc   : > { %v604_v58 = vpop.f32.mrf.mxu3 }
  0xdd   : > { %v660_v54 = vadd.f32 %v1098_v63, %v640_v52 }
  0xde   : > { %v536_v55 = vpop.f32.mrf.mxu2 }
  0xdf   : > { %v676_v56 = vmax.f32 %v660_v54, 0.0  ;;  %v537_v57 = vadd.f32 %v536_v55, %v472_v53 }
  0xe1   : > { %692 = vst [vmem:[%s1106_s14 + $0x28] sm:$0xff] %v676_v56  ;;  %v602_v59 = vadd.f32 %v601_v48, %v537_v57  ;;  %v409_v61 = vpop.f32.mrf.mxu0 }
  0xe2   : > { %v474_v62 = vpop.f32.mrf.mxu1 }
  0xe3   : > { %v641_v0 = vmul.f32 %v1093_v60, %v602_v59  ;;  %v475_v1 = vadd.f32 %v474_v62, %v409_v61 }
  0xe4   : > { %v607_v6 = vpop.f32.mrf.mxu3 }
  0xe5   : > { %v661_v2 = vadd.f32 %v1098_v63, %v641_v0 }
  0xe6   : > { %v539_v3 = vpop.f32.mrf.mxu2 }
  0xe7   : > { %v677_v4 = vmax.f32 %v661_v2, 0.0  ;;  %v540_v5 = vadd.f32 %v539_v3, %v475_v1 }
  0xe9   : > { %693 = vst [vmem:[%s1106_s14 + $0x30] sm:$0xff] %v677_v4  ;;  %v605_v7 = vadd.f32 %v604_v58, %v540_v5  ;;  %v412_v8 = vpop.f32.mrf.mxu0 }
  0xea   : > { %v477_v9 = vpop.f32.mrf.mxu1 }
  0xeb   : > { %v642_v10 = vmul.f32 %v1093_v60, %v605_v7  ;;  %v478_v11 = vadd.f32 %v477_v9, %v412_v8 }
  0xec   : > { %v610_v16 = vpop.f32.mrf.mxu3 }
  0xed   : > { %v662_v12 = vadd.f32 %v1098_v63, %v642_v10 }
  0xee   : > { %v542_v13 = vpop.f32.mrf.mxu2 }
  0xef   : > { %v678_v14 = vmax.f32 %v662_v12, 0.0  ;;  %v543_v15 = vadd.f32 %v542_v13, %v478_v11 }
  0xf1   : > { %694 = vst [vmem:[%s1106_s14 + $0x38] sm:$0xff] %v678_v14  ;;  %v608_v17 = vadd.f32 %v607_v6, %v543_v15  ;;  %v415_v18 = vpop.f32.mrf.mxu0 }
  0xf2   : > { %v480_v19 = vpop.f32.mrf.mxu1 }
  0xf3   : > { %v643_v20 = vmul.f32 %v1093_v60, %v608_v17  ;;  %v481_v21 = vadd.f32 %v480_v19, %v415_v18 }
  0xf4   : > { %v613_v26 = vpop.f32.mrf.mxu3 }
  0xf5   : > { %v663_v22 = vadd.f32 %v1098_v63, %v643_v20 }
  0xf6   : > { %v545_v23 = vpop.f32.mrf.mxu2 }
  0xf7   : > { %v679_v24 = vmax.f32 %v663_v22, 0.0  ;;  %v546_v25 = vadd.f32 %v545_v23, %v481_v21 }
  0xf9   : > { %695 = vst [vmem:[%s1106_s14 + $0x40] sm:$0xff] %v679_v24  ;;  %v611_v27 = vadd.f32 %v610_v16, %v546_v25  ;;  %v418_v28 = vpop.f32.mrf.mxu0 }
  0xfa   : > { %v483_v29 = vpop.f32.mrf.mxu1 }
  0xfb   : > { %v644_v30 = vmul.f32 %v1093_v60, %v611_v27  ;;  %v484_v31 = vadd.f32 %v483_v29, %v418_v28 }
  0xfc   : > { %v616_v36 = vpop.f32.mrf.mxu3 }
  0xfd   : > { %v664_v32 = vadd.f32 %v1098_v63, %v644_v30 }
  0xfe   : > { %v548_v33 = vpop.f32.mrf.mxu2 }
  0xff   : > { %v680_v34 = vmax.f32 %v664_v32, 0.0  ;;  %v549_v35 = vadd.f32 %v548_v33, %v484_v31 }
 0x101   : > { %696 = vst [vmem:[%s1106_s14 + $0x48] sm:$0xff] %v680_v34  ;;  %v614_v37 = vadd.f32 %v613_v26, %v549_v35  ;;  %v421_v38 = vpop.f32.mrf.mxu0 }
 0x102   : > { %v486_v39 = vpop.f32.mrf.mxu1 }
 0x103   : > { %v645_v40 = vmul.f32 %v1093_v60, %v614_v37  ;;  %v487_v41 = vadd.f32 %v486_v39, %v421_v38 }
 0x104   : > { %v619_v46 = vpop.f32.mrf.mxu3 }
 0x105   : > { %v665_v42 = vadd.f32 %v1098_v63, %v645_v40 }
 0x106   : > { %v551_v43 = vpop.f32.mrf.mxu2 }
 0x107   : > { %v681_v44 = vmax.f32 %v665_v42, 0.0  ;;  %v552_v45 = vadd.f32 %v551_v43, %v487_v41 }
 0x109   : > { %697 = vst [vmem:[%s1106_s14 + $0x50] sm:$0xff] %v681_v44  ;;  %v617_v47 = vadd.f32 %v616_v36, %v552_v45  ;;  %v424_v48 = vpop.f32.mrf.mxu0 }
 0x10a   : > { %v489_v49 = vpop.f32.mrf.mxu1 }
 0x10b   : > { %v646_v50 = vmul.f32 %v1093_v60, %v617_v47  ;;  %v490_v51 = vadd.f32 %v489_v49, %v424_v48 }
 0x10c   : > { %v622_v59 = vpop.f32.mrf.mxu3 }
 0x10d   : > { %v666_v52 = vadd.f32 %v1098_v63, %v646_v50 }
 0x10e   : > { %v554_v53 = vpop.f32.mrf.mxu2 }
 0x10f   : > { %v682_v54 = vmax.f32 %v666_v52, 0.0  ;;  %v555_v55 = vadd.f32 %v554_v53, %v490_v51 }
 0x111   : > { %698 = vst [vmem:[%s1106_s14 + $0x58] sm:$0xff] %v682_v54  ;;  %v620_v56 = vadd.f32 %v619_v46, %v555_v55  ;;  %v427_v57 = vpop.f32.mrf.mxu0 }
 0x112   : > { %v492_v58 = vpop.f32.mrf.mxu1 }
 0x113   : > { %v647_v61 = vmul.f32 %v1093_v60, %v620_v56  ;;  %v493_v62 = vadd.f32 %v492_v58, %v427_v57 }
 0x114   : > { %v625_v9 = vpop.f32.mrf.mxu3 }
 0x115   : > { %v667_v0 = vadd.f32 %v1098_v63, %v647_v61 }
 0x116   : > { %v557_v1 = vpop.f32.mrf.mxu2 }
 0x117   : > { %v683_v2 = vmax.f32 %v667_v0, 0.0  ;;  %v558_v3 = vadd.f32 %v557_v1, %v493_v62 }
 0x119   : > { %699 = vst [vmem:[%s1106_s14 + $0x60] sm:$0xff] %v683_v2  ;;  %v623_v4 = vadd.f32 %v622_v59, %v558_v3  ;;  %v430_v5 = vpop.f32.mrf.mxu0 }
 0x11a   : > { %v495_v6 = vpop.f32.mrf.mxu1 }
 0x11b   : > { %v648_v7 = vmul.f32 %v1093_v60, %v623_v4  ;;  %v496_v8 = vadd.f32 %v495_v6, %v430_v5 }
 0x11c   : > { %v628_v21 = vpop.f32.mrf.mxu3 }
 0x11d   : > { %v668_v10 = vadd.f32 %v1098_v63, %v648_v7 }
 0x11e   : > { %v560_v11 = vpop.f32.mrf.mxu2 }
 0x11f   : > { %v684_v12 = vmax.f32 %v668_v10, 0.0  ;;  %v561_v13 = vadd.f32 %v560_v11, %v496_v8 }
 0x121   : > { %700 = vst [vmem:[%s1106_s14 + $0x68] sm:$0xff] %v684_v12  ;;  %v626_v14 = vadd.f32 %v625_v9, %v561_v13  ;;  %v433_v15 = vpop.f32.mrf.mxu0 }
 0x122   : > { %v498_v16 = vpop.f32.mrf.mxu1 }
 0x123   : > { %v649_v17 = vmul.f32 %v1093_v60, %v626_v14  ;;  %v499_v18 = vadd.f32 %v498_v16, %v433_v15 }
 0x125   : > { %v669_v19 = vadd.f32 %v1098_v63, %v649_v17 }
 0x126   : > { %v563_v20 = vpop.f32.mrf.mxu2 }
 0x127   : > { %v685_v22 = vmax.f32 %v669_v19, 0.0  ;;  %v564_v23 = vadd.f32 %v563_v20, %v499_v18 }
 0x129   : > { %701 = vst [vmem:[%s1106_s14 + $0x70] sm:$0xff] %v685_v22  ;;  %v629_v24 = vadd.f32 %v628_v21, %v564_v23 }
 0x12b   : > { %v650_v25 = vmul.f32 %v1093_v60, %v629_v24 }
 0x12d   : > { %v670_v26 = vadd.f32 %v1098_v63, %v650_v25 }
 0x12f   : > { %v686_v27 = vmax.f32 %v670_v26, 0.0 }
 0x131   : > { %702 = vst [vmem:[%s1106_s14 + $0x78] sm:$0xff] %v686_v27 }
 0x132 PF: > { %s14_s15 = sadd.s32 1, %s804_s15  }
 0x133   : > { %p11_p4 = scmp.ge.s32.totalorder %s14_s15, 4  }
 0x135   :  { %13 = sbr.rel (!%p11_p4) target bundleno = 1 (0x1), region = 66 }

// kernel: forward.15
= control target key start
LH: loop header
LB: loop body
LE: loop exit
PB: predicated region body
PF: predicated region fallthrough
CT: control target
= control target key end

     0   :  { %s931_s18 = smov 0   ;;  %s1278_s0 = inlined_call_operand.vmem [shape: f32[256,432], index: 0, kind: input, shape index: {}]   ;;  %s1279_s1 = inlined_call_operand.vmem [shape: f32[432,128], index: 1, kind: input, shape index: {}]   ;;  %s1280_s2 = inlined_call_operand.vmem [shape: f32[1,128], index: 2, kind: input, shape index: {}]   ;;  %s1281_s3 = inlined_call_operand.vmem [shape: f32[1,128], index: 3, kind: input, shape index: {}]   ;;  %s1282_s4 = inlined_call_operand.vmem [shape: f32[256,128], index: 4, kind: input, shape index: {}]   ;;  %s1283_s5 = inlined_call_operand.vmem [shape: f32[256,128], index: 5, kind: output, shape index: {}]  }
   0x1 LB: > { %s852_s19 = sadd.s32 4294967295, %s899_s18   ;;  %p856_p0 = scmp.ge.s32.totalorder %s899_s18, 1  ;;  %s899_s18 = sphi %s931_s18, %s15_s18  }
   0x2   : > { %p200_p1 = scmp.lt.s32.totalorder %s899_s18, 3 }
   0x4   : > { %p201_p2 = pnand %p856_p0, %p200_p1 }
   0x5   : > { %s857_s25 = sshll.u32 (!%p201_p2), %s852_s19, 4 }
   0x6   : > { %204 = sbr.rel (%p201_p2) target bundleno = 308 (0x134), region = 40  ;;  %p235_p3 = scmp.lt.s32.totalorder (!%p201_p2), %s857_s25, 31 }
   0xb   : > { %v364_v0 = vld [vmem:[%s1279_s1 + $0x178] sm:$0xff]  ;;  %v363_v1 = vld [vmem:[%s1279_s1 + $0x170] sm:$0xff]  ;;  %v362_v5 = vld [vmem:[%s1279_s1 + $0x168] sm:$0xff]  ;;  %s1285_s25 = smov (!%p235_p3, %s857_s25), 31  ;;  %vm371_vm0 = vcmask 392192  }
   0xc   : > { %v332_v2 = vld [vmem:[%s1279_s1 + $0x78] sm:$0xff]  ;;  %550 = vmatpush.msra.mxu2 %v364_v0  ;;  %v331_v4 = vld [vmem:[%s1279_s1 + $0x70] sm:$0xff]  ;;  %v330_v7 = vld [vmem:[%s1279_s1 + $0x68] sm:$0xff]  ;;  %s882_s21 = sshll.u32 %s1285_s25, 5  ;;  %s861_s16 = sshll.u32 %s1285_s25, 3 }
   0xd   : > { %420 = vmatpush.msra.mxu0 %v332_v2  ;;  %v348_v3 = vld [vmem:[%s1279_s1 + $0xf8] sm:$0xff]  ;;  %v347_v6 = vld [vmem:[%s1279_s1 + $0xf0] sm:$0xff]  ;;  %v346_v8 = vld [vmem:[%s1279_s1 + $0xe8] sm:$0xff]  ;;  %s1069_s11 = scalar_lea.vmem %s1278_s0, %s882_s21  ;;  %s1212_s27 = scalar_lea.vmem %s1283_s5, %s861_s16 }
   0xe   : > { %485 = vmatpush.msra.mxu1 %v348_v3  ;;  %551 = vmatpush.msra.mxu2 %v363_v1  ;;  %v361_v9 = vld [vmem:[%s1279_s1 + $0x160] sm:$0xff]  ;;  %v360_v12 = vld [vmem:[%s1279_s1 + $0x158] sm:$0xff]  ;;  %v359_v15 = vld [vmem:[%s1279_s1 + $0x150] sm:$0xff] }
   0xf   : > { %421 = vmatpush.msra.mxu0 %v331_v4  ;;  %v329_v10 = vld [vmem:[%s1279_s1 + $0x60] sm:$0xff]  ;;  %v328_v13 = vld [vmem:[%s1279_s1 + $0x58] sm:$0xff]  ;;  %v327_v16 = vld [vmem:[%s1279_s1 + $0x50] sm:$0xff] }
  0x10   : > { %486 = vmatpush.msra.mxu1 %v347_v6  ;;  %552 = vmatpush.msra.mxu2 %v362_v5  ;;  %v345_v11 = vld [vmem:[%s1279_s1 + $0xe0] sm:$0xff]  ;;  %v344_v14 = vld [vmem:[%s1279_s1 + $0xd8] sm:$0xff]  ;;  %v343_v17 = vld [vmem:[%s1279_s1 + $0xd0] sm:$0xff] }
  0x11   : > { %422 = vmatpush.msra.mxu0 %v330_v7  ;;  %v358_v18 = vld [vmem:[%s1279_s1 + $0x148] sm:$0xff]  ;;  %v357_v22 = vld [vmem:[%s1279_s1 + $0x140] sm:$0xff]  ;;  %v368_v26 = vld [vmem:[%s1279_s1 + $0x198] sm:$0xff] }
  0x12   : > { %487 = vmatpush.msra.mxu1 %v346_v8  ;;  %553 = vmatpush.msra.mxu2 %v361_v9  ;;  %v326_v19 = vld [vmem:[%s1279_s1 + $0x48] sm:$0xff]  ;;  %v325_v23 = vld [vmem:[%s1279_s1 + $0x40] sm:$0xff]  ;;  %v356_v27 = vld [vmem:[%s1279_s1 + $0x138] sm:$0xff] }
  0x13   : > { %423 = vmatpush.msra.mxu0 %v329_v10  ;;  %v370_v20 = vld [vmem:[%s1279_s1 + $0x1a8] sm:$0xff]  ;;  %v369_v24 = vld [vmem:[%s1279_s1 + $0x1a0] sm:$0xff]  ;;  %v324_v28 = vld [vmem:[%s1279_s1 + $0x38] sm:$0xff] }
  0x14   : > { %488 = vmatpush.msra.mxu1 %v345_v11  ;;  %554 = vmatpush.msra.mxu2 %v360_v12  ;;  %v342_v21 = vld [vmem:[%s1279_s1 + $0xc8] sm:$0xff]  ;;  %v341_v25 = vld [vmem:[%s1279_s1 + $0xc0] sm:$0xff]  ;;  %v340_v29 = vld [vmem:[%s1279_s1 + $0xb8] sm:$0xff] }
  0x15   : > { %424 = vmatpush.msra.mxu0 %v328_v13  ;;  %625 = vmatpush.msra.mxu3 %v370_v20  ;;  %v367_v30 = vld [vmem:[%s1279_s1 + $0x190] sm:$0xff]  ;;  %v366_v34 = vld [vmem:[%s1279_s1 + $0x188] sm:$0xff]  ;;  %v365_v38 = vld [vmem:[%s1279_s1 + $0x180] sm:$0xff] }
  0x16   : > { %489 = vmatpush.msra.mxu1 %v344_v14  ;;  %555 = vmatpush.msra.mxu2 %v359_v15  ;;  %v355_v31 = vld [vmem:[%s1279_s1 + $0x130] sm:$0xff]  ;;  %v354_v35 = vld [vmem:[%s1279_s1 + $0x128] sm:$0xff]  ;;  %v353_v39 = vld [vmem:[%s1279_s1 + $0x120] sm:$0xff] }
  0x17   : > { %425 = vmatpush.msra.mxu0 %v327_v16  ;;  %626 = vmatpush.msra.mxu3 %v369_v24  ;;  %v323_v32 = vld [vmem:[%s1279_s1 + $0x30] sm:$0xff]  ;;  %v322_v36 = vld [vmem:[%s1279_s1 + $0x28] sm:$0xff]  ;;  %v321_v40 = vld [vmem:[%s1279_s1 + $0x20] sm:$0xff] }
  0x18   : > { %490 = vmatpush.msra.mxu1 %v343_v17  ;;  %556 = vmatpush.msra.mxu2 %v358_v18  ;;  %v339_v33 = vld [vmem:[%s1279_s1 + $0xb0] sm:$0xff]  ;;  %v338_v37 = vld [vmem:[%s1279_s1 + $0xa8] sm:$0xff]  ;;  %v352_v41 = vld [vmem:[%s1279_s1 + $0x118] sm:$0xff] }
  0x19   : > { %426 = vmatpush.msra.mxu0 %v326_v19  ;;  %627 = vmatpush.msra.mxu3 %v368_v26  ;;  %v337_v42 = vld [vmem:[%s1279_s1 + $0xa0] sm:$0xff]  ;;  %v256_v43 = vld [vmem:[%s1069_s11 + $0x18] sm:$0xff]  ;;  %v351_v46 = vld [vmem:[%s1279_s1 + $0x110] sm:$0xff] }
  0x1a   : > { %491 = vmatpush.msra.mxu1 %v342_v21  ;;  %557 = vmatpush.msra.mxu2 %v357_v22  ;;  %v320_v44 = vld [vmem:[%s1279_s1 + $0x18] sm:$0xff]  ;;  %v319_v47 = vld [vmem:[%s1279_s1 + $0x10] sm:$0xff]  ;;  %v350_v49 = vld [vmem:[%s1279_s1 + $0x108] sm:$0xff] }
  0x1b   : > { %427 = vmatpush.msra.mxu0 %v325_v23  ;;  %628 = vmatpush.msra.mxu3 %v367_v30  ;;  %v336_v45 = vld [vmem:[%s1279_s1 + $0x98] sm:$0xff]  ;;  %v335_v48 = vld [vmem:[%s1279_s1 + $0x90] sm:$0xff]  ;;  %v318_v50 = vld [vmem:[%s1279_s1 + $0x8] sm:$0xff] }
  0x1c   : > { %492 = vmatpush.msra.mxu1 %v341_v25  ;;  %558 = vmatpush.msra.mxu2 %v356_v27  ;;  %v334_v51 = vld [vmem:[%s1279_s1 + $0x88] sm:$0xff]  ;;  %v349_v52 = vld [vmem:[%s1279_s1 + $0x100] sm:$0xff]  ;;  %v255_v54 = vld [vmem:[%s1069_s11 + $0x10] sm:$0xff] }
  0x1d   : > { %428 = vmatpush.msra.mxu0 %v324_v28  ;;  %629 = vmatpush.msra.mxu3 %v366_v34  ;;  %v317_v53 = vld [vmem:[%s1279_s1] sm:$0xff]  ;;  %v254_v57 = vld [vmem:[%s1069_s11 + $0x8] sm:$0xff]  ;;  %v260_v58 = vld [vmem:[%s1069_s11 + $0x38] sm:$0xff] }
  0x1e   : > { %493 = vmatpush.msra.mxu1 %v340_v29  ;;  %559 = vmatpush.msra.mxu2 %v355_v31  ;;  %v333_v55 = vld [vmem:[%s1279_s1 + $0x80] sm:$0xff]  ;;  %v259_v59 = vld [vmem:[%s1069_s11 + $0x30] sm:$0xff]  ;;  %v258_v61 = vld [vmem:[%s1069_s11 + $0x28] sm:$0xff] }
  0x1f   : > { %429 = vmatpush.msra.mxu0 %v323_v32  ;;  %630 = vmatpush.msra.mxu3 %v365_v38  ;;  %v253_v56 = vld [vmem:[%s1069_s11] sm:$0xff]  ;;  %v264_v62 = vld [vmem:[%s1069_s11 + $0x58] sm:$0xff]  ;;  %v263_v63 = vld [vmem:[%s1069_s11 + $0x50] sm:$0xff] }
  0x20   : > { %494 = vmatpush.msra.mxu1 %v339_v33  ;;  %560 = vmatpush.msra.mxu2 %v354_v35  ;;  %v257_v60 = vld [vmem:[%s1069_s11 + $0x20] sm:$0xff]  ;;  %v262_v1 = vld [vmem:[%s1069_s11 + $0x48] sm:$0xff]  ;;  %v268_v2 = vld [vmem:[%s1069_s11 + $0x78] sm:$0xff] }
  0x21   : > { %430 = vmatpush.msra.mxu0 %v322_v36  ;;  %864 = vmatmul.msk.f32.vlgmr.msra.gmra.mxu3 %vm371_vm0, %v256_v43  ;;  %v261_v0 = vld [vmem:[%s1069_s11 + $0x40] sm:$0xff]  ;;  %v267_v3 = vld [vmem:[%s1069_s11 + $0x70] sm:$0xff]  ;;  %v266_v5 = vld [vmem:[%s1069_s11 + $0x68] sm:$0xff] }
  0x22   : > { %495 = vmatpush.msra.mxu1 %v338_v37  ;;  %561 = vmatpush.msra.mxu2 %v353_v39  ;;  %v265_v4 = vld [vmem:[%s1069_s11 + $0x60] sm:$0xff]  ;;  %v272_v6 = vld [vmem:[%s1069_s11 + $0x98] sm:$0xff]  ;;  %v271_v7 = vld [vmem:[%s1069_s11 + $0x90] sm:$0xff] }
  0x23   : > { %431 = vmatpush.msra.mxu0 %v321_v40  ;;  %v269_v8 = vld [vmem:[%s1069_s11 + $0x80] sm:$0xff]  ;;  %v270_v9 = vld [vmem:[%s1069_s11 + $0x88] sm:$0xff]  ;;  %v276_v10 = vld [vmem:[%s1069_s11 + $0xb8] sm:$0xff] }
  0x24   : > { %496 = vmatpush.msra.mxu1 %v337_v42  ;;  %562 = vmatpush.msra.mxu2 %v352_v41  ;;  %v275_v11 = vld [vmem:[%s1069_s11 + $0xb0] sm:$0xff]  ;;  %v273_v12 = vld [vmem:[%s1069_s11 + $0xa0] sm:$0xff]  ;;  %v274_v13 = vld [vmem:[%s1069_s11 + $0xa8] sm:$0xff] }
  0x25   : > { %432 = vmatpush.msra.mxu0 %v320_v44  ;;  %v280_v14 = vld [vmem:[%s1069_s11 + $0xd8] sm:$0xff]  ;;  %v279_v15 = vld [vmem:[%s1069_s11 + $0xd0] sm:$0xff]  ;;  %v277_v16 = vld [vmem:[%s1069_s11 + $0xc0] sm:$0xff] }
  0x26   : > { %497 = vmatpush.msra.mxu1 %v336_v45  ;;  %563 = vmatpush.msra.mxu2 %v351_v46  ;;  %v278_v17 = vld [vmem:[%s1069_s11 + $0xc8] sm:$0xff]  ;;  %v284_v18 = vld [vmem:[%s1069_s11 + $0xf8] sm:$0xff]  ;;  %v283_v19 = vld [vmem:[%s1069_s11 + $0xf0] sm:$0xff] }
  0x27   : > { %433 = vmatpush.msra.mxu0 %v319_v47  ;;  %v281_v20 = vld [vmem:[%s1069_s11 + $0xe0] sm:$0xff]  ;;  %v282_v21 = vld [vmem:[%s1069_s11 + $0xe8] sm:$0xff]  ;;  %v288_v22 = vld [vmem:[%s1069_s11 + $0x118] sm:$0xff] }
  0x28   : > { %498 = vmatpush.msra.mxu1 %v335_v48  ;;  %564 = vmatpush.msra.mxu2 %v350_v49  ;;  %v287_v23 = vld [vmem:[%s1069_s11 + $0x110] sm:$0xff]  ;;  %v285_v24 = vld [vmem:[%s1069_s11 + $0x100] sm:$0xff]  ;;  %v286_v25 = vld [vmem:[%s1069_s11 + $0x108] sm:$0xff] }
  0x29   : > { %434 = vmatpush.msra.mxu0 %v318_v50  ;;  %865 = vmatmul.msk.f32.gmra.mxu3 %vm371_vm0, %v260_v58  ;;  %v292_v26 = vld [vmem:[%s1069_s11 + $0x138] sm:$0xff]  ;;  %v291_v27 = vld [vmem:[%s1069_s11 + $0x130] sm:$0xff]  ;;  %v289_v28 = vld [vmem:[%s1069_s11 + $0x120] sm:$0xff] }
  0x2a   : > { %499 = vmatpush.msra.mxu1 %v334_v51  ;;  %565 = vmatpush.msra.mxu2 %v349_v52  ;;  %v290_v29 = vld [vmem:[%s1069_s11 + $0x128] sm:$0xff]  ;;  %v296_v30 = vld [vmem:[%s1069_s11 + $0x158] sm:$0xff]  ;;  %v295_v31 = vld [vmem:[%s1069_s11 + $0x150] sm:$0xff] }
  0x2b   : > { %435 = vmatpush.msra.mxu0 %v317_v53  ;;  %566 = vmatmul.f32.vlgmr.msra.gmra.mxu2 %v255_v54  ;;  %v293_v32 = vld [vmem:[%s1069_s11 + $0x140] sm:$0xff]  ;;  %v294_v33 = vld [vmem:[%s1069_s11 + $0x148] sm:$0xff]  ;;  %v300_v34 = vld [vmem:[%s1069_s11 + $0x178] sm:$0xff] }
  0x2c   : > { %500 = vmatpush.msra.mxu1 %v333_v55  ;;  %436 = vmatmul.f32.vlgmr.msra.gmra.mxu0 %v253_v56  ;;  %v299_v35 = vld [vmem:[%s1069_s11 + $0x170] sm:$0xff]  ;;  %v297_v36 = vld [vmem:[%s1069_s11 + $0x160] sm:$0xff]  ;;  %v298_v37 = vld [vmem:[%s1069_s11 + $0x168] sm:$0xff] }
  0x2d   : > { %501 = vmatmul.f32.vlgmr.msra.gmra.mxu1 %v254_v57  ;;  %v304_v38 = vld [vmem:[%s1069_s11 + $0x198] sm:$0xff]  ;;  %v303_v39 = vld [vmem:[%s1069_s11 + $0x190] sm:$0xff]  ;;  %v301_v40 = vld [vmem:[%s1069_s11 + $0x180] sm:$0xff] }
  0x2e   : > { %v302_v41 = vld [vmem:[%s1069_s11 + $0x188] sm:$0xff]  ;;  %v308_v42 = vld [vmem:[%s1069_s11 + $0x1b8] sm:$0xff]  ;;  %v307_v43 = vld [vmem:[%s1069_s11 + $0x1b0] sm:$0xff] }
  0x2f   : > { %v305_v44 = vld [vmem:[%s1069_s11 + $0x1a0] sm:$0xff]  ;;  %v306_v45 = vld [vmem:[%s1069_s11 + $0x1a8] sm:$0xff]  ;;  %v312_v46 = vld [vmem:[%s1069_s11 + $0x1d8] sm:$0xff] }
  0x30   : > { %v311_v47 = vld [vmem:[%s1069_s11 + $0x1d0] sm:$0xff]  ;;  %v309_v48 = vld [vmem:[%s1069_s11 + $0x1c0] sm:$0xff]  ;;  %v310_v49 = vld [vmem:[%s1069_s11 + $0x1c8] sm:$0xff] }
  0x31   : > { %866 = vmatmul.msk.f32.gmra.mxu3 %vm371_vm0, %v264_v62  ;;  %v316_v50 = vld [vmem:[%s1069_s11 + $0x1f8] sm:$0xff]  ;;  %v315_v51 = vld [vmem:[%s1069_s11 + $0x1f0] sm:$0xff]  ;;  %v313_v52 = vld [vmem:[%s1069_s11 + $0x1e0] sm:$0xff] }
  0x32   : > { %v314_v53 = vld [vmem:[%s1069_s11 + $0x1e8] sm:$0xff]  ;;  %s1199_s11 = scalar_lea.vmem %s1282_s4, %s861_s16 }
  0x33   : > { %569 = vmatmul.f32.gmra.mxu2 %v259_v59 }
  0x34   : > { %439 = vmatmul.f32.gmra.mxu0 %v257_v60  ;;  %v1194_v60 = vld [vmem:[%s1280_s2] ss:$0 sm:$0xff] }
  0x35   : > { %504 = vmatmul.f32.gmra.mxu1 %v258_v61 }
  0x39   : > { %867 = vmatmul.msk.f32.gmra.mxu3 %vm371_vm0, %v268_v2 }
  0x3b   : > { %572 = vmatmul.f32.gmra.mxu2 %v263_v63  ;;  %v1204_v63 = vld [vmem:[%s1281_s3] ss:$0 sm:$0xff] }
  0x3c   : > { %442 = vmatmul.f32.gmra.mxu0 %v261_v0 }
  0x3d   : > { %507 = vmatmul.f32.gmra.mxu1 %v262_v1 }
  0x41   : > { %868 = vmatmul.msk.f32.gmra.mxu3 %vm371_vm0, %v272_v6 }
  0x43   : > { %575 = vmatmul.f32.gmra.mxu2 %v267_v3 }
  0x44   : > { %445 = vmatmul.f32.gmra.mxu0 %v265_v4  ;;  %v720_v4 = vld [vmem:[%s1199_s11] sm:$0xff] }
  0x45   : > { %510 = vmatmul.f32.gmra.mxu1 %v266_v5 }
  0x49   : > { %869 = vmatmul.msk.f32.gmra.mxu3 %vm371_vm0, %v276_v10 }
  0x4b   : > { %578 = vmatmul.f32.gmra.mxu2 %v271_v7 }
  0x4c   : > { %448 = vmatmul.f32.gmra.mxu0 %v269_v8 }
  0x4d   : > { %513 = vmatmul.f32.gmra.mxu1 %v270_v9 }
  0x51   : > { %870 = vmatmul.msk.f32.gmra.mxu3 %vm371_vm0, %v280_v14 }
  0x53   : > { %581 = vmatmul.f32.gmra.mxu2 %v275_v11 }
  0x54   : > { %451 = vmatmul.f32.gmra.mxu0 %v273_v12 }
  0x55   : > { %516 = vmatmul.f32.gmra.mxu1 %v274_v13 }
  0x59   : > { %871 = vmatmul.msk.f32.gmra.mxu3 %vm371_vm0, %v284_v18 }
  0x5b   : > { %584 = vmatmul.f32.gmra.mxu2 %v279_v15 }
  0x5c   : > { %454 = vmatmul.f32.gmra.mxu0 %v277_v16  ;;  %v721_v16 = vld [vmem:[%s1199_s11 + $0x8] sm:$0xff] }
  0x5d   : > { %519 = vmatmul.f32.gmra.mxu1 %v278_v17 }
  0x61   : > { %872 = vmatmul.msk.f32.gmra.mxu3 %vm371_vm0, %v288_v22 }
  0x63   : > { %587 = vmatmul.f32.gmra.mxu2 %v283_v19 }
  0x64   : > { %457 = vmatmul.f32.gmra.mxu0 %v281_v20 }
  0x65   : > { %522 = vmatmul.f32.gmra.mxu1 %v282_v21 }
  0x69   : > { %873 = vmatmul.msk.f32.gmra.mxu3 %vm371_vm0, %v292_v26 }
  0x6b   : > { %590 = vmatmul.f32.gmra.mxu2 %v287_v23 }
  0x6c   : > { %460 = vmatmul.f32.gmra.mxu0 %v285_v24 }
  0x6d   : > { %525 = vmatmul.f32.gmra.mxu1 %v286_v25 }
  0x71   : > { %874 = vmatmul.msk.f32.gmra.mxu3 %vm371_vm0, %v296_v30 }
  0x73   : > { %593 = vmatmul.f32.gmra.mxu2 %v291_v27 }
  0x74   : > { %463 = vmatmul.f32.gmra.mxu0 %v289_v28  ;;  %v722_v28 = vld [vmem:[%s1199_s11 + $0x10] sm:$0xff] }
  0x75   : > { %528 = vmatmul.f32.gmra.mxu1 %v290_v29 }
  0x79   : > { %875 = vmatmul.msk.f32.gmra.mxu3 %vm371_vm0, %v300_v34 }
  0x7b   : > { %596 = vmatmul.f32.gmra.mxu2 %v295_v31 }
  0x7c   : > { %466 = vmatmul.f32.gmra.mxu0 %v293_v32 }
  0x7d   : > { %531 = vmatmul.f32.gmra.mxu1 %v294_v33 }
  0x81   : > { %876 = vmatmul.msk.f32.gmra.mxu3 %vm371_vm0, %v304_v38 }
  0x83   : > { %599 = vmatmul.f32.gmra.mxu2 %v299_v35 }
  0x84   : > { %469 = vmatmul.f32.gmra.mxu0 %v297_v36 }
  0x85   : > { %534 = vmatmul.f32.gmra.mxu1 %v298_v37 }
  0x89   : > { %877 = vmatmul.msk.f32.gmra.mxu3 %vm371_vm0, %v308_v42 }
  0x8b   : > { %602 = vmatmul.f32.gmra.mxu2 %v303_v39 }
  0x8c   : > { %472 = vmatmul.f32.gmra.mxu0 %v301_v40  ;;  %v723_v40 = vld [vmem:[%s1199_s11 + $0x18] sm:$0xff] }
  0x8d   : > { %537 = vmatmul.f32.gmra.mxu1 %v302_v41 }
  0x91   : > { %878 = vmatmul.msk.f32.gmra.mxu3 %vm371_vm0, %v312_v46 }
  0x93   : > { %605 = vmatmul.f32.gmra.mxu2 %v307_v43 }
  0x94   : > { %475 = vmatmul.f32.gmra.mxu0 %v305_v44 }
  0x95   : > { %540 = vmatmul.f32.gmra.mxu1 %v306_v45 }
  0x99   : > { %879 = vmatmul.msk.f32.gmra.mxu3 %vm371_vm0, %v316_v50 }
  0x9b   : > { %608 = vmatmul.f32.gmra.mxu2 %v311_v47 }
  0x9c   : > { %478 = vmatmul.f32.gmra.mxu0 %v309_v48 }
  0x9d   : > { %543 = vmatmul.f32.gmra.mxu1 %v310_v49 }
  0xa3   : > { %611 = vmatmul.f32.gmra.mxu2 %v315_v51 }
  0xa4   : > { %481 = vmatmul.f32.gmra.mxu0 %v313_v52  ;;  %v632_v54 = vpop.f32.mrf.mxu3  ;;  %v724_v52 = vld [vmem:[%s1199_s11 + $0x20] sm:$0xff] }
  0xa5   : > { %546 = vmatmul.f32.gmra.mxu1 %v314_v53 }
  0xa9   : > { %v437_v55 = vpop.f32.mrf.mxu0 }
  0xaa   : > { %v502_v56 = vpop.f32.mrf.mxu1 }
  0xab   : > { %v503_v57 = vadd.f32 %v502_v56, %v437_v55 }
  0xac   : > { %v635_v61 = vpop.f32.mrf.mxu3 }
  0xae   : > { %v567_v58 = vpop.f32.mrf.mxu2 }
  0xaf   : > { %v568_v59 = vadd.f32 %v567_v58, %v503_v57 }
  0xb1   : > { %v633_v62 = vadd.f32 %v632_v54, %v568_v59  ;;  %v440_v0 = vpop.f32.mrf.mxu0 }
  0xb2   : > { %v505_v1 = vpop.f32.mrf.mxu1 }
  0xb3   : > { %v684_v2 = vmul.f32 %v1194_v60, %v633_v62  ;;  %v506_v3 = vadd.f32 %v505_v1, %v440_v0 }
  0xb4   : > { %v638_v9 = vpop.f32.mrf.mxu3 }
  0xb5   : > { %v704_v5 = vadd.f32 %v1204_v63, %v684_v2  ;;  %v725_v2 = vld [vmem:[%s1199_s11 + $0x28] sm:$0xff] }
  0xb6   : > { %v570_v6 = vpop.f32.mrf.mxu2 }
  0xb7   : > { %v736_v7 = vadd.f32 %v720_v4, %v704_v5  ;;  %v571_v8 = vadd.f32 %v570_v6, %v506_v3 }
  0xb9   : > { %v752_v10 = vmax.f32 %v736_v7, 0.0  ;;  %v636_v11 = vadd.f32 %v635_v61, %v571_v8  ;;  %v443_v12 = vpop.f32.mrf.mxu0 }
  0xba   : > { %v508_v13 = vpop.f32.mrf.mxu1 }
  0xbb   : > { %768 = vst [vmem:[%s1212_s27] sm:$0xff] %v752_v10  ;;  %v685_v14 = vmul.f32 %v1194_v60, %v636_v11  ;;  %v509_v15 = vadd.f32 %v508_v13, %v443_v12 }
  0xbc   : > { %v641_v21 = vpop.f32.mrf.mxu3 }
  0xbd   : > { %v705_v17 = vadd.f32 %v1204_v63, %v685_v14  ;;  %v726_v14 = vld [vmem:[%s1199_s11 + $0x30] sm:$0xff] }
  0xbe   : > { %v573_v18 = vpop.f32.mrf.mxu2 }
  0xbf   : > { %v737_v19 = vadd.f32 %v721_v16, %v705_v17  ;;  %v574_v20 = vadd.f32 %v573_v18, %v509_v15 }
  0xc1   : > { %v753_v22 = vmax.f32 %v737_v19, 0.0  ;;  %v639_v23 = vadd.f32 %v638_v9, %v574_v20  ;;  %v446_v24 = vpop.f32.mrf.mxu0 }
  0xc2   : > { %v511_v25 = vpop.f32.mrf.mxu1 }
  0xc3   : > { %769 = vst [vmem:[%s1212_s27 + $0x8] sm:$0xff] %v753_v22  ;;  %v686_v26 = vmul.f32 %v1194_v60, %v639_v23  ;;  %v512_v27 = vadd.f32 %v511_v25, %v446_v24 }
  0xc4   : > { %v644_v33 = vpop.f32.mrf.mxu3 }
  0xc5   : > { %v706_v29 = vadd.f32 %v1204_v63, %v686_v26  ;;  %v727_v26 = vld [vmem:[%s1199_s11 + $0x38] sm:$0xff] }
  0xc6   : > { %v576_v30 = vpop.f32.mrf.mxu2 }
  0xc7   : > { %v738_v31 = vadd.f32 %v722_v28, %v706_v29  ;;  %v577_v32 = vadd.f32 %v576_v30, %v512_v27 }
  0xc9   : > { %v754_v34 = vmax.f32 %v738_v31, 0.0  ;;  %v642_v35 = vadd.f32 %v641_v21, %v577_v32  ;;  %v449_v36 = vpop.f32.mrf.mxu0 }
  0xca   : > { %v514_v37 = vpop.f32.mrf.mxu1 }
  0xcb   : > { %770 = vst [vmem:[%s1212_s27 + $0x10] sm:$0xff] %v754_v34  ;;  %v687_v38 = vmul.f32 %v1194_v60, %v642_v35  ;;  %v515_v39 = vadd.f32 %v514_v37, %v449_v36 }
  0xcc   : > { %v647_v45 = vpop.f32.mrf.mxu3 }
  0xcd   : > { %v707_v41 = vadd.f32 %v1204_v63, %v687_v38  ;;  %v728_v38 = vld [vmem:[%s1199_s11 + $0x40] sm:$0xff] }
  0xce   : > { %v579_v42 = vpop.f32.mrf.mxu2 }
  0xcf   : > { %v739_v43 = vadd.f32 %v723_v40, %v707_v41  ;;  %v580_v44 = vadd.f32 %v579_v42, %v515_v39 }
  0xd1   : > { %v755_v46 = vmax.f32 %v739_v43, 0.0  ;;  %v645_v47 = vadd.f32 %v644_v33, %v580_v44  ;;  %v452_v48 = vpop.f32.mrf.mxu0 }
  0xd2   : > { %v517_v49 = vpop.f32.mrf.mxu1 }
  0xd3   : > { %771 = vst [vmem:[%s1212_s27 + $0x18] sm:$0xff] %v755_v46  ;;  %v688_v50 = vmul.f32 %v1194_v60, %v645_v47  ;;  %v518_v51 = vadd.f32 %v517_v49, %v452_v48 }
  0xd4   : > { %v650_v57 = vpop.f32.mrf.mxu3 }
  0xd5   : > { %v708_v53 = vadd.f32 %v1204_v63, %v688_v50  ;;  %v729_v50 = vld [vmem:[%s1199_s11 + $0x48] sm:$0xff] }
  0xd6   : > { %v582_v54 = vpop.f32.mrf.mxu2 }
  0xd7   : > { %v740_v55 = vadd.f32 %v724_v52, %v708_v53  ;;  %v583_v56 = vadd.f32 %v582_v54, %v518_v51 }
  0xd9   : > { %v756_v58 = vmax.f32 %v740_v55, 0.0  ;;  %v648_v59 = vadd.f32 %v647_v45, %v583_v56  ;;  %v455_v61 = vpop.f32.mrf.mxu0 }
  0xda   : > { %v520_v62 = vpop.f32.mrf.mxu1 }
  0xdb   : > { %772 = vst [vmem:[%s1212_s27 + $0x20] sm:$0xff] %v756_v58  ;;  %v689_v0 = vmul.f32 %v1194_v60, %v648_v59  ;;  %v521_v1 = vadd.f32 %v520_v62, %v455_v61 }
  0xdc   : > { %v653_v7 = vpop.f32.mrf.mxu3 }
  0xdd   : > { %v709_v3 = vadd.f32 %v1204_v63, %v689_v0  ;;  %v730_v0 = vld [vmem:[%s1199_s11 + $0x50] sm:$0xff] }
  0xde   : > { %v585_v4 = vpop.f32.mrf.mxu2 }
  0xdf   : > { %v741_v5 = vadd.f32 %v725_v2, %v709_v3  ;;  %v586_v6 = vadd.f32 %v585_v4, %v521_v1 }
  0xe1   : > { %v757_v8 = vmax.f32 %v741_v5, 0.0  ;;  %v651_v9 = vadd.f32 %v650_v57, %v586_v6  ;;  %v458_v10 = vpop.f32.mrf.mxu0 }
  0xe2   : > { %v523_v11 = vpop.f32.mrf.mxu1 }
  0xe3   : > { %773 = vst [vmem:[%s1212_s27 + $0x28] sm:$0xff] %v757_v8  ;;  %v690_v12 = vmul.f32 %v1194_v60, %v651_v9  ;;  %v524_v13 = vadd.f32 %v523_v11, %v458_v10 }
  0xe4   : > { %v656_v19 = vpop.f32.mrf.mxu3 }
  0xe5   : > { %v710_v15 = vadd.f32 %v1204_v63, %v690_v12  ;;  %v731_v12 = vld [vmem:[%s1199_s11 + $0x58] sm:$0xff] }
  0xe6   : > { %v588_v16 = vpop.f32.mrf.mxu2 }
  0xe7   : > { %v742_v17 = vadd.f32 %v726_v14, %v710_v15  ;;  %v589_v18 = vadd.f32 %v588_v16, %v524_v13 }
  0xe9   : > { %v758_v20 = vmax.f32 %v742_v17, 0.0  ;;  %v654_v21 = vadd.f32 %v653_v7, %v589_v18  ;;  %v461_v22 = vpop.f32.mrf.mxu0 }
  0xea   : > { %v526_v23 = vpop.f32.mrf.mxu1 }
  0xeb   : > { %774 = vst [vmem:[%s1212_s27 + $0x30] sm:$0xff] %v758_v20  ;;  %v691_v24 = vmul.f32 %v1194_v60, %v654_v21  ;;  %v527_v25 = vadd.f32 %v526_v23, %v461_v22 }
  0xec   : > { %v659_v31 = vpop.f32.mrf.mxu3 }
  0xed   : > { %v711_v27 = vadd.f32 %v1204_v63, %v691_v24  ;;  %v732_v24 = vld [vmem:[%s1199_s11 + $0x60] sm:$0xff] }
  0xee   : > { %v591_v28 = vpop.f32.mrf.mxu2 }
  0xef   : > { %v743_v29 = vadd.f32 %v727_v26, %v711_v27  ;;  %v592_v30 = vadd.f32 %v591_v28, %v527_v25 }
  0xf1   : > { %v759_v32 = vmax.f32 %v743_v29, 0.0  ;;  %v657_v33 = vadd.f32 %v656_v19, %v592_v30  ;;  %v464_v34 = vpop.f32.mrf.mxu0 }
  0xf2   : > { %v529_v35 = vpop.f32.mrf.mxu1 }
  0xf3   : > { %775 = vst [vmem:[%s1212_s27 + $0x38] sm:$0xff] %v759_v32  ;;  %v692_v36 = vmul.f32 %v1194_v60, %v657_v33  ;;  %v530_v37 = vadd.f32 %v529_v35, %v464_v34  ;;  %v733_v35 = vld [vmem:[%s1199_s11 + $0x68] sm:$0xff] }
  0xf4   : > { %v662_v43 = vpop.f32.mrf.mxu3 }
  0xf5   : > { %v712_v39 = vadd.f32 %v1204_v63, %v692_v36 }
  0xf6   : > { %v594_v40 = vpop.f32.mrf.mxu2 }
  0xf7   : > { %v744_v41 = vadd.f32 %v728_v38, %v712_v39  ;;  %v595_v42 = vadd.f32 %v594_v40, %v530_v37 }
  0xf9   : > { %v760_v44 = vmax.f32 %v744_v41, 0.0  ;;  %v660_v45 = vadd.f32 %v659_v31, %v595_v42  ;;  %v467_v46 = vpop.f32.mrf.mxu0 }
  0xfa   : > { %v532_v47 = vpop.f32.mrf.mxu1 }
  0xfb   : > { %776 = vst [vmem:[%s1212_s27 + $0x40] sm:$0xff] %v760_v44  ;;  %v693_v48 = vmul.f32 %v1194_v60, %v660_v45  ;;  %v533_v49 = vadd.f32 %v532_v47, %v467_v46  ;;  %v734_v47 = vld [vmem:[%s1199_s11 + $0x70] sm:$0xff] }
  0xfc   : > { %v665_v55 = vpop.f32.mrf.mxu3 }
  0xfd   : > { %v713_v51 = vadd.f32 %v1204_v63, %v693_v48 }
  0xfe   : > { %v597_v52 = vpop.f32.mrf.mxu2 }
  0xff   : > { %v745_v53 = vadd.f32 %v729_v50, %v713_v51  ;;  %v598_v54 = vadd.f32 %v597_v52, %v533_v49 }
 0x101   : > { %v761_v56 = vmax.f32 %v745_v53, 0.0  ;;  %v663_v57 = vadd.f32 %v662_v43, %v598_v54  ;;  %v470_v58 = vpop.f32.mrf.mxu0 }
 0x102   : > { %v535_v59 = vpop.f32.mrf.mxu1 }
 0x103   : > { %777 = vst [vmem:[%s1212_s27 + $0x48] sm:$0xff] %v761_v56  ;;  %v694_v61 = vmul.f32 %v1194_v60, %v663_v57  ;;  %v536_v62 = vadd.f32 %v535_v59, %v470_v58  ;;  %v735_v56 = vld [vmem:[%s1199_s11 + $0x78] sm:$0xff] }
 0x104   : > { %v668_v5 = vpop.f32.mrf.mxu3 }
 0x105   : > { %v714_v1 = vadd.f32 %v1204_v63, %v694_v61 }
 0x106   : > { %v600_v2 = vpop.f32.mrf.mxu2 }
 0x107   : > { %v746_v3 = vadd.f32 %v730_v0, %v714_v1  ;;  %v601_v4 = vadd.f32 %v600_v2, %v536_v62 }
 0x109   : > { %v762_v6 = vmax.f32 %v746_v3, 0.0  ;;  %v666_v7 = vadd.f32 %v665_v55, %v601_v4  ;;  %v473_v8 = vpop.f32.mrf.mxu0 }
 0x10a   : > { %v538_v9 = vpop.f32.mrf.mxu1 }
 0x10b   : > { %778 = vst [vmem:[%s1212_s27 + $0x50] sm:$0xff] %v762_v6  ;;  %v695_v10 = vmul.f32 %v1194_v60, %v666_v7  ;;  %v539_v11 = vadd.f32 %v538_v9, %v473_v8 }
 0x10c   : > { %v671_v21 = vpop.f32.mrf.mxu3 }
 0x10d   : > { %v715_v13 = vadd.f32 %v1204_v63, %v695_v10 }
 0x10e   : > { %v603_v14 = vpop.f32.mrf.mxu2 }
 0x10f   : > { %v747_v15 = vadd.f32 %v731_v12, %v715_v13  ;;  %v604_v16 = vadd.f32 %v603_v14, %v539_v11 }
 0x111   : > { %v763_v17 = vmax.f32 %v747_v15, 0.0  ;;  %v669_v18 = vadd.f32 %v668_v5, %v604_v16  ;;  %v476_v19 = vpop.f32.mrf.mxu0 }
 0x112   : > { %v541_v20 = vpop.f32.mrf.mxu1 }
 0x113   : > { %779 = vst [vmem:[%s1212_s27 + $0x58] sm:$0xff] %v763_v17  ;;  %v696_v22 = vmul.f32 %v1194_v60, %v669_v18  ;;  %v542_v23 = vadd.f32 %v541_v20, %v476_v19 }
 0x114   : > { %v674_v36 = vpop.f32.mrf.mxu3 }
 0x115   : > { %v716_v25 = vadd.f32 %v1204_v63, %v696_v22 }
 0x116   : > { %v606_v26 = vpop.f32.mrf.mxu2 }
 0x117   : > { %v748_v27 = vadd.f32 %v732_v24, %v716_v25  ;;  %v607_v28 = vadd.f32 %v606_v26, %v542_v23 }
 0x119   : > { %v764_v29 = vmax.f32 %v748_v27, 0.0  ;;  %v672_v30 = vadd.f32 %v671_v21, %v607_v28  ;;  %v479_v31 = vpop.f32.mrf.mxu0 }
 0x11a   : > { %v544_v32 = vpop.f32.mrf.mxu1 }
 0x11b   : > { %780 = vst [vmem:[%s1212_s27 + $0x60] sm:$0xff] %v764_v29  ;;  %v697_v33 = vmul.f32 %v1194_v60, %v672_v30  ;;  %v545_v34 = vadd.f32 %v544_v32, %v479_v31 }
 0x11c   : > { %v677_v50 = vpop.f32.mrf.mxu3 }
 0x11d   : > { %v717_v37 = vadd.f32 %v1204_v63, %v697_v33 }
 0x11e   : > { %v609_v38 = vpop.f32.mrf.mxu2 }
 0x11f   : > { %v749_v39 = vadd.f32 %v733_v35, %v717_v37  ;;  %v610_v40 = vadd.f32 %v609_v38, %v545_v34 }
 0x121   : > { %v765_v41 = vmax.f32 %v749_v39, 0.0  ;;  %v675_v42 = vadd.f32 %v674_v36, %v610_v40  ;;  %v482_v43 = vpop.f32.mrf.mxu0 }
 0x122   : > { %v547_v44 = vpop.f32.mrf.mxu1 }
 0x123   : > { %781 = vst [vmem:[%s1212_s27 + $0x68] sm:$0xff] %v765_v41  ;;  %v698_v45 = vmul.f32 %v1194_v60, %v675_v42  ;;  %v548_v46 = vadd.f32 %v547_v44, %v482_v43 }
 0x125   : > { %v718_v48 = vadd.f32 %v1204_v63, %v698_v45 }
 0x126   : > { %v612_v49 = vpop.f32.mrf.mxu2 }
 0x127   : > { %v750_v51 = vadd.f32 %v734_v47, %v718_v48  ;;  %v613_v52 = vadd.f32 %v612_v49, %v548_v46 }
 0x129   : > { %v766_v53 = vmax.f32 %v750_v51, 0.0  ;;  %v678_v54 = vadd.f32 %v677_v50, %v613_v52 }
 0x12b   : > { %782 = vst [vmem:[%s1212_s27 + $0x70] sm:$0xff] %v766_v53  ;;  %v699_v55 = vmul.f32 %v1194_v60, %v678_v54 }
 0x12d   : > { %v719_v57 = vadd.f32 %v1204_v63, %v699_v55 }
 0x12f   : > { %v751_v58 = vadd.f32 %v735_v56, %v719_v57 }
 0x131   : > { %v767_v59 = vmax.f32 %v751_v58, 0.0 }
 0x133   : > { %783 = vst [vmem:[%s1212_s27 + $0x78] sm:$0xff] %v767_v59 }
 0x134 PF: > { %s15_s18 = sadd.s32 1, %s899_s18  }
 0x135   : > { %p12_p4 = scmp.ge.s32.totalorder %s15_s18, 4  }
 0x137   :  { %14 = sbr.rel (!%p12_p4) target bundleno = 1 (0x1), region = 73 }

// kernel: forward.16
= control target key start
LH: loop header
LB: loop body
LE: loop exit
PB: predicated region body
PF: predicated region fallthrough
CT: control target
= control target key end

     0   :  { %s495_s15 = smov 0   ;;  %s697_s0 = inlined_call_operand.vmem [shape: f32[32,432], index: 0, kind: input, shape index: {}]   ;;  %s698_s1 = inlined_call_operand.vmem [shape: f32[432,128], index: 1, kind: input, shape index: {}]   ;;  %s699_s2 = inlined_call_operand.vmem [shape: f32[1,128], index: 2, kind: input, shape index: {}]   ;;  %s700_s3 = inlined_call_operand.vmem [shape: f32[1,128], index: 3, kind: input, shape index: {}]   ;;  %s701_s4 = inlined_call_operand.vmem [shape: f32[32,128], index: 4, kind: output, shape index: {}]  }
   0x1 LB: > { %s437_s16 = sadd.s32 4294967295, %s468_s15   ;;  %p441_p0 = scmp.ge.s32.totalorder %s468_s15, 1  ;;  %s468_s15 = sphi %s495_s15, %s14_s15  }
   0x2   : > { %p164_p1 = scmp.lt.s32.totalorder %s468_s15, 3 }
   0x4   : > { %p165_p2 = pnand %p441_p0, %p164_p1 }
   0x5   : > { %s442_s21 = sshll.u32 (!%p165_p2), %s437_s16, 1 }
   0x6   : > { %168 = sbr.rel (%p165_p2) target bundleno = 194 (0xc2), region = 36  ;;  %p192_p3 = scmp.lt.s32.totalorder (!%p165_p2), %s442_s21, 3 }
   0xb   : > { %v259_v0 = vld [vmem:[%s698_s1 + $0x178] sm:$0xff]  ;;  %v258_v1 = vld [vmem:[%s698_s1 + $0x170] sm:$0xff]  ;;  %v257_v5 = vld [vmem:[%s698_s1 + $0x168] sm:$0xff]  ;;  %s703_s21 = smov (!%p192_p3, %s442_s21), 3  ;;  %vm266_vm0 = vcmask 392192  }
   0xc   : > { %v227_v2 = vld [vmem:[%s698_s1 + $0x78] sm:$0xff]  ;;  %319 = vmatpush.msra.mxu2 %v259_v0  ;;  %v226_v4 = vld [vmem:[%s698_s1 + $0x70] sm:$0xff]  ;;  %v225_v7 = vld [vmem:[%s698_s1 + $0x68] sm:$0xff]  ;;  %s451_s13 = sshll.u32 %s703_s21, 5 }
   0xd   : > { %273 = vmatpush.msra.mxu0 %v227_v2  ;;  %v243_v3 = vld [vmem:[%s698_s1 + $0xf8] sm:$0xff]  ;;  %v242_v6 = vld [vmem:[%s698_s1 + $0xf0] sm:$0xff]  ;;  %v241_v8 = vld [vmem:[%s698_s1 + $0xe8] sm:$0xff]  ;;  %s633_s30 = scalar_lea.vmem %s697_s0, %s451_s13 }
   0xe   : > { %296 = vmatpush.msra.mxu1 %v243_v3  ;;  %320 = vmatpush.msra.mxu2 %v258_v1  ;;  %v256_v9 = vld [vmem:[%s698_s1 + $0x160] sm:$0xff]  ;;  %v255_v12 = vld [vmem:[%s698_s1 + $0x158] sm:$0xff]  ;;  %v254_v15 = vld [vmem:[%s698_s1 + $0x150] sm:$0xff] }
   0xf   : > { %274 = vmatpush.msra.mxu0 %v226_v4  ;;  %v224_v10 = vld [vmem:[%s698_s1 + $0x60] sm:$0xff]  ;;  %v223_v13 = vld [vmem:[%s698_s1 + $0x58] sm:$0xff]  ;;  %v222_v16 = vld [vmem:[%s698_s1 + $0x50] sm:$0xff] }
  0x10   : > { %297 = vmatpush.msra.mxu1 %v242_v6  ;;  %321 = vmatpush.msra.mxu2 %v257_v5  ;;  %v240_v11 = vld [vmem:[%s698_s1 + $0xe0] sm:$0xff]  ;;  %v239_v14 = vld [vmem:[%s698_s1 + $0xd8] sm:$0xff]  ;;  %v238_v17 = vld [vmem:[%s698_s1 + $0xd0] sm:$0xff] }
  0x11   : > { %275 = vmatpush.msra.mxu0 %v225_v7  ;;  %v253_v18 = vld [vmem:[%s698_s1 + $0x148] sm:$0xff]  ;;  %v252_v22 = vld [vmem:[%s698_s1 + $0x140] sm:$0xff]  ;;  %v263_v26 = vld [vmem:[%s698_s1 + $0x198] sm:$0xff] }
  0x12   : > { %298 = vmatpush.msra.mxu1 %v241_v8  ;;  %322 = vmatpush.msra.mxu2 %v256_v9  ;;  %v221_v19 = vld [vmem:[%s698_s1 + $0x48] sm:$0xff]  ;;  %v220_v23 = vld [vmem:[%s698_s1 + $0x40] sm:$0xff]  ;;  %v251_v27 = vld [vmem:[%s698_s1 + $0x138] sm:$0xff] }
  0x13   : > { %276 = vmatpush.msra.mxu0 %v224_v10  ;;  %v265_v20 = vld [vmem:[%s698_s1 + $0x1a8] sm:$0xff]  ;;  %v264_v24 = vld [vmem:[%s698_s1 + $0x1a0] sm:$0xff]  ;;  %v219_v28 = vld [vmem:[%s698_s1 + $0x38] sm:$0xff] }
  0x14   : > { %299 = vmatpush.msra.mxu1 %v240_v11  ;;  %323 = vmatpush.msra.mxu2 %v255_v12  ;;  %v237_v21 = vld [vmem:[%s698_s1 + $0xc8] sm:$0xff]  ;;  %v236_v25 = vld [vmem:[%s698_s1 + $0xc0] sm:$0xff]  ;;  %v235_v29 = vld [vmem:[%s698_s1 + $0xb8] sm:$0xff] }
  0x15   : > { %277 = vmatpush.msra.mxu0 %v223_v13  ;;  %352 = vmatpush.msra.mxu3 %v265_v20  ;;  %v262_v30 = vld [vmem:[%s698_s1 + $0x190] sm:$0xff]  ;;  %v261_v34 = vld [vmem:[%s698_s1 + $0x188] sm:$0xff]  ;;  %v260_v38 = vld [vmem:[%s698_s1 + $0x180] sm:$0xff] }
  0x16   : > { %300 = vmatpush.msra.mxu1 %v239_v14  ;;  %324 = vmatpush.msra.mxu2 %v254_v15  ;;  %v250_v31 = vld [vmem:[%s698_s1 + $0x130] sm:$0xff]  ;;  %v249_v35 = vld [vmem:[%s698_s1 + $0x128] sm:$0xff]  ;;  %v248_v39 = vld [vmem:[%s698_s1 + $0x120] sm:$0xff] }
  0x17   : > { %278 = vmatpush.msra.mxu0 %v222_v16  ;;  %353 = vmatpush.msra.mxu3 %v264_v24  ;;  %v218_v32 = vld [vmem:[%s698_s1 + $0x30] sm:$0xff]  ;;  %v217_v36 = vld [vmem:[%s698_s1 + $0x28] sm:$0xff]  ;;  %v216_v40 = vld [vmem:[%s698_s1 + $0x20] sm:$0xff] }
  0x18   : > { %301 = vmatpush.msra.mxu1 %v238_v17  ;;  %325 = vmatpush.msra.mxu2 %v253_v18  ;;  %v234_v33 = vld [vmem:[%s698_s1 + $0xb0] sm:$0xff]  ;;  %v233_v37 = vld [vmem:[%s698_s1 + $0xa8] sm:$0xff]  ;;  %v232_v41 = vld [vmem:[%s698_s1 + $0xa0] sm:$0xff] }
  0x19   : > { %279 = vmatpush.msra.mxu0 %v221_v19  ;;  %354 = vmatpush.msra.mxu3 %v263_v26  ;;  %v207_v42 = vld [vmem:[%s633_s30 + $0x18] sm:$0xff]  ;;  %v246_v46 = vld [vmem:[%s698_s1 + $0x110] sm:$0xff]  ;;  %v245_v49 = vld [vmem:[%s698_s1 + $0x108] sm:$0xff] }
  0x1a   : > { %302 = vmatpush.msra.mxu1 %v237_v21  ;;  %326 = vmatpush.msra.mxu2 %v252_v22  ;;  %v247_v43 = vld [vmem:[%s698_s1 + $0x118] sm:$0xff]  ;;  %v214_v47 = vld [vmem:[%s698_s1 + $0x10] sm:$0xff]  ;;  %v213_v50 = vld [vmem:[%s698_s1 + $0x8] sm:$0xff] }
  0x1b   : > { %280 = vmatpush.msra.mxu0 %v220_v23  ;;  %355 = vmatpush.msra.mxu3 %v262_v30  ;;  %v215_v44 = vld [vmem:[%s698_s1 + $0x18] sm:$0xff]  ;;  %v230_v48 = vld [vmem:[%s698_s1 + $0x90] sm:$0xff]  ;;  %v229_v51 = vld [vmem:[%s698_s1 + $0x88] sm:$0xff] }
  0x1c   : > { %303 = vmatpush.msra.mxu1 %v236_v25  ;;  %327 = vmatpush.msra.mxu2 %v251_v27  ;;  %v231_v45 = vld [vmem:[%s698_s1 + $0x98] sm:$0xff]  ;;  %v244_v52 = vld [vmem:[%s698_s1 + $0x100] sm:$0xff]  ;;  %v206_v54 = vld [vmem:[%s633_s30 + $0x10] sm:$0xff] }
  0x1d   : > { %281 = vmatpush.msra.mxu0 %v219_v28  ;;  %356 = vmatpush.msra.mxu3 %v261_v34  ;;  %v212_v53 = vld [vmem:[%s698_s1] sm:$0xff]  ;;  %v205_v57 = vld [vmem:[%s633_s30 + $0x8] sm:$0xff]  ;;  %v211_v58 = vld [vmem:[%s633_s30 + $0x38] sm:$0xff] }
  0x1e   : > { %304 = vmatpush.msra.mxu1 %v235_v29  ;;  %328 = vmatpush.msra.mxu2 %v250_v31  ;;  %v228_v55 = vld [vmem:[%s698_s1 + $0x80] sm:$0xff]  ;;  %v210_v59 = vld [vmem:[%s633_s30 + $0x30] sm:$0xff]  ;;  %v209_v61 = vld [vmem:[%s633_s30 + $0x28] sm:$0xff] }
  0x1f   : > { %282 = vmatpush.msra.mxu0 %v218_v32  ;;  %357 = vmatpush.msra.mxu3 %v260_v38  ;;  %v204_v56 = vld [vmem:[%s633_s30] sm:$0xff] }
  0x20   : > { %305 = vmatpush.msra.mxu1 %v234_v33  ;;  %329 = vmatpush.msra.mxu2 %v249_v35  ;;  %v208_v60 = vld [vmem:[%s633_s30 + $0x20] sm:$0xff]  ;;  %s446_s30 = sshll.u32 %s703_s21, 3 }
  0x21   : > { %283 = vmatpush.msra.mxu0 %v217_v36  ;;  %447 = vmatmul.msk.f32.vlgmr.msra.gmra.mxu3 %vm266_vm0, %v207_v42  ;;  %v460_v4 = vld [vmem:[%s699_s2] ss:$0 sm:$0xff]  ;;  %s202_s14 = scalar_lea.vmem %s701_s4, %s446_s30 }
  0x22   : > { %306 = vmatpush.msra.mxu1 %v233_v37  ;;  %330 = vmatpush.msra.mxu2 %v248_v39  ;;  %v461_v6 = vld [vmem:[%s700_s3] ss:$0 sm:$0xff] }
  0x23   : > { %284 = vmatpush.msra.mxu0 %v216_v40 }
  0x24   : > { %307 = vmatpush.msra.mxu1 %v232_v41  ;;  %331 = vmatpush.msra.mxu2 %v247_v43 }
  0x25   : > { %285 = vmatpush.msra.mxu0 %v215_v44 }
  0x26   : > { %308 = vmatpush.msra.mxu1 %v231_v45  ;;  %332 = vmatpush.msra.mxu2 %v246_v46 }
  0x27   : > { %286 = vmatpush.msra.mxu0 %v214_v47 }
  0x28   : > { %309 = vmatpush.msra.mxu1 %v230_v48  ;;  %333 = vmatpush.msra.mxu2 %v245_v49 }
  0x29   : > { %287 = vmatpush.msra.mxu0 %v213_v50  ;;  %448 = vmatmul.msk.f32.gmra.mxu3 %vm266_vm0, %v211_v58 }
  0x2a   : > { %310 = vmatpush.msra.mxu1 %v229_v51  ;;  %334 = vmatpush.msra.mxu2 %v244_v52 }
  0x2b   : > { %288 = vmatpush.msra.mxu0 %v212_v53  ;;  %335 = vmatmul.f32.vlgmr.msra.gmra.mxu2 %v206_v54 }
  0x2c   : > { %311 = vmatpush.msra.mxu1 %v228_v55  ;;  %289 = vmatmul.f32.vlgmr.msra.gmra.mxu0 %v204_v56 }
  0x2d   : > { %312 = vmatmul.f32.vlgmr.msra.gmra.mxu1 %v205_v57 }
  0x33   : > { %338 = vmatmul.f32.gmra.mxu2 %v210_v59 }
  0x34   : > { %292 = vmatmul.f32.gmra.mxu0 %v208_v60 }
  0x35   : > { %315 = vmatmul.f32.gmra.mxu1 %v209_v61 }
  0xa4   : > { %v359_v1 = vpop.f32.mrf.mxu3 }
  0xa9   : > { %v290_v62 = vpop.f32.mrf.mxu0 }
  0xaa   : > { %v313_v63 = vpop.f32.mrf.mxu1 }
  0xab   : > { %v314_v0 = vadd.f32 %v313_v63, %v290_v62 }
  0xac   : > { %v362_v13 = vpop.f32.mrf.mxu3 }
  0xae   : > { %v336_v2 = vpop.f32.mrf.mxu2 }
  0xaf   : > { %v337_v3 = vadd.f32 %v336_v2, %v314_v0 }
  0xb1   : > { %v360_v5 = vadd.f32 %v359_v1, %v337_v3  ;;  %v293_v7 = vpop.f32.mrf.mxu0 }
  0xb2   : > { %v316_v8 = vpop.f32.mrf.mxu1 }
  0xb3   : > { %v369_v9 = vmul.f32 %v460_v4, %v360_v5  ;;  %v317_v10 = vadd.f32 %v316_v8, %v293_v7 }
  0xb5   : > { %v375_v11 = vadd.f32 %v461_v6, %v369_v9 }
  0xb6   : > { %v339_v12 = vpop.f32.mrf.mxu2 }
  0xb7   : > { %v377_v14 = vmax.f32 %v375_v11, 0.0  ;;  %v340_v15 = vadd.f32 %v339_v12, %v317_v10 }
  0xb9   : > { %379 = vst [vmem:[%s202_s14] sm:$0xff] %v377_v14  ;;  %v363_v16 = vadd.f32 %v362_v13, %v340_v15 }
  0xbb   : > { %v370_v17 = vmul.f32 %v460_v4, %v363_v16 }
  0xbd   : > { %v376_v18 = vadd.f32 %v461_v6, %v370_v17 }
  0xbf   : > { %v378_v19 = vmax.f32 %v376_v18, 0.0 }
  0xc1   : > { %380 = vst [vmem:[%s202_s14 + $0x8] sm:$0xff] %v378_v19 }
  0xc2 PF: > { %s14_s15 = sadd.s32 1, %s468_s15  }
  0xc3   : > { %p11_p4 = scmp.ge.s32.totalorder %s14_s15, 4  }
  0xc5   :  { %13 = sbr.rel (!%p11_p4) target bundleno = 1 (0x1), region = 66 }

// kernel: forward.17
= control target key start
LH: loop header
LB: loop body
LE: loop exit
PB: predicated region body
PF: predicated region fallthrough
CT: control target
= control target key end

     0   :  { %s363_s15 = smov 0   ;;  %s392_s0 = inlined_call_operand.vmem [shape: f32[32,16], index: 0, kind: input, shape index: {}]   ;;  %s393_s1 = inlined_call_operand.vmem [shape: f32[16,128], index: 1, kind: input, shape index: {}]   ;;  %s394_s2 = inlined_call_operand.vmem [shape: f32[1,128], index: 2, kind: input, shape index: {}]   ;;  %s395_s3 = inlined_call_operand.vmem [shape: f32[1,128], index: 3, kind: input, shape index: {}]   ;;  %s396_s4 = inlined_call_operand.vmem [shape: f32[32,128], index: 4, kind: output, shape index: {}]  }
   0x1 LB: > { %s305_s16 = sadd.s32 4294967295, %s336_s15   ;;  %p309_p0 = scmp.ge.s32.totalorder %s336_s15, 1  ;;  %s336_s15 = sphi %s363_s15, %s14_s15  }
   0x2   : > { %p163_p1 = scmp.lt.s32.totalorder %s336_s15, 3 }
   0x4   : > { %p164_p2 = pnand %p309_p0, %p163_p1 }
   0x5   : > { %s310_s21 = sshll.u32 (!%p164_p2), %s305_s16, 1 }
   0x6   : > { %167 = sbr.rel (%p164_p2) target bundleno = 147 (0x93), region = 36  ;;  %p190_p3 = scmp.lt.s32.totalorder (!%p164_p2), %s310_s21, 3 }
   0xb   : > { %v204_v0 = vld [vmem:[%s393_s1 + $0x8] sm:$0xff]  ;;  %v203_v1 = vld [vmem:[%s393_s1] sm:$0xff]  ;;  %s398_s21 = smov (!%p190_p3, %s310_s21), 3  ;;  %vm205_vm0 = vcmask 130048  }
   0xc   : > { %226 = vmatpush.msra.mxu0 %v204_v0  ;;  %318 = vmatpush.msra.mxu1 %v204_v0  ;;  %s311_s22 = sshll.u32 %s398_s21, 3  ;;  %v328_v4 = vld [vmem:[%s394_s2] ss:$0 sm:$0xff] }
   0xd   : > { %s193_s25 = scalar_lea.vmem %s392_s0, %s311_s22  ;;  %v329_v5 = vld [vmem:[%s395_s3] ss:$0 sm:$0xff]  ;;  %s199_s6 = scalar_lea.vmem %s396_s4, %s311_s22 }
   0xe   : > { %227 = vmatpush.msra.mxu0 %v203_v1  ;;  %319 = vmatpush.msra.mxu1 %v203_v1  ;;  %v201_v2 = vld [vmem:[%s193_s25] sm:$0xff]  ;;  %v202_v3 = vld [vmem:[%s193_s25 + $0x8] sm:$0xff] }
   0xf   : > { %314 = vmatmul.msk.f32.vlgmr.msra.gmra.mxu0 %vm205_vm0, %v201_v2  ;;  %315 = vmatmul.msk.f32.vlgmr.msra.gmra.mxu1 %vm205_vm0, %v202_v3 }
  0x8c   : > { %v229_v6 = vpop.f32.mrf.mxu0  ;;  %v232_v7 = vpop.f32.mrf.mxu1 }
  0x8d   : > { %v239_v8 = vmul.f32 %v328_v4, %v229_v6  ;;  %v240_v9 = vmul.f32 %v328_v4, %v232_v7 }
  0x8f   : > { %v245_v10 = vadd.f32 %v329_v5, %v239_v8  ;;  %v246_v11 = vadd.f32 %v329_v5, %v240_v9 }
  0x91   : > { %247 = vst [vmem:[%s199_s6] sm:$0xff] %v245_v10 }
  0x92   : > { %248 = vst [vmem:[%s199_s6 + $0x8] sm:$0xff] %v246_v11 }
  0x93 PF: > { %s14_s15 = sadd.s32 1, %s336_s15  }
  0x94   : > { %p11_p4 = scmp.ge.s32.totalorder %s14_s15, 4  }
  0x96   :  { %13 = sbr.rel (!%p11_p4) target bundleno = 1 (0x1), region = 66 }

// kernel: forward.18
= control target key start
LH: loop header
LB: loop body
LE: loop exit
PB: predicated region body
PF: predicated region fallthrough
CT: control target
= control target key end

     0   :  { %s711_s18 = smov 0   ;;  %s1086_s0 = inlined_call_operand.vmem [shape: f32[32,864], index: 0, kind: input, shape index: {}]   ;;  %s1087_s1 = inlined_call_operand.vmem [shape: f32[864,128], index: 1, kind: input, shape index: {}]   ;;  %s1088_s2 = inlined_call_operand.vmem [shape: f32[1,128], index: 2, kind: input, shape index: {}]   ;;  %s1089_s3 = inlined_call_operand.vmem [shape: f32[1,128], index: 3, kind: input, shape index: {}]   ;;  %s1090_s4 = inlined_call_operand.vmem [shape: f32[32,128], index: 4, kind: input, shape index: {}]   ;;  %s1091_s5 = inlined_call_operand.vmem [shape: f32[32,128], index: 5, kind: output, shape index: {}]  }
   0x1 LB: > { %s631_s19 = sadd.s32 4294967295, %s679_s18   ;;  %p635_p0 = scmp.ge.s32.totalorder %s679_s18, 1  ;;  %s679_s18 = sphi %s711_s18, %s15_s18  }
   0x2   : > { %p200_p1 = scmp.lt.s32.totalorder %s679_s18, 3 }
   0x4   : > { %p201_p2 = pnand %p635_p0, %p200_p1 }
   0x5   : > { %s636_s9 = sshll.u32 (!%p201_p2), %s631_s19, 1 }
   0x6   : > { %204 = sbr.rel (%p201_p2) target bundleno = 228 (0xe4), region = 40  ;;  %p235_p3 = scmp.lt.s32.totalorder (!%p201_p2), %s636_s9, 3 }
   0xb   : > { %v282_v0 = vld [vmem:[%s1087_s1 + $0x78] sm:$0xff]  ;;  %v281_v3 = vld [vmem:[%s1087_s1 + $0x70] sm:$0xff]  ;;  %v280_v6 = vld [vmem:[%s1087_s1 + $0x68] sm:$0xff]  ;;  %s1093_s9 = smov (!%p235_p3, %s636_s9), 3  ;;  %vm375_vm0 = vcmask 785408  }
   0xc   : > { %v298_v1 = vld [vmem:[%s1087_s1 + $0xf8] sm:$0xff]  ;;  %382 = vmatpush.msra.mxu0 %v282_v0  ;;  %v297_v4 = vld [vmem:[%s1087_s1 + $0xf0] sm:$0xff]  ;;  %v296_v7 = vld [vmem:[%s1087_s1 + $0xe8] sm:$0xff]  ;;  %s662_s26 = smul.u32 56, %s1093_s9  ;;  %s639_s11 = sshll.u32 %s1093_s9, 3 }
   0xd   : > { %v330_v2 = vld [vmem:[%s1087_s1 + $0x1f8] sm:$0xff]  ;;  %405 = vmatpush.msra.mxu1 %v298_v1  ;;  %v329_v5 = vld [vmem:[%s1087_s1 + $0x1f0] sm:$0xff]  ;;  %v328_v9 = vld [vmem:[%s1087_s1 + $0x1e8] sm:$0xff]  ;;  %s245_s15 = scalar_lea.vmem %s1090_s4, %s639_s11  ;;  %s251_s21 = scalar_lea.vmem %s1091_s5, %s639_s11 }
   0xe   : > { %451 = vmatpush.msra.mxu3 %v330_v2  ;;  %v314_v8 = vld [vmem:[%s1087_s1 + $0x178] sm:$0xff]  ;;  %383 = vmatpush.msra.mxu0 %v281_v3  ;;  %v279_v10 = vld [vmem:[%s1087_s1 + $0x60] sm:$0xff]  ;;  %v313_v12 = vld [vmem:[%s1087_s1 + $0x170] sm:$0xff]  ;;  %s962_s17 = scalar_lea.vmem %s1086_s0, %s662_s26 }
   0xf   : > { %406 = vmatpush.msra.mxu1 %v297_v4  ;;  %428 = vmatpush.msra.mxu2 %v314_v8  ;;  %v295_v11 = vld [vmem:[%s1087_s1 + $0xe0] sm:$0xff]  ;;  %v312_v14 = vld [vmem:[%s1087_s1 + $0x168] sm:$0xff]  ;;  %v278_v15 = vld [vmem:[%s1087_s1 + $0x58] sm:$0xff] }
  0x10   : > { %452 = vmatpush.msra.mxu3 %v329_v5  ;;  %384 = vmatpush.msra.mxu0 %v280_v6  ;;  %v327_v13 = vld [vmem:[%s1087_s1 + $0x1e0] sm:$0xff]  ;;  %v294_v16 = vld [vmem:[%s1087_s1 + $0xd8] sm:$0xff]  ;;  %v277_v19 = vld [vmem:[%s1087_s1 + $0x50] sm:$0xff] }
  0x11   : > { %407 = vmatpush.msra.mxu1 %v296_v7  ;;  %429 = vmatpush.msra.mxu2 %v313_v12  ;;  %v326_v17 = vld [vmem:[%s1087_s1 + $0x1d8] sm:$0xff]  ;;  %v311_v18 = vld [vmem:[%s1087_s1 + $0x160] sm:$0xff]  ;;  %v293_v20 = vld [vmem:[%s1087_s1 + $0xd0] sm:$0xff] }
  0x12   : > { %453 = vmatpush.msra.mxu3 %v328_v9  ;;  %385 = vmatpush.msra.mxu0 %v279_v10  ;;  %v325_v21 = vld [vmem:[%s1087_s1 + $0x1d0] sm:$0xff]  ;;  %v310_v22 = vld [vmem:[%s1087_s1 + $0x158] sm:$0xff]  ;;  %v276_v23 = vld [vmem:[%s1087_s1 + $0x48] sm:$0xff] }
  0x13   : > { %408 = vmatpush.msra.mxu1 %v295_v11  ;;  %430 = vmatpush.msra.mxu2 %v312_v14  ;;  %v292_v24 = vld [vmem:[%s1087_s1 + $0xc8] sm:$0xff]  ;;  %v309_v26 = vld [vmem:[%s1087_s1 + $0x150] sm:$0xff]  ;;  %v275_v27 = vld [vmem:[%s1087_s1 + $0x40] sm:$0xff] }
  0x14   : > { %454 = vmatpush.msra.mxu3 %v327_v13  ;;  %386 = vmatpush.msra.mxu0 %v278_v15  ;;  %v324_v25 = vld [vmem:[%s1087_s1 + $0x1c8] sm:$0xff]  ;;  %v291_v28 = vld [vmem:[%s1087_s1 + $0xc0] sm:$0xff]  ;;  %v274_v31 = vld [vmem:[%s1087_s1 + $0x38] sm:$0xff] }
  0x15   : > { %409 = vmatpush.msra.mxu1 %v294_v16  ;;  %431 = vmatpush.msra.mxu2 %v311_v18  ;;  %v323_v29 = vld [vmem:[%s1087_s1 + $0x1c0] sm:$0xff]  ;;  %v308_v30 = vld [vmem:[%s1087_s1 + $0x148] sm:$0xff]  ;;  %v290_v32 = vld [vmem:[%s1087_s1 + $0xb8] sm:$0xff] }
  0x16   : > { %455 = vmatpush.msra.mxu3 %v326_v17  ;;  %387 = vmatpush.msra.mxu0 %v277_v19  ;;  %v322_v33 = vld [vmem:[%s1087_s1 + $0x1b8] sm:$0xff]  ;;  %v307_v34 = vld [vmem:[%s1087_s1 + $0x140] sm:$0xff]  ;;  %v273_v35 = vld [vmem:[%s1087_s1 + $0x30] sm:$0xff] }
  0x17   : > { %410 = vmatpush.msra.mxu1 %v293_v20  ;;  %432 = vmatpush.msra.mxu2 %v310_v22  ;;  %v289_v36 = vld [vmem:[%s1087_s1 + $0xb0] sm:$0xff]  ;;  %v306_v38 = vld [vmem:[%s1087_s1 + $0x138] sm:$0xff]  ;;  %v272_v39 = vld [vmem:[%s1087_s1 + $0x28] sm:$0xff] }
  0x18   : > { %456 = vmatpush.msra.mxu3 %v325_v21  ;;  %388 = vmatpush.msra.mxu0 %v276_v23  ;;  %v321_v37 = vld [vmem:[%s1087_s1 + $0x1b0] sm:$0xff]  ;;  %v288_v40 = vld [vmem:[%s1087_s1 + $0xa8] sm:$0xff]  ;;  %v271_v43 = vld [vmem:[%s1087_s1 + $0x20] sm:$0xff] }
  0x19   : > { %411 = vmatpush.msra.mxu1 %v292_v24  ;;  %433 = vmatpush.msra.mxu2 %v309_v26  ;;  %v320_v41 = vld [vmem:[%s1087_s1 + $0x1a8] sm:$0xff]  ;;  %v305_v42 = vld [vmem:[%s1087_s1 + $0x130] sm:$0xff]  ;;  %v287_v44 = vld [vmem:[%s1087_s1 + $0xa0] sm:$0xff] }
  0x1a   : > { %457 = vmatpush.msra.mxu3 %v324_v25  ;;  %389 = vmatpush.msra.mxu0 %v275_v27  ;;  %v319_v45 = vld [vmem:[%s1087_s1 + $0x1a0] sm:$0xff]  ;;  %v304_v46 = vld [vmem:[%s1087_s1 + $0x128] sm:$0xff]  ;;  %v270_v47 = vld [vmem:[%s1087_s1 + $0x18] sm:$0xff] }
  0x1b   : > { %412 = vmatpush.msra.mxu1 %v291_v28  ;;  %434 = vmatpush.msra.mxu2 %v308_v30  ;;  %v286_v48 = vld [vmem:[%s1087_s1 + $0x98] sm:$0xff]  ;;  %v303_v50 = vld [vmem:[%s1087_s1 + $0x120] sm:$0xff]  ;;  %v269_v51 = vld [vmem:[%s1087_s1 + $0x10] sm:$0xff] }
  0x1c   : > { %458 = vmatpush.msra.mxu3 %v323_v29  ;;  %390 = vmatpush.msra.mxu0 %v274_v31  ;;  %v318_v49 = vld [vmem:[%s1087_s1 + $0x198] sm:$0xff]  ;;  %v285_v52 = vld [vmem:[%s1087_s1 + $0x90] sm:$0xff]  ;;  %v268_v55 = vld [vmem:[%s1087_s1 + $0x8] sm:$0xff] }
  0x1d   : > { %413 = vmatpush.msra.mxu1 %v290_v32  ;;  %435 = vmatpush.msra.mxu2 %v307_v34  ;;  %v317_v53 = vld [vmem:[%s1087_s1 + $0x190] sm:$0xff]  ;;  %v302_v54 = vld [vmem:[%s1087_s1 + $0x118] sm:$0xff]  ;;  %v284_v56 = vld [vmem:[%s1087_s1 + $0x88] sm:$0xff] }
  0x1e   : > { %459 = vmatpush.msra.mxu3 %v322_v33  ;;  %391 = vmatpush.msra.mxu0 %v273_v35  ;;  %v316_v57 = vld [vmem:[%s1087_s1 + $0x188] sm:$0xff]  ;;  %v301_v58 = vld [vmem:[%s1087_s1 + $0x110] sm:$0xff]  ;;  %v267_v59 = vld [vmem:[%s1087_s1] sm:$0xff] }
  0x1f   : > { %414 = vmatpush.msra.mxu1 %v289_v36  ;;  %436 = vmatpush.msra.mxu2 %v306_v38  ;;  %v283_v60 = vld [vmem:[%s1087_s1 + $0x80] sm:$0xff]  ;;  %v346_v62 = vld [vmem:[%s1087_s1 + $0x278] sm:$0xff]  ;;  %v300_v0 = vld [vmem:[%s1087_s1 + $0x108] sm:$0xff] }
  0x20   : > { %460 = vmatpush.msra.mxu3 %v321_v37  ;;  %392 = vmatpush.msra.mxu0 %v272_v39  ;;  %v315_v61 = vld [vmem:[%s1087_s1 + $0x180] sm:$0xff]  ;;  %v362_v63 = vld [vmem:[%s1087_s1 + $0x2f8] sm:$0xff]  ;;  %v345_v1 = vld [vmem:[%s1087_s1 + $0x270] sm:$0xff] }
  0x21   : > { %415 = vmatpush.msra.mxu1 %v288_v40  ;;  %437 = vmatpush.msra.mxu2 %v305_v42  ;;  %v361_v2 = vld [vmem:[%s1087_s1 + $0x2f0] sm:$0xff]  ;;  %v299_v3 = vld [vmem:[%s1087_s1 + $0x100] sm:$0xff]  ;;  %v344_v4 = vld [vmem:[%s1087_s1 + $0x268] sm:$0xff] }
  0x22   : > { %461 = vmatpush.msra.mxu3 %v320_v41  ;;  %393 = vmatpush.msra.mxu0 %v271_v43  ;;  %v360_v5 = vld [vmem:[%s1087_s1 + $0x2e8] sm:$0xff]  ;;  %v374_v6 = vld [vmem:[%s1087_s1 + $0x358] sm:$0xff]  ;;  %v343_v7 = vld [vmem:[%s1087_s1 + $0x260] sm:$0xff] }
  0x23   : > { %416 = vmatpush.msra.mxu1 %v287_v44  ;;  %438 = vmatpush.msra.mxu2 %v304_v46  ;;  %v359_v8 = vld [vmem:[%s1087_s1 + $0x2e0] sm:$0xff]  ;;  %v373_v9 = vld [vmem:[%s1087_s1 + $0x350] sm:$0xff]  ;;  %v342_v10 = vld [vmem:[%s1087_s1 + $0x258] sm:$0xff] }
  0x24   : > { %462 = vmatpush.msra.mxu3 %v319_v45  ;;  %394 = vmatpush.msra.mxu0 %v270_v47  ;;  %v358_v11 = vld [vmem:[%s1087_s1 + $0x2d8] sm:$0xff]  ;;  %v372_v12 = vld [vmem:[%s1087_s1 + $0x348] sm:$0xff]  ;;  %v341_v13 = vld [vmem:[%s1087_s1 + $0x250] sm:$0xff] }
  0x25   : > { %417 = vmatpush.msra.mxu1 %v286_v48  ;;  %439 = vmatpush.msra.mxu2 %v303_v50  ;;  %v357_v14 = vld [vmem:[%s1087_s1 + $0x2d0] sm:$0xff]  ;;  %v371_v15 = vld [vmem:[%s1087_s1 + $0x340] sm:$0xff]  ;;  %v340_v16 = vld [vmem:[%s1087_s1 + $0x248] sm:$0xff] }
  0x26   : > { %463 = vmatpush.msra.mxu3 %v318_v49  ;;  %395 = vmatpush.msra.mxu0 %v269_v51  ;;  %v255_v17 = vld [vmem:[%s962_s17 + $0x10] sm:$0xff]  ;;  %v356_v18 = vld [vmem:[%s1087_s1 + $0x2c8] sm:$0xff]  ;;  %v370_v19 = vld [vmem:[%s1087_s1 + $0x338] sm:$0xff] }
  0x27   : > { %418 = vmatpush.msra.mxu1 %v285_v52  ;;  %440 = vmatpush.msra.mxu2 %v302_v54  ;;  %v256_v20 = vld [vmem:[%s962_s17 + $0x18] sm:$0xff]  ;;  %v339_v21 = vld [vmem:[%s1087_s1 + $0x240] sm:$0xff]  ;;  %v369_v23 = vld [vmem:[%s1087_s1 + $0x330] sm:$0xff] }
  0x28   : > { %464 = vmatpush.msra.mxu3 %v317_v53  ;;  %396 = vmatpush.msra.mxu0 %v268_v55  ;;  %v355_v22 = vld [vmem:[%s1087_s1 + $0x2c0] sm:$0xff]  ;;  %v254_v25 = vld [vmem:[%s962_s17 + $0x8] sm:$0xff]  ;;  %v338_v26 = vld [vmem:[%s1087_s1 + $0x238] sm:$0xff] }
  0x29   : > { %419 = vmatpush.msra.mxu1 %v284_v56  ;;  %441 = vmatpush.msra.mxu2 %v301_v58  ;;  %v253_v24 = vld [vmem:[%s962_s17] sm:$0xff]  ;;  %v354_v27 = vld [vmem:[%s1087_s1 + $0x2b8] sm:$0xff]  ;;  %v368_v28 = vld [vmem:[%s1087_s1 + $0x328] sm:$0xff] }
  0x2a   : > { %465 = vmatpush.msra.mxu3 %v316_v57  ;;  %397 = vmatpush.msra.mxu0 %v267_v59  ;;  %v337_v29 = vld [vmem:[%s1087_s1 + $0x230] sm:$0xff]  ;;  %v367_v31 = vld [vmem:[%s1087_s1 + $0x320] sm:$0xff]  ;;  %v336_v32 = vld [vmem:[%s1087_s1 + $0x228] sm:$0xff] }
  0x2b   : > { %420 = vmatpush.msra.mxu1 %v283_v60  ;;  %442 = vmatpush.msra.mxu2 %v300_v0  ;;  %v353_v30 = vld [vmem:[%s1087_s1 + $0x2b0] sm:$0xff]  ;;  %v262_v33 = vld [vmem:[%s962_s17 + $0x48] sm:$0xff]  ;;  %v366_v35 = vld [vmem:[%s1087_s1 + $0x318] sm:$0xff] }
  0x2c   : > { %466 = vmatpush.msra.mxu3 %v315_v61  ;;  %474 = vmatpush.msrb.mxu0 %v346_v62  ;;  %v352_v34 = vld [vmem:[%s1087_s1 + $0x2a8] sm:$0xff]  ;;  %v263_v36 = vld [vmem:[%s962_s17 + $0x50] sm:$0xff]  ;;  %v335_v37 = vld [vmem:[%s1087_s1 + $0x220] sm:$0xff] }
  0x2d   : > { %497 = vmatpush.msrb.mxu1 %v362_v63  ;;  %443 = vmatpush.msra.mxu2 %v299_v3  ;;  %v351_v38 = vld [vmem:[%s1087_s1 + $0x2a0] sm:$0xff]  ;;  %v365_v39 = vld [vmem:[%s1087_s1 + $0x310] sm:$0xff]  ;;  %v260_v40 = vld [vmem:[%s962_s17 + $0x38] sm:$0xff] }
  0x2e   : > { %646 = vmatpush.msrb.mxu3 %v346_v62  ;;  %475 = vmatpush.msrb.mxu0 %v345_v1  ;;  %v261_v41 = vld [vmem:[%s962_s17 + $0x40] sm:$0xff]  ;;  %v334_v42 = vld [vmem:[%s1087_s1 + $0x218] sm:$0xff]  ;;  %v364_v44 = vld [vmem:[%s1087_s1 + $0x308] sm:$0xff] }
  0x2f   : > { %498 = vmatpush.msrb.mxu1 %v361_v2  ;;  %524 = vmatpush.msrb.mxu2 %v374_v6  ;;  %v350_v43 = vld [vmem:[%s1087_s1 + $0x298] sm:$0xff]  ;;  %v333_v45 = vld [vmem:[%s1087_s1 + $0x210] sm:$0xff]  ;;  %v363_v47 = vld [vmem:[%s1087_s1 + $0x300] sm:$0xff] }
  0x30   : > { %647 = vmatpush.msrb.mxu3 %v345_v1  ;;  %476 = vmatpush.msrb.mxu0 %v344_v4  ;;  %v349_v46 = vld [vmem:[%s1087_s1 + $0x290] sm:$0xff]  ;;  %v332_v48 = vld [vmem:[%s1087_s1 + $0x208] sm:$0xff]  ;;  %v331_v51 = vld [vmem:[%s1087_s1 + $0x200] sm:$0xff] }
  0x31   : > { %499 = vmatpush.msrb.mxu1 %v360_v5  ;;  %525 = vmatpush.msrb.mxu2 %v373_v9  ;;  %v259_v49 = vld [vmem:[%s962_s17 + $0x30] sm:$0xff]  ;;  %v348_v50 = vld [vmem:[%s1087_s1 + $0x288] sm:$0xff]  ;;  %v257_v52 = vld [vmem:[%s962_s17 + $0x20] sm:$0xff] }
  0x32   : > { %648 = vmatpush.msrb.mxu3 %v344_v4  ;;  %477 = vmatpush.msrb.mxu0 %v343_v7  ;;  %v347_v53 = vld [vmem:[%s1087_s1 + $0x280] sm:$0xff]  ;;  %v264_v54 = vld [vmem:[%s962_s17 + $0x58] sm:$0xff]  ;;  %v258_v55 = vld [vmem:[%s962_s17 + $0x28] sm:$0xff] }
  0x33   : > { %500 = vmatpush.msrb.mxu1 %v359_v8  ;;  %526 = vmatpush.msrb.mxu2 %v372_v12  ;;  %v266_v56 = vld [vmem:[%s962_s17 + $0x68] sm:$0xff]  ;;  %v265_v57 = vld [vmem:[%s962_s17 + $0x60] sm:$0xff] }
  0x34   : > { %649 = vmatpush.msrb.mxu3 %v343_v7  ;;  %478 = vmatpush.msrb.mxu0 %v342_v10 }
  0x35   : > { %501 = vmatpush.msrb.mxu1 %v358_v11  ;;  %527 = vmatpush.msrb.mxu2 %v371_v15  ;;  %v671_v11 = vld [vmem:[%s1088_s2] ss:$0 sm:$0xff] }
  0x36   : > { %650 = vmatpush.msrb.mxu3 %v342_v10  ;;  %479 = vmatpush.msrb.mxu0 %v341_v13 }
  0x37   : > { %502 = vmatpush.msrb.mxu1 %v357_v14  ;;  %444 = vmatmul.f32.vlgmr.msra.gmra.mxu2 %v255_v17  ;;  %v672_v14 = vld [vmem:[%s1089_s3] ss:$0 sm:$0xff] }
  0x38   : > { %651 = vmatpush.msrb.mxu3 %v341_v13  ;;  %480 = vmatpush.msrb.mxu0 %v340_v16 }
  0x39   : > { %503 = vmatpush.msrb.mxu1 %v356_v18  ;;  %528 = vmatpush.msrb.mxu2 %v370_v19  ;;  %v555_v18 = vld [vmem:[%s245_s15] sm:$0xff] }
  0x3a   : > { %652 = vmatpush.msrb.mxu3 %v340_v16  ;;  %481 = vmatpush.msrb.mxu0 %v339_v21 }
  0x3b   : > { %467 = vmatmul.f32.vlgmr.msra.gmra.mxu3 %v256_v20  ;;  %504 = vmatpush.msrb.mxu1 %v355_v22 }
  0x3c   : > { %653 = vmatpush.msrb.mxu3 %v339_v21  ;;  %529 = vmatpush.msrb.mxu2 %v369_v23 }
  0x3d   : > { %398 = vmatmul.f32.vlgmr.msra.gmra.mxu0 %v253_v24  ;;  %421 = vmatmul.f32.vlgmr.msra.gmra.mxu1 %v254_v25 }
  0x3e   : > { %482 = vmatpush.msrb.mxu0 %v338_v26  ;;  %654 = vmatpush.msrb.mxu3 %v338_v26 }
  0x3f   : > { %505 = vmatpush.msrb.mxu1 %v354_v27  ;;  %530 = vmatpush.msrb.mxu2 %v368_v28  ;;  %v556_v28 = vld [vmem:[%s245_s15 + $0x8] sm:$0xff] }
  0x40   : > { %483 = vmatpush.msrb.mxu0 %v337_v29  ;;  %655 = vmatpush.msrb.mxu3 %v337_v29 }
  0x41   : > { %506 = vmatpush.msrb.mxu1 %v353_v30  ;;  %531 = vmatpush.msrb.mxu2 %v367_v31 }
  0x42   : > { %484 = vmatpush.msrb.mxu0 %v336_v32  ;;  %447 = vmatmul.f32.gmra.mxu2 %v262_v33 }
  0x43   : > { %656 = vmatpush.msrb.mxu3 %v336_v32  ;;  %507 = vmatpush.msrb.mxu1 %v352_v34 }
  0x44   : > { %532 = vmatpush.msrb.mxu2 %v366_v35  ;;  %470 = vmatmul.f32.gmra.mxu3 %v263_v36 }
  0x45   : > { %485 = vmatpush.msrb.mxu0 %v335_v37  ;;  %657 = vmatpush.msrb.mxu3 %v335_v37 }
  0x46   : > { %508 = vmatpush.msrb.mxu1 %v351_v38  ;;  %533 = vmatpush.msrb.mxu2 %v365_v39 }
  0x47   : > { %401 = vmatmul.f32.gmra.mxu0 %v260_v40  ;;  %424 = vmatmul.f32.gmra.mxu1 %v261_v41 }
  0x48   : > { %486 = vmatpush.msrb.mxu0 %v334_v42  ;;  %658 = vmatpush.msrb.mxu3 %v334_v42 }
  0x49   : > { %509 = vmatpush.msrb.mxu1 %v350_v43  ;;  %534 = vmatpush.msrb.mxu2 %v364_v44 }
  0x4a   : > { %487 = vmatpush.msrb.mxu0 %v333_v45  ;;  %659 = vmatpush.msrb.mxu3 %v333_v45 }
  0x4b   : > { %510 = vmatpush.msrb.mxu1 %v349_v46  ;;  %535 = vmatpush.msrb.mxu2 %v363_v47 }
  0x4c   : > { %488 = vmatpush.msrb.mxu0 %v332_v48  ;;  %642 = vmatmul.msk.f32.vlgmr.msrb.gmra.mxu2 %vm375_vm0, %v259_v49 }
  0x4d   : > { %660 = vmatpush.msrb.mxu3 %v332_v48  ;;  %511 = vmatpush.msrb.mxu1 %v348_v50 }
  0x4e   : > { %489 = vmatpush.msrb.mxu0 %v331_v51 }
  0x4f   : > { %661 = vmatpush.msrb.mxu3 %v331_v51  ;;  %490 = vmatmul.f32.vlgmr.msrb.gmra.mxu0 %v257_v52 }
  0x50   : > { %512 = vmatpush.msrb.mxu1 %v347_v53  ;;  %493 = vmatmul.f32.vlgmr.msrb.gmra.mxu3 %v264_v54 }
  0x51   : > { %513 = vmatmul.f32.vlgmr.msrb.gmra.mxu1 %v258_v55 }
  0x54   : > { %643 = vmatmul.msk.f32.gmra.mxu2 %vm375_vm0, %v266_v56 }
  0x59   : > { %516 = vmatmul.f32.gmra.mxu1 %v265_v57 }
  0xba   : > { %v399_v58 = vpop.f32.mrf.mxu0  ;;  %v422_v59 = vpop.f32.mrf.mxu1 }
  0xbb   : > { %v445_v60 = vpop.f32.mrf.mxu2  ;;  %v423_v62 = vadd.f32 %v422_v59, %v399_v58 }
  0xbd   : > { %v446_v2 = vadd.f32 %v445_v60, %v423_v62 }
  0xbe   : > { %v468_v61 = vpop.f32.mrf.mxu3 }
  0xbf   : > { %v469_v4 = vadd.f32 %v468_v61, %v446_v2 }
  0xc4   : > { %v402_v63 = vpop.f32.mrf.mxu0  ;;  %v425_v0 = vpop.f32.mrf.mxu1 }
  0xc5   : > { %v448_v1 = vpop.f32.mrf.mxu2  ;;  %v426_v3 = vadd.f32 %v425_v0, %v402_v63 }
  0xc7   : > { %v471_v5 = vpop.f32.mrf.mxu3  ;;  %v449_v8 = vadd.f32 %v448_v1, %v426_v3 }
  0xc9   : > { %v472_v15 = vadd.f32 %v471_v5, %v449_v8 }
  0xcc   : > { %v491_v6 = vpop.f32.mrf.mxu0 }
  0xcd   : > { %v492_v7 = vadd.f32 %v491_v6, %v469_v4 }
  0xce   : > { %v514_v9 = vpop.f32.mrf.mxu1 }
  0xcf   : > { %v515_v10 = vadd.f32 %v514_v9, %v492_v7  ;;  %v537_v12 = vpop.f32.mrf.mxu2 }
  0xd1   : > { %v538_v13 = vadd.f32 %v537_v12, %v515_v10 }
  0xd3   : > { %v547_v16 = vmul.f32 %v671_v11, %v538_v13  ;;  %v494_v17 = vpop.f32.mrf.mxu3 }
  0xd4   : > { %v495_v19 = vadd.f32 %v494_v17, %v472_v15 }
  0xd5   : > { %v553_v20 = vadd.f32 %v672_v14, %v547_v16 }
  0xd6   : > { %v517_v21 = vpop.f32.mrf.mxu1 }
  0xd7   : > { %v557_v22 = vadd.f32 %v555_v18, %v553_v20  ;;  %v518_v23 = vadd.f32 %v517_v21, %v495_v19  ;;  %v540_v24 = vpop.f32.mrf.mxu2 }
  0xd9   : > { %v559_v25 = vmax.f32 %v557_v22, 0.0  ;;  %v541_v26 = vadd.f32 %v540_v24, %v518_v23 }
  0xdb   : > { %561 = vst [vmem:[%s251_s21] sm:$0xff] %v559_v25  ;;  %v548_v27 = vmul.f32 %v671_v11, %v541_v26 }
  0xdd   : > { %v554_v29 = vadd.f32 %v672_v14, %v548_v27 }
  0xdf   : > { %v558_v30 = vadd.f32 %v556_v28, %v554_v29 }
  0xe1   : > { %v560_v31 = vmax.f32 %v558_v30, 0.0 }
  0xe3   : > { %562 = vst [vmem:[%s251_s21 + $0x8] sm:$0xff] %v560_v31 }
  0xe4 PF: > { %s15_s18 = sadd.s32 1, %s679_s18  }
  0xe5   : > { %p12_p4 = scmp.ge.s32.totalorder %s15_s18, 4  }
  0xe7   :  { %14 = sbr.rel (!%p12_p4) target bundleno = 1 (0x1), region = 73 }

// kernel: forward.19
= control target key start
LH: loop header
LB: loop body
LE: loop exit
PB: predicated region body
PF: predicated region fallthrough
CT: control target
= control target key end

     0   :  { %vm153_vm0 = vcmask 785408   ;;  %s685_s1 = inlined_call_operand.vmem [shape: f32[864,128], index: 1, kind: input, shape index: {}]   ;;  %s686_s0 = inlined_call_operand.vmem [shape: f32[4,864], index: 0, kind: input, shape index: {}]   ;;  %s687_s2 = inlined_call_operand.vmem [shape: f32[1,128], index: 2, kind: input, shape index: {}]   ;;  %s688_s3 = inlined_call_operand.vmem [shape: f32[1,128], index: 3, kind: input, shape index: {}]   ;;  %s689_s4 = inlined_call_operand.vmem [shape: f32[4,128], index: 4, kind: output, shape index: {}]  }
   0x1   :  { %v36_v0 = vld [vmem:[%s685_s1 + $0x78] sm:$0xff]  ;;  %v35_v1 = vld [vmem:[%s685_s1 + $0x70] sm:$0xff]  ;;  %v34_v4 = vld [vmem:[%s685_s1 + $0x68] sm:$0xff] }
   0x2   :  { %v52_v2 = vld [vmem:[%s685_s1 + $0xf8] sm:$0xff]  ;;  %156 = vmatpush.msra.mxu0 %v36_v0  ;;  %v51_v3 = vld [vmem:[%s685_s1 + $0xf0] sm:$0xff]  ;;  %v50_v5 = vld [vmem:[%s685_s1 + $0xe8] sm:$0xff] }
   0x3   :  { %176 = vmatpush.msra.mxu1 %v52_v2  ;;  %v68_v6 = vld [vmem:[%s685_s1 + $0x178] sm:$0xff]  ;;  %v67_v7 = vld [vmem:[%s685_s1 + $0x170] sm:$0xff]  ;;  %v33_v8 = vld [vmem:[%s685_s1 + $0x60] sm:$0xff] }
   0x4   :  { %157 = vmatpush.msra.mxu0 %v35_v1  ;;  %196 = vmatpush.msra.mxu2 %v68_v6  ;;  %v49_v9 = vld [vmem:[%s685_s1 + $0xe0] sm:$0xff]  ;;  %v66_v10 = vld [vmem:[%s685_s1 + $0x168] sm:$0xff]  ;;  %v32_v11 = vld [vmem:[%s685_s1 + $0x58] sm:$0xff] }
   0x5   :  { %177 = vmatpush.msra.mxu1 %v51_v3  ;;  %v48_v12 = vld [vmem:[%s685_s1 + $0xd8] sm:$0xff]  ;;  %v65_v13 = vld [vmem:[%s685_s1 + $0x160] sm:$0xff]  ;;  %v31_v14 = vld [vmem:[%s685_s1 + $0x50] sm:$0xff] }
   0x6   :  { %158 = vmatpush.msra.mxu0 %v34_v4  ;;  %197 = vmatpush.msra.mxu2 %v67_v7  ;;  %v47_v15 = vld [vmem:[%s685_s1 + $0xd0] sm:$0xff]  ;;  %v64_v16 = vld [vmem:[%s685_s1 + $0x158] sm:$0xff]  ;;  %v30_v18 = vld [vmem:[%s685_s1 + $0x48] sm:$0xff] }
   0x7   :  { %178 = vmatpush.msra.mxu1 %v50_v5  ;;  %v84_v17 = vld [vmem:[%s685_s1 + $0x1f8] sm:$0xff]  ;;  %v46_v19 = vld [vmem:[%s685_s1 + $0xc8] sm:$0xff]  ;;  %v63_v20 = vld [vmem:[%s685_s1 + $0x150] sm:$0xff] }
   0x8   :  { %159 = vmatpush.msra.mxu0 %v33_v8  ;;  %198 = vmatpush.msra.mxu2 %v66_v10  ;;  %v83_v21 = vld [vmem:[%s685_s1 + $0x1f0] sm:$0xff]  ;;  %v29_v22 = vld [vmem:[%s685_s1 + $0x40] sm:$0xff]  ;;  %v82_v24 = vld [vmem:[%s685_s1 + $0x1e8] sm:$0xff] }
   0x9   :  { %179 = vmatpush.msra.mxu1 %v49_v9  ;;  %216 = vmatpush.msra.mxu3 %v84_v17  ;;  %v45_v23 = vld [vmem:[%s685_s1 + $0xc0] sm:$0xff]  ;;  %v62_v25 = vld [vmem:[%s685_s1 + $0x148] sm:$0xff]  ;;  %v28_v27 = vld [vmem:[%s685_s1 + $0x38] sm:$0xff] }
   0xa   :  { %160 = vmatpush.msra.mxu0 %v32_v11  ;;  %199 = vmatpush.msra.mxu2 %v65_v13  ;;  %v81_v26 = vld [vmem:[%s685_s1 + $0x1e0] sm:$0xff]  ;;  %v44_v28 = vld [vmem:[%s685_s1 + $0xb8] sm:$0xff]  ;;  %v27_v31 = vld [vmem:[%s685_s1 + $0x30] sm:$0xff] }
   0xb   :  { %180 = vmatpush.msra.mxu1 %v48_v12  ;;  %217 = vmatpush.msra.mxu3 %v83_v21  ;;  %v61_v29 = vld [vmem:[%s685_s1 + $0x140] sm:$0xff]  ;;  %v80_v30 = vld [vmem:[%s685_s1 + $0x1d8] sm:$0xff]  ;;  %v43_v32 = vld [vmem:[%s685_s1 + $0xb0] sm:$0xff] }
   0xc   :  { %161 = vmatpush.msra.mxu0 %v31_v14  ;;  %200 = vmatpush.msra.mxu2 %v64_v16  ;;  %v60_v33 = vld [vmem:[%s685_s1 + $0x138] sm:$0xff]  ;;  %v79_v34 = vld [vmem:[%s685_s1 + $0x1d0] sm:$0xff]  ;;  %v26_v35 = vld [vmem:[%s685_s1 + $0x28] sm:$0xff] }
   0xd   :  { %181 = vmatpush.msra.mxu1 %v47_v15  ;;  %218 = vmatpush.msra.mxu3 %v82_v24  ;;  %v42_v36 = vld [vmem:[%s685_s1 + $0xa8] sm:$0xff]  ;;  %v59_v37 = vld [vmem:[%s685_s1 + $0x130] sm:$0xff]  ;;  %v25_v39 = vld [vmem:[%s685_s1 + $0x20] sm:$0xff] }
   0xe   :  { %162 = vmatpush.msra.mxu0 %v30_v18  ;;  %201 = vmatpush.msra.mxu2 %v63_v20  ;;  %v78_v38 = vld [vmem:[%s685_s1 + $0x1c8] sm:$0xff]  ;;  %v41_v40 = vld [vmem:[%s685_s1 + $0xa0] sm:$0xff]  ;;  %v24_v43 = vld [vmem:[%s685_s1 + $0x18] sm:$0xff] }
   0xf   :  { %182 = vmatpush.msra.mxu1 %v46_v19  ;;  %219 = vmatpush.msra.mxu3 %v81_v26  ;;  %v58_v41 = vld [vmem:[%s685_s1 + $0x128] sm:$0xff]  ;;  %v77_v42 = vld [vmem:[%s685_s1 + $0x1c0] sm:$0xff]  ;;  %v40_v44 = vld [vmem:[%s685_s1 + $0x98] sm:$0xff] }
  0x10   :  { %163 = vmatpush.msra.mxu0 %v29_v22  ;;  %202 = vmatpush.msra.mxu2 %v62_v25  ;;  %v57_v45 = vld [vmem:[%s685_s1 + $0x120] sm:$0xff]  ;;  %v76_v46 = vld [vmem:[%s685_s1 + $0x1b8] sm:$0xff]  ;;  %v23_v47 = vld [vmem:[%s685_s1 + $0x10] sm:$0xff] }
  0x11   :  { %183 = vmatpush.msra.mxu1 %v45_v23  ;;  %220 = vmatpush.msra.mxu3 %v80_v30  ;;  %v39_v48 = vld [vmem:[%s685_s1 + $0x90] sm:$0xff]  ;;  %v56_v49 = vld [vmem:[%s685_s1 + $0x118] sm:$0xff]  ;;  %v22_v51 = vld [vmem:[%s685_s1 + $0x8] sm:$0xff] }
  0x12   :  { %164 = vmatpush.msra.mxu0 %v28_v27  ;;  %203 = vmatpush.msra.mxu2 %v61_v29  ;;  %v75_v50 = vld [vmem:[%s685_s1 + $0x1b0] sm:$0xff]  ;;  %v38_v52 = vld [vmem:[%s685_s1 + $0x88] sm:$0xff]  ;;  %v21_v55 = vld [vmem:[%s685_s1] sm:$0xff] }
  0x13   :  { %184 = vmatpush.msra.mxu1 %v44_v28  ;;  %221 = vmatpush.msra.mxu3 %v79_v34  ;;  %v55_v53 = vld [vmem:[%s685_s1 + $0x110] sm:$0xff]  ;;  %v74_v54 = vld [vmem:[%s685_s1 + $0x1a8] sm:$0xff]  ;;  %v37_v56 = vld [vmem:[%s685_s1 + $0x80] sm:$0xff] }
  0x14   :  { %165 = vmatpush.msra.mxu0 %v27_v31  ;;  %204 = vmatpush.msra.mxu2 %v60_v33  ;;  %v100_v57 = vld [vmem:[%s685_s1 + $0x278] sm:$0xff]  ;;  %v18_v59 = vld [vmem:[%s686_s0 + $0x8] sm:$0xff]  ;;  %v73_v61 = vld [vmem:[%s685_s1 + $0x1a0] sm:$0xff] }
  0x15   :  { %185 = vmatpush.msra.mxu1 %v43_v32  ;;  %222 = vmatpush.msra.mxu3 %v78_v38  ;;  %v116_v58 = vld [vmem:[%s685_s1 + $0x2f8] sm:$0xff]  ;;  %v54_v60 = vld [vmem:[%s685_s1 + $0x108] sm:$0xff]  ;;  %135 = vst [vmem:[#allocation1 + $0x10] ss:$2 sm:$0xff] %v18_v59  ;;  %v99_v62 = vld [vmem:[%s685_s1 + $0x270] sm:$0xff] }
  0x16   :  { %166 = vmatpush.msra.mxu0 %v26_v35  ;;  %205 = vmatpush.msra.mxu2 %v59_v37  ;;  %v115_v63 = vld [vmem:[%s685_s1 + $0x2f0] sm:$0xff]  ;;  %v53_v0 = vld [vmem:[%s685_s1 + $0x100] sm:$0xff]  ;;  %v72_v1 = vld [vmem:[%s685_s1 + $0x198] sm:$0xff] }
  0x17   :  { %186 = vmatpush.msra.mxu1 %v42_v36  ;;  %223 = vmatpush.msra.mxu3 %v77_v42  ;;  %v17_v2 = vld [vmem:[%s686_s0] sm:$0xff]  ;;  %v98_v3 = vld [vmem:[%s685_s1 + $0x268] sm:$0xff]  ;;  %v128_v5 = vld [vmem:[%s685_s1 + $0x358] sm:$0xff] }
  0x18   :  { %167 = vmatpush.msra.mxu0 %v25_v39  ;;  %206 = vmatpush.msra.mxu2 %v58_v41  ;;  %v114_v4 = vld [vmem:[%s685_s1 + $0x2e8] sm:$0xff]  ;;  %133 = vst [vmem:[#allocation1] ss:$2 sm:$0xff] %v17_v2  ;;  %v71_v6 = vld [vmem:[%s685_s1 + $0x190] sm:$0xff]  ;;  %v97_v7 = vld [vmem:[%s685_s1 + $0x260] sm:$0xff] }
  0x19   :  { %187 = vmatpush.msra.mxu1 %v41_v40  ;;  %224 = vmatpush.msra.mxu3 %v76_v46  ;;  %v113_v8 = vld [vmem:[%s685_s1 + $0x2e0] sm:$0xff]  ;;  %v20_v9 = vld [vmem:[%s686_s0 + $0x18] sm:$0xf]  ;;  %v127_v10 = vld [vmem:[%s685_s1 + $0x350] sm:$0xff] }
  0x1a   :  { %168 = vmatpush.msra.mxu0 %v24_v43  ;;  %207 = vmatpush.msra.mxu2 %v57_v45  ;;  %v70_v11 = vld [vmem:[%s685_s1 + $0x188] sm:$0xff]  ;;  %139 = vst [vmem:[#allocation1 + $0x30] ss:$2 sm:$0xff] %v20_v9  ;;  %v19_v12 = vld [vmem:[%s686_s0 + $0x10] sm:$0xff]  ;;  %v96_v13 = vld [vmem:[%s685_s1 + $0x258] sm:$0xff] }
  0x1b   :  { %188 = vmatpush.msra.mxu1 %v40_v44  ;;  %225 = vmatpush.msra.mxu3 %v75_v50  ;;  %v112_v14 = vld [vmem:[%s685_s1 + $0x2d8] sm:$0xff]  ;;  %v126_v15 = vld [vmem:[%s685_s1 + $0x348] sm:$0xff]  ;;  %v69_v16 = vld [vmem:[%s685_s1 + $0x180] sm:$0xff]  ;;  %137 = vst [vmem:[#allocation1 + $0x20] ss:$2 sm:$0xff] %v19_v12 }
  0x1c   :  { %169 = vmatpush.msra.mxu0 %v23_v47  ;;  %208 = vmatpush.msra.mxu2 %v56_v49  ;;  %v95_v17 = vld [vmem:[%s685_s1 + $0x250] sm:$0xff]  ;;  %v125_v19 = vld [vmem:[%s685_s1 + $0x340] sm:$0xff]  ;;  %v143_v20 = vld.sshfl [vmem:[#allocation1 + $0x18] sm:$0xff pattern:$0x75316420] }
  0x1d   :  { %189 = vmatpush.msra.mxu1 %v39_v48  ;;  %226 = vmatpush.msra.mxu3 %v74_v54  ;;  %v111_v18 = vld [vmem:[%s685_s1 + $0x2d0] sm:$0xff]  ;;  %v94_v21 = vld [vmem:[%s685_s1 + $0x248] sm:$0xff]  ;;  %v124_v23 = vld [vmem:[%s685_s1 + $0x338] sm:$0xff] }
  0x1e   :  { %170 = vmatpush.msra.mxu0 %v22_v51  ;;  %209 = vmatpush.msra.mxu2 %v55_v53  ;;  %v110_v22 = vld [vmem:[%s685_s1 + $0x2c8] sm:$0xff]  ;;  %v93_v25 = vld [vmem:[%s685_s1 + $0x240] sm:$0xff]  ;;  %v123_v27 = vld [vmem:[%s685_s1 + $0x330] sm:$0xff] }
  0x1f   :  { %190 = vmatpush.msra.mxu1 %v38_v52  ;;  %227 = vmatpush.msra.mxu3 %v73_v61  ;;  %v140_v24 = vld.sshfl [vmem:[#allocation1] sm:$0xff pattern:$0x75316420]  ;;  %v109_v26 = vld [vmem:[%s685_s1 + $0x2c0] sm:$0xff]  ;;  %v92_v29 = vld [vmem:[%s685_s1 + $0x238] sm:$0xff] }
  0x20   :  { %171 = vmatpush.msra.mxu0 %v21_v55  ;;  %210 = vmatpush.msra.mxu2 %v54_v60  ;;  %v141_v28 = vld.sshfl [vmem:[#allocation1 + $0x8] sm:$0xff pattern:$0x75316420]  ;;  %v122_v31 = vld [vmem:[%s685_s1 + $0x328] sm:$0xff]  ;;  %v91_v32 = vld [vmem:[%s685_s1 + $0x230] sm:$0xff] }
  0x21   :  { %191 = vmatpush.msra.mxu1 %v37_v56  ;;  %228 = vmatpush.msra.mxu3 %v72_v1  ;;  %v108_v30 = vld [vmem:[%s685_s1 + $0x2b8] sm:$0xff]  ;;  %v142_v33 = vld.sshfl [vmem:[#allocation1 + $0x10] sm:$0xff pattern:$0x75316420]  ;;  %v107_v34 = vld [vmem:[%s685_s1 + $0x2b0] sm:$0xff] }
  0x22   :  { %236 = vmatpush.msrb.mxu0 %v100_v57  ;;  %211 = vmatpush.msra.mxu2 %v53_v0  ;;  %v121_v35 = vld [vmem:[%s685_s1 + $0x320] sm:$0xff]  ;;  %v90_v36 = vld [vmem:[%s685_s1 + $0x228] sm:$0xff]  ;;  %v120_v38 = vld [vmem:[%s685_s1 + $0x318] sm:$0xff] }
  0x23   :  { %256 = vmatpush.msrb.mxu1 %v116_v58  ;;  %229 = vmatpush.msra.mxu3 %v71_v6  ;;  %v106_v37 = vld [vmem:[%s685_s1 + $0x2a8] sm:$0xff]  ;;  %v89_v39 = vld [vmem:[%s685_s1 + $0x220] sm:$0xff]  ;;  %v119_v41 = vld [vmem:[%s685_s1 + $0x310] sm:$0xff] }
  0x24   :  { %237 = vmatpush.msrb.mxu0 %v99_v62  ;;  %280 = vmatpush.msrb.mxu2 %v128_v5  ;;  %v105_v40 = vld [vmem:[%s685_s1 + $0x2a0] sm:$0xff]  ;;  %v88_v42 = vld [vmem:[%s685_s1 + $0x218] sm:$0xff]  ;;  %v118_v44 = vld [vmem:[%s685_s1 + $0x308] sm:$0xff] }
  0x25   :  { %257 = vmatpush.msrb.mxu1 %v115_v63  ;;  %230 = vmatpush.msra.mxu3 %v70_v11  ;;  %v104_v43 = vld [vmem:[%s685_s1 + $0x298] sm:$0xff]  ;;  %v87_v45 = vld [vmem:[%s685_s1 + $0x210] sm:$0xff]  ;;  %v117_v47 = vld [vmem:[%s685_s1 + $0x300] sm:$0xff] }
  0x26   :  { %238 = vmatpush.msrb.mxu0 %v98_v3  ;;  %281 = vmatpush.msrb.mxu2 %v127_v10  ;;  %v103_v46 = vld [vmem:[%s685_s1 + $0x290] sm:$0xff]  ;;  %v86_v48 = vld [vmem:[%s685_s1 + $0x208] sm:$0xff]  ;;  %v146_v49 = vld.sshfl [vmem:[#allocation1 + $0x30] sm:$0xff pattern:$0x75316420] }
  0x27   :  { %258 = vmatpush.msrb.mxu1 %v114_v4  ;;  %231 = vmatpush.msra.mxu3 %v69_v16  ;;  %v102_v50 = vld [vmem:[%s685_s1 + $0x288] sm:$0xff]  ;;  %v85_v51 = vld [vmem:[%s685_s1 + $0x200] sm:$0xff]  ;;  %v144_v52 = vld.sshfl [vmem:[#allocation1 + $0x20] sm:$0xff pattern:$0x75316420] }
  0x28   :  { %239 = vmatpush.msrb.mxu0 %v97_v7  ;;  %282 = vmatpush.msrb.mxu2 %v126_v15  ;;  %v101_v53 = vld [vmem:[%s685_s1 + $0x280] sm:$0xff]  ;;  %v145_v54 = vld.sshfl [vmem:[#allocation1 + $0x28] sm:$0xff pattern:$0x75316420] }
  0x29   :  { %259 = vmatpush.msrb.mxu1 %v113_v8  ;;  %232 = vmatmul.f32.vlgmr.msra.gmra.mxu3 %v143_v20  ;;  %v313_v3 = vld [vmem:[%s687_s2] ss:$0 sm:$0xff] }
  0x2a   :  { %240 = vmatpush.msrb.mxu0 %v96_v13  ;;  %283 = vmatpush.msrb.mxu2 %v125_v19  ;;  %v314_v5 = vld [vmem:[%s688_s3] ss:$0 sm:$0xff] }
  0x2b   :  { %260 = vmatpush.msrb.mxu1 %v112_v14  ;;  %172 = vmatmul.f32.vlgmr.msra.gmra.mxu0 %v140_v24 }
  0x2c   :  { %241 = vmatpush.msrb.mxu0 %v95_v17  ;;  %284 = vmatpush.msrb.mxu2 %v124_v23 }
  0x2d   :  { %261 = vmatpush.msrb.mxu1 %v111_v18  ;;  %212 = vmatmul.f32.vlgmr.msra.gmra.mxu2 %v142_v33 }
  0x2e   :  { %242 = vmatpush.msrb.mxu0 %v94_v21  ;;  %285 = vmatpush.msrb.mxu2 %v123_v27 }
  0x2f   :  { %262 = vmatpush.msrb.mxu1 %v110_v22 }
  0x30   :  { %243 = vmatpush.msrb.mxu0 %v93_v25  ;;  %192 = vmatmul.f32.vlgmr.msra.gmra.mxu1 %v141_v28 }
  0x31   :  { %263 = vmatpush.msrb.mxu1 %v109_v26  ;;  %286 = vmatpush.msrb.mxu2 %v122_v31 }
  0x32   :  { %244 = vmatpush.msrb.mxu0 %v92_v29 }
  0x33   :  { %264 = vmatpush.msrb.mxu1 %v108_v30  ;;  %287 = vmatpush.msrb.mxu2 %v121_v35 }
  0x34   :  { %245 = vmatpush.msrb.mxu0 %v91_v32 }
  0x35   :  { %265 = vmatpush.msrb.mxu1 %v107_v34  ;;  %288 = vmatpush.msrb.mxu2 %v120_v38 }
  0x36   :  { %246 = vmatpush.msrb.mxu0 %v90_v36 }
  0x37   :  { %266 = vmatpush.msrb.mxu1 %v106_v37  ;;  %289 = vmatpush.msrb.mxu2 %v119_v41 }
  0x38   :  { %247 = vmatpush.msrb.mxu0 %v89_v39 }
  0x39   :  { %267 = vmatpush.msrb.mxu1 %v105_v40  ;;  %290 = vmatpush.msrb.mxu2 %v118_v44 }
  0x3a   :  { %248 = vmatpush.msrb.mxu0 %v88_v42 }
  0x3b   :  { %268 = vmatpush.msrb.mxu1 %v104_v43  ;;  %291 = vmatpush.msrb.mxu2 %v117_v47 }
  0x3c   :  { %249 = vmatpush.msrb.mxu0 %v87_v45  ;;  %312 = vmatmul.msk.f32.vlgmr.msrb.gmra.mxu2 %vm153_vm0, %v146_v49 }
  0x3d   :  { %269 = vmatpush.msrb.mxu1 %v103_v46 }
  0x3e   :  { %250 = vmatpush.msrb.mxu0 %v86_v48 }
  0x3f   :  { %270 = vmatpush.msrb.mxu1 %v102_v50 }
  0x40   :  { %251 = vmatpush.msrb.mxu0 %v85_v51 }
  0x41   :  { %252 = vmatmul.f32.vlgmr.msrb.gmra.mxu0 %v144_v52  ;;  %271 = vmatpush.msrb.mxu1 %v101_v53 }
  0x42   :  { %272 = vmatmul.f32.vlgmr.msrb.gmra.mxu1 %v145_v54 }
  0xa8   :  { %v173_v55 = vpop.f32.mrf.mxu0 }
  0xac   :  { %v233_v60 = vpop.f32.mrf.mxu3 }
  0xad   :  { %v193_v56 = vpop.f32.mrf.mxu1 }
  0xae   :  { %v194_v57 = vadd.f32 %v193_v56, %v173_v55 }
  0xb0   :  { %v213_v58 = vpop.f32.mrf.mxu2 }
  0xb1   :  { %v214_v59 = vadd.f32 %v213_v58, %v194_v57 }
  0xb3   :  { %v234_v61 = vadd.f32 %v233_v60, %v214_v59 }
  0xbe   :  { %v253_v62 = vpop.f32.mrf.mxu0 }
  0xbf   :  { %v254_v63 = vadd.f32 %v253_v62, %v234_v61  ;;  %v273_v0 = vpop.f32.mrf.mxu1  ;;  %v293_v2 = vpop.f32.mrf.mxu2 }
  0xc1   :  { %v274_v1 = vadd.f32 %v273_v0, %v254_v63 }
  0xc3   :  { %v294_v4 = vadd.f32 %v293_v2, %v274_v1 }
  0xc5   :  { %v300_v6 = vmul.f32 %v313_v3, %v294_v4 }
  0xc7   :  { %v305_v7 = vadd.f32 %v314_v5, %v300_v6 }
  0xc9   :  { %v306_v8 = vmax.f32 %v305_v7, 0.0 }
  0xcb   :  { %307 = vst [vmem:[%s689_s4] sm:$0xf] %v306_v8 }

// kernel: forward.20
= control target key start
LH: loop header
LB: loop body
LE: loop exit
PB: predicated region body
PF: predicated region fallthrough
CT: control target
= control target key end

     0   :  { %vm22_vm0 = vcmask 261120   ;;  %s113_s1 = inlined_call_operand.vmem [shape: f32[32,128], index: 1, kind: input, shape index: {}]   ;;  %s114_s2 = inlined_call_operand.vmem [shape: f32[1,128], index: 2, kind: input, shape index: {}]   ;;  %s115_s3 = inlined_call_operand.vmem [shape: f32[1,128], index: 3, kind: input, shape index: {}]   ;;  %s116_s0 = inlined_call_operand.vmem [shape: f32[4,32], index: 0, kind: input, shape index: {}]   ;;  %s117_s4 = inlined_call_operand.vmem [shape: f32[4,128], index: 4, kind: output, shape index: {}]  }
   0x1   :  { %v21_v0 = vld [vmem:[%s113_s1 + $0x18] sm:$0xff]  ;;  %v20_v1 = vld [vmem:[%s113_s1 + $0x10] sm:$0xff]  ;;  %v19_v2 = vld [vmem:[%s113_s1 + $0x8] sm:$0xff] }
   0x2   :  { %38 = vmatpush.msra.mxu0 %v21_v0  ;;  %v18_v3 = vld [vmem:[%s113_s1] sm:$0xff] }
   0x3   :  { %v17_v4 = vld [vmem:[%s116_s0] sm:$0xf] }
   0x4   :  { %39 = vmatpush.msra.mxu0 %v20_v1  ;;  %v62_v5 = vld [vmem:[%s114_s2] ss:$0 sm:$0xff] }
   0x5   :  { %v63_v6 = vld [vmem:[%s115_s3] ss:$0 sm:$0xff] }
   0x6   :  { %40 = vmatpush.msra.mxu0 %v19_v2 }
   0x8   :  { %41 = vmatpush.msra.mxu0 %v18_v3 }
   0x9   :  { %61 = vmatmul.msk.f32.vlgmr.msra.gmra.mxu0 %vm22_vm0, %v17_v4 }
  0x86   :  { %v43_v7 = vpop.f32.mrf.mxu0 }
  0x87   :  { %v50_v8 = vmul.f32 %v62_v5, %v43_v7 }
  0x89   :  { %v55_v9 = vadd.f32 %v63_v6, %v50_v8 }
  0x8b   :  { %56 = vst [vmem:[%s117_s4] sm:$0xf] %v55_v9 }

// kernel: forward.21
= control target key start
LH: loop header
LB: loop body
LE: loop exit
PB: predicated region body
PF: predicated region fallthrough
CT: control target
= control target key end

     0   :  { %vm287_vm0 = vcmask 523264   ;;  %s1308_s1 = inlined_call_operand.vmem [shape: f32[1728,128], index: 1, kind: input, shape index: {}]   ;;  %s1309_s0 = inlined_call_operand.vmem [shape: f32[4,1728], index: 0, kind: input, shape index: {}]   ;;  %s1310_s2 = inlined_call_operand.vmem [shape: f32[1,128], index: 2, kind: input, shape index: {}]   ;;  %s1311_s3 = inlined_call_operand.vmem [shape: f32[1,128], index: 3, kind: input, shape index: {}]   ;;  %s1312_s4 = inlined_call_operand.vmem [shape: f32[4,128], index: 4, kind: input, shape index: {}]   ;;  %s1313_s5 = inlined_call_operand.vmem [shape: f32[4,128], index: 5, kind: output, shape index: {}]  }
   0x1   :  { %v42_v0 = vld [vmem:[%s1308_s1 + $0x78] sm:$0xff]  ;;  %v41_v2 = vld [vmem:[%s1308_s1 + $0x70] sm:$0xff]  ;;  %v40_v6 = vld [vmem:[%s1308_s1 + $0x68] sm:$0xff] }
   0x2   :  { %v74_v1 = vld [vmem:[%s1308_s1 + $0x178] sm:$0xff]  ;;  %290 = vmatpush.msra.mxu0 %v42_v0  ;;  %v73_v4 = vld [vmem:[%s1308_s1 + $0x170] sm:$0xff]  ;;  %v72_v8 = vld [vmem:[%s1308_s1 + $0x168] sm:$0xff] }
   0x3   :  { %330 = vmatpush.msra.mxu2 %v74_v1  ;;  %v58_v3 = vld [vmem:[%s1308_s1 + $0xf8] sm:$0xff]  ;;  %v57_v7 = vld [vmem:[%s1308_s1 + $0xf0] sm:$0xff]  ;;  %v56_v10 = vld [vmem:[%s1308_s1 + $0xe8] sm:$0xff] }
   0x4   :  { %v90_v5 = vld [vmem:[%s1308_s1 + $0x1f8] sm:$0xff]  ;;  %310 = vmatpush.msra.mxu1 %v58_v3  ;;  %291 = vmatpush.msra.mxu0 %v41_v2  ;;  %v89_v9 = vld [vmem:[%s1308_s1 + $0x1f0] sm:$0xff]  ;;  %v39_v11 = vld [vmem:[%s1308_s1 + $0x60] sm:$0xff] }
   0x5   :  { %350 = vmatpush.msra.mxu3 %v90_v5  ;;  %331 = vmatpush.msra.mxu2 %v73_v4  ;;  %v71_v12 = vld [vmem:[%s1308_s1 + $0x160] sm:$0xff]  ;;  %v88_v13 = vld [vmem:[%s1308_s1 + $0x1e8] sm:$0xff]  ;;  %v38_v16 = vld [vmem:[%s1308_s1 + $0x58] sm:$0xff] }
   0x6   :  { %311 = vmatpush.msra.mxu1 %v57_v7  ;;  %292 = vmatpush.msra.mxu0 %v40_v6  ;;  %v55_v14 = vld [vmem:[%s1308_s1 + $0xe0] sm:$0xff]  ;;  %v70_v17 = vld [vmem:[%s1308_s1 + $0x158] sm:$0xff]  ;;  %v37_v20 = vld [vmem:[%s1308_s1 + $0x50] sm:$0xff] }
   0x7   :  { %351 = vmatpush.msra.mxu3 %v89_v9  ;;  %332 = vmatpush.msra.mxu2 %v72_v8  ;;  %v87_v15 = vld [vmem:[%s1308_s1 + $0x1e0] sm:$0xff]  ;;  %v54_v18 = vld [vmem:[%s1308_s1 + $0xd8] sm:$0xff]  ;;  %v69_v21 = vld [vmem:[%s1308_s1 + $0x150] sm:$0xff] }
   0x8   :  { %312 = vmatpush.msra.mxu1 %v56_v10  ;;  %293 = vmatpush.msra.mxu0 %v39_v11  ;;  %v86_v19 = vld [vmem:[%s1308_s1 + $0x1d8] sm:$0xff]  ;;  %v53_v22 = vld [vmem:[%s1308_s1 + $0xd0] sm:$0xff]  ;;  %v36_v24 = vld [vmem:[%s1308_s1 + $0x48] sm:$0xff] }
   0x9   :  { %352 = vmatpush.msra.mxu3 %v88_v13  ;;  %333 = vmatpush.msra.mxu2 %v71_v12  ;;  %v85_v23 = vld [vmem:[%s1308_s1 + $0x1d0] sm:$0xff]  ;;  %v68_v25 = vld [vmem:[%s1308_s1 + $0x148] sm:$0xff]  ;;  %v35_v28 = vld [vmem:[%s1308_s1 + $0x40] sm:$0xff] }
   0xa   :  { %313 = vmatpush.msra.mxu1 %v55_v14  ;;  %294 = vmatpush.msra.mxu0 %v38_v16  ;;  %v52_v26 = vld [vmem:[%s1308_s1 + $0xc8] sm:$0xff]  ;;  %v67_v29 = vld [vmem:[%s1308_s1 + $0x140] sm:$0xff]  ;;  %v34_v32 = vld [vmem:[%s1308_s1 + $0x38] sm:$0xff] }
   0xb   :  { %353 = vmatpush.msra.mxu3 %v87_v15  ;;  %334 = vmatpush.msra.mxu2 %v70_v17  ;;  %v84_v27 = vld [vmem:[%s1308_s1 + $0x1c8] sm:$0xff]  ;;  %v51_v30 = vld [vmem:[%s1308_s1 + $0xc0] sm:$0xff]  ;;  %v66_v33 = vld [vmem:[%s1308_s1 + $0x138] sm:$0xff] }
   0xc   :  { %314 = vmatpush.msra.mxu1 %v54_v18  ;;  %295 = vmatpush.msra.mxu0 %v37_v20  ;;  %v83_v31 = vld [vmem:[%s1308_s1 + $0x1c0] sm:$0xff]  ;;  %v50_v34 = vld [vmem:[%s1308_s1 + $0xb8] sm:$0xff]  ;;  %v33_v36 = vld [vmem:[%s1308_s1 + $0x30] sm:$0xff] }
   0xd   :  { %354 = vmatpush.msra.mxu3 %v86_v19  ;;  %335 = vmatpush.msra.mxu2 %v69_v21  ;;  %v82_v35 = vld [vmem:[%s1308_s1 + $0x1b8] sm:$0xff]  ;;  %v65_v37 = vld [vmem:[%s1308_s1 + $0x130] sm:$0xff]  ;;  %v32_v40 = vld [vmem:[%s1308_s1 + $0x28] sm:$0xff] }
   0xe   :  { %315 = vmatpush.msra.mxu1 %v53_v22  ;;  %296 = vmatpush.msra.mxu0 %v36_v24  ;;  %v49_v38 = vld [vmem:[%s1308_s1 + $0xb0] sm:$0xff]  ;;  %v64_v41 = vld [vmem:[%s1308_s1 + $0x128] sm:$0xff]  ;;  %v31_v44 = vld [vmem:[%s1308_s1 + $0x20] sm:$0xff] }
   0xf   :  { %355 = vmatpush.msra.mxu3 %v85_v23  ;;  %336 = vmatpush.msra.mxu2 %v68_v25  ;;  %v81_v39 = vld [vmem:[%s1308_s1 + $0x1b0] sm:$0xff]  ;;  %v48_v42 = vld [vmem:[%s1308_s1 + $0xa8] sm:$0xff]  ;;  %v63_v45 = vld [vmem:[%s1308_s1 + $0x120] sm:$0xff] }
  0x10   :  { %316 = vmatpush.msra.mxu1 %v52_v26  ;;  %297 = vmatpush.msra.mxu0 %v35_v28  ;;  %v80_v43 = vld [vmem:[%s1308_s1 + $0x1a8] sm:$0xff]  ;;  %v47_v46 = vld [vmem:[%s1308_s1 + $0xa0] sm:$0xff]  ;;  %v30_v48 = vld [vmem:[%s1308_s1 + $0x18] sm:$0xff] }
  0x11   :  { %356 = vmatpush.msra.mxu3 %v84_v27  ;;  %337 = vmatpush.msra.mxu2 %v67_v29  ;;  %v79_v47 = vld [vmem:[%s1308_s1 + $0x1a0] sm:$0xff]  ;;  %v62_v49 = vld [vmem:[%s1308_s1 + $0x118] sm:$0xff]  ;;  %v29_v52 = vld [vmem:[%s1308_s1 + $0x10] sm:$0xff] }
  0x12   :  { %317 = vmatpush.msra.mxu1 %v51_v30  ;;  %298 = vmatpush.msra.mxu0 %v34_v32  ;;  %v46_v50 = vld [vmem:[%s1308_s1 + $0x98] sm:$0xff]  ;;  %v61_v53 = vld [vmem:[%s1308_s1 + $0x110] sm:$0xff]  ;;  %v28_v56 = vld [vmem:[%s1308_s1 + $0x8] sm:$0xff] }
  0x13   :  { %357 = vmatpush.msra.mxu3 %v83_v31  ;;  %338 = vmatpush.msra.mxu2 %v66_v33  ;;  %v78_v51 = vld [vmem:[%s1308_s1 + $0x198] sm:$0xff]  ;;  %v45_v54 = vld [vmem:[%s1308_s1 + $0x90] sm:$0xff]  ;;  %v60_v57 = vld [vmem:[%s1308_s1 + $0x108] sm:$0xff] }
  0x14   :  { %318 = vmatpush.msra.mxu1 %v50_v34  ;;  %299 = vmatpush.msra.mxu0 %v33_v36  ;;  %v77_v55 = vld [vmem:[%s1308_s1 + $0x190] sm:$0xff]  ;;  %v44_v58 = vld [vmem:[%s1308_s1 + $0x88] sm:$0xff]  ;;  %v27_v60 = vld [vmem:[%s1308_s1] sm:$0xff] }
  0x15   :  { %358 = vmatpush.msra.mxu3 %v82_v35  ;;  %339 = vmatpush.msra.mxu2 %v65_v37  ;;  %v76_v59 = vld [vmem:[%s1308_s1 + $0x188] sm:$0xff]  ;;  %v59_v61 = vld [vmem:[%s1308_s1 + $0x100] sm:$0xff]  ;;  %v106_v62 = vld [vmem:[%s1308_s1 + $0x278] sm:$0xff] }
  0x16   :  { %319 = vmatpush.msra.mxu1 %v49_v38  ;;  %300 = vmatpush.msra.mxu0 %v32_v40  ;;  %v138_v63 = vld [vmem:[%s1308_s1 + $0x378] sm:$0xff]  ;;  %v43_v0 = vld [vmem:[%s1308_s1 + $0x80] sm:$0xff]  ;;  %v105_v2 = vld [vmem:[%s1308_s1 + $0x270] sm:$0xff] }
  0x17   :  { %359 = vmatpush.msra.mxu3 %v81_v39  ;;  %340 = vmatpush.msra.mxu2 %v64_v41  ;;  %v75_v1 = vld [vmem:[%s1308_s1 + $0x180] sm:$0xff]  ;;  %v122_v3 = vld [vmem:[%s1308_s1 + $0x2f8] sm:$0xff]  ;;  %v137_v4 = vld [vmem:[%s1308_s1 + $0x370] sm:$0xff] }
  0x18   :  { %320 = vmatpush.msra.mxu1 %v48_v42  ;;  %301 = vmatpush.msra.mxu0 %v31_v44  ;;  %v154_v5 = vld [vmem:[%s1308_s1 + $0x3f8] sm:$0xff]  ;;  %v104_v6 = vld [vmem:[%s1308_s1 + $0x268] sm:$0xff]  ;;  %v121_v7 = vld [vmem:[%s1308_s1 + $0x2f0] sm:$0xff] }
  0x19   :  { %360 = vmatpush.msra.mxu3 %v80_v43  ;;  %341 = vmatpush.msra.mxu2 %v63_v45  ;;  %v136_v8 = vld [vmem:[%s1308_s1 + $0x368] sm:$0xff]  ;;  %v153_v9 = vld [vmem:[%s1308_s1 + $0x3f0] sm:$0xff]  ;;  %v103_v10 = vld [vmem:[%s1308_s1 + $0x260] sm:$0xff] }
  0x1a   :  { %321 = vmatpush.msra.mxu1 %v47_v46  ;;  %302 = vmatpush.msra.mxu0 %v30_v48  ;;  %v120_v11 = vld [vmem:[%s1308_s1 + $0x2e8] sm:$0xff]  ;;  %v135_v12 = vld [vmem:[%s1308_s1 + $0x360] sm:$0xff]  ;;  %v102_v14 = vld [vmem:[%s1308_s1 + $0x258] sm:$0xff] }
  0x1b   :  { %361 = vmatpush.msra.mxu3 %v79_v47  ;;  %342 = vmatpush.msra.mxu2 %v62_v49  ;;  %v152_v13 = vld [vmem:[%s1308_s1 + $0x3e8] sm:$0xff]  ;;  %v119_v15 = vld [vmem:[%s1308_s1 + $0x2e0] sm:$0xff]  ;;  %v134_v16 = vld [vmem:[%s1308_s1 + $0x358] sm:$0xff] }
  0x1c   :  { %322 = vmatpush.msra.mxu1 %v46_v50  ;;  %303 = vmatpush.msra.mxu0 %v29_v52  ;;  %v151_v17 = vld [vmem:[%s1308_s1 + $0x3e0] sm:$0xff]  ;;  %v101_v18 = vld [vmem:[%s1308_s1 + $0x250] sm:$0xff]  ;;  %v118_v19 = vld [vmem:[%s1308_s1 + $0x2d8] sm:$0xff] }
  0x1d   :  { %362 = vmatpush.msra.mxu3 %v78_v51  ;;  %343 = vmatpush.msra.mxu2 %v61_v53  ;;  %v21_v20 = vld [vmem:[%s1309_s0 + $0x8] sm:$0xff]  ;;  %v133_v21 = vld [vmem:[%s1308_s1 + $0x350] sm:$0xff]  ;;  %v150_v22 = vld [vmem:[%s1308_s1 + $0x3d8] sm:$0xff] }
  0x1e   :  { %323 = vmatpush.msra.mxu1 %v45_v54  ;;  %304 = vmatpush.msra.mxu0 %v28_v56  ;;  %v100_v23 = vld [vmem:[%s1308_s1 + $0x248] sm:$0xff]  ;;  %252 = vst [vmem:[#allocation1 + $0x10] ss:$2 sm:$0xff] %v21_v20  ;;  %v117_v24 = vld [vmem:[%s1308_s1 + $0x2d0] sm:$0xff]  ;;  %v20_v26 = vld [vmem:[%s1309_s0] sm:$0xff] }
  0x1f   :  { %363 = vmatpush.msra.mxu3 %v77_v55  ;;  %344 = vmatpush.msra.mxu2 %v60_v57  ;;  %v132_v25 = vld [vmem:[%s1308_s1 + $0x348] sm:$0xff]  ;;  %v149_v27 = vld [vmem:[%s1308_s1 + $0x3d0] sm:$0xff]  ;;  %v99_v28 = vld [vmem:[%s1308_s1 + $0x240] sm:$0xff]  ;;  %250 = vst [vmem:[#allocation1] ss:$2 sm:$0xff] %v20_v26 }
  0x20   :  { %324 = vmatpush.msra.mxu1 %v44_v58  ;;  %305 = vmatpush.msra.mxu0 %v27_v60  ;;  %v116_v29 = vld [vmem:[%s1308_s1 + $0x2c8] sm:$0xff]  ;;  %v131_v30 = vld [vmem:[%s1308_s1 + $0x340] sm:$0xff]  ;;  %v98_v32 = vld [vmem:[%s1308_s1 + $0x238] sm:$0xff] }
  0x21   :  { %364 = vmatpush.msra.mxu3 %v76_v59  ;;  %345 = vmatpush.msra.mxu2 %v59_v61  ;;  %v148_v31 = vld [vmem:[%s1308_s1 + $0x3c8] sm:$0xff]  ;;  %v115_v33 = vld [vmem:[%s1308_s1 + $0x2c0] sm:$0xff]  ;;  %v130_v34 = vld [vmem:[%s1308_s1 + $0x338] sm:$0xff] }
  0x22   :  { %370 = vmatpush.msrb.mxu0 %v106_v62  ;;  %325 = vmatpush.msra.mxu1 %v43_v0  ;;  %v147_v35 = vld [vmem:[%s1308_s1 + $0x3c0] sm:$0xff]  ;;  %v97_v36 = vld [vmem:[%s1308_s1 + $0x230] sm:$0xff]  ;;  %v114_v37 = vld [vmem:[%s1308_s1 + $0x2b8] sm:$0xff] }
  0x23   :  { %410 = vmatpush.msrb.mxu2 %v138_v63  ;;  %365 = vmatpush.msra.mxu3 %v75_v1  ;;  %v25_v38 = vld [vmem:[%s1309_s0 + $0x28] sm:$0xff]  ;;  %v129_v39 = vld [vmem:[%s1308_s1 + $0x330] sm:$0xff]  ;;  %v146_v40 = vld [vmem:[%s1308_s1 + $0x3b8] sm:$0xff] }
  0x24   :  { %371 = vmatpush.msrb.mxu0 %v105_v2  ;;  %390 = vmatpush.msrb.mxu1 %v122_v3  ;;  %v24_v41 = vld [vmem:[%s1309_s0 + $0x20] sm:$0xff]  ;;  %v96_v42 = vld [vmem:[%s1308_s1 + $0x228] sm:$0xff]  ;;  %v113_v45 = vld [vmem:[%s1308_s1 + $0x2b0] sm:$0xff] }
  0x25   :  { %411 = vmatpush.msrb.mxu2 %v137_v4  ;;  %430 = vmatpush.msrb.mxu3 %v154_v5  ;;  %v259_v43 = vld.sshfl [vmem:[#allocation1 + $0x10] sm:$0xff pattern:$0x75316420]  ;;  %v942_v44 = vld.sshfl [vmem:[#allocation1 + $0x18] sm:$0xff pattern:$0x75316420] }
  0x26   :  { %372 = vmatpush.msrb.mxu0 %v104_v6  ;;  %391 = vmatpush.msrb.mxu1 %v121_v7  ;;  %266 = vst [vmem:[#allocation1 + $0x10] ss:$2 sm:$0xff] %v25_v38  ;;  %v23_v46 = vld [vmem:[%s1309_s0 + $0x18] sm:$0xff]  ;;  %v22_v47 = vld [vmem:[%s1309_s0 + $0x10] sm:$0xff]  ;;  %v128_v50 = vld [vmem:[%s1308_s1 + $0x328] sm:$0xff] }
  0x27   :  { %412 = vmatpush.msrb.mxu2 %v136_v8  ;;  %431 = vmatpush.msrb.mxu3 %v153_v9  ;;  %v257_v48 = vld.sshfl [vmem:[#allocation1] sm:$0xff pattern:$0x75316420]  ;;  %v953_v49 = vld.sshfl [vmem:[#allocation1 + $0x8] sm:$0xff pattern:$0x75316420] }
  0x28   :  { %373 = vmatpush.msrb.mxu0 %v103_v10  ;;  %392 = vmatpush.msrb.mxu1 %v120_v11  ;;  %v145_v51 = vld [vmem:[%s1308_s1 + $0x3b0] sm:$0xff]  ;;  %265 = vst [vmem:[#allocation1] ss:$2 sm:$0xff] %v24_v41  ;;  %v95_v52 = vld [vmem:[%s1308_s1 + $0x220] sm:$0xff]  ;;  %v112_v53 = vld [vmem:[%s1308_s1 + $0x2a8] sm:$0xff] }
  0x29   :  { %413 = vmatpush.msrb.mxu2 %v135_v12  ;;  %432 = vmatpush.msrb.mxu3 %v152_v13  ;;  %256 = vst [vmem:[#allocation1 + $0x30] ss:$2 sm:$0xff] %v23_v46  ;;  %v127_v54 = vld [vmem:[%s1308_s1 + $0x320] sm:$0xff]  ;;  %v144_v55 = vld [vmem:[%s1308_s1 + $0x3a8] sm:$0xff]  ;;  %v94_v56 = vld [vmem:[%s1308_s1 + $0x218] sm:$0xff] }
  0x2a   :  { %374 = vmatpush.msrb.mxu0 %v102_v14  ;;  %393 = vmatpush.msrb.mxu1 %v119_v15  ;;  %254 = vst [vmem:[#allocation1 + $0x20] ss:$2 sm:$0xff] %v22_v47  ;;  %v111_v57 = vld [vmem:[%s1308_s1 + $0x2a0] sm:$0xff]  ;;  %v126_v58 = vld [vmem:[%s1308_s1 + $0x318] sm:$0xff]  ;;  %v93_v60 = vld [vmem:[%s1308_s1 + $0x210] sm:$0xff] }
  0x2b   :  { %414 = vmatpush.msrb.mxu2 %v134_v16  ;;  %433 = vmatpush.msrb.mxu3 %v151_v17  ;;  %v143_v59 = vld [vmem:[%s1308_s1 + $0x3a0] sm:$0xff]  ;;  %v110_v61 = vld [vmem:[%s1308_s1 + $0x298] sm:$0xff]  ;;  %v125_v62 = vld [vmem:[%s1308_s1 + $0x310] sm:$0xff] }
  0x2c   :  { %375 = vmatpush.msrb.mxu0 %v101_v18  ;;  %394 = vmatpush.msrb.mxu1 %v118_v19  ;;  %v142_v63 = vld [vmem:[%s1308_s1 + $0x398] sm:$0xff]  ;;  %v92_v0 = vld [vmem:[%s1308_s1 + $0x208] sm:$0xff]  ;;  %v26_v1 = vld [vmem:[%s1309_s0 + $0x30] sm:$0xff] }
  0x2d   :  { %415 = vmatpush.msrb.mxu2 %v133_v21  ;;  %434 = vmatpush.msrb.mxu3 %v150_v22  ;;  %v109_v2 = vld [vmem:[%s1308_s1 + $0x290] sm:$0xff]  ;;  %v124_v3 = vld [vmem:[%s1308_s1 + $0x308] sm:$0xff]  ;;  %v91_v7 = vld [vmem:[%s1308_s1 + $0x200] sm:$0xff] }
  0x2e   :  { %376 = vmatpush.msrb.mxu0 %v100_v23  ;;  %395 = vmatpush.msrb.mxu1 %v117_v24  ;;  %v141_v4 = vld [vmem:[%s1308_s1 + $0x390] sm:$0xff]  ;;  %v108_v8 = vld [vmem:[%s1308_s1 + $0x288] sm:$0xff]  ;;  %v123_v9 = vld [vmem:[%s1308_s1 + $0x300] sm:$0xff] }
  0x2f   :  { %416 = vmatpush.msrb.mxu2 %v132_v25  ;;  %435 = vmatpush.msrb.mxu3 %v149_v27  ;;  %v140_v10 = vld [vmem:[%s1308_s1 + $0x388] sm:$0xff]  ;;  %v170_v11 = vld [vmem:[%s1308_s1 + $0x478] sm:$0xff]  ;;  %v107_v13 = vld [vmem:[%s1308_s1 + $0x280] sm:$0xff] }
  0x30   :  { %377 = vmatpush.msrb.mxu0 %v99_v28  ;;  %396 = vmatpush.msrb.mxu1 %v116_v29  ;;  %v202_v12 = vld [vmem:[%s1308_s1 + $0x578] sm:$0xff]  ;;  %v139_v14 = vld [vmem:[%s1308_s1 + $0x380] sm:$0xff]  ;;  %v169_v15 = vld [vmem:[%s1308_s1 + $0x470] sm:$0xff] }
  0x31   :  { %417 = vmatpush.msrb.mxu2 %v131_v30  ;;  %436 = vmatpush.msrb.mxu3 %v148_v31  ;;  %v261_v5 = vld.sshfl [vmem:[#allocation1 + $0x20] sm:$0xff pattern:$0x75316420]  ;;  %v262_v6 = vld.sshfl [vmem:[#allocation1 + $0x28] sm:$0xff pattern:$0x75316420] }
  0x32   :  { %378 = vmatpush.msrb.mxu0 %v98_v32  ;;  %397 = vmatpush.msrb.mxu1 %v115_v33  ;;  %267 = vst [vmem:[#allocation1 + $0x20] ss:$2 sm:$0xff] %v26_v1  ;;  %v186_v16 = vld [vmem:[%s1308_s1 + $0x4f8] sm:$0xff]  ;;  %v201_v17 = vld [vmem:[%s1308_s1 + $0x570] sm:$0xff]  ;;  %v168_v20 = vld [vmem:[%s1308_s1 + $0x468] sm:$0xff] }
  0x33   :  { %418 = vmatpush.msrb.mxu2 %v130_v34  ;;  %437 = vmatpush.msrb.mxu3 %v147_v35  ;;  %v218_v18 = vld [vmem:[%s1308_s1 + $0x5f8] sm:$0xff]  ;;  %v263_v19 = vld.sshfl [vmem:[#allocation1 + $0x30] sm:$0xff pattern:$0x75316420]  ;;  %v185_v21 = vld [vmem:[%s1308_s1 + $0x4f0] sm:$0xff] }
  0x34   :  { %379 = vmatpush.msrb.mxu0 %v97_v36  ;;  %398 = vmatpush.msrb.mxu1 %v114_v37  ;;  %v200_v22 = vld [vmem:[%s1308_s1 + $0x568] sm:$0xff]  ;;  %v217_v23 = vld [vmem:[%s1308_s1 + $0x5f0] sm:$0xff]  ;;  %v167_v25 = vld [vmem:[%s1308_s1 + $0x460] sm:$0xff] }
  0x35   :  { %419 = vmatpush.msrb.mxu2 %v129_v39  ;;  %438 = vmatpush.msrb.mxu3 %v146_v40  ;;  %v264_v24 = vld.sshfl [vmem:[#allocation1 + $0x38] sm:$0xff pattern:$0x75316420]  ;;  %v199_v27 = vld [vmem:[%s1308_s1 + $0x560] sm:$0xff]  ;;  %v166_v29 = vld [vmem:[%s1308_s1 + $0x458] sm:$0xff] }
  0x36   :  { %380 = vmatpush.msrb.mxu0 %v96_v42  ;;  %399 = vmatpush.msrb.mxu1 %v113_v45  ;;  %v184_v26 = vld [vmem:[%s1308_s1 + $0x4e8] sm:$0xff]  ;;  %v183_v30 = vld [vmem:[%s1308_s1 + $0x4e0] sm:$0xff]  ;;  %v198_v31 = vld [vmem:[%s1308_s1 + $0x558] sm:$0xff] }
  0x37   :  { %420 = vmatpush.msrb.mxu2 %v128_v50  ;;  %439 = vmatpush.msrb.mxu3 %v145_v51  ;;  %v216_v28 = vld [vmem:[%s1308_s1 + $0x5e8] sm:$0xff]  ;;  %v215_v32 = vld [vmem:[%s1308_s1 + $0x5e0] sm:$0xff]  ;;  %v165_v33 = vld [vmem:[%s1308_s1 + $0x450] sm:$0xff] }
  0x38   :  { %381 = vmatpush.msrb.mxu0 %v95_v52  ;;  %400 = vmatpush.msrb.mxu1 %v112_v53  ;;  %v182_v34 = vld [vmem:[%s1308_s1 + $0x4d8] sm:$0xff]  ;;  %v197_v35 = vld [vmem:[%s1308_s1 + $0x550] sm:$0xff]  ;;  %v164_v37 = vld [vmem:[%s1308_s1 + $0x448] sm:$0xff] }
  0x39   :  { %421 = vmatpush.msrb.mxu2 %v127_v54  ;;  %440 = vmatpush.msrb.mxu3 %v144_v55  ;;  %v214_v36 = vld [vmem:[%s1308_s1 + $0x5d8] sm:$0xff]  ;;  %v181_v38 = vld [vmem:[%s1308_s1 + $0x4d0] sm:$0xff]  ;;  %v196_v39 = vld [vmem:[%s1308_s1 + $0x548] sm:$0xff] }
  0x3a   :  { %382 = vmatpush.msrb.mxu0 %v94_v56  ;;  %401 = vmatpush.msrb.mxu1 %v111_v57  ;;  %v213_v40 = vld [vmem:[%s1308_s1 + $0x5d0] sm:$0xff]  ;;  %v163_v41 = vld [vmem:[%s1308_s1 + $0x440] sm:$0xff]  ;;  %v180_v42 = vld [vmem:[%s1308_s1 + $0x4c8] sm:$0xff] }
  0x3b   :  { %422 = vmatpush.msrb.mxu2 %v126_v58  ;;  %441 = vmatpush.msrb.mxu3 %v143_v59  ;;  %v162_v45 = vld [vmem:[%s1308_s1 + $0x438] sm:$0xff]  ;;  %v179_v46 = vld [vmem:[%s1308_s1 + $0x4c0] sm:$0xff]  ;;  %v193_v51 = vld [vmem:[%s1308_s1 + $0x530] sm:$0xff] }
  0x3c   :  { %383 = vmatpush.msrb.mxu0 %v93_v60  ;;  %402 = vmatpush.msrb.mxu1 %v110_v61  ;;  %v194_v47 = vld [vmem:[%s1308_s1 + $0x538] sm:$0xff]  ;;  %v160_v53 = vld [vmem:[%s1308_s1 + $0x428] sm:$0xff]  ;;  %v177_v54 = vld [vmem:[%s1308_s1 + $0x4b0] sm:$0xff] }
  0x3d   :  { %423 = vmatpush.msrb.mxu2 %v125_v62  ;;  %442 = vmatpush.msrb.mxu3 %v142_v63  ;;  %v178_v50 = vld [vmem:[%s1308_s1 + $0x4b8] sm:$0xff]  ;;  %v192_v55 = vld [vmem:[%s1308_s1 + $0x528] sm:$0xff]  ;;  %v209_v56 = vld [vmem:[%s1308_s1 + $0x5b0] sm:$0xff] }
  0x3e   :  { %346 = vmatmul.f32.vlgmr.msra.gmra.mxu2 %v259_v43  ;;  %384 = vmatpush.msrb.mxu0 %v92_v0  ;;  %v195_v43 = vld [vmem:[%s1308_s1 + $0x540] sm:$0xff]  ;;  %v210_v52 = vld [vmem:[%s1308_s1 + $0x5b8] sm:$0xff]  ;;  %v176_v58 = vld [vmem:[%s1308_s1 + $0x4a8] sm:$0xff] }
  0x3f   :  { %403 = vmatpush.msrb.mxu1 %v109_v2  ;;  %424 = vmatpush.msrb.mxu2 %v124_v3  ;;  %v159_v57 = vld [vmem:[%s1308_s1 + $0x420] sm:$0xff]  ;;  %v208_v60 = vld [vmem:[%s1308_s1 + $0x5a8] sm:$0xff]  ;;  %v158_v61 = vld [vmem:[%s1308_s1 + $0x418] sm:$0xff] }
  0x40   :  { %443 = vmatpush.msrb.mxu3 %v141_v4  ;;  %306 = vmatmul.f32.vlgmr.msra.gmra.mxu0 %v257_v48  ;;  %v211_v48 = vld [vmem:[%s1308_s1 + $0x5c0] sm:$0xff]  ;;  %v190_v63 = vld [vmem:[%s1308_s1 + $0x518] sm:$0xff]  ;;  %v157_v1 = vld [vmem:[%s1308_s1 + $0x410] sm:$0xff] }
  0x41   :  { %366 = vmatmul.f32.vlgmr.msra.gmra.mxu3 %v942_v44  ;;  %385 = vmatpush.msrb.mxu0 %v91_v7  ;;  %v212_v44 = vld [vmem:[%s1308_s1 + $0x5c8] sm:$0xff]  ;;  %v191_v59 = vld [vmem:[%s1308_s1 + $0x520] sm:$0xff]  ;;  %v174_v2 = vld [vmem:[%s1308_s1 + $0x498] sm:$0xff] }
  0x42   :  { %404 = vmatpush.msrb.mxu1 %v108_v8  ;;  %425 = vmatpush.msrb.mxu2 %v123_v9  ;;  %v175_v62 = vld [vmem:[%s1308_s1 + $0x4a0] sm:$0xff]  ;;  %v189_v3 = vld [vmem:[%s1308_s1 + $0x510] sm:$0xff]  ;;  %v206_v4 = vld [vmem:[%s1308_s1 + $0x598] sm:$0xff] }
  0x43   :  { %444 = vmatpush.msrb.mxu3 %v140_v10  ;;  %326 = vmatmul.f32.vlgmr.msra.gmra.mxu1 %v953_v49  ;;  %v161_v49 = vld [vmem:[%s1308_s1 + $0x430] sm:$0xff]  ;;  %v207_v0 = vld [vmem:[%s1308_s1 + $0x5a0] sm:$0xff]  ;;  %v188_v7 = vld [vmem:[%s1308_s1 + $0x508] sm:$0xff] }
  0x44   :  { %450 = vmatpush.msra.mxu0 %v170_v11  ;;  %490 = vmatpush.msra.mxu2 %v202_v12  ;;  %v205_v8 = vld [vmem:[%s1308_s1 + $0x590] sm:$0xff]  ;;  %v155_v9 = vld [vmem:[%s1308_s1 + $0x400] sm:$0xff]  ;;  %v172_v10 = vld [vmem:[%s1308_s1 + $0x488] sm:$0xff] }
  0x45   :  { %405 = vmatpush.msrb.mxu1 %v107_v13  ;;  %445 = vmatpush.msrb.mxu3 %v139_v14  ;;  %v187_v11 = vld [vmem:[%s1308_s1 + $0x500] sm:$0xff]  ;;  %v204_v12 = vld [vmem:[%s1308_s1 + $0x588] sm:$0xff]  ;;  %v268_v13 = vld.sshfl [vmem:[#allocation1] sm:$0xff pattern:$0x75316420] }
  0x46   :  { %451 = vmatpush.msra.mxu0 %v169_v15  ;;  %491 = vmatpush.msra.mxu2 %v201_v17  ;;  %v270_v14 = vld.sshfl [vmem:[#allocation1 + $0x10] sm:$0xff pattern:$0x75316420]  ;;  %v234_v15 = vld [vmem:[%s1308_s1 + $0x678] sm:$0xff] }
  0x47   :  { %470 = vmatpush.msra.mxu1 %v186_v16  ;;  %510 = vmatpush.msra.mxu3 %v218_v18  ;;  %v171_v16 = vld [vmem:[%s1308_s1 + $0x480] sm:$0xff]  ;;  %v269_v18 = vld.sshfl [vmem:[#allocation1 + $0x8] sm:$0xff pattern:$0x75316420] }
  0x48   :  { %426 = vmatmul.f32.vlgmr.msrb.gmra.mxu2 %v263_v19  ;;  %452 = vmatpush.msra.mxu0 %v168_v20  ;;  %v203_v17 = vld [vmem:[%s1308_s1 + $0x580] sm:$0xff]  ;;  %v271_v19 = vld.sshfl [vmem:[#allocation1 + $0x18] sm:$0xff pattern:$0x75316420]  ;;  %v233_v20 = vld [vmem:[%s1308_s1 + $0x670] sm:$0xff] }
  0x49   :  { %471 = vmatpush.msra.mxu1 %v185_v21  ;;  %492 = vmatpush.msra.mxu2 %v200_v22  ;;  %v242_v21 = vld [vmem:[%s1308_s1 + $0x6b8] sm:$0xff]  ;;  %v232_v22 = vld [vmem:[%s1308_s1 + $0x668] sm:$0xff] }
  0x4a   :  { %511 = vmatpush.msra.mxu3 %v217_v23  ;;  %386 = vmatmul.f32.vlgmr.msrb.gmra.mxu0 %v261_v5  ;;  %v156_v5 = vld [vmem:[%s1308_s1 + $0x408] sm:$0xff]  ;;  %v241_v23 = vld [vmem:[%s1308_s1 + $0x6b0] sm:$0xff] }
  0x4b   :  { %446 = vmatmul.f32.vlgmr.msrb.gmra.mxu3 %v264_v24  ;;  %453 = vmatpush.msra.mxu0 %v167_v25  ;;  %v231_v24 = vld [vmem:[%s1308_s1 + $0x660] sm:$0xff]  ;;  %v240_v25 = vld [vmem:[%s1308_s1 + $0x6a8] sm:$0xff] }
  0x4c   :  { %472 = vmatpush.msra.mxu1 %v184_v26  ;;  %493 = vmatpush.msra.mxu2 %v199_v27  ;;  %v230_v26 = vld [vmem:[%s1308_s1 + $0x658] sm:$0xff]  ;;  %v239_v27 = vld [vmem:[%s1308_s1 + $0x6a0] sm:$0xff] }
  0x4d   :  { %512 = vmatpush.msra.mxu3 %v216_v28  ;;  %406 = vmatmul.f32.vlgmr.msrb.gmra.mxu1 %v262_v6  ;;  %v173_v6 = vld [vmem:[%s1308_s1 + $0x490] sm:$0xff] }
  0x4e   :  { %454 = vmatpush.msra.mxu0 %v166_v29  ;;  %473 = vmatpush.msra.mxu1 %v183_v30  ;;  %v229_v28 = vld [vmem:[%s1308_s1 + $0x650] sm:$0xff]  ;;  %v238_v29 = vld [vmem:[%s1308_s1 + $0x698] sm:$0xff]  ;;  %v228_v30 = vld [vmem:[%s1308_s1 + $0x648] sm:$0xff] }
  0x4f   :  { %494 = vmatpush.msra.mxu2 %v198_v31  ;;  %513 = vmatpush.msra.mxu3 %v215_v32  ;;  %v237_v31 = vld [vmem:[%s1308_s1 + $0x690] sm:$0xff]  ;;  %v227_v32 = vld [vmem:[%s1308_s1 + $0x640] sm:$0xff] }
  0x50   :  { %455 = vmatpush.msra.mxu0 %v165_v33  ;;  %474 = vmatpush.msra.mxu1 %v182_v34  ;;  %v236_v33 = vld [vmem:[%s1308_s1 + $0x688] sm:$0xff]  ;;  %v226_v34 = vld [vmem:[%s1308_s1 + $0x638] sm:$0xff] }
  0x51   :  { %495 = vmatpush.msra.mxu2 %v197_v35  ;;  %514 = vmatpush.msra.mxu3 %v214_v36  ;;  %v235_v35 = vld [vmem:[%s1308_s1 + $0x680] sm:$0xff]  ;;  %v225_v36 = vld [vmem:[%s1308_s1 + $0x630] sm:$0xff] }
  0x52   :  { %456 = vmatpush.msra.mxu0 %v164_v37  ;;  %475 = vmatpush.msra.mxu1 %v181_v38  ;;  %v273_v37 = vld.sshfl [vmem:[#allocation1 + $0x28] sm:$0xff pattern:$0x75316420]  ;;  %v224_v38 = vld [vmem:[%s1308_s1 + $0x628] sm:$0xff] }
  0x53   :  { %496 = vmatpush.msra.mxu2 %v196_v39  ;;  %515 = vmatpush.msra.mxu3 %v213_v40  ;;  %v223_v39 = vld [vmem:[%s1308_s1 + $0x620] sm:$0xff]  ;;  %v222_v40 = vld [vmem:[%s1308_s1 + $0x618] sm:$0xff] }
  0x54   :  { %457 = vmatpush.msra.mxu0 %v163_v41  ;;  %476 = vmatpush.msra.mxu1 %v180_v42  ;;  %v221_v41 = vld [vmem:[%s1308_s1 + $0x610] sm:$0xff]  ;;  %v220_v42 = vld [vmem:[%s1308_s1 + $0x608] sm:$0xff] }
  0x55   :  { %497 = vmatpush.msra.mxu2 %v195_v43  ;;  %516 = vmatpush.msra.mxu3 %v212_v44  ;;  %v219_v43 = vld [vmem:[%s1308_s1 + $0x600] sm:$0xff]  ;;  %v272_v44 = vld.sshfl [vmem:[#allocation1 + $0x20] sm:$0xff pattern:$0x75316420] }
  0x56   :  { %458 = vmatpush.msra.mxu0 %v162_v45  ;;  %477 = vmatpush.msra.mxu1 %v179_v46 }
  0x57   :  { %498 = vmatpush.msra.mxu2 %v194_v47  ;;  %517 = vmatpush.msra.mxu3 %v211_v48 }
  0x58   :  { %459 = vmatpush.msra.mxu0 %v161_v49  ;;  %478 = vmatpush.msra.mxu1 %v178_v50 }
  0x59   :  { %499 = vmatpush.msra.mxu2 %v193_v51  ;;  %518 = vmatpush.msra.mxu3 %v210_v52 }
  0x5a   :  { %460 = vmatpush.msra.mxu0 %v160_v53  ;;  %479 = vmatpush.msra.mxu1 %v177_v54 }
  0x5b   :  { %500 = vmatpush.msra.mxu2 %v192_v55  ;;  %519 = vmatpush.msra.mxu3 %v209_v56 }
  0x5c   :  { %461 = vmatpush.msra.mxu0 %v159_v57  ;;  %480 = vmatpush.msra.mxu1 %v176_v58 }
  0x5d   :  { %501 = vmatpush.msra.mxu2 %v191_v59  ;;  %520 = vmatpush.msra.mxu3 %v208_v60 }
  0x5e   :  { %462 = vmatpush.msra.mxu0 %v158_v61  ;;  %481 = vmatpush.msra.mxu1 %v175_v62 }
  0x5f   :  { %502 = vmatpush.msra.mxu2 %v190_v63  ;;  %521 = vmatpush.msra.mxu3 %v207_v0 }
  0x60   :  { %463 = vmatpush.msra.mxu0 %v157_v1  ;;  %482 = vmatpush.msra.mxu1 %v174_v2 }
  0x61   :  { %503 = vmatpush.msra.mxu2 %v189_v3  ;;  %522 = vmatpush.msra.mxu3 %v206_v4 }
  0x62   :  { %464 = vmatpush.msra.mxu0 %v156_v5  ;;  %483 = vmatpush.msra.mxu1 %v173_v6 }
  0x63   :  { %504 = vmatpush.msra.mxu2 %v188_v7  ;;  %523 = vmatpush.msra.mxu3 %v205_v8  ;;  %v589_v7 = vld [vmem:[%s1310_s2] ss:$0 sm:$0xff] }
  0x64   :  { %465 = vmatpush.msra.mxu0 %v155_v9  ;;  %484 = vmatpush.msra.mxu1 %v172_v10  ;;  %v590_v9 = vld [vmem:[%s1311_s3] ss:$0 sm:$0xff] }
  0x65   :  { %505 = vmatpush.msra.mxu2 %v187_v11  ;;  %524 = vmatpush.msra.mxu3 %v204_v12  ;;  %v580_v11 = vld [vmem:[%s1312_s4] sm:$0xf] }
  0x66   :  { %466 = vmatmul.f32.vlgmr.msra.gmra.mxu0 %v268_v13  ;;  %506 = vmatmul.f32.vlgmr.msra.gmra.mxu2 %v270_v14 }
  0x67   :  { %530 = vmatpush.msrb.mxu0 %v234_v15  ;;  %485 = vmatpush.msra.mxu1 %v171_v16 }
  0x68   :  { %525 = vmatpush.msra.mxu3 %v203_v17  ;;  %486 = vmatmul.f32.vlgmr.msra.gmra.mxu1 %v269_v18 }
  0x69   :  { %526 = vmatmul.f32.vlgmr.msra.gmra.mxu3 %v271_v19  ;;  %531 = vmatpush.msrb.mxu0 %v233_v20 }
  0x6a   :  { %558 = vmatpush.msrb.mxu1 %v242_v21 }
  0x6b   :  { %532 = vmatpush.msrb.mxu0 %v232_v22 }
  0x6c   :  { %559 = vmatpush.msrb.mxu1 %v241_v23 }
  0x6d   :  { %533 = vmatpush.msrb.mxu0 %v231_v24 }
  0x6e   :  { %560 = vmatpush.msrb.mxu1 %v240_v25 }
  0x6f   :  { %534 = vmatpush.msrb.mxu0 %v230_v26 }
  0x70   :  { %561 = vmatpush.msrb.mxu1 %v239_v27 }
  0x71   :  { %535 = vmatpush.msrb.mxu0 %v229_v28 }
  0x72   :  { %562 = vmatpush.msrb.mxu1 %v238_v29 }
  0x73   :  { %536 = vmatpush.msrb.mxu0 %v228_v30 }
  0x74   :  { %563 = vmatpush.msrb.mxu1 %v237_v31 }
  0x75   :  { %537 = vmatpush.msrb.mxu0 %v227_v32 }
  0x76   :  { %564 = vmatpush.msrb.mxu1 %v236_v33 }
  0x77   :  { %538 = vmatpush.msrb.mxu0 %v226_v34 }
  0x78   :  { %565 = vmatpush.msrb.mxu1 %v235_v35 }
  0x79   :  { %539 = vmatpush.msrb.mxu0 %v225_v36  ;;  %588 = vmatmul.msk.f32.vlgmr.msrb.gmra.mxu1 %vm287_vm0, %v273_v37 }
  0x7b   :  { %540 = vmatpush.msrb.mxu0 %v224_v38 }
  0x7d   :  { %541 = vmatpush.msrb.mxu0 %v223_v39 }
  0x7f   :  { %542 = vmatpush.msrb.mxu0 %v222_v40 }
  0x81   :  { %543 = vmatpush.msrb.mxu0 %v221_v41 }
  0x83   :  { %544 = vmatpush.msrb.mxu0 %v220_v42 }
  0x85   :  { %545 = vmatpush.msrb.mxu0 %v219_v43 }
  0x86   :  { %546 = vmatmul.f32.vlgmr.msrb.gmra.mxu0 %v272_v44 }
  0xbd   :  { %v307_v46 = vpop.f32.mrf.mxu0 }
  0xc0   :  { %v327_v45 = vpop.f32.mrf.mxu1 }
  0xc1   :  { %v328_v47 = vadd.f32 %v327_v45, %v307_v46  ;;  %v347_v48 = vpop.f32.mrf.mxu2 }
  0xc3   :  { %v348_v49 = vadd.f32 %v347_v48, %v328_v47 }
  0xc4   :  { %v367_v50 = vpop.f32.mrf.mxu3 }
  0xc5   :  { %v368_v51 = vadd.f32 %v367_v50, %v348_v49 }
  0xc7   :  { %v387_v52 = vpop.f32.mrf.mxu0 }
  0xc8   :  { %v388_v53 = vadd.f32 %v387_v52, %v368_v51 }
  0xca   :  { %v407_v54 = vpop.f32.mrf.mxu1 }
  0xcb   :  { %v408_v55 = vadd.f32 %v407_v54, %v388_v53  ;;  %v427_v56 = vpop.f32.mrf.mxu2 }
  0xcd   :  { %v428_v57 = vadd.f32 %v427_v56, %v408_v55 }
  0xce   :  { %v447_v58 = vpop.f32.mrf.mxu3 }
  0xcf   :  { %v448_v60 = vadd.f32 %v447_v58, %v428_v57 }
  0xe3   :  { %v467_v59 = vpop.f32.mrf.mxu0 }
  0xe4   :  { %v468_v61 = vadd.f32 %v467_v59, %v448_v60 }
  0xe5   :  { %v487_v62 = vpop.f32.mrf.mxu1 }
  0xe6   :  { %v488_v0 = vadd.f32 %v487_v62, %v468_v61 }
  0xe9   :  { %v507_v63 = vpop.f32.mrf.mxu2 }
  0xea   :  { %v508_v1 = vadd.f32 %v507_v63, %v488_v0 }
  0xec   :  { %v527_v2 = vpop.f32.mrf.mxu3 }
  0xed   :  { %v528_v3 = vadd.f32 %v527_v2, %v508_v1 }
  0xf6   :  { %v567_v5 = vpop.f32.mrf.mxu1 }
 0x103   :  { %v547_v4 = vpop.f32.mrf.mxu0 }
 0x104   :  { %v548_v6 = vadd.f32 %v547_v4, %v528_v3 }
 0x106   :  { %v568_v8 = vadd.f32 %v567_v5, %v548_v6 }
 0x108   :  { %v574_v10 = vmul.f32 %v589_v7, %v568_v8 }
 0x10a   :  { %v579_v12 = vadd.f32 %v590_v9, %v574_v10 }
 0x10c   :  { %v581_v13 = vadd.f32 %v580_v11, %v579_v12 }
 0x10e   :  { %v582_v14 = vmax.f32 %v581_v13, 0.0 }
 0x110   :  { %583 = vst [vmem:[%s1313_s5] sm:$0xf] %v582_v14 }

// kernel: forward.22
= control target key start
LH: loop header
LB: loop body
LE: loop exit
PB: predicated region body
PF: predicated region fallthrough
CT: control target
= control target key end

     0   :  { %vm26_vm0 = vcmask 523264   ;;  %s129_s1 = inlined_call_operand.vmem [shape: f32[64,128], index: 1, kind: input, shape index: {}]   ;;  %s130_s2 = inlined_call_operand.vmem [shape: f32[1,128], index: 2, kind: input, shape index: {}]   ;;  %s131_s3 = inlined_call_operand.vmem [shape: f32[1,128], index: 3, kind: input, shape index: {}]   ;;  %s132_s0 = inlined_call_operand.vmem [shape: f32[2,64], index: 0, kind: input, shape index: {}]   ;;  %s133_s4 = inlined_call_operand.vmem [shape: f32[2,128], index: 4, kind: output, shape index: {}]  }
   0x1   :  { %v25_v0 = vld [vmem:[%s129_s1 + $0x38] sm:$0xff]  ;;  %v24_v1 = vld [vmem:[%s129_s1 + $0x30] sm:$0xff]  ;;  %v23_v2 = vld [vmem:[%s129_s1 + $0x28] sm:$0xff] }
   0x2   :  { %38 = vmatpush.msra.mxu0 %v25_v0  ;;  %v22_v3 = vld [vmem:[%s129_s1 + $0x20] sm:$0xff]  ;;  %v21_v4 = vld [vmem:[%s129_s1 + $0x18] sm:$0xff]  ;;  %v20_v5 = vld [vmem:[%s129_s1 + $0x10] sm:$0xff] }
   0x3   :  { %v19_v6 = vld [vmem:[%s129_s1 + $0x8] sm:$0xff]  ;;  %v18_v7 = vld [vmem:[%s129_s1] sm:$0xff] }
   0x4   :  { %39 = vmatpush.msra.mxu0 %v24_v1  ;;  %v17_v8 = vld [vmem:[%s132_s0] sm:$0x3] }
   0x5   :  { %v66_v9 = vld [vmem:[%s130_s2] ss:$0 sm:$0xff] }
   0x6   :  { %40 = vmatpush.msra.mxu0 %v23_v2  ;;  %v67_v10 = vld [vmem:[%s131_s3] ss:$0 sm:$0xff] }
   0x8   :  { %41 = vmatpush.msra.mxu0 %v22_v3 }
   0xa   :  { %42 = vmatpush.msra.mxu0 %v21_v4 }
   0xc   :  { %43 = vmatpush.msra.mxu0 %v20_v5 }
   0xe   :  { %44 = vmatpush.msra.mxu0 %v19_v6 }
  0x10   :  { %45 = vmatpush.msra.mxu0 %v18_v7 }
  0x11   :  { %65 = vmatmul.msk.f32.vlgmr.msra.gmra.mxu0 %vm26_vm0, %v17_v8 }
  0x8e   :  { %v47_v11 = vpop.f32.mrf.mxu0 }
  0x8f   :  { %v54_v12 = vmul.f32 %v66_v9, %v47_v11 }
  0x91   :  { %v59_v13 = vadd.f32 %v67_v10, %v54_v12 }
  0x93   :  { %60 = vst [vmem:[%s133_s4] sm:$0x3] %v59_v13 }

// kernel: forward.24
= control target key start
LH: loop header
LB: loop body
LE: loop exit
PB: predicated region body
PF: predicated region fallthrough
CT: control target
= control target key end

     0   :  { %vm275_vm0 = vcmask 523264   ;;  %s1326_s0 = inlined_call_operand.vmem [shape: f32[2,1,1,1,27,128], index: 0, kind: input, shape index: {}, may-alias: {0,5}]   ;;  %s1327_s1 = inlined_call_operand.vmem [shape: f32[2,1728], index: 1, kind: input, shape index: {}]   ;;  %s1328_s2 = inlined_call_operand.vmem [shape: f32[1728,128], index: 2, kind: input, shape index: {}]   ;;  %s1329_s3 = inlined_call_operand.vmem [shape: f32[1,128], index: 3, kind: input, shape index: {}]   ;;  %s1330_s4 = inlined_call_operand.vmem [shape: f32[1,128], index: 4, kind: input, shape index: {}]   ;;  %s1331_s5 = inlined_call_operand.vmem [shape: f32[2,1,1,1,27,128], index: 5, kind: output, shape index: {}, may-alias: {0,5}]  }
   0x1   :  { %v38_v0 = vld [vmem:[%s1328_s2 + $0x78] sm:$0xff]  ;;  %v37_v2 = vld [vmem:[%s1328_s2 + $0x70] sm:$0xff]  ;;  %v36_v6 = vld [vmem:[%s1328_s2 + $0x68] sm:$0xff] }
   0x2   :  { %v70_v1 = vld [vmem:[%s1328_s2 + $0x178] sm:$0xff]  ;;  %278 = vmatpush.msra.mxu0 %v38_v0  ;;  %v69_v4 = vld [vmem:[%s1328_s2 + $0x170] sm:$0xff]  ;;  %v68_v8 = vld [vmem:[%s1328_s2 + $0x168] sm:$0xff] }
   0x3   :  { %318 = vmatpush.msra.mxu2 %v70_v1  ;;  %v54_v3 = vld [vmem:[%s1328_s2 + $0xf8] sm:$0xff]  ;;  %v53_v7 = vld [vmem:[%s1328_s2 + $0xf0] sm:$0xff]  ;;  %v52_v10 = vld [vmem:[%s1328_s2 + $0xe8] sm:$0xff] }
   0x4   :  { %v86_v5 = vld [vmem:[%s1328_s2 + $0x1f8] sm:$0xff]  ;;  %298 = vmatpush.msra.mxu1 %v54_v3  ;;  %279 = vmatpush.msra.mxu0 %v37_v2  ;;  %v85_v9 = vld [vmem:[%s1328_s2 + $0x1f0] sm:$0xff]  ;;  %v35_v11 = vld [vmem:[%s1328_s2 + $0x60] sm:$0xff] }
   0x5   :  { %338 = vmatpush.msra.mxu3 %v86_v5  ;;  %319 = vmatpush.msra.mxu2 %v69_v4  ;;  %v67_v12 = vld [vmem:[%s1328_s2 + $0x160] sm:$0xff]  ;;  %v84_v13 = vld [vmem:[%s1328_s2 + $0x1e8] sm:$0xff]  ;;  %v34_v16 = vld [vmem:[%s1328_s2 + $0x58] sm:$0xff] }
   0x6   :  { %299 = vmatpush.msra.mxu1 %v53_v7  ;;  %280 = vmatpush.msra.mxu0 %v36_v6  ;;  %v51_v14 = vld [vmem:[%s1328_s2 + $0xe0] sm:$0xff]  ;;  %v66_v17 = vld [vmem:[%s1328_s2 + $0x158] sm:$0xff]  ;;  %v33_v20 = vld [vmem:[%s1328_s2 + $0x50] sm:$0xff] }
   0x7   :  { %339 = vmatpush.msra.mxu3 %v85_v9  ;;  %320 = vmatpush.msra.mxu2 %v68_v8  ;;  %v83_v15 = vld [vmem:[%s1328_s2 + $0x1e0] sm:$0xff]  ;;  %v50_v18 = vld [vmem:[%s1328_s2 + $0xd8] sm:$0xff]  ;;  %v65_v21 = vld [vmem:[%s1328_s2 + $0x150] sm:$0xff] }
   0x8   :  { %300 = vmatpush.msra.mxu1 %v52_v10  ;;  %281 = vmatpush.msra.mxu0 %v35_v11  ;;  %v82_v19 = vld [vmem:[%s1328_s2 + $0x1d8] sm:$0xff]  ;;  %v49_v22 = vld [vmem:[%s1328_s2 + $0xd0] sm:$0xff]  ;;  %v32_v24 = vld [vmem:[%s1328_s2 + $0x48] sm:$0xff] }
   0x9   :  { %340 = vmatpush.msra.mxu3 %v84_v13  ;;  %321 = vmatpush.msra.mxu2 %v67_v12  ;;  %v81_v23 = vld [vmem:[%s1328_s2 + $0x1d0] sm:$0xff]  ;;  %v64_v25 = vld [vmem:[%s1328_s2 + $0x148] sm:$0xff]  ;;  %v31_v28 = vld [vmem:[%s1328_s2 + $0x40] sm:$0xff] }
   0xa   :  { %301 = vmatpush.msra.mxu1 %v51_v14  ;;  %282 = vmatpush.msra.mxu0 %v34_v16  ;;  %v48_v26 = vld [vmem:[%s1328_s2 + $0xc8] sm:$0xff]  ;;  %v63_v29 = vld [vmem:[%s1328_s2 + $0x140] sm:$0xff]  ;;  %v30_v32 = vld [vmem:[%s1328_s2 + $0x38] sm:$0xff] }
   0xb   :  { %341 = vmatpush.msra.mxu3 %v83_v15  ;;  %322 = vmatpush.msra.mxu2 %v66_v17  ;;  %v80_v27 = vld [vmem:[%s1328_s2 + $0x1c8] sm:$0xff]  ;;  %v47_v30 = vld [vmem:[%s1328_s2 + $0xc0] sm:$0xff]  ;;  %v62_v33 = vld [vmem:[%s1328_s2 + $0x138] sm:$0xff] }
   0xc   :  { %302 = vmatpush.msra.mxu1 %v50_v18  ;;  %283 = vmatpush.msra.mxu0 %v33_v20  ;;  %v79_v31 = vld [vmem:[%s1328_s2 + $0x1c0] sm:$0xff]  ;;  %v46_v34 = vld [vmem:[%s1328_s2 + $0xb8] sm:$0xff]  ;;  %v29_v36 = vld [vmem:[%s1328_s2 + $0x30] sm:$0xff] }
   0xd   :  { %342 = vmatpush.msra.mxu3 %v82_v19  ;;  %323 = vmatpush.msra.mxu2 %v65_v21  ;;  %v78_v35 = vld [vmem:[%s1328_s2 + $0x1b8] sm:$0xff]  ;;  %v61_v37 = vld [vmem:[%s1328_s2 + $0x130] sm:$0xff]  ;;  %v28_v40 = vld [vmem:[%s1328_s2 + $0x28] sm:$0xff] }
   0xe   :  { %303 = vmatpush.msra.mxu1 %v49_v22  ;;  %284 = vmatpush.msra.mxu0 %v32_v24  ;;  %v45_v38 = vld [vmem:[%s1328_s2 + $0xb0] sm:$0xff]  ;;  %v60_v41 = vld [vmem:[%s1328_s2 + $0x128] sm:$0xff]  ;;  %v27_v44 = vld [vmem:[%s1328_s2 + $0x20] sm:$0xff] }
   0xf   :  { %343 = vmatpush.msra.mxu3 %v81_v23  ;;  %324 = vmatpush.msra.mxu2 %v64_v25  ;;  %v77_v39 = vld [vmem:[%s1328_s2 + $0x1b0] sm:$0xff]  ;;  %v44_v42 = vld [vmem:[%s1328_s2 + $0xa8] sm:$0xff]  ;;  %v59_v45 = vld [vmem:[%s1328_s2 + $0x120] sm:$0xff] }
  0x10   :  { %304 = vmatpush.msra.mxu1 %v48_v26  ;;  %285 = vmatpush.msra.mxu0 %v31_v28  ;;  %v76_v43 = vld [vmem:[%s1328_s2 + $0x1a8] sm:$0xff]  ;;  %v43_v46 = vld [vmem:[%s1328_s2 + $0xa0] sm:$0xff]  ;;  %v26_v48 = vld [vmem:[%s1328_s2 + $0x18] sm:$0xff] }
  0x11   :  { %344 = vmatpush.msra.mxu3 %v80_v27  ;;  %325 = vmatpush.msra.mxu2 %v63_v29  ;;  %v75_v47 = vld [vmem:[%s1328_s2 + $0x1a0] sm:$0xff]  ;;  %v58_v49 = vld [vmem:[%s1328_s2 + $0x118] sm:$0xff]  ;;  %v25_v52 = vld [vmem:[%s1328_s2 + $0x10] sm:$0xff] }
  0x12   :  { %305 = vmatpush.msra.mxu1 %v47_v30  ;;  %286 = vmatpush.msra.mxu0 %v30_v32  ;;  %v42_v50 = vld [vmem:[%s1328_s2 + $0x98] sm:$0xff]  ;;  %v57_v53 = vld [vmem:[%s1328_s2 + $0x110] sm:$0xff]  ;;  %v24_v56 = vld [vmem:[%s1328_s2 + $0x8] sm:$0xff] }
  0x13   :  { %345 = vmatpush.msra.mxu3 %v79_v31  ;;  %326 = vmatpush.msra.mxu2 %v62_v33  ;;  %v74_v51 = vld [vmem:[%s1328_s2 + $0x198] sm:$0xff]  ;;  %v41_v54 = vld [vmem:[%s1328_s2 + $0x90] sm:$0xff]  ;;  %v56_v57 = vld [vmem:[%s1328_s2 + $0x108] sm:$0xff] }
  0x14   :  { %306 = vmatpush.msra.mxu1 %v46_v34  ;;  %287 = vmatpush.msra.mxu0 %v29_v36  ;;  %v73_v55 = vld [vmem:[%s1328_s2 + $0x190] sm:$0xff]  ;;  %v40_v58 = vld [vmem:[%s1328_s2 + $0x88] sm:$0xff]  ;;  %v23_v60 = vld [vmem:[%s1328_s2] sm:$0xff] }
  0x15   :  { %346 = vmatpush.msra.mxu3 %v78_v35  ;;  %327 = vmatpush.msra.mxu2 %v61_v37  ;;  %v72_v59 = vld [vmem:[%s1328_s2 + $0x188] sm:$0xff]  ;;  %v55_v61 = vld [vmem:[%s1328_s2 + $0x100] sm:$0xff]  ;;  %v102_v62 = vld [vmem:[%s1328_s2 + $0x278] sm:$0xff] }
  0x16   :  { %307 = vmatpush.msra.mxu1 %v45_v38  ;;  %288 = vmatpush.msra.mxu0 %v28_v40  ;;  %v134_v63 = vld [vmem:[%s1328_s2 + $0x378] sm:$0xff]  ;;  %v39_v0 = vld [vmem:[%s1328_s2 + $0x80] sm:$0xff]  ;;  %v101_v2 = vld [vmem:[%s1328_s2 + $0x270] sm:$0xff] }
  0x17   :  { %347 = vmatpush.msra.mxu3 %v77_v39  ;;  %328 = vmatpush.msra.mxu2 %v60_v41  ;;  %v71_v1 = vld [vmem:[%s1328_s2 + $0x180] sm:$0xff]  ;;  %v118_v3 = vld [vmem:[%s1328_s2 + $0x2f8] sm:$0xff]  ;;  %v133_v4 = vld [vmem:[%s1328_s2 + $0x370] sm:$0xff] }
  0x18   :  { %308 = vmatpush.msra.mxu1 %v44_v42  ;;  %289 = vmatpush.msra.mxu0 %v27_v44  ;;  %v150_v5 = vld [vmem:[%s1328_s2 + $0x3f8] sm:$0xff]  ;;  %v100_v6 = vld [vmem:[%s1328_s2 + $0x268] sm:$0xff]  ;;  %v117_v7 = vld [vmem:[%s1328_s2 + $0x2f0] sm:$0xff] }
  0x19   :  { %348 = vmatpush.msra.mxu3 %v76_v43  ;;  %329 = vmatpush.msra.mxu2 %v59_v45  ;;  %v132_v8 = vld [vmem:[%s1328_s2 + $0x368] sm:$0xff]  ;;  %v149_v9 = vld [vmem:[%s1328_s2 + $0x3f0] sm:$0xff]  ;;  %v99_v10 = vld [vmem:[%s1328_s2 + $0x260] sm:$0xff] }
  0x1a   :  { %309 = vmatpush.msra.mxu1 %v43_v46  ;;  %290 = vmatpush.msra.mxu0 %v26_v48  ;;  %v116_v11 = vld [vmem:[%s1328_s2 + $0x2e8] sm:$0xff]  ;;  %v131_v12 = vld [vmem:[%s1328_s2 + $0x360] sm:$0xff]  ;;  %v98_v14 = vld [vmem:[%s1328_s2 + $0x258] sm:$0xff] }
  0x1b   :  { %349 = vmatpush.msra.mxu3 %v75_v47  ;;  %330 = vmatpush.msra.mxu2 %v58_v49  ;;  %v148_v13 = vld [vmem:[%s1328_s2 + $0x3e8] sm:$0xff]  ;;  %v115_v15 = vld [vmem:[%s1328_s2 + $0x2e0] sm:$0xff]  ;;  %v130_v16 = vld [vmem:[%s1328_s2 + $0x358] sm:$0xff] }
  0x1c   :  { %310 = vmatpush.msra.mxu1 %v42_v50  ;;  %291 = vmatpush.msra.mxu0 %v25_v52  ;;  %v147_v17 = vld [vmem:[%s1328_s2 + $0x3e0] sm:$0xff]  ;;  %v97_v18 = vld [vmem:[%s1328_s2 + $0x250] sm:$0xff]  ;;  %v114_v19 = vld [vmem:[%s1328_s2 + $0x2d8] sm:$0xff] }
  0x1d   :  { %350 = vmatpush.msra.mxu3 %v74_v51  ;;  %331 = vmatpush.msra.mxu2 %v57_v53  ;;  %v19_v20 = vld [vmem:[%s1327_s1] sm:$0xff]  ;;  %v129_v21 = vld [vmem:[%s1328_s2 + $0x350] sm:$0xff]  ;;  %v146_v22 = vld [vmem:[%s1328_s2 + $0x3d8] sm:$0xff] }
  0x1e   :  { %311 = vmatpush.msra.mxu1 %v41_v54  ;;  %292 = vmatpush.msra.mxu0 %v24_v56  ;;  %243 = vst [vmem:[#allocation1] ss:$4 sm:$0xff] %v19_v20  ;;  %v96_v23 = vld [vmem:[%s1328_s2 + $0x248] sm:$0xff]  ;;  %v113_v24 = vld [vmem:[%s1328_s2 + $0x2d0] sm:$0xff]  ;;  %v95_v27 = vld [vmem:[%s1328_s2 + $0x240] sm:$0xff] }
  0x1f   :  { %351 = vmatpush.msra.mxu3 %v73_v55  ;;  %332 = vmatpush.msra.mxu2 %v56_v57  ;;  %v128_v25 = vld [vmem:[%s1328_s2 + $0x348] sm:$0xff]  ;;  %v145_v26 = vld [vmem:[%s1328_s2 + $0x3d0] sm:$0xff]  ;;  %v127_v29 = vld [vmem:[%s1328_s2 + $0x340] sm:$0xff] }
  0x20   :  { %312 = vmatpush.msra.mxu1 %v40_v58  ;;  %293 = vmatpush.msra.mxu0 %v23_v60  ;;  %v112_v28 = vld [vmem:[%s1328_s2 + $0x2c8] sm:$0xff]  ;;  %v94_v31 = vld [vmem:[%s1328_s2 + $0x238] sm:$0xff]  ;;  %v111_v32 = vld [vmem:[%s1328_s2 + $0x2c0] sm:$0xff] }
  0x21   :  { %352 = vmatpush.msra.mxu3 %v72_v59  ;;  %333 = vmatpush.msra.mxu2 %v55_v61  ;;  %v144_v30 = vld [vmem:[%s1328_s2 + $0x3c8] sm:$0xff]  ;;  %v126_v33 = vld [vmem:[%s1328_s2 + $0x338] sm:$0xff]  ;;  %v143_v34 = vld [vmem:[%s1328_s2 + $0x3c0] sm:$0xff] }
  0x22   :  { %358 = vmatpush.msrb.mxu0 %v102_v62  ;;  %313 = vmatpush.msra.mxu1 %v39_v0  ;;  %v93_v35 = vld [vmem:[%s1328_s2 + $0x230] sm:$0xff]  ;;  %v110_v36 = vld [vmem:[%s1328_s2 + $0x2b8] sm:$0xff]  ;;  %v20_v37 = vld [vmem:[%s1327_s1 + $0x8] sm:$0xff] }
  0x23   :  { %398 = vmatpush.msrb.mxu2 %v134_v63  ;;  %353 = vmatpush.msra.mxu3 %v71_v1  ;;  %v125_v38 = vld [vmem:[%s1328_s2 + $0x330] sm:$0xff]  ;;  %v142_v39 = vld [vmem:[%s1328_s2 + $0x3b8] sm:$0xff]  ;;  %245 = vst [vmem:[#allocation1 + $0x20] ss:$4 sm:$0xff] %v20_v37  ;;  %v92_v41 = vld [vmem:[%s1328_s2 + $0x228] sm:$0xff] }
  0x24   :  { %359 = vmatpush.msrb.mxu0 %v101_v2  ;;  %378 = vmatpush.msrb.mxu1 %v118_v3  ;;  %v21_v40 = vld [vmem:[%s1327_s1 + $0x10] sm:$0xff]  ;;  %v124_v47 = vld [vmem:[%s1328_s2 + $0x328] sm:$0xff]  ;;  %v91_v49 = vld [vmem:[%s1328_s2 + $0x220] sm:$0xff] }
  0x25   :  { %399 = vmatpush.msrb.mxu2 %v133_v4  ;;  %418 = vmatpush.msrb.mxu3 %v150_v5  ;;  %v248_v42 = vld.sshfl [vmem:[#allocation1 + $0x10] sm:$0xff pattern:$0x73625140]  ;;  %v246_v43 = vld.sshfl [vmem:[#allocation1] sm:$0xff pattern:$0x73625140] }
  0x26   :  { %360 = vmatpush.msrb.mxu0 %v100_v6  ;;  %379 = vmatpush.msrb.mxu1 %v117_v7  ;;  %v249_v44 = vld.sshfl [vmem:[#allocation1 + $0x18] sm:$0xff pattern:$0x73625140]  ;;  %v963_v45 = vld.sshfl [vmem:[#allocation1 + $0x8] sm:$0xff pattern:$0x73625140] }
  0x27   :  { %400 = vmatpush.msrb.mxu2 %v132_v8  ;;  %419 = vmatpush.msrb.mxu3 %v149_v9  ;;  %v109_v46 = vld [vmem:[%s1328_s2 + $0x2b0] sm:$0xff]  ;;  %254 = vst [vmem:[#allocation1] ss:$4 sm:$0xff] %v21_v40  ;;  %v108_v50 = vld [vmem:[%s1328_s2 + $0x2a8] sm:$0xff]  ;;  %v123_v51 = vld [vmem:[%s1328_s2 + $0x320] sm:$0xff] }
  0x28   :  { %361 = vmatpush.msrb.mxu0 %v99_v10  ;;  %380 = vmatpush.msrb.mxu1 %v116_v11  ;;  %v141_v48 = vld [vmem:[%s1328_s2 + $0x3b0] sm:$0xff]  ;;  %v140_v52 = vld [vmem:[%s1328_s2 + $0x3a8] sm:$0xff]  ;;  %v90_v53 = vld [vmem:[%s1328_s2 + $0x218] sm:$0xff] }
  0x29   :  { %401 = vmatpush.msrb.mxu2 %v131_v12  ;;  %420 = vmatpush.msrb.mxu3 %v148_v13  ;;  %v107_v54 = vld [vmem:[%s1328_s2 + $0x2a0] sm:$0xff]  ;;  %v122_v55 = vld [vmem:[%s1328_s2 + $0x318] sm:$0xff]  ;;  %v89_v62 = vld [vmem:[%s1328_s2 + $0x210] sm:$0xff] }
  0x2a   :  { %362 = vmatpush.msrb.mxu0 %v98_v14  ;;  %381 = vmatpush.msrb.mxu1 %v115_v15  ;;  %v139_v56 = vld [vmem:[%s1328_s2 + $0x3a0] sm:$0xff]  ;;  %v22_v57 = vld [vmem:[%s1327_s1 + $0x18] sm:$0xf]  ;;  %v1001_v59 = vld.sshfl [vmem:[#allocation1 + $0x20] sm:$0xff pattern:$0x73625140] }
  0x2b   :  { %402 = vmatpush.msrb.mxu2 %v130_v16  ;;  %421 = vmatpush.msrb.mxu3 %v147_v17  ;;  %v252_v58 = vld.sshfl [vmem:[#allocation1 + $0x30] sm:$0xff pattern:$0x73625140]  ;;  %v1003_v60 = vld.sshfl [vmem:[#allocation1 + $0x38] sm:$0xff pattern:$0x73625140] }
  0x2c   :  { %363 = vmatpush.msrb.mxu0 %v97_v18  ;;  %382 = vmatpush.msrb.mxu1 %v114_v19  ;;  %v1005_v61 = vld.sshfl [vmem:[#allocation1 + $0x28] sm:$0xff pattern:$0x73625140]  ;;  %v121_v0 = vld [vmem:[%s1328_s2 + $0x310] sm:$0xff]  ;;  %v88_v2 = vld [vmem:[%s1328_s2 + $0x208] sm:$0xff] }
  0x2d   :  { %403 = vmatpush.msrb.mxu2 %v129_v21  ;;  %422 = vmatpush.msrb.mxu3 %v146_v22  ;;  %v106_v63 = vld [vmem:[%s1328_s2 + $0x298] sm:$0xff]  ;;  %255 = vst [vmem:[#allocation1 + $0x20] ss:$4 sm:$0xff] %v22_v57  ;;  %v105_v3 = vld [vmem:[%s1328_s2 + $0x290] sm:$0xff]  ;;  %v120_v4 = vld [vmem:[%s1328_s2 + $0x308] sm:$0xff] }
  0x2e   :  { %364 = vmatpush.msrb.mxu0 %v96_v23  ;;  %383 = vmatpush.msrb.mxu1 %v113_v24  ;;  %v138_v1 = vld [vmem:[%s1328_s2 + $0x398] sm:$0xff]  ;;  %v137_v5 = vld [vmem:[%s1328_s2 + $0x390] sm:$0xff]  ;;  %v87_v6 = vld [vmem:[%s1328_s2 + $0x200] sm:$0xff] }
  0x2f   :  { %404 = vmatpush.msrb.mxu2 %v128_v25  ;;  %423 = vmatpush.msrb.mxu3 %v145_v26  ;;  %v104_v7 = vld [vmem:[%s1328_s2 + $0x288] sm:$0xff]  ;;  %v119_v8 = vld [vmem:[%s1328_s2 + $0x300] sm:$0xff]  ;;  %v166_v10 = vld [vmem:[%s1328_s2 + $0x478] sm:$0xff] }
  0x30   :  { %365 = vmatpush.msrb.mxu0 %v95_v27  ;;  %384 = vmatpush.msrb.mxu1 %v112_v28  ;;  %v136_v9 = vld [vmem:[%s1328_s2 + $0x388] sm:$0xff]  ;;  %v198_v11 = vld [vmem:[%s1328_s2 + $0x578] sm:$0xff]  ;;  %v103_v12 = vld [vmem:[%s1328_s2 + $0x280] sm:$0xff] }
  0x31   :  { %405 = vmatpush.msrb.mxu2 %v127_v29  ;;  %424 = vmatpush.msrb.mxu3 %v144_v30  ;;  %v135_v13 = vld [vmem:[%s1328_s2 + $0x380] sm:$0xff]  ;;  %v165_v14 = vld [vmem:[%s1328_s2 + $0x470] sm:$0xff]  ;;  %v182_v15 = vld [vmem:[%s1328_s2 + $0x4f8] sm:$0xff] }
  0x32   :  { %366 = vmatpush.msrb.mxu0 %v94_v31  ;;  %385 = vmatpush.msrb.mxu1 %v111_v32  ;;  %v197_v16 = vld [vmem:[%s1328_s2 + $0x570] sm:$0xff]  ;;  %v214_v17 = vld [vmem:[%s1328_s2 + $0x5f8] sm:$0xff]  ;;  %v164_v18 = vld [vmem:[%s1328_s2 + $0x468] sm:$0xff] }
  0x33   :  { %406 = vmatpush.msrb.mxu2 %v126_v33  ;;  %425 = vmatpush.msrb.mxu3 %v143_v34  ;;  %v181_v19 = vld [vmem:[%s1328_s2 + $0x4f0] sm:$0xff]  ;;  %v196_v20 = vld [vmem:[%s1328_s2 + $0x568] sm:$0xff]  ;;  %v163_v22 = vld [vmem:[%s1328_s2 + $0x460] sm:$0xff] }
  0x34   :  { %367 = vmatpush.msrb.mxu0 %v93_v35  ;;  %386 = vmatpush.msrb.mxu1 %v110_v36  ;;  %v213_v21 = vld [vmem:[%s1328_s2 + $0x5f0] sm:$0xff]  ;;  %v180_v23 = vld [vmem:[%s1328_s2 + $0x4e8] sm:$0xff]  ;;  %v195_v24 = vld [vmem:[%s1328_s2 + $0x560] sm:$0xff] }
  0x35   :  { %407 = vmatpush.msrb.mxu2 %v125_v38  ;;  %426 = vmatpush.msrb.mxu3 %v142_v39  ;;  %v212_v25 = vld [vmem:[%s1328_s2 + $0x5e8] sm:$0xff]  ;;  %v162_v26 = vld [vmem:[%s1328_s2 + $0x458] sm:$0xff]  ;;  %v179_v27 = vld [vmem:[%s1328_s2 + $0x4e0] sm:$0xff] }
  0x36   :  { %368 = vmatpush.msrb.mxu0 %v92_v41  ;;  %387 = vmatpush.msrb.mxu1 %v109_v46  ;;  %v194_v28 = vld [vmem:[%s1328_s2 + $0x558] sm:$0xff]  ;;  %v211_v29 = vld [vmem:[%s1328_s2 + $0x5e0] sm:$0xff]  ;;  %v161_v30 = vld [vmem:[%s1328_s2 + $0x450] sm:$0xff] }
  0x37   :  { %408 = vmatpush.msrb.mxu2 %v124_v47  ;;  %427 = vmatpush.msrb.mxu3 %v141_v48  ;;  %v178_v31 = vld [vmem:[%s1328_s2 + $0x4d8] sm:$0xff]  ;;  %v193_v32 = vld [vmem:[%s1328_s2 + $0x550] sm:$0xff]  ;;  %v160_v34 = vld [vmem:[%s1328_s2 + $0x448] sm:$0xff] }
  0x38   :  { %369 = vmatpush.msrb.mxu0 %v91_v49  ;;  %388 = vmatpush.msrb.mxu1 %v108_v50  ;;  %v210_v33 = vld [vmem:[%s1328_s2 + $0x5d8] sm:$0xff]  ;;  %v177_v35 = vld [vmem:[%s1328_s2 + $0x4d0] sm:$0xff]  ;;  %v192_v36 = vld [vmem:[%s1328_s2 + $0x548] sm:$0xff] }
  0x39   :  { %409 = vmatpush.msrb.mxu2 %v123_v51  ;;  %428 = vmatpush.msrb.mxu3 %v140_v52  ;;  %v209_v37 = vld [vmem:[%s1328_s2 + $0x5d0] sm:$0xff]  ;;  %v159_v38 = vld [vmem:[%s1328_s2 + $0x440] sm:$0xff]  ;;  %v176_v39 = vld [vmem:[%s1328_s2 + $0x4c8] sm:$0xff] }
  0x3a   :  { %370 = vmatpush.msrb.mxu0 %v90_v53  ;;  %389 = vmatpush.msrb.mxu1 %v107_v54  ;;  %v191_v40 = vld [vmem:[%s1328_s2 + $0x540] sm:$0xff]  ;;  %v208_v41 = vld [vmem:[%s1328_s2 + $0x5c8] sm:$0xff]  ;;  %v157_v46 = vld [vmem:[%s1328_s2 + $0x430] sm:$0xff] }
  0x3b   :  { %410 = vmatpush.msrb.mxu2 %v122_v55  ;;  %429 = vmatpush.msrb.mxu3 %v139_v56  ;;  %v174_v47 = vld [vmem:[%s1328_s2 + $0x4b8] sm:$0xff]  ;;  %v189_v48 = vld [vmem:[%s1328_s2 + $0x530] sm:$0xff]  ;;  %v156_v50 = vld [vmem:[%s1328_s2 + $0x428] sm:$0xff] }
  0x3c   :  { %371 = vmatpush.msrb.mxu0 %v89_v62  ;;  %390 = vmatpush.msrb.mxu1 %v106_v63  ;;  %v206_v49 = vld [vmem:[%s1328_s2 + $0x5b8] sm:$0xff]  ;;  %v173_v51 = vld [vmem:[%s1328_s2 + $0x4b0] sm:$0xff]  ;;  %v188_v52 = vld [vmem:[%s1328_s2 + $0x528] sm:$0xff] }
  0x3d   :  { %411 = vmatpush.msrb.mxu2 %v121_v0  ;;  %430 = vmatpush.msrb.mxu3 %v138_v1  ;;  %v205_v53 = vld [vmem:[%s1328_s2 + $0x5b0] sm:$0xff]  ;;  %v155_v54 = vld [vmem:[%s1328_s2 + $0x420] sm:$0xff]  ;;  %v172_v55 = vld [vmem:[%s1328_s2 + $0x4a8] sm:$0xff] }
  0x3e   :  { %334 = vmatmul.f32.vlgmr.msra.gmra.mxu2 %v248_v42  ;;  %372 = vmatpush.msrb.mxu0 %v88_v2  ;;  %v158_v42 = vld [vmem:[%s1328_s2 + $0x438] sm:$0xff]  ;;  %v187_v56 = vld [vmem:[%s1328_s2 + $0x520] sm:$0xff]  ;;  %v204_v57 = vld [vmem:[%s1328_s2 + $0x5a8] sm:$0xff] }
  0x3f   :  { %391 = vmatpush.msrb.mxu1 %v105_v3  ;;  %412 = vmatpush.msrb.mxu2 %v120_v4  ;;  %v153_v62 = vld [vmem:[%s1328_s2 + $0x410] sm:$0xff]  ;;  %v170_v63 = vld [vmem:[%s1328_s2 + $0x498] sm:$0xff]  ;;  %v152_v2 = vld [vmem:[%s1328_s2 + $0x408] sm:$0xff] }
  0x40   :  { %431 = vmatpush.msrb.mxu3 %v137_v5  ;;  %294 = vmatmul.f32.vlgmr.msra.gmra.mxu0 %v246_v43  ;;  %v175_v43 = vld [vmem:[%s1328_s2 + $0x4c0] sm:$0xff]  ;;  %v185_v0 = vld [vmem:[%s1328_s2 + $0x510] sm:$0xff]  ;;  %v202_v1 = vld [vmem:[%s1328_s2 + $0x598] sm:$0xff] }
  0x41   :  { %354 = vmatmul.f32.vlgmr.msra.gmra.mxu3 %v249_v44  ;;  %373 = vmatpush.msrb.mxu0 %v87_v6  ;;  %v190_v44 = vld [vmem:[%s1328_s2 + $0x538] sm:$0xff]  ;;  %v169_v3 = vld [vmem:[%s1328_s2 + $0x490] sm:$0xff]  ;;  %v184_v4 = vld [vmem:[%s1328_s2 + $0x508] sm:$0xff] }
  0x42   :  { %392 = vmatpush.msrb.mxu1 %v104_v7  ;;  %413 = vmatpush.msrb.mxu2 %v119_v8  ;;  %v201_v5 = vld [vmem:[%s1328_s2 + $0x590] sm:$0xff]  ;;  %v151_v6 = vld [vmem:[%s1328_s2 + $0x400] sm:$0xff]  ;;  %v168_v7 = vld [vmem:[%s1328_s2 + $0x488] sm:$0xff] }
  0x43   :  { %432 = vmatpush.msrb.mxu3 %v136_v9  ;;  %314 = vmatmul.f32.vlgmr.msra.gmra.mxu1 %v963_v45  ;;  %v207_v45 = vld [vmem:[%s1328_s2 + $0x5c0] sm:$0xff]  ;;  %v200_v9 = vld [vmem:[%s1328_s2 + $0x588] sm:$0xff] }
  0x44   :  { %438 = vmatpush.msra.mxu0 %v166_v10  ;;  %478 = vmatpush.msra.mxu2 %v198_v11  ;;  %v183_v8 = vld [vmem:[%s1328_s2 + $0x500] sm:$0xff]  ;;  %v256_v10 = vld.sshfl [vmem:[#allocation1] sm:$0xff pattern:$0x73625140] }
  0x45   :  { %393 = vmatpush.msrb.mxu1 %v103_v12  ;;  %433 = vmatpush.msrb.mxu3 %v135_v13  ;;  %v258_v11 = vld.sshfl [vmem:[#allocation1 + $0x10] sm:$0xff pattern:$0x73625140]  ;;  %v230_v12 = vld [vmem:[%s1328_s2 + $0x678] sm:$0xff] }
  0x46   :  { %439 = vmatpush.msra.mxu0 %v165_v14  ;;  %479 = vmatpush.msra.mxu2 %v197_v16  ;;  %v167_v13 = vld [vmem:[%s1328_s2 + $0x480] sm:$0xff]  ;;  %v259_v16 = vld.sshfl [vmem:[#allocation1 + $0x18] sm:$0xff pattern:$0x73625140] }
  0x47   :  { %458 = vmatpush.msra.mxu1 %v182_v15  ;;  %498 = vmatpush.msra.mxu3 %v214_v17  ;;  %v199_v14 = vld [vmem:[%s1328_s2 + $0x580] sm:$0xff]  ;;  %v257_v15 = vld.sshfl [vmem:[#allocation1 + $0x8] sm:$0xff pattern:$0x73625140]  ;;  %v229_v17 = vld [vmem:[%s1328_s2 + $0x670] sm:$0xff] }
  0x48   :  { %414 = vmatmul.f32.vlgmr.msrb.gmra.mxu2 %v252_v58  ;;  %440 = vmatpush.msra.mxu0 %v164_v18  ;;  %v154_v58 = vld [vmem:[%s1328_s2 + $0x418] sm:$0xff] }
  0x49   :  { %459 = vmatpush.msra.mxu1 %v181_v19  ;;  %480 = vmatpush.msra.mxu2 %v196_v20  ;;  %v238_v18 = vld [vmem:[%s1328_s2 + $0x6b8] sm:$0xff]  ;;  %v228_v19 = vld [vmem:[%s1328_s2 + $0x668] sm:$0xff]  ;;  %v237_v20 = vld [vmem:[%s1328_s2 + $0x6b0] sm:$0xff] }
  0x4a   :  { %499 = vmatpush.msra.mxu3 %v213_v21  ;;  %374 = vmatmul.f32.vlgmr.msrb.gmra.mxu0 %v1001_v59  ;;  %v171_v59 = vld [vmem:[%s1328_s2 + $0x4a0] sm:$0xff] }
  0x4b   :  { %434 = vmatmul.f32.vlgmr.msrb.gmra.mxu3 %v1003_v60  ;;  %441 = vmatpush.msra.mxu0 %v163_v22  ;;  %v186_v60 = vld [vmem:[%s1328_s2 + $0x518] sm:$0xff]  ;;  %v227_v21 = vld [vmem:[%s1328_s2 + $0x660] sm:$0xff]  ;;  %v236_v22 = vld [vmem:[%s1328_s2 + $0x6a8] sm:$0xff] }
  0x4c   :  { %460 = vmatpush.msra.mxu1 %v180_v23  ;;  %481 = vmatpush.msra.mxu2 %v195_v24  ;;  %v226_v23 = vld [vmem:[%s1328_s2 + $0x658] sm:$0xff]  ;;  %v235_v24 = vld [vmem:[%s1328_s2 + $0x6a0] sm:$0xff] }
  0x4d   :  { %500 = vmatpush.msra.mxu3 %v212_v25  ;;  %394 = vmatmul.f32.vlgmr.msrb.gmra.mxu1 %v1005_v61  ;;  %v203_v61 = vld [vmem:[%s1328_s2 + $0x5a0] sm:$0xff]  ;;  %v225_v25 = vld [vmem:[%s1328_s2 + $0x650] sm:$0xff] }
  0x4e   :  { %442 = vmatpush.msra.mxu0 %v162_v26  ;;  %461 = vmatpush.msra.mxu1 %v179_v27  ;;  %v234_v26 = vld [vmem:[%s1328_s2 + $0x698] sm:$0xff]  ;;  %v224_v27 = vld [vmem:[%s1328_s2 + $0x648] sm:$0xff] }
  0x4f   :  { %482 = vmatpush.msra.mxu2 %v194_v28  ;;  %501 = vmatpush.msra.mxu3 %v211_v29  ;;  %v233_v28 = vld [vmem:[%s1328_s2 + $0x690] sm:$0xff]  ;;  %v223_v29 = vld [vmem:[%s1328_s2 + $0x640] sm:$0xff] }
  0x50   :  { %443 = vmatpush.msra.mxu0 %v161_v30  ;;  %462 = vmatpush.msra.mxu1 %v178_v31  ;;  %v232_v30 = vld [vmem:[%s1328_s2 + $0x688] sm:$0xff]  ;;  %v222_v31 = vld [vmem:[%s1328_s2 + $0x638] sm:$0xff] }
  0x51   :  { %483 = vmatpush.msra.mxu2 %v193_v32  ;;  %502 = vmatpush.msra.mxu3 %v210_v33  ;;  %v231_v32 = vld [vmem:[%s1328_s2 + $0x680] sm:$0xff]  ;;  %v221_v33 = vld [vmem:[%s1328_s2 + $0x630] sm:$0xff] }
  0x52   :  { %444 = vmatpush.msra.mxu0 %v160_v34  ;;  %463 = vmatpush.msra.mxu1 %v177_v35  ;;  %v261_v34 = vld.sshfl [vmem:[#allocation1 + $0x28] sm:$0xff pattern:$0x73625140]  ;;  %v220_v35 = vld [vmem:[%s1328_s2 + $0x628] sm:$0xff] }
  0x53   :  { %484 = vmatpush.msra.mxu2 %v192_v36  ;;  %503 = vmatpush.msra.mxu3 %v209_v37  ;;  %v219_v36 = vld [vmem:[%s1328_s2 + $0x620] sm:$0xff]  ;;  %v218_v37 = vld [vmem:[%s1328_s2 + $0x618] sm:$0xff] }
  0x54   :  { %445 = vmatpush.msra.mxu0 %v159_v38  ;;  %464 = vmatpush.msra.mxu1 %v176_v39  ;;  %v217_v38 = vld [vmem:[%s1328_s2 + $0x610] sm:$0xff]  ;;  %v216_v39 = vld [vmem:[%s1328_s2 + $0x608] sm:$0xff] }
  0x55   :  { %485 = vmatpush.msra.mxu2 %v191_v40  ;;  %504 = vmatpush.msra.mxu3 %v208_v41  ;;  %v215_v40 = vld [vmem:[%s1328_s2 + $0x600] sm:$0xff]  ;;  %v260_v41 = vld.sshfl [vmem:[#allocation1 + $0x20] sm:$0xff pattern:$0x73625140] }
  0x56   :  { %446 = vmatpush.msra.mxu0 %v158_v42  ;;  %465 = vmatpush.msra.mxu1 %v175_v43 }
  0x57   :  { %486 = vmatpush.msra.mxu2 %v190_v44  ;;  %505 = vmatpush.msra.mxu3 %v207_v45 }
  0x58   :  { %447 = vmatpush.msra.mxu0 %v157_v46  ;;  %466 = vmatpush.msra.mxu1 %v174_v47 }
  0x59   :  { %487 = vmatpush.msra.mxu2 %v189_v48  ;;  %506 = vmatpush.msra.mxu3 %v206_v49 }
  0x5a   :  { %448 = vmatpush.msra.mxu0 %v156_v50  ;;  %467 = vmatpush.msra.mxu1 %v173_v51 }
  0x5b   :  { %488 = vmatpush.msra.mxu2 %v188_v52  ;;  %507 = vmatpush.msra.mxu3 %v205_v53 }
  0x5c   :  { %449 = vmatpush.msra.mxu0 %v155_v54  ;;  %468 = vmatpush.msra.mxu1 %v172_v55 }
  0x5d   :  { %489 = vmatpush.msra.mxu2 %v187_v56  ;;  %508 = vmatpush.msra.mxu3 %v204_v57 }
  0x5e   :  { %450 = vmatpush.msra.mxu0 %v154_v58  ;;  %469 = vmatpush.msra.mxu1 %v171_v59 }
  0x5f   :  { %490 = vmatpush.msra.mxu2 %v186_v60  ;;  %509 = vmatpush.msra.mxu3 %v203_v61 }
  0x60   :  { %451 = vmatpush.msra.mxu0 %v153_v62  ;;  %470 = vmatpush.msra.mxu1 %v170_v63 }
  0x61   :  { %491 = vmatpush.msra.mxu2 %v185_v0  ;;  %510 = vmatpush.msra.mxu3 %v202_v1 }
  0x62   :  { %452 = vmatpush.msra.mxu0 %v152_v2  ;;  %471 = vmatpush.msra.mxu1 %v169_v3 }
  0x63   :  { %492 = vmatpush.msra.mxu2 %v184_v4  ;;  %511 = vmatpush.msra.mxu3 %v201_v5  ;;  %v613_v4 = vld [vmem:[%s1329_s3] ss:$0 sm:$0xff] }
  0x64   :  { %453 = vmatpush.msra.mxu0 %v151_v6  ;;  %472 = vmatpush.msra.mxu1 %v168_v7  ;;  %v614_v6 = vld [vmem:[%s1330_s4] ss:$0 sm:$0xff] }
  0x65   :  { %493 = vmatpush.msra.mxu2 %v183_v8  ;;  %512 = vmatpush.msra.mxu3 %v200_v9 }
  0x66   :  { %454 = vmatmul.f32.vlgmr.msra.gmra.mxu0 %v256_v10  ;;  %494 = vmatmul.f32.vlgmr.msra.gmra.mxu2 %v258_v11 }
  0x67   :  { %518 = vmatpush.msrb.mxu0 %v230_v12  ;;  %473 = vmatpush.msra.mxu1 %v167_v13 }
  0x68   :  { %513 = vmatpush.msra.mxu3 %v199_v14  ;;  %474 = vmatmul.f32.vlgmr.msra.gmra.mxu1 %v257_v15 }
  0x69   :  { %514 = vmatmul.f32.vlgmr.msra.gmra.mxu3 %v259_v16  ;;  %519 = vmatpush.msrb.mxu0 %v229_v17 }
  0x6a   :  { %546 = vmatpush.msrb.mxu1 %v238_v18 }
  0x6b   :  { %520 = vmatpush.msrb.mxu0 %v228_v19 }
  0x6c   :  { %547 = vmatpush.msrb.mxu1 %v237_v20 }
  0x6d   :  { %521 = vmatpush.msrb.mxu0 %v227_v21 }
  0x6e   :  { %548 = vmatpush.msrb.mxu1 %v236_v22 }
  0x6f   :  { %522 = vmatpush.msrb.mxu0 %v226_v23 }
  0x70   :  { %549 = vmatpush.msrb.mxu1 %v235_v24 }
  0x71   :  { %523 = vmatpush.msrb.mxu0 %v225_v25 }
  0x72   :  { %550 = vmatpush.msrb.mxu1 %v234_v26 }
  0x73   :  { %524 = vmatpush.msrb.mxu0 %v224_v27 }
  0x74   :  { %551 = vmatpush.msrb.mxu1 %v233_v28 }
  0x75   :  { %525 = vmatpush.msrb.mxu0 %v223_v29 }
  0x76   :  { %552 = vmatpush.msrb.mxu1 %v232_v30 }
  0x77   :  { %526 = vmatpush.msrb.mxu0 %v222_v31 }
  0x78   :  { %553 = vmatpush.msrb.mxu1 %v231_v32 }
  0x79   :  { %527 = vmatpush.msrb.mxu0 %v221_v33  ;;  %611 = vmatmul.msk.f32.vlgmr.msrb.gmra.mxu1 %vm275_vm0, %v261_v34 }
  0x7b   :  { %528 = vmatpush.msrb.mxu0 %v220_v35 }
  0x7d   :  { %529 = vmatpush.msrb.mxu0 %v219_v36 }
  0x7f   :  { %530 = vmatpush.msrb.mxu0 %v218_v37 }
  0x81   :  { %531 = vmatpush.msrb.mxu0 %v217_v38 }
  0x83   :  { %532 = vmatpush.msrb.mxu0 %v216_v39 }
  0x85   :  { %533 = vmatpush.msrb.mxu0 %v215_v40 }
  0x86   :  { %534 = vmatmul.f32.vlgmr.msrb.gmra.mxu0 %v260_v41 }
  0xbd   :  { %v295_v43 = vpop.f32.mrf.mxu0 }
  0xc0   :  { %v315_v42 = vpop.f32.mrf.mxu1 }
  0xc1   :  { %v316_v44 = vadd.f32 %v315_v42, %v295_v43  ;;  %v335_v45 = vpop.f32.mrf.mxu2 }
  0xc3   :  { %v336_v46 = vadd.f32 %v335_v45, %v316_v44 }
  0xc4   :  { %v355_v47 = vpop.f32.mrf.mxu3 }
  0xc5   :  { %v356_v48 = vadd.f32 %v355_v47, %v336_v46 }
  0xc7   :  { %v375_v49 = vpop.f32.mrf.mxu0 }
  0xc8   :  { %v376_v50 = vadd.f32 %v375_v49, %v356_v48 }
  0xca   :  { %v395_v51 = vpop.f32.mrf.mxu1 }
  0xcb   :  { %v396_v52 = vadd.f32 %v395_v51, %v376_v50  ;;  %v415_v53 = vpop.f32.mrf.mxu2 }
  0xcd   :  { %v416_v54 = vadd.f32 %v415_v53, %v396_v52 }
  0xce   :  { %v435_v55 = vpop.f32.mrf.mxu3 }
  0xcf   :  { %v436_v57 = vadd.f32 %v435_v55, %v416_v54 }
  0xe3   :  { %v455_v56 = vpop.f32.mrf.mxu0 }
  0xe4   :  { %v456_v58 = vadd.f32 %v455_v56, %v436_v57 }
  0xe5   :  { %v475_v59 = vpop.f32.mrf.mxu1 }
  0xe6   :  { %v476_v61 = vadd.f32 %v475_v59, %v456_v58 }
  0xe9   :  { %v495_v60 = vpop.f32.mrf.mxu2 }
  0xea   :  { %v496_v62 = vadd.f32 %v495_v60, %v476_v61 }
  0xec   :  { %v515_v63 = vpop.f32.mrf.mxu3 }
  0xed   :  { %v516_v0 = vadd.f32 %v515_v63, %v496_v62 }
  0xf6   :  { %v555_v2 = vpop.f32.mrf.mxu1 }
 0x103   :  { %v535_v1 = vpop.f32.mrf.mxu0 }
 0x104   :  { %v536_v3 = vadd.f32 %v535_v1, %v516_v0 }
 0x106   :  { %v556_v5 = vadd.f32 %v555_v2, %v536_v3 }
 0x108   :  { %v562_v7 = vmul.f32 %v613_v4, %v556_v5 }
 0x10a   :  { %v567_v8 = vadd.f32 %v614_v6, %v562_v7 }
 0x10c   :  { %v568_v9 = vmax.f32 %v567_v8, 0.0 }
 0x10e   :  { %569 = vst [vmem:[#allocation2] sm:$0x3] %v568_v9 }
 0x115   :  { %v588_v10 = vld [vmem:[#allocation2] sm:$0x3] }
 0x116   :  { %612 = vst [vmem:[%s1331_s5 + $0x1a] sm:$0x3] %v588_v10 }

// kernel: forward.23
= control target key start
LH: loop header
LB: loop body
LE: loop exit
PB: predicated region body
PF: predicated region fallthrough
CT: control target
= control target key end

     0   :  { %s2495_s1 = inlined_call_operand.vmem [shape: f32[3456,128], index: 1, kind: input, shape index: {}]   ;;  %s2496_s0 = inlined_call_operand.vmem [shape: f32[2,3456], index: 0, kind: input, shape index: {}]   ;;  %s2497_s2 = inlined_call_operand.vmem [shape: f32[1,128], index: 2, kind: input, shape index: {}]   ;;  %s2498_s3 = inlined_call_operand.vmem [shape: f32[1,128], index: 3, kind: input, shape index: {}]   ;;  %s2499_s4 = inlined_call_operand.vmem [shape: f32[2,128], index: 4, kind: input, shape index: {}]   ;;  %s2500_s5 = inlined_call_operand.vmem [shape: f32[2,128], index: 5, kind: output, shape index: {}]  }
   0x1   :  { %v42_v0 = vld [vmem:[%s2495_s1 + $0x78] sm:$0xff]  ;;  %v41_v2 = vld [vmem:[%s2495_s1 + $0x70] sm:$0xff]  ;;  %v40_v6 = vld [vmem:[%s2495_s1 + $0x68] sm:$0xff] }
   0x2   :  { %v74_v1 = vld [vmem:[%s2495_s1 + $0x178] sm:$0xff]  ;;  %528 = vmatpush.msra.mxu0 %v42_v0  ;;  %v73_v4 = vld [vmem:[%s2495_s1 + $0x170] sm:$0xff]  ;;  %v72_v8 = vld [vmem:[%s2495_s1 + $0x168] sm:$0xff] }
   0x3   :  { %568 = vmatpush.msra.mxu2 %v74_v1  ;;  %v58_v3 = vld [vmem:[%s2495_s1 + $0xf8] sm:$0xff]  ;;  %v57_v7 = vld [vmem:[%s2495_s1 + $0xf0] sm:$0xff]  ;;  %v56_v10 = vld [vmem:[%s2495_s1 + $0xe8] sm:$0xff] }
   0x4   :  { %v90_v5 = vld [vmem:[%s2495_s1 + $0x1f8] sm:$0xff]  ;;  %548 = vmatpush.msra.mxu1 %v58_v3  ;;  %529 = vmatpush.msra.mxu0 %v41_v2  ;;  %v89_v9 = vld [vmem:[%s2495_s1 + $0x1f0] sm:$0xff]  ;;  %v39_v11 = vld [vmem:[%s2495_s1 + $0x60] sm:$0xff] }
   0x5   :  { %588 = vmatpush.msra.mxu3 %v90_v5  ;;  %569 = vmatpush.msra.mxu2 %v73_v4  ;;  %v71_v12 = vld [vmem:[%s2495_s1 + $0x160] sm:$0xff]  ;;  %v88_v13 = vld [vmem:[%s2495_s1 + $0x1e8] sm:$0xff]  ;;  %v38_v16 = vld [vmem:[%s2495_s1 + $0x58] sm:$0xff] }
   0x6   :  { %549 = vmatpush.msra.mxu1 %v57_v7  ;;  %530 = vmatpush.msra.mxu0 %v40_v6  ;;  %v55_v14 = vld [vmem:[%s2495_s1 + $0xe0] sm:$0xff]  ;;  %v70_v17 = vld [vmem:[%s2495_s1 + $0x158] sm:$0xff]  ;;  %v37_v20 = vld [vmem:[%s2495_s1 + $0x50] sm:$0xff] }
   0x7   :  { %589 = vmatpush.msra.mxu3 %v89_v9  ;;  %570 = vmatpush.msra.mxu2 %v72_v8  ;;  %v87_v15 = vld [vmem:[%s2495_s1 + $0x1e0] sm:$0xff]  ;;  %v54_v18 = vld [vmem:[%s2495_s1 + $0xd8] sm:$0xff]  ;;  %v69_v21 = vld [vmem:[%s2495_s1 + $0x150] sm:$0xff] }
   0x8   :  { %550 = vmatpush.msra.mxu1 %v56_v10  ;;  %531 = vmatpush.msra.mxu0 %v39_v11  ;;  %v86_v19 = vld [vmem:[%s2495_s1 + $0x1d8] sm:$0xff]  ;;  %v53_v22 = vld [vmem:[%s2495_s1 + $0xd0] sm:$0xff]  ;;  %v36_v24 = vld [vmem:[%s2495_s1 + $0x48] sm:$0xff] }
   0x9   :  { %590 = vmatpush.msra.mxu3 %v88_v13  ;;  %571 = vmatpush.msra.mxu2 %v71_v12  ;;  %v85_v23 = vld [vmem:[%s2495_s1 + $0x1d0] sm:$0xff]  ;;  %v68_v25 = vld [vmem:[%s2495_s1 + $0x148] sm:$0xff]  ;;  %v35_v28 = vld [vmem:[%s2495_s1 + $0x40] sm:$0xff] }
   0xa   :  { %551 = vmatpush.msra.mxu1 %v55_v14  ;;  %532 = vmatpush.msra.mxu0 %v38_v16  ;;  %v52_v26 = vld [vmem:[%s2495_s1 + $0xc8] sm:$0xff]  ;;  %v67_v29 = vld [vmem:[%s2495_s1 + $0x140] sm:$0xff]  ;;  %v34_v32 = vld [vmem:[%s2495_s1 + $0x38] sm:$0xff] }
   0xb   :  { %591 = vmatpush.msra.mxu3 %v87_v15  ;;  %572 = vmatpush.msra.mxu2 %v70_v17  ;;  %v84_v27 = vld [vmem:[%s2495_s1 + $0x1c8] sm:$0xff]  ;;  %v51_v30 = vld [vmem:[%s2495_s1 + $0xc0] sm:$0xff]  ;;  %v66_v33 = vld [vmem:[%s2495_s1 + $0x138] sm:$0xff] }
   0xc   :  { %552 = vmatpush.msra.mxu1 %v54_v18  ;;  %533 = vmatpush.msra.mxu0 %v37_v20  ;;  %v83_v31 = vld [vmem:[%s2495_s1 + $0x1c0] sm:$0xff]  ;;  %v50_v34 = vld [vmem:[%s2495_s1 + $0xb8] sm:$0xff]  ;;  %v33_v36 = vld [vmem:[%s2495_s1 + $0x30] sm:$0xff] }
   0xd   :  { %592 = vmatpush.msra.mxu3 %v86_v19  ;;  %573 = vmatpush.msra.mxu2 %v69_v21  ;;  %v82_v35 = vld [vmem:[%s2495_s1 + $0x1b8] sm:$0xff]  ;;  %v65_v37 = vld [vmem:[%s2495_s1 + $0x130] sm:$0xff]  ;;  %v32_v40 = vld [vmem:[%s2495_s1 + $0x28] sm:$0xff] }
   0xe   :  { %553 = vmatpush.msra.mxu1 %v53_v22  ;;  %534 = vmatpush.msra.mxu0 %v36_v24  ;;  %v49_v38 = vld [vmem:[%s2495_s1 + $0xb0] sm:$0xff]  ;;  %v64_v41 = vld [vmem:[%s2495_s1 + $0x128] sm:$0xff]  ;;  %v31_v44 = vld [vmem:[%s2495_s1 + $0x20] sm:$0xff] }
   0xf   :  { %593 = vmatpush.msra.mxu3 %v85_v23  ;;  %574 = vmatpush.msra.mxu2 %v68_v25  ;;  %v81_v39 = vld [vmem:[%s2495_s1 + $0x1b0] sm:$0xff]  ;;  %v48_v42 = vld [vmem:[%s2495_s1 + $0xa8] sm:$0xff]  ;;  %v63_v45 = vld [vmem:[%s2495_s1 + $0x120] sm:$0xff] }
  0x10   :  { %554 = vmatpush.msra.mxu1 %v52_v26  ;;  %535 = vmatpush.msra.mxu0 %v35_v28  ;;  %v80_v43 = vld [vmem:[%s2495_s1 + $0x1a8] sm:$0xff]  ;;  %v47_v46 = vld [vmem:[%s2495_s1 + $0xa0] sm:$0xff]  ;;  %v30_v48 = vld [vmem:[%s2495_s1 + $0x18] sm:$0xff] }
  0x11   :  { %594 = vmatpush.msra.mxu3 %v84_v27  ;;  %575 = vmatpush.msra.mxu2 %v67_v29  ;;  %v79_v47 = vld [vmem:[%s2495_s1 + $0x1a0] sm:$0xff]  ;;  %v62_v49 = vld [vmem:[%s2495_s1 + $0x118] sm:$0xff]  ;;  %v29_v52 = vld [vmem:[%s2495_s1 + $0x10] sm:$0xff] }
  0x12   :  { %555 = vmatpush.msra.mxu1 %v51_v30  ;;  %536 = vmatpush.msra.mxu0 %v34_v32  ;;  %v46_v50 = vld [vmem:[%s2495_s1 + $0x98] sm:$0xff]  ;;  %v61_v53 = vld [vmem:[%s2495_s1 + $0x110] sm:$0xff]  ;;  %v28_v56 = vld [vmem:[%s2495_s1 + $0x8] sm:$0xff] }
  0x13   :  { %595 = vmatpush.msra.mxu3 %v83_v31  ;;  %576 = vmatpush.msra.mxu2 %v66_v33  ;;  %v78_v51 = vld [vmem:[%s2495_s1 + $0x198] sm:$0xff]  ;;  %v45_v54 = vld [vmem:[%s2495_s1 + $0x90] sm:$0xff]  ;;  %v60_v57 = vld [vmem:[%s2495_s1 + $0x108] sm:$0xff] }
  0x14   :  { %556 = vmatpush.msra.mxu1 %v50_v34  ;;  %537 = vmatpush.msra.mxu0 %v33_v36  ;;  %v77_v55 = vld [vmem:[%s2495_s1 + $0x190] sm:$0xff]  ;;  %v44_v58 = vld [vmem:[%s2495_s1 + $0x88] sm:$0xff]  ;;  %v27_v60 = vld [vmem:[%s2495_s1] sm:$0xff] }
  0x15   :  { %596 = vmatpush.msra.mxu3 %v82_v35  ;;  %577 = vmatpush.msra.mxu2 %v65_v37  ;;  %v76_v59 = vld [vmem:[%s2495_s1 + $0x188] sm:$0xff]  ;;  %v59_v61 = vld [vmem:[%s2495_s1 + $0x100] sm:$0xff]  ;;  %v106_v62 = vld [vmem:[%s2495_s1 + $0x278] sm:$0xff] }
  0x16   :  { %557 = vmatpush.msra.mxu1 %v49_v38  ;;  %538 = vmatpush.msra.mxu0 %v32_v40  ;;  %v138_v63 = vld [vmem:[%s2495_s1 + $0x378] sm:$0xff]  ;;  %v43_v0 = vld [vmem:[%s2495_s1 + $0x80] sm:$0xff]  ;;  %v105_v2 = vld [vmem:[%s2495_s1 + $0x270] sm:$0xff] }
  0x17   :  { %597 = vmatpush.msra.mxu3 %v81_v39  ;;  %578 = vmatpush.msra.mxu2 %v64_v41  ;;  %v75_v1 = vld [vmem:[%s2495_s1 + $0x180] sm:$0xff]  ;;  %v122_v3 = vld [vmem:[%s2495_s1 + $0x2f8] sm:$0xff]  ;;  %v137_v4 = vld [vmem:[%s2495_s1 + $0x370] sm:$0xff] }
  0x18   :  { %558 = vmatpush.msra.mxu1 %v48_v42  ;;  %539 = vmatpush.msra.mxu0 %v31_v44  ;;  %v154_v5 = vld [vmem:[%s2495_s1 + $0x3f8] sm:$0xff]  ;;  %v104_v6 = vld [vmem:[%s2495_s1 + $0x268] sm:$0xff]  ;;  %v121_v7 = vld [vmem:[%s2495_s1 + $0x2f0] sm:$0xff] }
  0x19   :  { %598 = vmatpush.msra.mxu3 %v80_v43  ;;  %579 = vmatpush.msra.mxu2 %v63_v45  ;;  %v136_v8 = vld [vmem:[%s2495_s1 + $0x368] sm:$0xff]  ;;  %v153_v9 = vld [vmem:[%s2495_s1 + $0x3f0] sm:$0xff]  ;;  %v103_v10 = vld [vmem:[%s2495_s1 + $0x260] sm:$0xff] }
  0x1a   :  { %559 = vmatpush.msra.mxu1 %v47_v46  ;;  %540 = vmatpush.msra.mxu0 %v30_v48  ;;  %v120_v11 = vld [vmem:[%s2495_s1 + $0x2e8] sm:$0xff]  ;;  %v135_v12 = vld [vmem:[%s2495_s1 + $0x360] sm:$0xff]  ;;  %v102_v14 = vld [vmem:[%s2495_s1 + $0x258] sm:$0xff] }
  0x1b   :  { %599 = vmatpush.msra.mxu3 %v79_v47  ;;  %580 = vmatpush.msra.mxu2 %v62_v49  ;;  %v152_v13 = vld [vmem:[%s2495_s1 + $0x3e8] sm:$0xff]  ;;  %v119_v15 = vld [vmem:[%s2495_s1 + $0x2e0] sm:$0xff]  ;;  %v134_v16 = vld [vmem:[%s2495_s1 + $0x358] sm:$0xff] }
  0x1c   :  { %560 = vmatpush.msra.mxu1 %v46_v50  ;;  %541 = vmatpush.msra.mxu0 %v29_v52  ;;  %v151_v17 = vld [vmem:[%s2495_s1 + $0x3e0] sm:$0xff]  ;;  %v101_v18 = vld [vmem:[%s2495_s1 + $0x250] sm:$0xff]  ;;  %v118_v19 = vld [vmem:[%s2495_s1 + $0x2d8] sm:$0xff] }
  0x1d   :  { %600 = vmatpush.msra.mxu3 %v78_v51  ;;  %581 = vmatpush.msra.mxu2 %v61_v53  ;;  %v133_v20 = vld [vmem:[%s2495_s1 + $0x350] sm:$0xff]  ;;  %v150_v21 = vld [vmem:[%s2495_s1 + $0x3d8] sm:$0xff]  ;;  %v20_v22 = vld [vmem:[%s2496_s0] sm:$0xff] }
  0x1e   :  { %561 = vmatpush.msra.mxu1 %v45_v54  ;;  %542 = vmatpush.msra.mxu0 %v28_v56  ;;  %v100_v23 = vld [vmem:[%s2495_s1 + $0x248] sm:$0xff]  ;;  %v117_v24 = vld [vmem:[%s2495_s1 + $0x2d0] sm:$0xff]  ;;  %466 = vst [vmem:[#allocation1] ss:$4 sm:$0xff] %v20_v22  ;;  %v99_v27 = vld [vmem:[%s2495_s1 + $0x240] sm:$0xff] }
  0x1f   :  { %601 = vmatpush.msra.mxu3 %v77_v55  ;;  %582 = vmatpush.msra.mxu2 %v60_v57  ;;  %v132_v25 = vld [vmem:[%s2495_s1 + $0x348] sm:$0xff]  ;;  %v149_v26 = vld [vmem:[%s2495_s1 + $0x3d0] sm:$0xff]  ;;  %v131_v29 = vld [vmem:[%s2495_s1 + $0x340] sm:$0xff] }
  0x20   :  { %562 = vmatpush.msra.mxu1 %v44_v58  ;;  %543 = vmatpush.msra.mxu0 %v27_v60  ;;  %v116_v28 = vld [vmem:[%s2495_s1 + $0x2c8] sm:$0xff]  ;;  %v98_v31 = vld [vmem:[%s2495_s1 + $0x238] sm:$0xff]  ;;  %v115_v32 = vld [vmem:[%s2495_s1 + $0x2c0] sm:$0xff] }
  0x21   :  { %602 = vmatpush.msra.mxu3 %v76_v59  ;;  %583 = vmatpush.msra.mxu2 %v59_v61  ;;  %v148_v30 = vld [vmem:[%s2495_s1 + $0x3c8] sm:$0xff]  ;;  %v130_v33 = vld [vmem:[%s2495_s1 + $0x338] sm:$0xff]  ;;  %v147_v34 = vld [vmem:[%s2495_s1 + $0x3c0] sm:$0xff] }
  0x22   :  { %608 = vmatpush.msrb.mxu0 %v106_v62  ;;  %563 = vmatpush.msra.mxu1 %v43_v0  ;;  %v97_v35 = vld [vmem:[%s2495_s1 + $0x230] sm:$0xff]  ;;  %v114_v36 = vld [vmem:[%s2495_s1 + $0x2b8] sm:$0xff]  ;;  %v96_v39 = vld [vmem:[%s2495_s1 + $0x228] sm:$0xff] }
  0x23   :  { %648 = vmatpush.msrb.mxu2 %v138_v63  ;;  %603 = vmatpush.msra.mxu3 %v75_v1  ;;  %v129_v37 = vld [vmem:[%s2495_s1 + $0x330] sm:$0xff]  ;;  %v146_v38 = vld [vmem:[%s2495_s1 + $0x3b8] sm:$0xff]  ;;  %v21_v42 = vld [vmem:[%s2496_s0 + $0x8] sm:$0xff] }
  0x24   :  { %609 = vmatpush.msrb.mxu0 %v105_v2  ;;  %628 = vmatpush.msrb.mxu1 %v122_v3  ;;  %v113_v40 = vld [vmem:[%s2495_s1 + $0x2b0] sm:$0xff]  ;;  %v128_v47 = vld [vmem:[%s2495_s1 + $0x328] sm:$0xff]  ;;  %v95_v49 = vld [vmem:[%s2495_s1 + $0x220] sm:$0xff]  ;;  %468 = vst [vmem:[#allocation1 + $0x20] ss:$4 sm:$0xff] %v21_v42 }
  0x25   :  { %649 = vmatpush.msrb.mxu2 %v137_v4  ;;  %668 = vmatpush.msrb.mxu3 %v154_v5  ;;  %v22_v41 = vld [vmem:[%s2496_s0 + $0x10] sm:$0xff]  ;;  %v471_v43 = vld.sshfl [vmem:[#allocation1 + $0x10] sm:$0xff pattern:$0x73625140]  ;;  %v112_v50 = vld [vmem:[%s2495_s1 + $0x2a8] sm:$0xff] }
  0x26   :  { %610 = vmatpush.msrb.mxu0 %v104_v6  ;;  %629 = vmatpush.msrb.mxu1 %v121_v7  ;;  %v1439_v44 = vld.sshfl [vmem:[#allocation1] sm:$0xff pattern:$0x73625140]  ;;  %v1441_v45 = vld.sshfl [vmem:[#allocation1 + $0x18] sm:$0xff pattern:$0x73625140] }
  0x27   :  { %650 = vmatpush.msrb.mxu2 %v136_v8  ;;  %669 = vmatpush.msrb.mxu3 %v153_v9  ;;  %v1443_v46 = vld.sshfl [vmem:[#allocation1 + $0x8] sm:$0xff pattern:$0x73625140]  ;;  %v145_v48 = vld [vmem:[%s2495_s1 + $0x3b0] sm:$0xff]  ;;  %v127_v51 = vld [vmem:[%s2495_s1 + $0x320] sm:$0xff] }
  0x28   :  { %611 = vmatpush.msrb.mxu0 %v103_v10  ;;  %630 = vmatpush.msrb.mxu1 %v120_v11  ;;  %477 = vst [vmem:[#allocation1] ss:$4 sm:$0xff] %v22_v41  ;;  %v144_v52 = vld [vmem:[%s2495_s1 + $0x3a8] sm:$0xff]  ;;  %v94_v53 = vld [vmem:[%s2495_s1 + $0x218] sm:$0xff]  ;;  %v111_v54 = vld [vmem:[%s2495_s1 + $0x2a0] sm:$0xff] }
  0x29   :  { %651 = vmatpush.msrb.mxu2 %v135_v12  ;;  %670 = vmatpush.msrb.mxu3 %v152_v13  ;;  %v126_v55 = vld [vmem:[%s2495_s1 + $0x318] sm:$0xff]  ;;  %v143_v56 = vld [vmem:[%s2495_s1 + $0x3a0] sm:$0xff]  ;;  %v93_v57 = vld [vmem:[%s2495_s1 + $0x210] sm:$0xff] }
  0x2a   :  { %612 = vmatpush.msrb.mxu0 %v102_v14  ;;  %631 = vmatpush.msrb.mxu1 %v119_v15  ;;  %v110_v58 = vld [vmem:[%s2495_s1 + $0x298] sm:$0xff]  ;;  %v125_v59 = vld [vmem:[%s2495_s1 + $0x310] sm:$0xff]  ;;  %v92_v61 = vld [vmem:[%s2495_s1 + $0x208] sm:$0xff] }
  0x2b   :  { %652 = vmatpush.msrb.mxu2 %v134_v16  ;;  %671 = vmatpush.msrb.mxu3 %v151_v17  ;;  %v142_v60 = vld [vmem:[%s2495_s1 + $0x398] sm:$0xff]  ;;  %v109_v62 = vld [vmem:[%s2495_s1 + $0x290] sm:$0xff]  ;;  %v124_v63 = vld [vmem:[%s2495_s1 + $0x308] sm:$0xff] }
  0x2c   :  { %613 = vmatpush.msrb.mxu0 %v101_v18  ;;  %632 = vmatpush.msrb.mxu1 %v118_v19  ;;  %v141_v0 = vld [vmem:[%s2495_s1 + $0x390] sm:$0xff]  ;;  %v91_v1 = vld [vmem:[%s2495_s1 + $0x200] sm:$0xff]  ;;  %v23_v2 = vld [vmem:[%s2496_s0 + $0x18] sm:$0xff] }
  0x2d   :  { %653 = vmatpush.msrb.mxu2 %v133_v20  ;;  %672 = vmatpush.msrb.mxu3 %v150_v21  ;;  %v475_v3 = vld.sshfl [vmem:[#allocation1 + $0x30] sm:$0xff pattern:$0x73625140]  ;;  %v473_v4 = vld.sshfl [vmem:[#allocation1 + $0x20] sm:$0xff pattern:$0x73625140] }
  0x2e   :  { %614 = vmatpush.msrb.mxu0 %v100_v23  ;;  %633 = vmatpush.msrb.mxu1 %v117_v24  ;;  %v476_v5 = vld.sshfl [vmem:[#allocation1 + $0x38] sm:$0xff pattern:$0x73625140]  ;;  %v1505_v6 = vld.sshfl [vmem:[#allocation1 + $0x28] sm:$0xff pattern:$0x73625140] }
  0x2f   :  { %654 = vmatpush.msrb.mxu2 %v132_v25  ;;  %673 = vmatpush.msrb.mxu3 %v149_v26  ;;  %v108_v7 = vld [vmem:[%s2495_s1 + $0x288] sm:$0xff]  ;;  %v123_v8 = vld [vmem:[%s2495_s1 + $0x300] sm:$0xff]  ;;  %478 = vst [vmem:[#allocation1 + $0x20] ss:$4 sm:$0xff] %v23_v2  ;;  %v170_v10 = vld [vmem:[%s2495_s1 + $0x478] sm:$0xff] }
  0x30   :  { %615 = vmatpush.msrb.mxu0 %v99_v27  ;;  %634 = vmatpush.msrb.mxu1 %v116_v28  ;;  %v140_v9 = vld [vmem:[%s2495_s1 + $0x388] sm:$0xff]  ;;  %v202_v11 = vld [vmem:[%s2495_s1 + $0x578] sm:$0xff]  ;;  %v107_v12 = vld [vmem:[%s2495_s1 + $0x280] sm:$0xff] }
  0x31   :  { %655 = vmatpush.msrb.mxu2 %v131_v29  ;;  %674 = vmatpush.msrb.mxu3 %v148_v30  ;;  %v139_v13 = vld [vmem:[%s2495_s1 + $0x380] sm:$0xff]  ;;  %v169_v14 = vld [vmem:[%s2495_s1 + $0x470] sm:$0xff]  ;;  %v186_v15 = vld [vmem:[%s2495_s1 + $0x4f8] sm:$0xff] }
  0x32   :  { %616 = vmatpush.msrb.mxu0 %v98_v31  ;;  %635 = vmatpush.msrb.mxu1 %v115_v32  ;;  %v201_v16 = vld [vmem:[%s2495_s1 + $0x570] sm:$0xff]  ;;  %v218_v17 = vld [vmem:[%s2495_s1 + $0x5f8] sm:$0xff]  ;;  %v168_v18 = vld [vmem:[%s2495_s1 + $0x468] sm:$0xff] }
  0x33   :  { %656 = vmatpush.msrb.mxu2 %v130_v33  ;;  %675 = vmatpush.msrb.mxu3 %v147_v34  ;;  %v185_v19 = vld [vmem:[%s2495_s1 + $0x4f0] sm:$0xff]  ;;  %v200_v20 = vld [vmem:[%s2495_s1 + $0x568] sm:$0xff]  ;;  %v167_v22 = vld [vmem:[%s2495_s1 + $0x460] sm:$0xff] }
  0x34   :  { %617 = vmatpush.msrb.mxu0 %v97_v35  ;;  %636 = vmatpush.msrb.mxu1 %v114_v36  ;;  %v217_v21 = vld [vmem:[%s2495_s1 + $0x5f0] sm:$0xff]  ;;  %v184_v23 = vld [vmem:[%s2495_s1 + $0x4e8] sm:$0xff]  ;;  %v199_v24 = vld [vmem:[%s2495_s1 + $0x560] sm:$0xff] }
  0x35   :  { %657 = vmatpush.msrb.mxu2 %v129_v37  ;;  %676 = vmatpush.msrb.mxu3 %v146_v38  ;;  %v216_v25 = vld [vmem:[%s2495_s1 + $0x5e8] sm:$0xff]  ;;  %v1567_v26 = vld.sshfl [vmem:[#allocation1] sm:$0xff pattern:$0x73625140]  ;;  %v166_v27 = vld [vmem:[%s2495_s1 + $0x458] sm:$0xff] }
  0x36   :  { %618 = vmatpush.msrb.mxu0 %v96_v39  ;;  %637 = vmatpush.msrb.mxu1 %v113_v40  ;;  %v1572_v28 = vld.sshfl [vmem:[#allocation1 + $0x10] sm:$0xff pattern:$0x73625140]  ;;  %v1577_v30 = vld.sshfl [vmem:[#allocation1 + $0x8] sm:$0xff pattern:$0x73625140] }
  0x37   :  { %658 = vmatpush.msrb.mxu2 %v128_v47  ;;  %677 = vmatpush.msrb.mxu3 %v145_v48  ;;  %v24_v29 = vld [vmem:[%s2496_s0 + $0x20] sm:$0xff]  ;;  %v1579_v31 = vld.sshfl [vmem:[#allocation1 + $0x18] sm:$0xff pattern:$0x73625140]  ;;  %v198_v33 = vld [vmem:[%s2495_s1 + $0x558] sm:$0xff] }
  0x38   :  { %619 = vmatpush.msrb.mxu0 %v95_v49  ;;  %638 = vmatpush.msrb.mxu1 %v112_v50  ;;  %v183_v32 = vld [vmem:[%s2495_s1 + $0x4e0] sm:$0xff]  ;;  %487 = vst [vmem:[#allocation1] ss:$4 sm:$0xff] %v24_v29  ;;  %v165_v35 = vld [vmem:[%s2495_s1 + $0x450] sm:$0xff]  ;;  %v182_v36 = vld [vmem:[%s2495_s1 + $0x4d8] sm:$0xff] }
  0x39   :  { %659 = vmatpush.msrb.mxu2 %v127_v51  ;;  %678 = vmatpush.msrb.mxu3 %v144_v52  ;;  %v215_v34 = vld [vmem:[%s2495_s1 + $0x5e0] sm:$0xff]  ;;  %v197_v37 = vld [vmem:[%s2495_s1 + $0x550] sm:$0xff]  ;;  %v214_v38 = vld [vmem:[%s2495_s1 + $0x5d8] sm:$0xff] }
  0x3a   :  { %620 = vmatpush.msrb.mxu0 %v94_v53  ;;  %639 = vmatpush.msrb.mxu1 %v111_v54  ;;  %v164_v39 = vld [vmem:[%s2495_s1 + $0x448] sm:$0xff]  ;;  %v181_v40 = vld [vmem:[%s2495_s1 + $0x4d0] sm:$0xff]  ;;  %v162_v47 = vld [vmem:[%s2495_s1 + $0x438] sm:$0xff] }
  0x3b   :  { %660 = vmatpush.msrb.mxu2 %v126_v55  ;;  %679 = vmatpush.msrb.mxu3 %v143_v56  ;;  %v196_v41 = vld [vmem:[%s2495_s1 + $0x548] sm:$0xff]  ;;  %v213_v42 = vld [vmem:[%s2495_s1 + $0x5d0] sm:$0xff]  ;;  %v179_v48 = vld [vmem:[%s2495_s1 + $0x4c0] sm:$0xff] }
  0x3c   :  { %621 = vmatpush.msrb.mxu0 %v93_v57  ;;  %640 = vmatpush.msrb.mxu1 %v110_v58  ;;  %v194_v49 = vld [vmem:[%s2495_s1 + $0x538] sm:$0xff]  ;;  %v211_v50 = vld [vmem:[%s2495_s1 + $0x5c0] sm:$0xff]  ;;  %v161_v51 = vld [vmem:[%s2495_s1 + $0x430] sm:$0xff] }
  0x3d   :  { %661 = vmatpush.msrb.mxu2 %v125_v59  ;;  %680 = vmatpush.msrb.mxu3 %v142_v60  ;;  %v178_v52 = vld [vmem:[%s2495_s1 + $0x4b8] sm:$0xff]  ;;  %v193_v53 = vld [vmem:[%s2495_s1 + $0x530] sm:$0xff]  ;;  %v160_v55 = vld [vmem:[%s2495_s1 + $0x428] sm:$0xff] }
  0x3e   :  { %622 = vmatpush.msrb.mxu0 %v92_v61  ;;  %641 = vmatpush.msrb.mxu1 %v109_v62  ;;  %v210_v54 = vld [vmem:[%s2495_s1 + $0x5b8] sm:$0xff]  ;;  %v177_v56 = vld [vmem:[%s2495_s1 + $0x4b0] sm:$0xff]  ;;  %v192_v57 = vld [vmem:[%s2495_s1 + $0x528] sm:$0xff] }
  0x3f   :  { %662 = vmatpush.msrb.mxu2 %v124_v63  ;;  %681 = vmatpush.msrb.mxu3 %v141_v0  ;;  %v209_v58 = vld [vmem:[%s2495_s1 + $0x5b0] sm:$0xff]  ;;  %v159_v59 = vld [vmem:[%s2495_s1 + $0x420] sm:$0xff]  ;;  %v176_v60 = vld [vmem:[%s2495_s1 + $0x4a8] sm:$0xff] }
  0x40   :  { %584 = vmatmul.f32.vlgmr.msra.gmra.mxu2 %v471_v43  ;;  %623 = vmatpush.msrb.mxu0 %v91_v1  ;;  %v163_v43 = vld [vmem:[%s2495_s1 + $0x440] sm:$0xff]  ;;  %v208_v62 = vld [vmem:[%s2495_s1 + $0x5a8] sm:$0xff]  ;;  %v158_v63 = vld [vmem:[%s2495_s1 + $0x418] sm:$0xff] }
  0x41   :  { %642 = vmatpush.msrb.mxu1 %v108_v7  ;;  %663 = vmatpush.msrb.mxu2 %v123_v8  ;;  %v191_v61 = vld [vmem:[%s2495_s1 + $0x520] sm:$0xff]  ;;  %v190_v1 = vld [vmem:[%s2495_s1 + $0x518] sm:$0xff]  ;;  %v156_v7 = vld [vmem:[%s2495_s1 + $0x408] sm:$0xff] }
  0x42   :  { %682 = vmatpush.msrb.mxu3 %v140_v9  ;;  %544 = vmatmul.f32.vlgmr.msra.gmra.mxu0 %v1439_v44  ;;  %v180_v44 = vld [vmem:[%s2495_s1 + $0x4c8] sm:$0xff]  ;;  %v175_v0 = vld [vmem:[%s2495_s1 + $0x4a0] sm:$0xff]  ;;  %v173_v8 = vld [vmem:[%s2495_s1 + $0x490] sm:$0xff] }
  0x43   :  { %604 = vmatmul.f32.vlgmr.msra.gmra.mxu3 %v1441_v45  ;;  %688 = vmatpush.msra.mxu0 %v170_v10  ;;  %v195_v45 = vld [vmem:[%s2495_s1 + $0x540] sm:$0xff]  ;;  %v188_v9 = vld [vmem:[%s2495_s1 + $0x508] sm:$0xff]  ;;  %v205_v10 = vld [vmem:[%s2495_s1 + $0x590] sm:$0xff] }
  0x44   :  { %728 = vmatpush.msra.mxu2 %v202_v11  ;;  %643 = vmatpush.msrb.mxu1 %v107_v12  ;;  %v207_v2 = vld [vmem:[%s2495_s1 + $0x5a0] sm:$0xff]  ;;  %v172_v12 = vld [vmem:[%s2495_s1 + $0x488] sm:$0xff] }
  0x45   :  { %683 = vmatpush.msrb.mxu3 %v139_v13  ;;  %564 = vmatmul.f32.vlgmr.msra.gmra.mxu1 %v1443_v46  ;;  %v212_v46 = vld [vmem:[%s2495_s1 + $0x5c8] sm:$0xff]  ;;  %v155_v11 = vld [vmem:[%s2495_s1 + $0x400] sm:$0xff] }
  0x46   :  { %689 = vmatpush.msra.mxu0 %v169_v14  ;;  %708 = vmatpush.msra.mxu1 %v186_v15  ;;  %v187_v13 = vld [vmem:[%s2495_s1 + $0x500] sm:$0xff]  ;;  %v204_v14 = vld [vmem:[%s2495_s1 + $0x588] sm:$0xff]  ;;  %v234_v15 = vld [vmem:[%s2495_s1 + $0x678] sm:$0xff] }
  0x47   :  { %729 = vmatpush.msra.mxu2 %v201_v16  ;;  %748 = vmatpush.msra.mxu3 %v218_v17  ;;  %v266_v16 = vld [vmem:[%s2495_s1 + $0x778] sm:$0xff]  ;;  %v171_v17 = vld [vmem:[%s2495_s1 + $0x480] sm:$0xff] }
  0x48   :  { %690 = vmatpush.msra.mxu0 %v168_v18  ;;  %709 = vmatpush.msra.mxu1 %v185_v19  ;;  %v203_v18 = vld [vmem:[%s2495_s1 + $0x580] sm:$0xff]  ;;  %v233_v19 = vld [vmem:[%s2495_s1 + $0x670] sm:$0xff] }
  0x49   :  { %730 = vmatpush.msra.mxu2 %v200_v20  ;;  %749 = vmatpush.msra.mxu3 %v217_v21  ;;  %v250_v20 = vld [vmem:[%s2495_s1 + $0x6f8] sm:$0xff]  ;;  %v265_v21 = vld [vmem:[%s2495_s1 + $0x770] sm:$0xff]  ;;  %v1768_v29 = vld.sshfl [vmem:[#allocation1 + $0x30] sm:$0xff pattern:$0x73625140] }
  0x4a   :  { %664 = vmatmul.f32.vlgmr.msrb.gmra.mxu2 %v475_v3  ;;  %691 = vmatpush.msra.mxu0 %v167_v22  ;;  %v157_v3 = vld [vmem:[%s2495_s1 + $0x410] sm:$0xff]  ;;  %v282_v22 = vld [vmem:[%s2495_s1 + $0x7f8] sm:$0xff] }
  0x4b   :  { %710 = vmatpush.msra.mxu1 %v184_v23  ;;  %731 = vmatpush.msra.mxu2 %v199_v24  ;;  %v232_v23 = vld [vmem:[%s2495_s1 + $0x668] sm:$0xff]  ;;  %v249_v24 = vld [vmem:[%s2495_s1 + $0x6f0] sm:$0xff] }
  0x4c   :  { %750 = vmatpush.msra.mxu3 %v216_v25  ;;  %624 = vmatmul.f32.vlgmr.msrb.gmra.mxu0 %v473_v4  ;;  %v174_v4 = vld [vmem:[%s2495_s1 + $0x498] sm:$0xff]  ;;  %v264_v25 = vld [vmem:[%s2495_s1 + $0x768] sm:$0xff] }
  0x4d   :  { %684 = vmatmul.f32.vlgmr.msrb.gmra.mxu3 %v476_v5  ;;  %692 = vmatpush.msra.mxu0 %v166_v27  ;;  %v189_v5 = vld [vmem:[%s2495_s1 + $0x510] sm:$0xff]  ;;  %v231_v27 = vld [vmem:[%s2495_s1 + $0x660] sm:$0xff] }
  0x4e   :  { %711 = vmatpush.msra.mxu1 %v183_v32  ;;  %732 = vmatpush.msra.mxu2 %v198_v33  ;;  %v1770_v32 = vld.sshfl [vmem:[#allocation1 + $0x28] sm:$0xff pattern:$0x73625140]  ;;  %v1778_v33 = vld.sshfl [vmem:[#allocation1 + $0x38] sm:$0xff pattern:$0x73625140] }
  0x4f   :  { %751 = vmatpush.msra.mxu3 %v215_v34  ;;  %644 = vmatmul.f32.vlgmr.msrb.gmra.mxu1 %v1505_v6  ;;  %v206_v6 = vld [vmem:[%s2495_s1 + $0x598] sm:$0xff]  ;;  %v263_v34 = vld [vmem:[%s2495_s1 + $0x760] sm:$0xff] }
  0x50   :  { %693 = vmatpush.msra.mxu0 %v165_v35  ;;  %712 = vmatpush.msra.mxu1 %v182_v36  ;;  %v280_v35 = vld [vmem:[%s2495_s1 + $0x7e8] sm:$0xff]  ;;  %v230_v36 = vld [vmem:[%s2495_s1 + $0x658] sm:$0xff] }
  0x51   :  { %733 = vmatpush.msra.mxu2 %v197_v37  ;;  %752 = vmatpush.msra.mxu3 %v214_v38  ;;  %v247_v37 = vld [vmem:[%s2495_s1 + $0x6e0] sm:$0xff]  ;;  %v262_v38 = vld [vmem:[%s2495_s1 + $0x758] sm:$0xff] }
  0x52   :  { %694 = vmatpush.msra.mxu0 %v164_v39  ;;  %713 = vmatpush.msra.mxu1 %v181_v40  ;;  %v279_v39 = vld [vmem:[%s2495_s1 + $0x7e0] sm:$0xff]  ;;  %v229_v40 = vld [vmem:[%s2495_s1 + $0x650] sm:$0xff] }
  0x53   :  { %734 = vmatpush.msra.mxu2 %v196_v41  ;;  %753 = vmatpush.msra.mxu3 %v213_v42  ;;  %v246_v41 = vld [vmem:[%s2495_s1 + $0x6d8] sm:$0xff]  ;;  %v261_v42 = vld [vmem:[%s2495_s1 + $0x750] sm:$0xff] }
  0x54   :  { %695 = vmatpush.msra.mxu0 %v163_v43  ;;  %714 = vmatpush.msra.mxu1 %v180_v44  ;;  %v278_v43 = vld [vmem:[%s2495_s1 + $0x7d8] sm:$0xff]  ;;  %v228_v44 = vld [vmem:[%s2495_s1 + $0x648] sm:$0xff] }
  0x55   :  { %735 = vmatpush.msra.mxu2 %v195_v45  ;;  %754 = vmatpush.msra.mxu3 %v212_v46  ;;  %v245_v45 = vld [vmem:[%s2495_s1 + $0x6d0] sm:$0xff]  ;;  %v260_v46 = vld [vmem:[%s2495_s1 + $0x748] sm:$0xff] }
  0x56   :  { %696 = vmatpush.msra.mxu0 %v162_v47  ;;  %715 = vmatpush.msra.mxu1 %v179_v48  ;;  %v277_v47 = vld [vmem:[%s2495_s1 + $0x7d0] sm:$0xff]  ;;  %v227_v48 = vld [vmem:[%s2495_s1 + $0x640] sm:$0xff] }
  0x57   :  { %736 = vmatpush.msra.mxu2 %v194_v49  ;;  %755 = vmatpush.msra.mxu3 %v211_v50  ;;  %v244_v49 = vld [vmem:[%s2495_s1 + $0x6c8] sm:$0xff]  ;;  %v259_v50 = vld [vmem:[%s2495_s1 + $0x740] sm:$0xff] }
  0x58   :  { %697 = vmatpush.msra.mxu0 %v161_v51  ;;  %716 = vmatpush.msra.mxu1 %v178_v52  ;;  %v276_v51 = vld [vmem:[%s2495_s1 + $0x7c8] sm:$0xff]  ;;  %v226_v52 = vld [vmem:[%s2495_s1 + $0x638] sm:$0xff] }
  0x59   :  { %737 = vmatpush.msra.mxu2 %v193_v53  ;;  %756 = vmatpush.msra.mxu3 %v210_v54  ;;  %v243_v53 = vld [vmem:[%s2495_s1 + $0x6c0] sm:$0xff]  ;;  %v258_v54 = vld [vmem:[%s2495_s1 + $0x738] sm:$0xff] }
  0x5a   :  { %698 = vmatpush.msra.mxu0 %v160_v55  ;;  %717 = vmatpush.msra.mxu1 %v177_v56  ;;  %v275_v55 = vld [vmem:[%s2495_s1 + $0x7c0] sm:$0xff]  ;;  %v225_v56 = vld [vmem:[%s2495_s1 + $0x630] sm:$0xff] }
  0x5b   :  { %738 = vmatpush.msra.mxu2 %v192_v57  ;;  %757 = vmatpush.msra.mxu3 %v209_v58  ;;  %v242_v57 = vld [vmem:[%s2495_s1 + $0x6b8] sm:$0xff]  ;;  %v257_v58 = vld [vmem:[%s2495_s1 + $0x730] sm:$0xff] }
  0x5c   :  { %699 = vmatpush.msra.mxu0 %v159_v59  ;;  %718 = vmatpush.msra.mxu1 %v176_v60  ;;  %v274_v59 = vld [vmem:[%s2495_s1 + $0x7b8] sm:$0xff]  ;;  %v224_v60 = vld [vmem:[%s2495_s1 + $0x628] sm:$0xff] }
  0x5d   :  { %739 = vmatpush.msra.mxu2 %v191_v61  ;;  %758 = vmatpush.msra.mxu3 %v208_v62  ;;  %v241_v61 = vld [vmem:[%s2495_s1 + $0x6b0] sm:$0xff]  ;;  %v256_v62 = vld [vmem:[%s2495_s1 + $0x728] sm:$0xff] }
  0x5e   :  { %700 = vmatpush.msra.mxu0 %v158_v63  ;;  %719 = vmatpush.msra.mxu1 %v175_v0  ;;  %v273_v63 = vld [vmem:[%s2495_s1 + $0x7b0] sm:$0xff]  ;;  %v223_v0 = vld [vmem:[%s2495_s1 + $0x620] sm:$0xff] }
  0x5f   :  { %740 = vmatpush.msra.mxu2 %v190_v1  ;;  %759 = vmatpush.msra.mxu3 %v207_v2  ;;  %v240_v1 = vld [vmem:[%s2495_s1 + $0x6a8] sm:$0xff]  ;;  %v255_v2 = vld [vmem:[%s2495_s1 + $0x720] sm:$0xff] }
  0x60   :  { %701 = vmatpush.msra.mxu0 %v157_v3  ;;  %720 = vmatpush.msra.mxu1 %v174_v4  ;;  %v272_v3 = vld [vmem:[%s2495_s1 + $0x7a8] sm:$0xff]  ;;  %v222_v4 = vld [vmem:[%s2495_s1 + $0x618] sm:$0xff] }
  0x61   :  { %741 = vmatpush.msra.mxu2 %v189_v5  ;;  %760 = vmatpush.msra.mxu3 %v206_v6  ;;  %v239_v5 = vld [vmem:[%s2495_s1 + $0x6a0] sm:$0xff]  ;;  %v254_v6 = vld [vmem:[%s2495_s1 + $0x718] sm:$0xff] }
  0x62   :  { %702 = vmatpush.msra.mxu0 %v156_v7  ;;  %721 = vmatpush.msra.mxu1 %v173_v8  ;;  %v271_v7 = vld [vmem:[%s2495_s1 + $0x7a0] sm:$0xff]  ;;  %v221_v8 = vld [vmem:[%s2495_s1 + $0x610] sm:$0xff] }
  0x63   :  { %742 = vmatpush.msra.mxu2 %v188_v9  ;;  %761 = vmatpush.msra.mxu3 %v205_v10  ;;  %v238_v9 = vld [vmem:[%s2495_s1 + $0x698] sm:$0xff]  ;;  %v253_v10 = vld [vmem:[%s2495_s1 + $0x710] sm:$0xff] }
  0x64   :  { %703 = vmatpush.msra.mxu0 %v155_v11  ;;  %722 = vmatpush.msra.mxu1 %v172_v12  ;;  %v270_v11 = vld [vmem:[%s2495_s1 + $0x798] sm:$0xff]  ;;  %v220_v12 = vld [vmem:[%s2495_s1 + $0x608] sm:$0xff] }
  0x65   :  { %743 = vmatpush.msra.mxu2 %v187_v13  ;;  %762 = vmatpush.msra.mxu3 %v204_v14  ;;  %v237_v13 = vld [vmem:[%s2495_s1 + $0x690] sm:$0xff]  ;;  %v252_v14 = vld [vmem:[%s2495_s1 + $0x708] sm:$0xff] }
  0x66   :  { %704 = vmatmul.f32.vlgmr.msra.gmra.mxu0 %v1567_v26  ;;  %744 = vmatmul.f32.vlgmr.msra.gmra.mxu2 %v1572_v28  ;;  %v281_v26 = vld [vmem:[%s2495_s1 + $0x7f0] sm:$0xff] }
  0x67   :  { %768 = vmatpush.msrb.mxu0 %v234_v15  ;;  %808 = vmatpush.msrb.mxu2 %v266_v16  ;;  %v1766_v28 = vld.sshfl [vmem:[#allocation1 + $0x20] sm:$0xff pattern:$0x73625140]  ;;  %v219_v16 = vld [vmem:[%s2495_s1 + $0x600] sm:$0xff] }
  0x68   :  { %723 = vmatpush.msra.mxu1 %v171_v17  ;;  %763 = vmatpush.msra.mxu3 %v203_v18  ;;  %v269_v15 = vld [vmem:[%s2495_s1 + $0x790] sm:$0xff]  ;;  %v236_v17 = vld [vmem:[%s2495_s1 + $0x688] sm:$0xff]  ;;  %v251_v18 = vld [vmem:[%s2495_s1 + $0x700] sm:$0xff] }
  0x69   :  { %724 = vmatmul.f32.vlgmr.msra.gmra.mxu1 %v1577_v30  ;;  %764 = vmatmul.f32.vlgmr.msra.gmra.mxu3 %v1579_v31  ;;  %v248_v30 = vld [vmem:[%s2495_s1 + $0x6e8] sm:$0xff] }
  0x6a   :  { %769 = vmatpush.msrb.mxu0 %v233_v19  ;;  %788 = vmatpush.msrb.mxu1 %v250_v20  ;;  %v25_v31 = vld [vmem:[%s2496_s0 + $0x28] sm:$0xff]  ;;  %v298_v20 = vld [vmem:[%s2495_s1 + $0x878] sm:$0xff] }
  0x6b   :  { %809 = vmatpush.msrb.mxu2 %v265_v21  ;;  %828 = vmatpush.msrb.mxu3 %v282_v22  ;;  %488 = vst [vmem:[#allocation1 + $0x20] ss:$4 sm:$0xff] %v25_v31  ;;  %v268_v19 = vld [vmem:[%s2495_s1 + $0x788] sm:$0xff]  ;;  %v330_v21 = vld [vmem:[%s2495_s1 + $0x978] sm:$0xff]  ;;  %v235_v22 = vld [vmem:[%s2495_s1 + $0x680] sm:$0xff] }
  0x6c   :  { %770 = vmatpush.msrb.mxu0 %v232_v23  ;;  %789 = vmatpush.msrb.mxu1 %v249_v24  ;;  %v267_v23 = vld [vmem:[%s2495_s1 + $0x780] sm:$0xff]  ;;  %v26_v24 = vld [vmem:[%s2496_s0 + $0x30] sm:$0x3f]  ;;  %v328_v31 = vld [vmem:[%s2495_s1 + $0x968] sm:$0xff] }
  0x6d   :  { %810 = vmatpush.msrb.mxu2 %v264_v25  ;;  %829 = vmatpush.msrb.mxu3 %v281_v26  ;;  %v297_v25 = vld [vmem:[%s2495_s1 + $0x870] sm:$0xff]  ;;  %v314_v26 = vld [vmem:[%s2495_s1 + $0x8f8] sm:$0xff] }
  0x6e   :  { %771 = vmatpush.msrb.mxu0 %v231_v27  ;;  %790 = vmatpush.msrb.mxu1 %v248_v30  ;;  %v329_v27 = vld [vmem:[%s2495_s1 + $0x970] sm:$0xff] }
  0x6f   :  { %811 = vmatpush.msrb.mxu2 %v263_v34  ;;  %830 = vmatpush.msrb.mxu3 %v280_v35  ;;  %v313_v30 = vld [vmem:[%s2495_s1 + $0x8f0] sm:$0xff] }
  0x70   :  { %772 = vmatpush.msrb.mxu0 %v230_v36  ;;  %791 = vmatpush.msrb.mxu1 %v247_v37  ;;  %v345_v34 = vld [vmem:[%s2495_s1 + $0x9f0] sm:$0xff]  ;;  %v1975_v36 = vld.sshfl [vmem:[#allocation1 + $0x10] sm:$0xff pattern:$0x73625140] }
  0x71   :  { %812 = vmatpush.msrb.mxu2 %v262_v38  ;;  %831 = vmatpush.msrb.mxu3 %v279_v39  ;;  %v1973_v35 = vld.sshfl [vmem:[#allocation1] sm:$0xff pattern:$0x73625140]  ;;  %v1977_v37 = vld.sshfl [vmem:[#allocation1 + $0x8] sm:$0xff pattern:$0x73625140] }
  0x72   :  { %773 = vmatpush.msrb.mxu0 %v229_v40  ;;  %792 = vmatpush.msrb.mxu1 %v246_v41  ;;  %v1979_v38 = vld.sshfl [vmem:[#allocation1 + $0x18] sm:$0xff pattern:$0x73625140]  ;;  %v295_v39 = vld [vmem:[%s2495_s1 + $0x860] sm:$0xff]  ;;  %v294_v41 = vld [vmem:[%s2495_s1 + $0x858] sm:$0xff] }
  0x73   :  { %813 = vmatpush.msrb.mxu2 %v261_v42  ;;  %832 = vmatpush.msrb.mxu3 %v278_v43  ;;  %497 = vst [vmem:[#allocation1] ss:$4 sm:$0xff] %v26_v24  ;;  %v344_v40 = vld [vmem:[%s2495_s1 + $0x9e8] sm:$0xff]  ;;  %v311_v42 = vld [vmem:[%s2495_s1 + $0x8e0] sm:$0xff]  ;;  %v326_v43 = vld [vmem:[%s2495_s1 + $0x958] sm:$0xff] }
  0x74   :  { %774 = vmatpush.msrb.mxu0 %v228_v44  ;;  %793 = vmatpush.msrb.mxu1 %v245_v45  ;;  %v343_v44 = vld [vmem:[%s2495_s1 + $0x9e0] sm:$0xff]  ;;  %v293_v45 = vld [vmem:[%s2495_s1 + $0x850] sm:$0xff]  ;;  %v332_v24 = vld [vmem:[%s2495_s1 + $0x988] sm:$0xff] }
  0x75   :  { %814 = vmatpush.msrb.mxu2 %v260_v46  ;;  %833 = vmatpush.msrb.mxu3 %v277_v47  ;;  %v310_v46 = vld [vmem:[%s2495_s1 + $0x8d8] sm:$0xff]  ;;  %v325_v47 = vld [vmem:[%s2495_s1 + $0x950] sm:$0xff] }
  0x76   :  { %775 = vmatpush.msrb.mxu0 %v227_v48  ;;  %794 = vmatpush.msrb.mxu1 %v244_v49  ;;  %v342_v48 = vld [vmem:[%s2495_s1 + $0x9d8] sm:$0xff]  ;;  %v292_v49 = vld [vmem:[%s2495_s1 + $0x848] sm:$0xff] }
  0x77   :  { %815 = vmatpush.msrb.mxu2 %v259_v50  ;;  %834 = vmatpush.msrb.mxu3 %v276_v51  ;;  %v309_v50 = vld [vmem:[%s2495_s1 + $0x8d0] sm:$0xff]  ;;  %v324_v51 = vld [vmem:[%s2495_s1 + $0x948] sm:$0xff] }
  0x78   :  { %776 = vmatpush.msrb.mxu0 %v226_v52  ;;  %795 = vmatpush.msrb.mxu1 %v243_v53  ;;  %v341_v52 = vld [vmem:[%s2495_s1 + $0x9d0] sm:$0xff]  ;;  %v291_v53 = vld [vmem:[%s2495_s1 + $0x840] sm:$0xff] }
  0x79   :  { %816 = vmatpush.msrb.mxu2 %v258_v54  ;;  %835 = vmatpush.msrb.mxu3 %v275_v55  ;;  %v308_v54 = vld [vmem:[%s2495_s1 + $0x8c8] sm:$0xff]  ;;  %v323_v55 = vld [vmem:[%s2495_s1 + $0x940] sm:$0xff] }
  0x7a   :  { %777 = vmatpush.msrb.mxu0 %v225_v56  ;;  %796 = vmatpush.msrb.mxu1 %v242_v57  ;;  %v340_v56 = vld [vmem:[%s2495_s1 + $0x9c8] sm:$0xff]  ;;  %v290_v57 = vld [vmem:[%s2495_s1 + $0x838] sm:$0xff] }
  0x7b   :  { %817 = vmatpush.msrb.mxu2 %v257_v58  ;;  %836 = vmatpush.msrb.mxu3 %v274_v59  ;;  %v307_v58 = vld [vmem:[%s2495_s1 + $0x8c0] sm:$0xff]  ;;  %v322_v59 = vld [vmem:[%s2495_s1 + $0x938] sm:$0xff] }
  0x7c   :  { %778 = vmatpush.msrb.mxu0 %v224_v60  ;;  %797 = vmatpush.msrb.mxu1 %v241_v61  ;;  %v339_v60 = vld [vmem:[%s2495_s1 + $0x9c0] sm:$0xff]  ;;  %v289_v61 = vld [vmem:[%s2495_s1 + $0x830] sm:$0xff] }
  0x7d   :  { %818 = vmatpush.msrb.mxu2 %v256_v62  ;;  %837 = vmatpush.msrb.mxu3 %v273_v63  ;;  %v306_v62 = vld [vmem:[%s2495_s1 + $0x8b8] sm:$0xff]  ;;  %v321_v63 = vld [vmem:[%s2495_s1 + $0x930] sm:$0xff] }
  0x7e   :  { %779 = vmatpush.msrb.mxu0 %v223_v0  ;;  %798 = vmatpush.msrb.mxu1 %v240_v1  ;;  %v338_v0 = vld [vmem:[%s2495_s1 + $0x9b8] sm:$0xff]  ;;  %v288_v1 = vld [vmem:[%s2495_s1 + $0x828] sm:$0xff] }
  0x7f   :  { %819 = vmatpush.msrb.mxu2 %v255_v2  ;;  %838 = vmatpush.msrb.mxu3 %v272_v3  ;;  %v305_v2 = vld [vmem:[%s2495_s1 + $0x8b0] sm:$0xff]  ;;  %v320_v3 = vld [vmem:[%s2495_s1 + $0x928] sm:$0xff] }
  0x80   :  { %780 = vmatpush.msrb.mxu0 %v222_v4  ;;  %799 = vmatpush.msrb.mxu1 %v239_v5  ;;  %v337_v4 = vld [vmem:[%s2495_s1 + $0x9b0] sm:$0xff]  ;;  %v287_v5 = vld [vmem:[%s2495_s1 + $0x820] sm:$0xff] }
  0x81   :  { %820 = vmatpush.msrb.mxu2 %v254_v6  ;;  %839 = vmatpush.msrb.mxu3 %v271_v7  ;;  %v304_v6 = vld [vmem:[%s2495_s1 + $0x8a8] sm:$0xff]  ;;  %v319_v7 = vld [vmem:[%s2495_s1 + $0x920] sm:$0xff] }
  0x82   :  { %781 = vmatpush.msrb.mxu0 %v221_v8  ;;  %800 = vmatpush.msrb.mxu1 %v238_v9  ;;  %v336_v8 = vld [vmem:[%s2495_s1 + $0x9a8] sm:$0xff]  ;;  %v286_v9 = vld [vmem:[%s2495_s1 + $0x818] sm:$0xff] }
  0x83   :  { %821 = vmatpush.msrb.mxu2 %v253_v10  ;;  %840 = vmatpush.msrb.mxu3 %v270_v11  ;;  %v303_v10 = vld [vmem:[%s2495_s1 + $0x8a0] sm:$0xff]  ;;  %v318_v11 = vld [vmem:[%s2495_s1 + $0x918] sm:$0xff] }
  0x84   :  { %782 = vmatpush.msrb.mxu0 %v220_v12  ;;  %801 = vmatpush.msrb.mxu1 %v237_v13  ;;  %v335_v12 = vld [vmem:[%s2495_s1 + $0x9a0] sm:$0xff]  ;;  %v285_v13 = vld [vmem:[%s2495_s1 + $0x810] sm:$0xff] }
  0x85   :  { %822 = vmatpush.msrb.mxu2 %v252_v14  ;;  %841 = vmatpush.msrb.mxu3 %v269_v15  ;;  %v302_v14 = vld [vmem:[%s2495_s1 + $0x898] sm:$0xff]  ;;  %v317_v15 = vld [vmem:[%s2495_s1 + $0x910] sm:$0xff] }
  0x86   :  { %783 = vmatpush.msrb.mxu0 %v219_v16  ;;  %802 = vmatpush.msrb.mxu1 %v236_v17  ;;  %v334_v16 = vld [vmem:[%s2495_s1 + $0x998] sm:$0xff]  ;;  %v284_v17 = vld [vmem:[%s2495_s1 + $0x808] sm:$0xff] }
  0x87   :  { %823 = vmatpush.msrb.mxu2 %v251_v18  ;;  %842 = vmatpush.msrb.mxu3 %v268_v19  ;;  %v301_v18 = vld [vmem:[%s2495_s1 + $0x890] sm:$0xff]  ;;  %v316_v19 = vld [vmem:[%s2495_s1 + $0x908] sm:$0xff] }
  0x88   :  { %784 = vmatmul.f32.vlgmr.msrb.gmra.mxu0 %v1766_v28  ;;  %824 = vmatmul.f32.vlgmr.msrb.gmra.mxu2 %v1768_v29  ;;  %v346_v28 = vld [vmem:[%s2495_s1 + $0x9f8] sm:$0xff]  ;;  %v296_v29 = vld [vmem:[%s2495_s1 + $0x868] sm:$0xff] }
  0x89   :  { %848 = vmatpush.msra.mxu0 %v298_v20  ;;  %888 = vmatpush.msra.mxu2 %v330_v21  ;;  %v333_v20 = vld [vmem:[%s2495_s1 + $0x990] sm:$0xff]  ;;  %v283_v21 = vld [vmem:[%s2495_s1 + $0x800] sm:$0xff] }
  0x8a   :  { %803 = vmatpush.msrb.mxu1 %v235_v22  ;;  %843 = vmatpush.msrb.mxu3 %v267_v23  ;;  %v300_v22 = vld [vmem:[%s2495_s1 + $0x888] sm:$0xff]  ;;  %v315_v23 = vld [vmem:[%s2495_s1 + $0x900] sm:$0xff] }
  0x8b   :  { %804 = vmatmul.f32.vlgmr.msrb.gmra.mxu1 %v1770_v32  ;;  %844 = vmatmul.f32.vlgmr.msrb.gmra.mxu3 %v1778_v33  ;;  %v312_v32 = vld [vmem:[%s2495_s1 + $0x8e8] sm:$0xff]  ;;  %v327_v33 = vld [vmem:[%s2495_s1 + $0x960] sm:$0xff] }
  0x8c   :  { %849 = vmatpush.msra.mxu0 %v297_v25  ;;  %868 = vmatpush.msra.mxu1 %v314_v26  ;;  %v362_v25 = vld [vmem:[%s2495_s1 + $0xa78] sm:$0xff] }
  0x8d   :  { %889 = vmatpush.msra.mxu2 %v329_v27  ;;  %908 = vmatpush.msra.mxu3 %v346_v28  ;;  %v394_v26 = vld [vmem:[%s2495_s1 + $0xb78] sm:$0xff]  ;;  %v299_v27 = vld [vmem:[%s2495_s1 + $0x880] sm:$0xff] }
  0x8e   :  { %850 = vmatpush.msra.mxu0 %v296_v29  ;;  %869 = vmatpush.msra.mxu1 %v313_v30  ;;  %v331_v28 = vld [vmem:[%s2495_s1 + $0x980] sm:$0xff]  ;;  %v361_v29 = vld [vmem:[%s2495_s1 + $0xa70] sm:$0xff]  ;;  %v378_v30 = vld [vmem:[%s2495_s1 + $0xaf8] sm:$0xff] }
  0x8f   :  { %890 = vmatpush.msra.mxu2 %v328_v31  ;;  %909 = vmatpush.msra.mxu3 %v345_v34  ;;  %v393_v31 = vld [vmem:[%s2495_s1 + $0xb70] sm:$0xff]  ;;  %v410_v34 = vld [vmem:[%s2495_s1 + $0xbf8] sm:$0xff] }
  0x90   :  { %851 = vmatpush.msra.mxu0 %v295_v39  ;;  %870 = vmatpush.msra.mxu1 %v312_v32  ;;  %v392_v39 = vld [vmem:[%s2495_s1 + $0xb68] sm:$0xff] }
  0x91   :  { %891 = vmatpush.msra.mxu2 %v327_v33  ;;  %910 = vmatpush.msra.mxu3 %v344_v40  ;;  %v376_v32 = vld [vmem:[%s2495_s1 + $0xae8] sm:$0xff]  ;;  %v391_v33 = vld [vmem:[%s2495_s1 + $0xb60] sm:$0xff] }
  0x92   :  { %852 = vmatpush.msra.mxu0 %v294_v41  ;;  %871 = vmatpush.msra.mxu1 %v311_v42  ;;  %v408_v40 = vld [vmem:[%s2495_s1 + $0xbe8] sm:$0xff]  ;;  %v358_v41 = vld [vmem:[%s2495_s1 + $0xa58] sm:$0xff]  ;;  %v375_v42 = vld [vmem:[%s2495_s1 + $0xae0] sm:$0xff] }
  0x93   :  { %892 = vmatpush.msra.mxu2 %v326_v43  ;;  %911 = vmatpush.msra.mxu3 %v343_v44  ;;  %v390_v43 = vld [vmem:[%s2495_s1 + $0xb58] sm:$0xff]  ;;  %v407_v44 = vld [vmem:[%s2495_s1 + $0xbe0] sm:$0xff] }
  0x94   :  { %853 = vmatpush.msra.mxu0 %v293_v45  ;;  %872 = vmatpush.msra.mxu1 %v310_v46  ;;  %v357_v45 = vld [vmem:[%s2495_s1 + $0xa50] sm:$0xff]  ;;  %v374_v46 = vld [vmem:[%s2495_s1 + $0xad8] sm:$0xff] }
  0x95   :  { %893 = vmatpush.msra.mxu2 %v325_v47  ;;  %912 = vmatpush.msra.mxu3 %v342_v48  ;;  %v389_v47 = vld [vmem:[%s2495_s1 + $0xb50] sm:$0xff]  ;;  %v406_v48 = vld [vmem:[%s2495_s1 + $0xbd8] sm:$0xff] }
  0x96   :  { %854 = vmatpush.msra.mxu0 %v292_v49  ;;  %873 = vmatpush.msra.mxu1 %v309_v50  ;;  %v356_v49 = vld [vmem:[%s2495_s1 + $0xa48] sm:$0xff]  ;;  %v373_v50 = vld [vmem:[%s2495_s1 + $0xad0] sm:$0xff] }
  0x97   :  { %894 = vmatpush.msra.mxu2 %v324_v51  ;;  %913 = vmatpush.msra.mxu3 %v341_v52  ;;  %v388_v51 = vld [vmem:[%s2495_s1 + $0xb48] sm:$0xff]  ;;  %v405_v52 = vld [vmem:[%s2495_s1 + $0xbd0] sm:$0xff] }
  0x98   :  { %855 = vmatpush.msra.mxu0 %v291_v53  ;;  %874 = vmatpush.msra.mxu1 %v308_v54  ;;  %v355_v53 = vld [vmem:[%s2495_s1 + $0xa40] sm:$0xff]  ;;  %v372_v54 = vld [vmem:[%s2495_s1 + $0xac8] sm:$0xff] }
  0x99   :  { %895 = vmatpush.msra.mxu2 %v323_v55  ;;  %914 = vmatpush.msra.mxu3 %v340_v56  ;;  %v387_v55 = vld [vmem:[%s2495_s1 + $0xb40] sm:$0xff]  ;;  %v404_v56 = vld [vmem:[%s2495_s1 + $0xbc8] sm:$0xff] }
  0x9a   :  { %856 = vmatpush.msra.mxu0 %v290_v57  ;;  %875 = vmatpush.msra.mxu1 %v307_v58  ;;  %v354_v57 = vld [vmem:[%s2495_s1 + $0xa38] sm:$0xff]  ;;  %v371_v58 = vld [vmem:[%s2495_s1 + $0xac0] sm:$0xff] }
  0x9b   :  { %896 = vmatpush.msra.mxu2 %v322_v59  ;;  %915 = vmatpush.msra.mxu3 %v339_v60  ;;  %v386_v59 = vld [vmem:[%s2495_s1 + $0xb38] sm:$0xff]  ;;  %v403_v60 = vld [vmem:[%s2495_s1 + $0xbc0] sm:$0xff] }
  0x9c   :  { %857 = vmatpush.msra.mxu0 %v289_v61  ;;  %876 = vmatpush.msra.mxu1 %v306_v62  ;;  %v353_v61 = vld [vmem:[%s2495_s1 + $0xa30] sm:$0xff]  ;;  %v370_v62 = vld [vmem:[%s2495_s1 + $0xab8] sm:$0xff] }
  0x9d   :  { %897 = vmatpush.msra.mxu2 %v321_v63  ;;  %916 = vmatpush.msra.mxu3 %v338_v0  ;;  %v385_v63 = vld [vmem:[%s2495_s1 + $0xb30] sm:$0xff]  ;;  %v402_v0 = vld [vmem:[%s2495_s1 + $0xbb8] sm:$0xff] }
  0x9e   :  { %858 = vmatpush.msra.mxu0 %v288_v1  ;;  %877 = vmatpush.msra.mxu1 %v305_v2  ;;  %v352_v1 = vld [vmem:[%s2495_s1 + $0xa28] sm:$0xff]  ;;  %v369_v2 = vld [vmem:[%s2495_s1 + $0xab0] sm:$0xff] }
  0x9f   :  { %898 = vmatpush.msra.mxu2 %v320_v3  ;;  %917 = vmatpush.msra.mxu3 %v337_v4  ;;  %v384_v3 = vld [vmem:[%s2495_s1 + $0xb28] sm:$0xff]  ;;  %v401_v4 = vld [vmem:[%s2495_s1 + $0xbb0] sm:$0xff] }
  0xa0   :  { %859 = vmatpush.msra.mxu0 %v287_v5  ;;  %878 = vmatpush.msra.mxu1 %v304_v6  ;;  %v351_v5 = vld [vmem:[%s2495_s1 + $0xa20] sm:$0xff]  ;;  %v368_v6 = vld [vmem:[%s2495_s1 + $0xaa8] sm:$0xff] }
  0xa1   :  { %899 = vmatpush.msra.mxu2 %v319_v7  ;;  %918 = vmatpush.msra.mxu3 %v336_v8  ;;  %v383_v7 = vld [vmem:[%s2495_s1 + $0xb20] sm:$0xff]  ;;  %v400_v8 = vld [vmem:[%s2495_s1 + $0xba8] sm:$0xff] }
  0xa2   :  { %860 = vmatpush.msra.mxu0 %v286_v9  ;;  %879 = vmatpush.msra.mxu1 %v303_v10  ;;  %v350_v9 = vld [vmem:[%s2495_s1 + $0xa18] sm:$0xff]  ;;  %v367_v10 = vld [vmem:[%s2495_s1 + $0xaa0] sm:$0xff] }
  0xa3   :  { %900 = vmatpush.msra.mxu2 %v318_v11  ;;  %919 = vmatpush.msra.mxu3 %v335_v12  ;;  %v382_v11 = vld [vmem:[%s2495_s1 + $0xb18] sm:$0xff]  ;;  %v399_v12 = vld [vmem:[%s2495_s1 + $0xba0] sm:$0xff] }
  0xa4   :  { %861 = vmatpush.msra.mxu0 %v285_v13  ;;  %880 = vmatpush.msra.mxu1 %v302_v14  ;;  %v349_v13 = vld [vmem:[%s2495_s1 + $0xa10] sm:$0xff]  ;;  %v366_v14 = vld [vmem:[%s2495_s1 + $0xa98] sm:$0xff] }
  0xa5   :  { %901 = vmatpush.msra.mxu2 %v317_v15  ;;  %920 = vmatpush.msra.mxu3 %v334_v16  ;;  %v381_v15 = vld [vmem:[%s2495_s1 + $0xb10] sm:$0xff]  ;;  %v398_v16 = vld [vmem:[%s2495_s1 + $0xb98] sm:$0xff] }
  0xa6   :  { %862 = vmatpush.msra.mxu0 %v284_v17  ;;  %881 = vmatpush.msra.mxu1 %v301_v18  ;;  %v348_v17 = vld [vmem:[%s2495_s1 + $0xa08] sm:$0xff]  ;;  %v365_v18 = vld [vmem:[%s2495_s1 + $0xa90] sm:$0xff] }
  0xa7   :  { %902 = vmatpush.msra.mxu2 %v316_v19  ;;  %921 = vmatpush.msra.mxu3 %v333_v20  ;;  %v380_v19 = vld [vmem:[%s2495_s1 + $0xb08] sm:$0xff]  ;;  %v397_v20 = vld [vmem:[%s2495_s1 + $0xb90] sm:$0xff] }
  0xa8   :  { %863 = vmatpush.msra.mxu0 %v283_v21  ;;  %882 = vmatpush.msra.mxu1 %v300_v22  ;;  %v347_v21 = vld [vmem:[%s2495_s1 + $0xa00] sm:$0xff]  ;;  %v364_v22 = vld [vmem:[%s2495_s1 + $0xa88] sm:$0xff] }
  0xa9   :  { %903 = vmatpush.msra.mxu2 %v315_v23  ;;  %922 = vmatpush.msra.mxu3 %v332_v24  ;;  %v379_v23 = vld [vmem:[%s2495_s1 + $0xb00] sm:$0xff]  ;;  %v396_v24 = vld [vmem:[%s2495_s1 + $0xb88] sm:$0xff] }
  0xaa   :  { %864 = vmatmul.f32.vlgmr.msra.gmra.mxu0 %v1973_v35  ;;  %904 = vmatmul.f32.vlgmr.msra.gmra.mxu2 %v1975_v36  ;;  %v360_v35 = vld [vmem:[%s2495_s1 + $0xa68] sm:$0xff]  ;;  %v377_v36 = vld [vmem:[%s2495_s1 + $0xaf0] sm:$0xff] }
  0xab   :  { %928 = vmatpush.msrb.mxu0 %v362_v25  ;;  %968 = vmatpush.msrb.mxu2 %v394_v26  ;;  %v493_v25 = vld.sshfl [vmem:[#allocation1 + $0x20] sm:$0xff pattern:$0x73625140]  ;;  %v495_v26 = vld.sshfl [vmem:[#allocation1 + $0x30] sm:$0xff pattern:$0x73625140] }
  0xac   :  { %883 = vmatpush.msra.mxu1 %v299_v27  ;;  %923 = vmatpush.msra.mxu3 %v331_v28  ;;  %v426_v27 = vld [vmem:[%s2495_s1 + $0xc78] sm:$0xff] }
  0xad   :  { %884 = vmatmul.f32.vlgmr.msra.gmra.mxu1 %v1977_v37  ;;  %924 = vmatmul.f32.vlgmr.msra.gmra.mxu3 %v1979_v38  ;;  %v409_v37 = vld [vmem:[%s2495_s1 + $0xbf0] sm:$0xff]  ;;  %v359_v38 = vld [vmem:[%s2495_s1 + $0xa60] sm:$0xff]  ;;  %v458_v28 = vld [vmem:[%s2495_s1 + $0xd78] sm:$0xff] }
  0xae   :  { %929 = vmatpush.msrb.mxu0 %v361_v29  ;;  %948 = vmatpush.msrb.mxu1 %v378_v30  ;;  %v363_v29 = vld [vmem:[%s2495_s1 + $0xa80] sm:$0xff] }
  0xaf   :  { %969 = vmatpush.msrb.mxu2 %v393_v31  ;;  %988 = vmatpush.msrb.mxu3 %v410_v34  ;;  %v395_v30 = vld [vmem:[%s2495_s1 + $0xb80] sm:$0xff]  ;;  %v494_v31 = vld.sshfl [vmem:[#allocation1 + $0x28] sm:$0xff pattern:$0x73625140] }
  0xb0   :  { %930 = vmatpush.msrb.mxu0 %v360_v35  ;;  %949 = vmatpush.msrb.mxu1 %v377_v36  ;;  %v496_v34 = vld.sshfl [vmem:[#allocation1 + $0x38] sm:$0xff pattern:$0x73625140]  ;;  %v425_v35 = vld [vmem:[%s2495_s1 + $0xc70] sm:$0xff]  ;;  %v442_v36 = vld [vmem:[%s2495_s1 + $0xcf8] sm:$0xff] }
  0xb1   :  { %970 = vmatpush.msrb.mxu2 %v392_v39  ;;  %989 = vmatpush.msrb.mxu3 %v409_v37  ;;  %v457_v39 = vld [vmem:[%s2495_s1 + $0xd70] sm:$0xff]  ;;  %v424_v37 = vld [vmem:[%s2495_s1 + $0xc68] sm:$0xff] }
  0xb2   :  { %931 = vmatpush.msrb.mxu0 %v359_v38  ;;  %950 = vmatpush.msrb.mxu1 %v376_v32  ;;  %v441_v38 = vld [vmem:[%s2495_s1 + $0xcf0] sm:$0xff]  ;;  %v456_v32 = vld [vmem:[%s2495_s1 + $0xd68] sm:$0xff] }
  0xb3   :  { %971 = vmatpush.msrb.mxu2 %v391_v33  ;;  %990 = vmatpush.msrb.mxu3 %v408_v40  ;;  %v423_v33 = vld [vmem:[%s2495_s1 + $0xc60] sm:$0xff]  ;;  %v440_v40 = vld [vmem:[%s2495_s1 + $0xce8] sm:$0xff] }
  0xb4   :  { %932 = vmatpush.msrb.mxu0 %v358_v41  ;;  %951 = vmatpush.msrb.mxu1 %v375_v42  ;;  %v455_v41 = vld [vmem:[%s2495_s1 + $0xd60] sm:$0xff]  ;;  %v422_v42 = vld [vmem:[%s2495_s1 + $0xc58] sm:$0xff] }
  0xb5   :  { %972 = vmatpush.msrb.mxu2 %v390_v43  ;;  %991 = vmatpush.msrb.mxu3 %v407_v44  ;;  %v439_v43 = vld [vmem:[%s2495_s1 + $0xce0] sm:$0xff]  ;;  %v454_v44 = vld [vmem:[%s2495_s1 + $0xd58] sm:$0xff] }
  0xb6   :  { %933 = vmatpush.msrb.mxu0 %v357_v45  ;;  %952 = vmatpush.msrb.mxu1 %v374_v46  ;;  %v421_v45 = vld [vmem:[%s2495_s1 + $0xc50] sm:$0xff]  ;;  %v438_v46 = vld [vmem:[%s2495_s1 + $0xcd8] sm:$0xff] }
  0xb7   :  { %973 = vmatpush.msrb.mxu2 %v389_v47  ;;  %992 = vmatpush.msrb.mxu3 %v406_v48  ;;  %v453_v47 = vld [vmem:[%s2495_s1 + $0xd50] sm:$0xff]  ;;  %v420_v48 = vld [vmem:[%s2495_s1 + $0xc48] sm:$0xff] }
  0xb8   :  { %934 = vmatpush.msrb.mxu0 %v356_v49  ;;  %953 = vmatpush.msrb.mxu1 %v373_v50  ;;  %v437_v49 = vld [vmem:[%s2495_s1 + $0xcd0] sm:$0xff]  ;;  %v452_v50 = vld [vmem:[%s2495_s1 + $0xd48] sm:$0xff] }
  0xb9   :  { %974 = vmatpush.msrb.mxu2 %v388_v51  ;;  %993 = vmatpush.msrb.mxu3 %v405_v52  ;;  %v419_v51 = vld [vmem:[%s2495_s1 + $0xc40] sm:$0xff]  ;;  %v436_v52 = vld [vmem:[%s2495_s1 + $0xcc8] sm:$0xff] }
  0xba   :  { %935 = vmatpush.msrb.mxu0 %v355_v53  ;;  %954 = vmatpush.msrb.mxu1 %v372_v54  ;;  %v451_v53 = vld [vmem:[%s2495_s1 + $0xd40] sm:$0xff]  ;;  %v418_v54 = vld [vmem:[%s2495_s1 + $0xc38] sm:$0xff] }
  0xbb   :  { %975 = vmatpush.msrb.mxu2 %v387_v55  ;;  %994 = vmatpush.msrb.mxu3 %v404_v56  ;;  %v435_v55 = vld [vmem:[%s2495_s1 + $0xcc0] sm:$0xff]  ;;  %v450_v56 = vld [vmem:[%s2495_s1 + $0xd38] sm:$0xff] }
  0xbc   :  { %936 = vmatpush.msrb.mxu0 %v354_v57  ;;  %955 = vmatpush.msrb.mxu1 %v371_v58  ;;  %v417_v57 = vld [vmem:[%s2495_s1 + $0xc30] sm:$0xff]  ;;  %v434_v58 = vld [vmem:[%s2495_s1 + $0xcb8] sm:$0xff] }
  0xbd   :  { %976 = vmatpush.msrb.mxu2 %v386_v59  ;;  %995 = vmatpush.msrb.mxu3 %v403_v60  ;;  %v449_v59 = vld [vmem:[%s2495_s1 + $0xd30] sm:$0xff]  ;;  %v416_v60 = vld [vmem:[%s2495_s1 + $0xc28] sm:$0xff] }
  0xbe   :  { %937 = vmatpush.msrb.mxu0 %v353_v61  ;;  %956 = vmatpush.msrb.mxu1 %v370_v62  ;;  %v433_v61 = vld [vmem:[%s2495_s1 + $0xcb0] sm:$0xff]  ;;  %v448_v62 = vld [vmem:[%s2495_s1 + $0xd28] sm:$0xff] }
  0xbf   :  { %977 = vmatpush.msrb.mxu2 %v385_v63  ;;  %996 = vmatpush.msrb.mxu3 %v402_v0  ;;  %v415_v63 = vld [vmem:[%s2495_s1 + $0xc20] sm:$0xff]  ;;  %v432_v0 = vld [vmem:[%s2495_s1 + $0xca8] sm:$0xff] }
  0xc0   :  { %938 = vmatpush.msrb.mxu0 %v352_v1  ;;  %957 = vmatpush.msrb.mxu1 %v369_v2  ;;  %v447_v1 = vld [vmem:[%s2495_s1 + $0xd20] sm:$0xff]  ;;  %v414_v2 = vld [vmem:[%s2495_s1 + $0xc18] sm:$0xff] }
  0xc1   :  { %978 = vmatpush.msrb.mxu2 %v384_v3  ;;  %997 = vmatpush.msrb.mxu3 %v401_v4  ;;  %v431_v3 = vld [vmem:[%s2495_s1 + $0xca0] sm:$0xff]  ;;  %v446_v4 = vld [vmem:[%s2495_s1 + $0xd18] sm:$0xff] }
  0xc2   :  { %939 = vmatpush.msrb.mxu0 %v351_v5  ;;  %958 = vmatpush.msrb.mxu1 %v368_v6  ;;  %v413_v5 = vld [vmem:[%s2495_s1 + $0xc10] sm:$0xff]  ;;  %v430_v6 = vld [vmem:[%s2495_s1 + $0xc98] sm:$0xff] }
  0xc3   :  { %979 = vmatpush.msrb.mxu2 %v383_v7  ;;  %998 = vmatpush.msrb.mxu3 %v400_v8  ;;  %v445_v7 = vld [vmem:[%s2495_s1 + $0xd10] sm:$0xff]  ;;  %v412_v8 = vld [vmem:[%s2495_s1 + $0xc08] sm:$0xff] }
  0xc4   :  { %940 = vmatpush.msrb.mxu0 %v350_v9  ;;  %959 = vmatpush.msrb.mxu1 %v367_v10  ;;  %v429_v9 = vld [vmem:[%s2495_s1 + $0xc90] sm:$0xff]  ;;  %v444_v10 = vld [vmem:[%s2495_s1 + $0xd08] sm:$0xff] }
  0xc5   :  { %980 = vmatpush.msrb.mxu2 %v382_v11  ;;  %999 = vmatpush.msrb.mxu3 %v399_v12  ;;  %v411_v11 = vld [vmem:[%s2495_s1 + $0xc00] sm:$0xff]  ;;  %v428_v12 = vld [vmem:[%s2495_s1 + $0xc88] sm:$0xff] }
  0xc6   :  { %941 = vmatpush.msrb.mxu0 %v349_v13  ;;  %960 = vmatpush.msrb.mxu1 %v366_v14  ;;  %v443_v13 = vld [vmem:[%s2495_s1 + $0xd00] sm:$0xff]  ;;  %v498_v14 = vld.sshfl [vmem:[#allocation1] sm:$0xff pattern:$0x73625140] }
  0xc7   :  { %981 = vmatpush.msrb.mxu2 %v381_v15  ;;  %1000 = vmatpush.msrb.mxu3 %v398_v16  ;;  %v500_v15 = vld.sshfl [vmem:[#allocation1 + $0x10] sm:$0xff pattern:$0x73625140] }
  0xc8   :  { %942 = vmatpush.msrb.mxu0 %v348_v17  ;;  %961 = vmatpush.msrb.mxu1 %v365_v18  ;;  %v427_v16 = vld [vmem:[%s2495_s1 + $0xc80] sm:$0xff]  ;;  %v499_v17 = vld.sshfl [vmem:[#allocation1 + $0x8] sm:$0xff pattern:$0x73625140]  ;;  %v565_v18 = vpop.f32.mrf.mxu1 }
  0xc9   :  { %982 = vmatpush.msrb.mxu2 %v380_v19  ;;  %1001 = vmatpush.msrb.mxu3 %v397_v20  ;;  %v545_v19 = vpop.f32.mrf.mxu0 }
  0xca   :  { %943 = vmatpush.msrb.mxu0 %v347_v21  ;;  %962 = vmatpush.msrb.mxu1 %v364_v22  ;;  %v566_v20 = vadd.f32 %v565_v18, %v545_v19  ;;  %v585_v21 = vpop.f32.mrf.mxu2 }
  0xcb   :  { %983 = vmatpush.msrb.mxu2 %v379_v23  ;;  %1002 = vmatpush.msrb.mxu3 %v396_v24  ;;  %v605_v23 = vpop.f32.mrf.mxu3 }
  0xcc   :  { %944 = vmatmul.f32.vlgmr.msrb.gmra.mxu0 %v493_v25  ;;  %984 = vmatmul.f32.vlgmr.msrb.gmra.mxu2 %v495_v26  ;;  %v586_v22 = vadd.f32 %v585_v21, %v566_v20 }
  0xcd   :  { %1008 = vmatpush.msra.mxu0 %v426_v27  ;;  %1048 = vmatpush.msra.mxu2 %v458_v28 }
  0xce   :  { %963 = vmatpush.msrb.mxu1 %v363_v29  ;;  %1003 = vmatpush.msrb.mxu3 %v395_v30  ;;  %v606_v24 = vadd.f32 %v605_v23, %v586_v22 }
  0xcf   :  { %964 = vmatmul.f32.vlgmr.msrb.gmra.mxu1 %v494_v31  ;;  %1004 = vmatmul.f32.vlgmr.msrb.gmra.mxu3 %v496_v34 }
  0xd0   :  { %1009 = vmatpush.msra.mxu0 %v425_v35  ;;  %1028 = vmatpush.msra.mxu1 %v442_v36  ;;  %v645_v27 = vpop.f32.mrf.mxu1 }
  0xd1   :  { %1049 = vmatpush.msra.mxu2 %v457_v39  ;;  %v625_v25 = vpop.f32.mrf.mxu0 }
  0xd2   :  { %1010 = vmatpush.msra.mxu0 %v424_v37  ;;  %1029 = vmatpush.msra.mxu1 %v441_v38  ;;  %v626_v26 = vadd.f32 %v625_v25, %v606_v24  ;;  %v665_v29 = vpop.f32.mrf.mxu2 }
  0xd3   :  { %1050 = vmatpush.msra.mxu2 %v456_v32  ;;  %v685_v31 = vpop.f32.mrf.mxu3 }
  0xd4   :  { %1011 = vmatpush.msra.mxu0 %v423_v33  ;;  %1030 = vmatpush.msra.mxu1 %v440_v40  ;;  %v646_v28 = vadd.f32 %v645_v27, %v626_v26 }
  0xd5   :  { %1051 = vmatpush.msra.mxu2 %v455_v41 }
  0xd6   :  { %1012 = vmatpush.msra.mxu0 %v422_v42  ;;  %1031 = vmatpush.msra.mxu1 %v439_v43  ;;  %v666_v30 = vadd.f32 %v665_v29, %v646_v28 }
  0xd7   :  { %1052 = vmatpush.msra.mxu2 %v454_v44 }
  0xd8   :  { %1013 = vmatpush.msra.mxu0 %v421_v45  ;;  %1032 = vmatpush.msra.mxu1 %v438_v46  ;;  %v686_v35 = vadd.f32 %v685_v31, %v666_v30 }
  0xd9   :  { %1053 = vmatpush.msra.mxu2 %v453_v47 }
  0xda   :  { %1014 = vmatpush.msra.mxu0 %v420_v48  ;;  %1033 = vmatpush.msra.mxu1 %v437_v49 }
  0xdb   :  { %1054 = vmatpush.msra.mxu2 %v452_v50 }
  0xdc   :  { %1015 = vmatpush.msra.mxu0 %v419_v51  ;;  %1034 = vmatpush.msra.mxu1 %v436_v52 }
  0xdd   :  { %1055 = vmatpush.msra.mxu2 %v451_v53 }
  0xde   :  { %1016 = vmatpush.msra.mxu0 %v418_v54  ;;  %1035 = vmatpush.msra.mxu1 %v435_v55 }
  0xdf   :  { %1056 = vmatpush.msra.mxu2 %v450_v56 }
  0xe0   :  { %1017 = vmatpush.msra.mxu0 %v417_v57  ;;  %1036 = vmatpush.msra.mxu1 %v434_v58 }
  0xe1   :  { %1057 = vmatpush.msra.mxu2 %v449_v59 }
  0xe2   :  { %1018 = vmatpush.msra.mxu0 %v416_v60  ;;  %1037 = vmatpush.msra.mxu1 %v433_v61 }
  0xe3   :  { %1058 = vmatpush.msra.mxu2 %v448_v62  ;;  %v705_v34 = vpop.f32.mrf.mxu0 }
  0xe4   :  { %1019 = vmatpush.msra.mxu0 %v415_v63  ;;  %1038 = vmatpush.msra.mxu1 %v432_v0  ;;  %v706_v36 = vadd.f32 %v705_v34, %v686_v35 }
  0xe5   :  { %1059 = vmatpush.msra.mxu2 %v447_v1 }
  0xe6   :  { %1020 = vmatpush.msra.mxu0 %v414_v2  ;;  %1039 = vmatpush.msra.mxu1 %v431_v3  ;;  %v725_v39 = vpop.f32.mrf.mxu1 }
  0xe7   :  { %1060 = vmatpush.msra.mxu2 %v446_v4  ;;  %v726_v38 = vadd.f32 %v725_v39, %v706_v36 }
  0xe8   :  { %1021 = vmatpush.msra.mxu0 %v413_v5  ;;  %1040 = vmatpush.msra.mxu1 %v430_v6  ;;  %v1086_v5 = vld [vmem:[%s2497_s2] ss:$0 sm:$0xff] }
  0xe9   :  { %1061 = vmatpush.msra.mxu2 %v445_v7  ;;  %v745_v37 = vpop.f32.mrf.mxu2 }
  0xea   :  { %1022 = vmatpush.msra.mxu0 %v412_v8  ;;  %1041 = vmatpush.msra.mxu1 %v429_v9  ;;  %v746_v32 = vadd.f32 %v745_v37, %v726_v38  ;;  %v1087_v8 = vld [vmem:[%s2498_s3] ss:$0 sm:$0xff] }
  0xeb   :  { %1062 = vmatpush.msra.mxu2 %v444_v10  ;;  %v1078_v10 = vld [vmem:[%s2499_s4] sm:$0x3] }
  0xec   :  { %1023 = vmatpush.msra.mxu0 %v411_v11  ;;  %1042 = vmatpush.msra.mxu1 %v428_v12  ;;  %v765_v33 = vpop.f32.mrf.mxu3 }
  0xed   :  { %1063 = vmatpush.msra.mxu2 %v443_v13  ;;  %1024 = vmatmul.f32.vlgmr.msra.gmra.mxu0 %v498_v14  ;;  %v766_v41 = vadd.f32 %v765_v33, %v746_v32 }
  0xee   :  { %1064 = vmatmul.f32.vlgmr.msra.gmra.mxu2 %v500_v15  ;;  %1043 = vmatpush.msra.mxu1 %v427_v16 }
  0xef   :  { %1044 = vmatmul.f32.vlgmr.msra.gmra.mxu1 %v499_v17 }
 0x105   :  { %v785_v40 = vpop.f32.mrf.mxu0 }
 0x106   :  { %v786_v42 = vadd.f32 %v785_v40, %v766_v41 }
 0x108   :  { %v805_v43 = vpop.f32.mrf.mxu1 }
 0x109   :  { %v806_v45 = vadd.f32 %v805_v43, %v786_v42 }
 0x10b   :  { %v825_v44 = vpop.f32.mrf.mxu2 }
 0x10c   :  { %v826_v46 = vadd.f32 %v825_v44, %v806_v45 }
 0x10e   :  { %v845_v47 = vpop.f32.mrf.mxu3 }
 0x10f   :  { %v846_v49 = vadd.f32 %v845_v47, %v826_v46 }
 0x127   :  { %v865_v48 = vpop.f32.mrf.mxu0 }
 0x128   :  { %v866_v50 = vadd.f32 %v865_v48, %v846_v49 }
 0x12a   :  { %v885_v51 = vpop.f32.mrf.mxu1 }
 0x12b   :  { %v886_v53 = vadd.f32 %v885_v51, %v866_v50 }
 0x12d   :  { %v905_v52 = vpop.f32.mrf.mxu2 }
 0x12e   :  { %v906_v54 = vadd.f32 %v905_v52, %v886_v53 }
 0x130   :  { %v925_v55 = vpop.f32.mrf.mxu3 }
 0x131   :  { %v926_v57 = vadd.f32 %v925_v55, %v906_v54 }
 0x149   :  { %v945_v56 = vpop.f32.mrf.mxu0 }
 0x14a   :  { %v946_v58 = vadd.f32 %v945_v56, %v926_v57 }
 0x14c   :  { %v965_v59 = vpop.f32.mrf.mxu1 }
 0x14d   :  { %v966_v61 = vadd.f32 %v965_v59, %v946_v58 }
 0x14f   :  { %v985_v60 = vpop.f32.mrf.mxu2 }
 0x150   :  { %v986_v62 = vadd.f32 %v985_v60, %v966_v61 }
 0x152   :  { %v1005_v63 = vpop.f32.mrf.mxu3 }
 0x153   :  { %v1006_v0 = vadd.f32 %v1005_v63, %v986_v62 }
 0x16a   :  { %v1025_v1 = vpop.f32.mrf.mxu0 }
 0x16b   :  { %v1026_v2 = vadd.f32 %v1025_v1, %v1006_v0 }
 0x16c   :  { %v1045_v3 = vpop.f32.mrf.mxu1 }
 0x16d   :  { %v1046_v4 = vadd.f32 %v1045_v3, %v1026_v2 }
 0x171   :  { %v1065_v6 = vpop.f32.mrf.mxu2 }
 0x172   :  { %v1066_v7 = vadd.f32 %v1065_v6, %v1046_v4 }
 0x174   :  { %v1072_v9 = vmul.f32 %v1086_v5, %v1066_v7 }
 0x176   :  { %v1077_v11 = vadd.f32 %v1087_v8, %v1072_v9 }
 0x178   :  { %v1079_v12 = vadd.f32 %v1078_v10, %v1077_v11 }
 0x17a   :  { %v1080_v13 = vmax.f32 %v1079_v12, 0.0 }
 0x17c   :  { %1081 = vst [vmem:[%s2500_s5] sm:$0x3] %v1080_v13 }

</bundles_post_ra>
